<compile_context>
chip_gen: v7x
topology: tpu7x:2x2x1
jax: 0.10.0
libtpu: 0.0.40
codegen_flags: <defaults>
</compile_context>

<pallas_src>
import functools
import math

import numpy as np
import jax
import jax.numpy as jnp
from jax.experimental import pallas as pl
from jax.experimental.pallas import tpu as pltpu


CFG = dict(
    img_size=32, patch=16, frames=16, tubelet=2,
    in_chans=3, embed_dim=64, depth=2, num_heads=4,
    mlp_ratio=4, num_labels=3, eps=1e-6,
)

OUT_PAD = 128  # lane-dense logits slab width (sliced to num_labels outside the kernel)


# ----------------------------------------------------------------------------
# The fused Pallas kernel: one grid step = `batch_per_step` batch elements,
# full forward (patch-embed -> depth x [attn, MLP] -> pool -> fc_norm -> head).
# ----------------------------------------------------------------------------
def _videomae_fused_kernel(
    # inputs (order must match the `inputs` list in videomae_forward)
    patches_ref, pos_ref, pw_ref,
    ln1g_ref, ln1b_ref, qkvw_ref, qkvb_ref, projw_ref, projb_ref,
    ln2g_ref, ln2b_ref, fc1w_ref, fc1b_ref, fc2w_ref, fc2b_ref,
    pool_ref, fng_ref, fnb_ref, hw_ref, hb_ref,
    # output
    out_ref,
    # scratch
    attn_scratch,
    *, depth, num_heads, n_tokens, batch_per_step, eps,
):
    f32, bf16 = jnp.float32, jnp.bfloat16
    D = pw_ref.shape[1]
    hd = D // num_heads
    N, bps = n_tokens, batch_per_step

    def mm(a, w):
        # bf16 MXU operands, f32 accumulation.
        return jnp.dot(a.astype(bf16), w.astype(bf16), preferred_element_type=f32)

    def ln(z, g, b):
        mu = jnp.mean(z, axis=-1, keepdims=True)
        zc = z - mu
        var = jnp.mean(zc * zc, axis=-1, keepdims=True)
        return zc * jax.lax.rsqrt(var + eps) * g + b

    def gelu(x):
        # tanh-approx GELU: single EUP tanh (otherwise idle slot); max err ~1e-3,
        # far inside the comparison tolerance and below the bf16-operand error.
        return 0.5 * x * (1.0 + jnp.tanh(0.7978845608028654 * (x + 0.044715 * x * x * x)))

    # Patch embed (Conv3d with kernel == stride rewritten as matmul);
    # patch bias is pre-folded into pos_ref on the wrapper side.
    xt = mm(patches_ref[...], pw_ref[...]) + pos_ref[...]                  # (bps*N, D) f32

    # Transformer blocks, statically unrolled; every intermediate stays on-chip.
    for d in range(depth):
        # ---- attention sub-block ----
        h = ln(xt, ln1g_ref[d], ln1b_ref[d])
        qkv = mm(h, qkvw_ref[d]) + qkvb_ref[d]                             # (bps*N, 3D); q pre-scaled
        for b in range(bps):
            qkv_b = qkv[b * N:(b + 1) * N]                                 # (N, 3D)
            for hh in range(num_heads):
                # TODO(synk): hd=16 lane slices — if a bundle dump shows VMEM round trips
                # here, pre-permute qkv_w so each head's q/k/v form a contiguous 48-lane group.
                q = qkv_b[:, hh * hd:(hh + 1) * hd]                        # (N, hd)
                k = qkv_b[:, D + hh * hd:D + (hh + 1) * hd]
                v = qkv_b[:, 2 * D + hh * hd:2 * D + (hh + 1) * hd]
                s = jnp.einsum("nd,md->nm", q.astype(bf16), k.astype(bf16),
                               preferred_element_type=f32)                 # (N, N)
                s = s - jnp.max(s, axis=-1, keepdims=True)
                p = jnp.exp(s)
                p = p / jnp.sum(p, axis=-1, keepdims=True)                 # exact reciprocal
                o_h = jnp.dot(p.astype(bf16), v.astype(bf16),
                              preferred_element_type=f32)                  # (N, hd)
                # Pack every head/batch output into one (bps*N, D) slab so the output
                # projection is a single K=D matmul instead of num_heads K=hd matmuls.
                attn_scratch[b * N:(b + 1) * N, hh * hd:(hh + 1) * hd] = o_h
        xt = xt + mm(attn_scratch[...], projw_ref[d]) + projb_ref[d]

        # ---- MLP sub-block ----
        h = ln(xt, ln2g_ref[d], ln2b_ref[d])
        h = gelu(mm(h, fc1w_ref[d]) + fc1b_ref[d])
        xt = xt + mm(h, fc2w_ref[d]) + fc2b_ref[d]

    # Mean-pool via block-diagonal pool matrix (MXU cross-sublane reduce) -> fc_norm ->
    # head matmul into a 128-lane padded slab (lane-dense store; sliced outside).
    pooled = jnp.dot(pool_ref[...], xt, preferred_element_type=f32)        # (bps, D)
    y = ln(pooled, fng_ref[...], fnb_ref[...])
    out_ref[0] = jnp.dot(y, hw_ref[...], preferred_element_type=f32) + hb_ref[...]


# ----------------------------------------------------------------------------
# Glue (patchify / parameter setup) in plain JAX
# ----------------------------------------------------------------------------
def patchify(x, tubelet, P):
    """(B,C,T,H,W) -> (B, N, C*tubelet*P*P); patch vector ordered (C, t, ph, pw) to match
    Conv3d weight flattening; token order (t, h, w) as in VideoMAE's proj().flatten(2)."""
    B, C, T, H, W = x.shape
    Tt, Hp, Wp = T // tubelet, H // P, W // P
    x = x.reshape(B, C, Tt, tubelet, Hp, P, Wp, P)
    x = x.transpose(0, 2, 4, 6, 1, 3, 5, 7)
    return x.reshape(B, Tt * Hp * Wp, C * tubelet * P * P)


def sincos_pos_embed(n_pos, d):
    pos = np.arange(n_pos, dtype=np.float64)[:, None]
    i = np.arange(d, dtype=np.float64)[None, :]
    angle = pos / np.power(10000.0, 2.0 * (i // 2) / d)
    pe = np.where(i % 2 == 0, np.sin(angle), np.cos(angle))
    return jnp.asarray(pe, jnp.float32)


def init_params(key, cfg):
    D = cfg["embed_dim"]
    pd = cfg["in_chans"] * cfg["tubelet"] * cfg["patch"] ** 2
    hidden = D * cfg["mlp_ratio"]
    n_tokens = (cfg["frames"] // cfg["tubelet"]) * (cfg["img_size"] // cfg["patch"]) ** 2
    keys = iter(jax.random.split(key, 128))

    def w(shape, scale=0.02):
        return (scale * jax.random.normal(next(keys), shape)).astype(jnp.float32)

    params = {
        "patch_w": w((pd, D)),
        "patch_b": jnp.zeros((D,), jnp.float32),
        "pos_embed": sincos_pos_embed(n_tokens, D),
        "blocks": [],
        "fc_norm_g": jnp.ones((D,), jnp.float32),
        "fc_norm_b": jnp.zeros((D,), jnp.float32),
        "head_w": w((D, cfg["num_labels"]), scale=math.sqrt(6.0 / (D + cfg["num_labels"]))),
        "head_b": jnp.zeros((cfg["num_labels"],), jnp.float32),
    }
    for _ in range(cfg["depth"]):
        params["blocks"].append({
            "ln1_g": jnp.ones((D,), jnp.float32), "ln1_b": jnp.zeros((D,), jnp.float32),
            "qkv_w": w((D, 3 * D)),
            # VideoMAE attention: learnable q/v bias, k bias fixed to zero.
            "qkv_b": jnp.concatenate([w((D,)), jnp.zeros((D,), jnp.float32), w((D,))]),
            "proj_w": w((D, D)), "proj_b": jnp.zeros((D,), jnp.float32),
            "ln2_g": jnp.ones((D,), jnp.float32), "ln2_b": jnp.zeros((D,), jnp.float32),
            "fc1_w": w((D, hidden)), "fc1_b": jnp.zeros((hidden,), jnp.float32),
            "fc2_w": w((hidden, D)), "fc2_b": jnp.zeros((D,), jnp.float32),
        })
    return params


def _use_batch_grid(B):
    """Per-batch 'parallel' grid only where it maps onto multiple TensorCores (v7x
    megacore, even batch); single-TC chips (v5e/v6e) fold the batch into one grid step."""
    if B < 2 or B % 2 != 0:
        return False
    try:
        kind = jax.devices()[0].device_kind.lower()
    except Exception:
        return False
    return "v7" in kind


def videomae_forward(x, params, cfg):
    B = x.shape[0]
    D = cfg["embed_dim"]
    Hh = cfg["num_heads"]
    depth = cfg["depth"]
    hidden = D * cfg["mlp_ratio"]
    L = cfg["num_labels"]
    hd = D // Hh

    patches = patchify(x, cfg["tubelet"], cfg["patch"])            # (B, N, pd) f32
    N, pd = patches.shape[1], patches.shape[2]
    # bf16 patch slab: halves the only per-step HBM read; the kernel feeds the MXU bf16 anyway.
    patches2d = patches.reshape(B * N, pd).astype(jnp.bfloat16)

    use_batch_grid = _use_batch_grid(B)
    bps = 1 if use_batch_grid else B                                # batch elements per grid step
    steps = B // bps

    bf = lambda a: a.astype(jnp.bfloat16)
    stack = lambda k: jnp.stack([blk[k] for blk in params["blocks"]])

    # Wrapper-side constant folding:
    #   * patch_b pre-added into the (tiled) pos-embed
    #   * 1/sqrt(hd) attention scale folded into the q columns of qkv_w / qkv_b (0.25: exact)
    pos_block = jnp.tile(params["pos_embed"] + params["patch_b"][None, :], (bps, 1))
    scale = hd ** -0.5
    qscale = jnp.concatenate([jnp.full((D,), scale, jnp.float32),
                              jnp.ones((2 * D,), jnp.float32)])
    qkv_w = stack("qkv_w") * qscale[None, None, :]
    qkv_b = stack("qkv_b") * qscale[None, :]

    # Lane-dense padded head (logits occupy the first L of 128 lanes).
    head_w_pad = jnp.zeros((D, OUT_PAD), jnp.float32).at[:, :L].set(params["head_w"])
    head_b_pad = jnp.zeros((1, OUT_PAD), jnp.float32).at[0, :L].set(params["head_b"])

    # Block-diagonal mean-pool matrix: pooled = pool_mat @ x  (MXU cross-sublane reduce).
    pool_mat = jnp.kron(jnp.eye(bps, dtype=jnp.float32),
                        jnp.full((1, N), 1.0 / N, jnp.float32))     # (bps, bps*N)

    # Per-block params stacked on a leading depth axis (static-int indexed in the unrolled
    # kernel loop).  Matmul weights pre-cast to bf16 (halves weight DMA); LN/bias stay f32.
    inputs = [
        patches2d,
        pos_block,
        bf(params["patch_w"]),
        stack("ln1_g").reshape(depth, 1, D), stack("ln1_b").reshape(depth, 1, D),
        bf(qkv_w), qkv_b.reshape(depth, 1, 3 * D),
        bf(stack("proj_w")), stack("proj_b").reshape(depth, 1, D),
        stack("ln2_g").reshape(depth, 1, D), stack("ln2_b").reshape(depth, 1, D),
        bf(stack("fc1_w")), stack("fc1_b").reshape(depth, 1, hidden),
        bf(stack("fc2_w")), stack("fc2_b").reshape(depth, 1, D),
        pool_mat,
        params["fc_norm_g"].reshape(1, D), params["fc_norm_b"].reshape(1, D),
        head_w_pad, head_b_pad,
    ]

    def full_spec(a):
        if a.ndim == 2:
            return pl.BlockSpec(a.shape, lambda i: (0, 0))
        return pl.BlockSpec(a.shape, lambda i: (0, 0, 0))

    in_specs = [pl.BlockSpec((bps * N, pd), lambda i: (i, 0))]      # per-step patch slab
    in_specs += [full_spec(a) for a in inputs[1:]]                   # weights: VMEM-resident

    kern = functools.partial(
        _videomae_fused_kernel,
        depth=depth, num_heads=Hh, n_tokens=N, batch_per_step=bps, eps=cfg["eps"])

    out = pl.pallas_call(
        kern,
        out_shape=jax.ShapeDtypeStruct((steps, bps, OUT_PAD), jnp.float32),
        grid=(steps,),
        in_specs=in_specs,
        out_specs=pl.BlockSpec((1, bps, OUT_PAD), lambda i: (i, 0, 0)),
        scratch_shapes=[pltpu.VMEM((bps * N, D), jnp.float32)],      # packed all-head attn out
        compiler_params=pltpu.CompilerParams(
            dimension_semantics=("parallel",) if use_batch_grid else ("arbitrary",)),
    )(*inputs)
    return out.reshape(B, OUT_PAD)[:, :L]


# ----------------------------------------------------------------------------
# Pure-JAX f32 reference (exact erf GELU, exact softmax) for the sanity check
# ----------------------------------------------------------------------------
def reference_forward(x, params, cfg):
    B = x.shape[0]
    D = cfg["embed_dim"]
    Hh = cfg["num_heads"]
    hd = D // Hh
    eps = cfg["eps"]

    def ln(z, g, b):
        mu = z.mean(-1, keepdims=True)
        var = ((z - mu) ** 2).mean(-1, keepdims=True)
        return (z - mu) / jnp.sqrt(var + eps) * g + b

    patches = patchify(x, cfg["tubelet"], cfg["patch"])
    N = patches.shape[1]
    xt = (patches.reshape(B * N, -1) @ params["patch_w"] + params["patch_b"]).reshape(B, N, D)
    xt = xt + params["pos_embed"][None]
    for blk in params["blocks"]:
        h = ln(xt, blk["ln1_g"], blk["ln1_b"]).reshape(B * N, D)
        qkv = (h @ blk["qkv_w"] + blk["qkv_b"]).reshape(B, N, 3, Hh, hd).transpose(2, 0, 3, 1, 4)
        q, k, v = qkv[0] * hd ** -0.5, qkv[1], qkv[2]
        a = jax.nn.softmax(jnp.einsum("bhnd,bhmd->bhnm", q, k), axis=-1)
        o = jnp.einsum("bhnm,bhmd->bhnd", a, v).transpose(0, 2, 1, 3).reshape(B * N, D)
        xt = xt + (o @ blk["proj_w"] + blk["proj_b"]).reshape(B, N, D)
        h = ln(xt, blk["ln2_g"], blk["ln2_b"]).reshape(B * N, D)
        h = jax.nn.gelu(h @ blk["fc1_w"] + blk["fc1_b"], approximate=False)
        h = h @ blk["fc2_w"] + blk["fc2_b"]
        xt = xt + h.reshape(B, N, D)
    pooled = xt.mean(axis=1)
    y = ln(pooled, params["fc_norm_g"], params["fc_norm_b"])
    return y @ params["head_w"] + params["head_b"]


if __name__ == "__main__":
    x = jax.random.normal(
        jax.random.PRNGKey(0),
        (2, CFG["in_chans"], CFG["frames"], CFG["img_size"], CFG["img_size"]),
        jnp.float32,
    )
    params = init_params(jax.random.PRNGKey(42), CFG)

    fwd = jax.jit(lambda xx, pp: videomae_forward(xx, pp, CFG))
    logits = jax.block_until_ready(fwd(x, params))
    assert logits.shape == (2, CFG["num_labels"]) and logits.dtype == jnp.float32

    ref = reference_forward(x, params, CFG)
    # Residual difference vs the f32 reference: bf16 MXU operands + tanh-approx GELU;
    # 3e-2 leaves ~4x headroom over the observed/expected error bound.
    np.testing.assert_allclose(np.asarray(logits), np.asarray(ref), rtol=3e-2, atol=3e-2)

    print("KERNEL_OK")
</pallas_src>

<mosaic_0001>
module attributes {stable_mosaic.version = 11 : i64} {
  func.func @_videomae_fused_kernel(%arg0: i32, %arg1: memref<64x1536xbf16, #tpu.memory_space<vmem>>, %arg2: memref<64x64xf32, #tpu.memory_space<vmem>>, %arg3: memref<1536x64xbf16, #tpu.memory_space<vmem>>, %arg4: memref<2x1x64xf32, #tpu.memory_space<vmem>>, %arg5: memref<2x1x64xf32, #tpu.memory_space<vmem>>, %arg6: memref<2x64x192xbf16, #tpu.memory_space<vmem>>, %arg7: memref<2x1x192xf32, #tpu.memory_space<vmem>>, %arg8: memref<2x64x64xbf16, #tpu.memory_space<vmem>>, %arg9: memref<2x1x64xf32, #tpu.memory_space<vmem>>, %arg10: memref<2x1x64xf32, #tpu.memory_space<vmem>>, %arg11: memref<2x1x64xf32, #tpu.memory_space<vmem>>, %arg12: memref<2x64x256xbf16, #tpu.memory_space<vmem>>, %arg13: memref<2x1x256xf32, #tpu.memory_space<vmem>>, %arg14: memref<2x256x64xbf16, #tpu.memory_space<vmem>>, %arg15: memref<2x1x64xf32, #tpu.memory_space<vmem>>, %arg16: memref<2x64xf32, #tpu.memory_space<vmem>>, %arg17: memref<1x64xf32, #tpu.memory_space<vmem>>, %arg18: memref<1x64xf32, #tpu.memory_space<vmem>>, %arg19: memref<64x128xf32, #tpu.memory_space<vmem>>, %arg20: memref<1x128xf32, #tpu.memory_space<vmem>>, %arg21: memref<1x2x128xf32, #tpu.memory_space<vmem>>, %arg22: memref<64x64xf32, #tpu.memory_space<vmem>>) attributes {dimension_semantics = [#tpu.dimension_semantics<arbitrary>], iteration_bounds = array<i64: 1>, scalar_prefetch = 0 : i64, scratch_operands = 1 : i64, tpu.core_type = #tpu.core_type<tc>, window_params = [{transform_indices = @transform_0, window_bounds = array<i64: 64, 1536>}, {pipeline_mode = #tpu.pipeline_mode<synchronous>, transform_indices = @transform_1, window_bounds = array<i64: 64, 64>}, {pipeline_mode = #tpu.pipeline_mode<synchronous>, transform_indices = @transform_2, window_bounds = array<i64: 1536, 64>}, {pipeline_mode = #tpu.pipeline_mode<synchronous>, transform_indices = @transform_3, window_bounds = array<i64: 2, 1, 64>}, {pipeline_mode = #tpu.pipeline_mode<synchronous>, transform_indices = @transform_4, window_bounds = array<i64: 2, 1, 64>}, {pipeline_mode = #tpu.pipeline_mode<synchronous>, transform_indices = @transform_5, window_bounds = array<i64: 2, 64, 192>}, {pipeline_mode = #tpu.pipeline_mode<synchronous>, transform_indices = @transform_6, window_bounds = array<i64: 2, 1, 192>}, {pipeline_mode = #tpu.pipeline_mode<synchronous>, transform_indices = @transform_7, window_bounds = array<i64: 2, 64, 64>}, {pipeline_mode = #tpu.pipeline_mode<synchronous>, transform_indices = @transform_8, window_bounds = array<i64: 2, 1, 64>}, {pipeline_mode = #tpu.pipeline_mode<synchronous>, transform_indices = @transform_9, window_bounds = array<i64: 2, 1, 64>}, {pipeline_mode = #tpu.pipeline_mode<synchronous>, transform_indices = @transform_10, window_bounds = array<i64: 2, 1, 64>}, {pipeline_mode = #tpu.pipeline_mode<synchronous>, transform_indices = @transform_11, window_bounds = array<i64: 2, 64, 256>}, {pipeline_mode = #tpu.pipeline_mode<synchronous>, transform_indices = @transform_12, window_bounds = array<i64: 2, 1, 256>}, {pipeline_mode = #tpu.pipeline_mode<synchronous>, transform_indices = @transform_13, window_bounds = array<i64: 2, 256, 64>}, {pipeline_mode = #tpu.pipeline_mode<synchronous>, transform_indices = @transform_14, window_bounds = array<i64: 2, 1, 64>}, {pipeline_mode = #tpu.pipeline_mode<synchronous>, transform_indices = @transform_15, window_bounds = array<i64: 2, 64>}, {pipeline_mode = #tpu.pipeline_mode<synchronous>, transform_indices = @transform_16, window_bounds = array<i64: 1, 64>}, {pipeline_mode = #tpu.pipeline_mode<synchronous>, transform_indices = @transform_17, window_bounds = array<i64: 1, 64>}, {pipeline_mode = #tpu.pipeline_mode<synchronous>, transform_indices = @transform_18, window_bounds = array<i64: 64, 128>}, {pipeline_mode = #tpu.pipeline_mode<synchronous>, transform_indices = @transform_19, window_bounds = array<i64: 1, 128>}, {transform_indices = @transform_20, window_bounds = array<i64: 1, 2, 128>}]} {
    %c0 = arith.constant 0 : index
    %c0_0 = arith.constant 0 : index
    %0 = vector.load %arg1[%c0, %c0_0] : memref<64x1536xbf16, #tpu.memory_space<vmem>>, vector<64x1536xbf16>
    %c0_1 = arith.constant 0 : index
    %c0_2 = arith.constant 0 : index
    %1 = vector.load %arg3[%c0_1, %c0_2] : memref<1536x64xbf16, #tpu.memory_space<vmem>>, vector<1536x64xbf16>
    %cst = arith.constant dense<0.000000e+00> : vector<64x64xf32>
    %2 = tpu.matmul %0, %1, %cst {dimension_numbers = #tpu.dot_dimension_numbers<[1], [0], [0], [1], [0, 0, 1, 1], [], []>} : vector<64x1536xbf16>, vector<1536x64xbf16>, vector<64x64xf32> -> vector<64x64xf32>
    %c0_3 = arith.constant 0 : index
    %c0_4 = arith.constant 0 : index
    %3 = vector.load %arg2[%c0_3, %c0_4] : memref<64x64xf32, #tpu.memory_space<vmem>>, vector<64x64xf32>
    %4 = arith.addf %2, %3 : vector<64x64xf32>
    %c0_5 = arith.constant 0 : index
    %c0_6 = arith.constant 0 : index
    %c0_7 = arith.constant 0 : index
    %5 = vector.load %arg4[%c0_5, %c0_6, %c0_7] : memref<2x1x64xf32, #tpu.memory_space<vmem>>, vector<1x1x64xf32>
    %6 = vector.shape_cast %5 : vector<1x1x64xf32> to vector<1x64xf32>
    %c0_8 = arith.constant 0 : index
    %c0_9 = arith.constant 0 : index
    %c0_10 = arith.constant 0 : index
    %7 = vector.load %arg5[%c0_8, %c0_9, %c0_10] : memref<2x1x64xf32, #tpu.memory_space<vmem>>, vector<1x1x64xf32>
    %8 = vector.shape_cast %7 : vector<1x1x64xf32> to vector<1x64xf32>
    %cst_11 = arith.constant dense<0.000000e+00> : vector<64xf32>
    %9 = vector.multi_reduction <add>, %4, %cst_11 [1] : vector<64x64xf32> to vector<64xf32>
    %10 = vector.shape_cast %9 : vector<64xf32> to vector<64x1xf32>
    %cst_12 = arith.constant 6.400000e+01 : f32
    %11 = vector.broadcast %cst_12 : f32 to vector<64x1xf32>
    %12 = arith.divf %10, %11 : vector<64x1xf32>
    %13 = vector.broadcast %12 : vector<64x1xf32> to vector<64x64xf32>
    %14 = arith.subf %4, %13 : vector<64x64xf32>
    %15 = arith.mulf %14, %14 : vector<64x64xf32>
    %cst_13 = arith.constant dense<0.000000e+00> : vector<64xf32>
    %16 = vector.multi_reduction <add>, %15, %cst_13 [1] : vector<64x64xf32> to vector<64xf32>
    %17 = vector.shape_cast %16 : vector<64xf32> to vector<64x1xf32>
    %cst_14 = arith.constant 6.400000e+01 : f32
    %18 = vector.broadcast %cst_14 : f32 to vector<64x1xf32>
    %19 = arith.divf %17, %18 : vector<64x1xf32>
    %cst_15 = arith.constant 9.99999997E-7 : f32
    %20 = vector.broadcast %cst_15 : f32 to vector<64x1xf32>
    %21 = arith.addf %19, %20 : vector<64x1xf32>
    %22 = math.rsqrt %21 : vector<64x1xf32>
    %23 = vector.broadcast %22 : vector<64x1xf32> to vector<64x64xf32>
    %24 = arith.mulf %14, %23 : vector<64x64xf32>
    %25 = vector.broadcast %6 : vector<1x64xf32> to vector<64x64xf32>
    %26 = arith.mulf %24, %25 : vector<64x64xf32>
    %27 = vector.broadcast %8 : vector<1x64xf32> to vector<64x64xf32>
    %28 = arith.addf %26, %27 : vector<64x64xf32>
    %c0_16 = arith.constant 0 : index
    %c0_17 = arith.constant 0 : index
    %c0_18 = arith.constant 0 : index
    %29 = vector.load %arg6[%c0_16, %c0_17, %c0_18] : memref<2x64x192xbf16, #tpu.memory_space<vmem>>, vector<1x64x192xbf16>
    %30 = vector.shape_cast %29 : vector<1x64x192xbf16> to vector<64x192xbf16>
    %31 = arith.truncf %28 : vector<64x64xf32> to vector<64x64xbf16>
    %cst_19 = arith.constant dense<0.000000e+00> : vector<64x192xf32>
    %32 = tpu.matmul %31, %30, %cst_19 {dimension_numbers = #tpu.dot_dimension_numbers<[1], [0], [0], [1], [0, 0, 1, 1], [], []>} : vector<64x64xbf16>, vector<64x192xbf16>, vector<64x192xf32> -> vector<64x192xf32>
    %c0_20 = arith.constant 0 : index
    %c0_21 = arith.constant 0 : index
    %c0_22 = arith.constant 0 : index
    %33 = vector.load %arg7[%c0_20, %c0_21, %c0_22] : memref<2x1x192xf32, #tpu.memory_space<vmem>>, vector<1x1x192xf32>
    %34 = vector.shape_cast %33 : vector<1x1x192xf32> to vector<1x192xf32>
    %35 = vector.broadcast %34 : vector<1x192xf32> to vector<64x192xf32>
    %36 = arith.addf %32, %35 : vector<64x192xf32>
    %37 = vector.extract_strided_slice %36 {offsets = [0, 0], sizes = [32, 192], strides = [1, 1]} : vector<64x192xf32> to vector<32x192xf32>
    %38 = vector.extract_strided_slice %37 {offsets = [0, 0], sizes = [32, 16], strides = [1, 1]} : vector<32x192xf32> to vector<32x16xf32>
    %39 = vector.extract_strided_slice %37 {offsets = [0, 64], sizes = [32, 16], strides = [1, 1]} : vector<32x192xf32> to vector<32x16xf32>
    %40 = vector.extract_strided_slice %37 {offsets = [0, 128], sizes = [32, 16], strides = [1, 1]} : vector<32x192xf32> to vector<32x16xf32>
    %41 = arith.truncf %38 : vector<32x16xf32> to vector<32x16xbf16>
    %42 = arith.truncf %39 : vector<32x16xf32> to vector<32x16xbf16>
    "tpu.trace_start"() <{level = 10 : i32, message = "nd,md->nm"}> : () -> ()
    %cst_23 = arith.constant dense<0.000000e+00> : vector<32x32xf32>
    %43 = tpu.matmul %41, %42, %cst_23 {dimension_numbers = #tpu.dot_dimension_numbers<[1], [1], [0], [0], [0, 0, 1, 0], [], []>} : vector<32x16xbf16>, vector<32x16xbf16>, vector<32x32xf32> -> vector<32x32xf32>
    "tpu.trace_stop"() : () -> ()
    %cst_24 = arith.constant dense<0xFF800000> : vector<32xf32>
    %44 = vector.multi_reduction <maximumf>, %43, %cst_24 [1] : vector<32x32xf32> to vector<32xf32>
    %45 = vector.shape_cast %44 : vector<32xf32> to vector<32x1xf32>
    %46 = vector.broadcast %45 : vector<32x1xf32> to vector<32x32xf32>
    %47 = arith.subf %43, %46 : vector<32x32xf32>
    %48 = math.exp %47 : vector<32x32xf32>
    %cst_25 = arith.constant dense<0.000000e+00> : vector<32xf32>
    %49 = vector.multi_reduction <add>, %48, %cst_25 [1] : vector<32x32xf32> to vector<32xf32>
    %50 = vector.shape_cast %49 : vector<32xf32> to vector<32x1xf32>
    %51 = vector.broadcast %50 : vector<32x1xf32> to vector<32x32xf32>
    %52 = arith.divf %48, %51 : vector<32x32xf32>
    %53 = arith.truncf %52 : vector<32x32xf32> to vector<32x32xbf16>
    %54 = arith.truncf %40 : vector<32x16xf32> to vector<32x16xbf16>
    %cst_26 = arith.constant dense<0.000000e+00> : vector<32x16xf32>
    %55 = tpu.matmul %53, %54, %cst_26 {dimension_numbers = #tpu.dot_dimension_numbers<[1], [0], [0], [1], [0, 0, 1, 1], [], []>} : vector<32x32xbf16>, vector<32x16xbf16>, vector<32x16xf32> -> vector<32x16xf32>
    %c0_27 = arith.constant 0 : index
    %c0_28 = arith.constant 0 : index
    %56 = vector.load %arg22[%c0_27, %c0_28] : memref<64x64xf32, #tpu.memory_space<vmem>>, vector<32x16xf32>
    tpu.vector_store %arg22[%c0_27, %c0_28], %55 {strides = array<i32>} : memref<64x64xf32, #tpu.memory_space<vmem>>, vector<32x16xf32>,
    %57 = vector.extract_strided_slice %37 {offsets = [0, 16], sizes = [32, 16], strides = [1, 1]} : vector<32x192xf32> to vector<32x16xf32>
    %58 = vector.extract_strided_slice %37 {offsets = [0, 80], sizes = [32, 16], strides = [1, 1]} : vector<32x192xf32> to vector<32x16xf32>
    %59 = vector.extract_strided_slice %37 {offsets = [0, 144], sizes = [32, 16], strides = [1, 1]} : vector<32x192xf32> to vector<32x16xf32>
    %60 = arith.truncf %57 : vector<32x16xf32> to vector<32x16xbf16>
    %61 = arith.truncf %58 : vector<32x16xf32> to vector<32x16xbf16>
    "tpu.trace_start"() <{level = 10 : i32, message = "nd,md->nm"}> : () -> ()
    %cst_29 = arith.constant dense<0.000000e+00> : vector<32x32xf32>
    %62 = tpu.matmul %60, %61, %cst_29 {dimension_numbers = #tpu.dot_dimension_numbers<[1], [1], [0], [0], [0, 0, 1, 0], [], []>} : vector<32x16xbf16>, vector<32x16xbf16>, vector<32x32xf32> -> vector<32x32xf32>
    "tpu.trace_stop"() : () -> ()
    %cst_30 = arith.constant dense<0xFF800000> : vector<32xf32>
    %63 = vector.multi_reduction <maximumf>, %62, %cst_30 [1] : vector<32x32xf32> to vector<32xf32>
    %64 = vector.shape_cast %63 : vector<32xf32> to vector<32x1xf32>
    %65 = vector.broadcast %64 : vector<32x1xf32> to vector<32x32xf32>
    %66 = arith.subf %62, %65 : vector<32x32xf32>
    %67 = math.exp %66 : vector<32x32xf32>
    %cst_31 = arith.constant dense<0.000000e+00> : vector<32xf32>
    %68 = vector.multi_reduction <add>, %67, %cst_31 [1] : vector<32x32xf32> to vector<32xf32>
    %69 = vector.shape_cast %68 : vector<32xf32> to vector<32x1xf32>
    %70 = vector.broadcast %69 : vector<32x1xf32> to vector<32x32xf32>
    %71 = arith.divf %67, %70 : vector<32x32xf32>
    %72 = arith.truncf %71 : vector<32x32xf32> to vector<32x32xbf16>
    %73 = arith.truncf %59 : vector<32x16xf32> to vector<32x16xbf16>
    %cst_32 = arith.constant dense<0.000000e+00> : vector<32x16xf32>
    %74 = tpu.matmul %72, %73, %cst_32 {dimension_numbers = #tpu.dot_dimension_numbers<[1], [0], [0], [1], [0, 0, 1, 1], [], []>} : vector<32x32xbf16>, vector<32x16xbf16>, vector<32x16xf32> -> vector<32x16xf32>
    %c0_33 = arith.constant 0 : index
    %c16 = arith.constant 16 : index
    %75 = vector.load %arg22[%c0_33, %c16] : memref<64x64xf32, #tpu.memory_space<vmem>>, vector<32x16xf32>
    tpu.vector_store %arg22[%c0_33, %c16], %74 {strides = array<i32>} : memref<64x64xf32, #tpu.memory_space<vmem>>, vector<32x16xf32>,
    %76 = vector.extract_strided_slice %37 {offsets = [0, 32], sizes = [32, 16], strides = [1, 1]} : vector<32x192xf32> to vector<32x16xf32>
    %77 = vector.extract_strided_slice %37 {offsets = [0, 96], sizes = [32, 16], strides = [1, 1]} : vector<32x192xf32> to vector<32x16xf32>
    %78 = vector.extract_strided_slice %37 {offsets = [0, 160], sizes = [32, 16], strides = [1, 1]} : vector<32x192xf32> to vector<32x16xf32>
    %79 = arith.truncf %76 : vector<32x16xf32> to vector<32x16xbf16>
    %80 = arith.truncf %77 : vector<32x16xf32> to vector<32x16xbf16>
    "tpu.trace_start"() <{level = 10 : i32, message = "nd,md->nm"}> : () -> ()
    %cst_34 = arith.constant dense<0.000000e+00> : vector<32x32xf32>
    %81 = tpu.matmul %79, %80, %cst_34 {dimension_numbers = #tpu.dot_dimension_numbers<[1], [1], [0], [0], [0, 0, 1, 0], [], []>} : vector<32x16xbf16>, vector<32x16xbf16>, vector<32x32xf32> -> vector<32x32xf32>
    "tpu.trace_stop"() : () -> ()
    %cst_35 = arith.constant dense<0xFF800000> : vector<32xf32>
    %82 = vector.multi_reduction <maximumf>, %81, %cst_35 [1] : vector<32x32xf32> to vector<32xf32>
    %83 = vector.shape_cast %82 : vector<32xf32> to vector<32x1xf32>
    %84 = vector.broadcast %83 : vector<32x1xf32> to vector<32x32xf32>
    %85 = arith.subf %81, %84 : vector<32x32xf32>
    %86 = math.exp %85 : vector<32x32xf32>
    %cst_36 = arith.constant dense<0.000000e+00> : vector<32xf32>
    %87 = vector.multi_reduction <add>, %86, %cst_36 [1] : vector<32x32xf32> to vector<32xf32>
    %88 = vector.shape_cast %87 : vector<32xf32> to vector<32x1xf32>
    %89 = vector.broadcast %88 : vector<32x1xf32> to vector<32x32xf32>
    %90 = arith.divf %86, %89 : vector<32x32xf32>
    %91 = arith.truncf %90 : vector<32x32xf32> to vector<32x32xbf16>
    %92 = arith.truncf %78 : vector<32x16xf32> to vector<32x16xbf16>
    %cst_37 = arith.constant dense<0.000000e+00> : vector<32x16xf32>
    %93 = tpu.matmul %91, %92, %cst_37 {dimension_numbers = #tpu.dot_dimension_numbers<[1], [0], [0], [1], [0, 0, 1, 1], [], []>} : vector<32x32xbf16>, vector<32x16xbf16>, vector<32x16xf32> -> vector<32x16xf32>
    %c0_38 = arith.constant 0 : index
    %c32 = arith.constant 32 : index
    %94 = vector.load %arg22[%c0_38, %c32] : memref<64x64xf32, #tpu.memory_space<vmem>>, vector<32x16xf32>
    tpu.vector_store %arg22[%c0_38, %c32], %93 {strides = array<i32>} : memref<64x64xf32, #tpu.memory_space<vmem>>, vector<32x16xf32>,
    %95 = vector.extract_strided_slice %37 {offsets = [0, 48], sizes = [32, 16], strides = [1, 1]} : vector<32x192xf32> to vector<32x16xf32>
    %96 = vector.extract_strided_slice %37 {offsets = [0, 112], sizes = [32, 16], strides = [1, 1]} : vector<32x192xf32> to vector<32x16xf32>
    %97 = vector.extract_strided_slice %37 {offsets = [0, 176], sizes = [32, 16], strides = [1, 1]} : vector<32x192xf32> to vector<32x16xf32>
    %98 = arith.truncf %95 : vector<32x16xf32> to vector<32x16xbf16>
    %99 = arith.truncf %96 : vector<32x16xf32> to vector<32x16xbf16>
    "tpu.trace_start"() <{level = 10 : i32, message = "nd,md->nm"}> : () -> ()
    %cst_39 = arith.constant dense<0.000000e+00> : vector<32x32xf32>
    %100 = tpu.matmul %98, %99, %cst_39 {dimension_numbers = #tpu.dot_dimension_numbers<[1], [1], [0], [0], [0, 0, 1, 0], [], []>} : vector<32x16xbf16>, vector<32x16xbf16>, vector<32x32xf32> -> vector<32x32xf32>
    "tpu.trace_stop"() : () -> ()
    %cst_40 = arith.constant dense<0xFF800000> : vector<32xf32>
    %101 = vector.multi_reduction <maximumf>, %100, %cst_40 [1] : vector<32x32xf32> to vector<32xf32>
    %102 = vector.shape_cast %101 : vector<32xf32> to vector<32x1xf32>
    %103 = vector.broadcast %102 : vector<32x1xf32> to vector<32x32xf32>
    %104 = arith.subf %100, %103 : vector<32x32xf32>
    %105 = math.exp %104 : vector<32x32xf32>
    %cst_41 = arith.constant dense<0.000000e+00> : vector<32xf32>
    %106 = vector.multi_reduction <add>, %105, %cst_41 [1] : vector<32x32xf32> to vector<32xf32>
    %107 = vector.shape_cast %106 : vector<32xf32> to vector<32x1xf32>
    %108 = vector.broadcast %107 : vector<32x1xf32> to vector<32x32xf32>
    %109 = arith.divf %105, %108 : vector<32x32xf32>
    %110 = arith.truncf %109 : vector<32x32xf32> to vector<32x32xbf16>
    %111 = arith.truncf %97 : vector<32x16xf32> to vector<32x16xbf16>
    %cst_42 = arith.constant dense<0.000000e+00> : vector<32x16xf32>
    %112 = tpu.matmul %110, %111, %cst_42 {dimension_numbers = #tpu.dot_dimension_numbers<[1], [0], [0], [1], [0, 0, 1, 1], [], []>} : vector<32x32xbf16>, vector<32x16xbf16>, vector<32x16xf32> -> vector<32x16xf32>
    %c0_43 = arith.constant 0 : index
    %c48 = arith.constant 48 : index
    %113 = vector.load %arg22[%c0_43, %c48] : memref<64x64xf32, #tpu.memory_space<vmem>>, vector<32x16xf32>
    tpu.vector_store %arg22[%c0_43, %c48], %112 {strides = array<i32>} : memref<64x64xf32, #tpu.memory_space<vmem>>, vector<32x16xf32>,
    %114 = vector.extract_strided_slice %36 {offsets = [32, 0], sizes = [32, 192], strides = [1, 1]} : vector<64x192xf32> to vector<32x192xf32>
    %115 = vector.extract_strided_slice %114 {offsets = [0, 0], sizes = [32, 16], strides = [1, 1]} : vector<32x192xf32> to vector<32x16xf32>
    %116 = vector.extract_strided_slice %114 {offsets = [0, 64], sizes = [32, 16], strides = [1, 1]} : vector<32x192xf32> to vector<32x16xf32>
    %117 = vector.extract_strided_slice %114 {offsets = [0, 128], sizes = [32, 16], strides = [1, 1]} : vector<32x192xf32> to vector<32x16xf32>
    %118 = arith.truncf %115 : vector<32x16xf32> to vector<32x16xbf16>
    %119 = arith.truncf %116 : vector<32x16xf32> to vector<32x16xbf16>
    "tpu.trace_start"() <{level = 10 : i32, message = "nd,md->nm"}> : () -> ()
    %cst_44 = arith.constant dense<0.000000e+00> : vector<32x32xf32>
    %120 = tpu.matmul %118, %119, %cst_44 {dimension_numbers = #tpu.dot_dimension_numbers<[1], [1], [0], [0], [0, 0, 1, 0], [], []>} : vector<32x16xbf16>, vector<32x16xbf16>, vector<32x32xf32> -> vector<32x32xf32>
    "tpu.trace_stop"() : () -> ()
    %cst_45 = arith.constant dense<0xFF800000> : vector<32xf32>
    %121 = vector.multi_reduction <maximumf>, %120, %cst_45 [1] : vector<32x32xf32> to vector<32xf32>
    %122 = vector.shape_cast %121 : vector<32xf32> to vector<32x1xf32>
    %123 = vector.broadcast %122 : vector<32x1xf32> to vector<32x32xf32>
    %124 = arith.subf %120, %123 : vector<32x32xf32>
    %125 = math.exp %124 : vector<32x32xf32>
    %cst_46 = arith.constant dense<0.000000e+00> : vector<32xf32>
    %126 = vector.multi_reduction <add>, %125, %cst_46 [1] : vector<32x32xf32> to vector<32xf32>
    %127 = vector.shape_cast %126 : vector<32xf32> to vector<32x1xf32>
    %128 = vector.broadcast %127 : vector<32x1xf32> to vector<32x32xf32>
    %129 = arith.divf %125, %128 : vector<32x32xf32>
    %130 = arith.truncf %129 : vector<32x32xf32> to vector<32x32xbf16>
    %131 = arith.truncf %117 : vector<32x16xf32> to vector<32x16xbf16>
    %cst_47 = arith.constant dense<0.000000e+00> : vector<32x16xf32>
    %132 = tpu.matmul %130, %131, %cst_47 {dimension_numbers = #tpu.dot_dimension_numbers<[1], [0], [0], [1], [0, 0, 1, 1], [], []>} : vector<32x32xbf16>, vector<32x16xbf16>, vector<32x16xf32> -> vector<32x16xf32>
    %c32_48 = arith.constant 32 : index
    %c0_49 = arith.constant 0 : index
    %133 = vector.load %arg22[%c32_48, %c0_49] : memref<64x64xf32, #tpu.memory_space<vmem>>, vector<32x16xf32>
    tpu.vector_store %arg22[%c32_48, %c0_49], %132 {strides = array<i32>} : memref<64x64xf32, #tpu.memory_space<vmem>>, vector<32x16xf32>,
    %134 = vector.extract_strided_slice %114 {offsets = [0, 16], sizes = [32, 16], strides = [1, 1]} : vector<32x192xf32> to vector<32x16xf32>
    %135 = vector.extract_strided_slice %114 {offsets = [0, 80], sizes = [32, 16], strides = [1, 1]} : vector<32x192xf32> to vector<32x16xf32>
    %136 = vector.extract_strided_slice %114 {offsets = [0, 144], sizes = [32, 16], strides = [1, 1]} : vector<32x192xf32> to vector<32x16xf32>
    %137 = arith.truncf %134 : vector<32x16xf32> to vector<32x16xbf16>
    %138 = arith.truncf %135 : vector<32x16xf32> to vector<32x16xbf16>
    "tpu.trace_start"() <{level = 10 : i32, message = "nd,md->nm"}> : () -> ()
    %cst_50 = arith.constant dense<0.000000e+00> : vector<32x32xf32>
    %139 = tpu.matmul %137, %138, %cst_50 {dimension_numbers = #tpu.dot_dimension_numbers<[1], [1], [0], [0], [0, 0, 1, 0], [], []>} : vector<32x16xbf16>, vector<32x16xbf16>, vector<32x32xf32> -> vector<32x32xf32>
    "tpu.trace_stop"() : () -> ()
    %cst_51 = arith.constant dense<0xFF800000> : vector<32xf32>
    %140 = vector.multi_reduction <maximumf>, %139, %cst_51 [1] : vector<32x32xf32> to vector<32xf32>
    %141 = vector.shape_cast %140 : vector<32xf32> to vector<32x1xf32>
    %142 = vector.broadcast %141 : vector<32x1xf32> to vector<32x32xf32>
    %143 = arith.subf %139, %142 : vector<32x32xf32>
    %144 = math.exp %143 : vector<32x32xf32>
    %cst_52 = arith.constant dense<0.000000e+00> : vector<32xf32>
    %145 = vector.multi_reduction <add>, %144, %cst_52 [1] : vector<32x32xf32> to vector<32xf32>
    %146 = vector.shape_cast %145 : vector<32xf32> to vector<32x1xf32>
    %147 = vector.broadcast %146 : vector<32x1xf32> to vector<32x32xf32>
    %148 = arith.divf %144, %147 : vector<32x32xf32>
    %149 = arith.truncf %148 : vector<32x32xf32> to vector<32x32xbf16>
    %150 = arith.truncf %136 : vector<32x16xf32> to vector<32x16xbf16>
    %cst_53 = arith.constant dense<0.000000e+00> : vector<32x16xf32>
    %151 = tpu.matmul %149, %150, %cst_53 {dimension_numbers = #tpu.dot_dimension_numbers<[1], [0], [0], [1], [0, 0, 1, 1], [], []>} : vector<32x32xbf16>, vector<32x16xbf16>, vector<32x16xf32> -> vector<32x16xf32>
    %c32_54 = arith.constant 32 : index
    %c16_55 = arith.constant 16 : index
    %152 = vector.load %arg22[%c32_54, %c16_55] : memref<64x64xf32, #tpu.memory_space<vmem>>, vector<32x16xf32>
    tpu.vector_store %arg22[%c32_54, %c16_55], %151 {strides = array<i32>} : memref<64x64xf32, #tpu.memory_space<vmem>>, vector<32x16xf32>,
    %153 = vector.extract_strided_slice %114 {offsets = [0, 32], sizes = [32, 16], strides = [1, 1]} : vector<32x192xf32> to vector<32x16xf32>
    %154 = vector.extract_strided_slice %114 {offsets = [0, 96], sizes = [32, 16], strides = [1, 1]} : vector<32x192xf32> to vector<32x16xf32>
    %155 = vector.extract_strided_slice %114 {offsets = [0, 160], sizes = [32, 16], strides = [1, 1]} : vector<32x192xf32> to vector<32x16xf32>
    %156 = arith.truncf %153 : vector<32x16xf32> to vector<32x16xbf16>
    %157 = arith.truncf %154 : vector<32x16xf32> to vector<32x16xbf16>
    "tpu.trace_start"() <{level = 10 : i32, message = "nd,md->nm"}> : () -> ()
    %cst_56 = arith.constant dense<0.000000e+00> : vector<32x32xf32>
    %158 = tpu.matmul %156, %157, %cst_56 {dimension_numbers = #tpu.dot_dimension_numbers<[1], [1], [0], [0], [0, 0, 1, 0], [], []>} : vector<32x16xbf16>, vector<32x16xbf16>, vector<32x32xf32> -> vector<32x32xf32>
    "tpu.trace_stop"() : () -> ()
    %cst_57 = arith.constant dense<0xFF800000> : vector<32xf32>
    %159 = vector.multi_reduction <maximumf>, %158, %cst_57 [1] : vector<32x32xf32> to vector<32xf32>
    %160 = vector.shape_cast %159 : vector<32xf32> to vector<32x1xf32>
    %161 = vector.broadcast %160 : vector<32x1xf32> to vector<32x32xf32>
    %162 = arith.subf %158, %161 : vector<32x32xf32>
    %163 = math.exp %162 : vector<32x32xf32>
    %cst_58 = arith.constant dense<0.000000e+00> : vector<32xf32>
    %164 = vector.multi_reduction <add>, %163, %cst_58 [1] : vector<32x32xf32> to vector<32xf32>
    %165 = vector.shape_cast %164 : vector<32xf32> to vector<32x1xf32>
    %166 = vector.broadcast %165 : vector<32x1xf32> to vector<32x32xf32>
    %167 = arith.divf %163, %166 : vector<32x32xf32>
    %168 = arith.truncf %167 : vector<32x32xf32> to vector<32x32xbf16>
    %169 = arith.truncf %155 : vector<32x16xf32> to vector<32x16xbf16>
    %cst_59 = arith.constant dense<0.000000e+00> : vector<32x16xf32>
    %170 = tpu.matmul %168, %169, %cst_59 {dimension_numbers = #tpu.dot_dimension_numbers<[1], [0], [0], [1], [0, 0, 1, 1], [], []>} : vector<32x32xbf16>, vector<32x16xbf16>, vector<32x16xf32> -> vector<32x16xf32>
    %c32_60 = arith.constant 32 : index
    %c32_61 = arith.constant 32 : index
    %171 = vector.load %arg22[%c32_60, %c32_61] : memref<64x64xf32, #tpu.memory_space<vmem>>, vector<32x16xf32>
    tpu.vector_store %arg22[%c32_60, %c32_61], %170 {strides = array<i32>} : memref<64x64xf32, #tpu.memory_space<vmem>>, vector<32x16xf32>,
    %172 = vector.extract_strided_slice %114 {offsets = [0, 48], sizes = [32, 16], strides = [1, 1]} : vector<32x192xf32> to vector<32x16xf32>
    %173 = vector.extract_strided_slice %114 {offsets = [0, 112], sizes = [32, 16], strides = [1, 1]} : vector<32x192xf32> to vector<32x16xf32>
    %174 = vector.extract_strided_slice %114 {offsets = [0, 176], sizes = [32, 16], strides = [1, 1]} : vector<32x192xf32> to vector<32x16xf32>
    %175 = arith.truncf %172 : vector<32x16xf32> to vector<32x16xbf16>
    %176 = arith.truncf %173 : vector<32x16xf32> to vector<32x16xbf16>
    "tpu.trace_start"() <{level = 10 : i32, message = "nd,md->nm"}> : () -> ()
    %cst_62 = arith.constant dense<0.000000e+00> : vector<32x32xf32>
    %177 = tpu.matmul %175, %176, %cst_62 {dimension_numbers = #tpu.dot_dimension_numbers<[1], [1], [0], [0], [0, 0, 1, 0], [], []>} : vector<32x16xbf16>, vector<32x16xbf16>, vector<32x32xf32> -> vector<32x32xf32>
    "tpu.trace_stop"() : () -> ()
    %cst_63 = arith.constant dense<0xFF800000> : vector<32xf32>
    %178 = vector.multi_reduction <maximumf>, %177, %cst_63 [1] : vector<32x32xf32> to vector<32xf32>
    %179 = vector.shape_cast %178 : vector<32xf32> to vector<32x1xf32>
    %180 = vector.broadcast %179 : vector<32x1xf32> to vector<32x32xf32>
    %181 = arith.subf %177, %180 : vector<32x32xf32>
    %182 = math.exp %181 : vector<32x32xf32>
    %cst_64 = arith.constant dense<0.000000e+00> : vector<32xf32>
    %183 = vector.multi_reduction <add>, %182, %cst_64 [1] : vector<32x32xf32> to vector<32xf32>
    %184 = vector.shape_cast %183 : vector<32xf32> to vector<32x1xf32>
    %185 = vector.broadcast %184 : vector<32x1xf32> to vector<32x32xf32>
    %186 = arith.divf %182, %185 : vector<32x32xf32>
    %187 = arith.truncf %186 : vector<32x32xf32> to vector<32x32xbf16>
    %188 = arith.truncf %174 : vector<32x16xf32> to vector<32x16xbf16>
    %cst_65 = arith.constant dense<0.000000e+00> : vector<32x16xf32>
    %189 = tpu.matmul %187, %188, %cst_65 {dimension_numbers = #tpu.dot_dimension_numbers<[1], [0], [0], [1], [0, 0, 1, 1], [], []>} : vector<32x32xbf16>, vector<32x16xbf16>, vector<32x16xf32> -> vector<32x16xf32>
    %c32_66 = arith.constant 32 : index
    %c48_67 = arith.constant 48 : index
    %190 = vector.load %arg22[%c32_66, %c48_67] : memref<64x64xf32, #tpu.memory_space<vmem>>, vector<32x16xf32>
    tpu.vector_store %arg22[%c32_66, %c48_67], %189 {strides = array<i32>} : memref<64x64xf32, #tpu.memory_space<vmem>>, vector<32x16xf32>,
    %c0_68 = arith.constant 0 : index
    %c0_69 = arith.constant 0 : index
    %191 = vector.load %arg22[%c0_68, %c0_69] : memref<64x64xf32, #tpu.memory_space<vmem>>, vector<64x64xf32>
    %c0_70 = arith.constant 0 : index
    %c0_71 = arith.constant 0 : index
    %c0_72 = arith.constant 0 : index
    %192 = vector.load %arg8[%c0_70, %c0_71, %c0_72] : memref<2x64x64xbf16, #tpu.memory_space<vmem>>, vector<1x64x64xbf16>
    %193 = vector.shape_cast %192 : vector<1x64x64xbf16> to vector<64x64xbf16>
    %194 = arith.truncf %191 : vector<64x64xf32> to vector<64x64xbf16>
    %cst_73 = arith.constant dense<0.000000e+00> : vector<64x64xf32>
    %195 = tpu.matmul %194, %193, %cst_73 {dimension_numbers = #tpu.dot_dimension_numbers<[1], [0], [0], [1], [0, 0, 1, 1], [], []>} : vector<64x64xbf16>, vector<64x64xbf16>, vector<64x64xf32> -> vector<64x64xf32>
    %196 = arith.addf %4, %195 : vector<64x64xf32>
    %c0_74 = arith.constant 0 : index
    %c0_75 = arith.constant 0 : index
    %c0_76 = arith.constant 0 : index
    %197 = vector.load %arg9[%c0_74, %c0_75, %c0_76] : memref<2x1x64xf32, #tpu.memory_space<vmem>>, vector<1x1x64xf32>
    %198 = vector.shape_cast %197 : vector<1x1x64xf32> to vector<1x64xf32>
    %199 = vector.broadcast %198 : vector<1x64xf32> to vector<64x64xf32>
    %200 = arith.addf %196, %199 : vector<64x64xf32>
    %c0_77 = arith.constant 0 : index
    %c0_78 = arith.constant 0 : index
    %c0_79 = arith.constant 0 : index
    %201 = vector.load %arg10[%c0_77, %c0_78, %c0_79] : memref<2x1x64xf32, #tpu.memory_space<vmem>>, vector<1x1x64xf32>
    %202 = vector.shape_cast %201 : vector<1x1x64xf32> to vector<1x64xf32>
    %c0_80 = arith.constant 0 : index
    %c0_81 = arith.constant 0 : index
    %c0_82 = arith.constant 0 : index
    %203 = vector.load %arg11[%c0_80, %c0_81, %c0_82] : memref<2x1x64xf32, #tpu.memory_space<vmem>>, vector<1x1x64xf32>
    %204 = vector.shape_cast %203 : vector<1x1x64xf32> to vector<1x64xf32>
    %cst_83 = arith.constant dense<0.000000e+00> : vector<64xf32>
    %205 = vector.multi_reduction <add>, %200, %cst_83 [1] : vector<64x64xf32> to vector<64xf32>
    %206 = vector.shape_cast %205 : vector<64xf32> to vector<64x1xf32>
    %cst_84 = arith.constant 6.400000e+01 : f32
    %207 = vector.broadcast %cst_84 : f32 to vector<64x1xf32>
    %208 = arith.divf %206, %207 : vector<64x1xf32>
    %209 = vector.broadcast %208 : vector<64x1xf32> to vector<64x64xf32>
    %210 = arith.subf %200, %209 : vector<64x64xf32>
    %211 = arith.mulf %210, %210 : vector<64x64xf32>
    %cst_85 = arith.constant dense<0.000000e+00> : vector<64xf32>
    %212 = vector.multi_reduction <add>, %211, %cst_85 [1] : vector<64x64xf32> to vector<64xf32>
    %213 = vector.shape_cast %212 : vector<64xf32> to vector<64x1xf32>
    %cst_86 = arith.constant 6.400000e+01 : f32
    %214 = vector.broadcast %cst_86 : f32 to vector<64x1xf32>
    %215 = arith.divf %213, %214 : vector<64x1xf32>
    %cst_87 = arith.constant 9.99999997E-7 : f32
    %216 = vector.broadcast %cst_87 : f32 to vector<64x1xf32>
    %217 = arith.addf %215, %216 : vector<64x1xf32>
    %218 = math.rsqrt %217 : vector<64x1xf32>
    %219 = vector.broadcast %218 : vector<64x1xf32> to vector<64x64xf32>
    %220 = arith.mulf %210, %219 : vector<64x64xf32>
    %221 = vector.broadcast %202 : vector<1x64xf32> to vector<64x64xf32>
    %222 = arith.mulf %220, %221 : vector<64x64xf32>
    %223 = vector.broadcast %204 : vector<1x64xf32> to vector<64x64xf32>
    %224 = arith.addf %222, %223 : vector<64x64xf32>
    %c0_88 = arith.constant 0 : index
    %c0_89 = arith.constant 0 : index
    %c0_90 = arith.constant 0 : index
    %225 = vector.load %arg12[%c0_88, %c0_89, %c0_90] : memref<2x64x256xbf16, #tpu.memory_space<vmem>>, vector<1x64x256xbf16>
    %226 = vector.shape_cast %225 : vector<1x64x256xbf16> to vector<64x256xbf16>
    %227 = arith.truncf %224 : vector<64x64xf32> to vector<64x64xbf16>
    %cst_91 = arith.constant dense<0.000000e+00> : vector<64x256xf32>
    %228 = tpu.matmul %227, %226, %cst_91 {dimension_numbers = #tpu.dot_dimension_numbers<[1], [0], [0], [1], [0, 0, 1, 1], [], []>} : vector<64x64xbf16>, vector<64x256xbf16>, vector<64x256xf32> -> vector<64x256xf32>
    %c0_92 = arith.constant 0 : index
    %c0_93 = arith.constant 0 : index
    %c0_94 = arith.constant 0 : index
    %229 = vector.load %arg13[%c0_92, %c0_93, %c0_94] : memref<2x1x256xf32, #tpu.memory_space<vmem>>, vector<1x1x256xf32>
    %230 = vector.shape_cast %229 : vector<1x1x256xf32> to vector<1x256xf32>
    %231 = vector.broadcast %230 : vector<1x256xf32> to vector<64x256xf32>
    %232 = arith.addf %228, %231 : vector<64x256xf32>
    %cst_95 = arith.constant 5.000000e-01 : f32
    %233 = vector.broadcast %cst_95 : f32 to vector<64x256xf32>
    %234 = arith.mulf %233, %232 : vector<64x256xf32>
    %cst_96 = arith.constant 4.471500e-02 : f32
    %235 = vector.broadcast %cst_96 : f32 to vector<64x256xf32>
    %236 = arith.mulf %235, %232 : vector<64x256xf32>
    %237 = arith.mulf %236, %232 : vector<64x256xf32>
    %238 = arith.mulf %237, %232 : vector<64x256xf32>
    %239 = arith.addf %232, %238 : vector<64x256xf32>
    %cst_97 = arith.constant 0.797884583 : f32
    %240 = vector.broadcast %cst_97 : f32 to vector<64x256xf32>
    %241 = arith.mulf %240, %239 : vector<64x256xf32>
    %242 = math.tanh %241 : vector<64x256xf32>
    %cst_98 = arith.constant 1.000000e+00 : f32
    %243 = vector.broadcast %cst_98 : f32 to vector<64x256xf32>
    %244 = arith.addf %243, %242 : vector<64x256xf32>
    %245 = arith.mulf %234, %244 : vector<64x256xf32>
    %c0_99 = arith.constant 0 : index
    %c0_100 = arith.constant 0 : index
    %c0_101 = arith.constant 0 : index
    %246 = vector.load %arg14[%c0_99, %c0_100, %c0_101] : memref<2x256x64xbf16, #tpu.memory_space<vmem>>, vector<1x256x64xbf16>
    %247 = vector.shape_cast %246 : vector<1x256x64xbf16> to vector<256x64xbf16>
    %248 = arith.truncf %245 : vector<64x256xf32> to vector<64x256xbf16>
    %cst_102 = arith.constant dense<0.000000e+00> : vector<64x64xf32>
    %249 = tpu.matmul %248, %247, %cst_102 {dimension_numbers = #tpu.dot_dimension_numbers<[1], [0], [0], [1], [0, 0, 1, 1], [], []>} : vector<64x256xbf16>, vector<256x64xbf16>, vector<64x64xf32> -> vector<64x64xf32>
    %250 = arith.addf %200, %249 : vector<64x64xf32>
    %c0_103 = arith.constant 0 : index
    %c0_104 = arith.constant 0 : index
    %c0_105 = arith.constant 0 : index
    %251 = vector.load %arg15[%c0_103, %c0_104, %c0_105] : memref<2x1x64xf32, #tpu.memory_space<vmem>>, vector<1x1x64xf32>
    %252 = vector.shape_cast %251 : vector<1x1x64xf32> to vector<1x64xf32>
    %253 = vector.broadcast %252 : vector<1x64xf32> to vector<64x64xf32>
    %254 = arith.addf %250, %253 : vector<64x64xf32>
    %c1 = arith.constant 1 : index
    %c0_106 = arith.constant 0 : index
    %c0_107 = arith.constant 0 : index
    %255 = vector.load %arg4[%c1, %c0_106, %c0_107] : memref<2x1x64xf32, #tpu.memory_space<vmem>>, vector<1x1x64xf32>
    %256 = vector.shape_cast %255 : vector<1x1x64xf32> to vector<1x64xf32>
    %c1_108 = arith.constant 1 : index
    %c0_109 = arith.constant 0 : index
    %c0_110 = arith.constant 0 : index
    %257 = vector.load %arg5[%c1_108, %c0_109, %c0_110] : memref<2x1x64xf32, #tpu.memory_space<vmem>>, vector<1x1x64xf32>
    %258 = vector.shape_cast %257 : vector<1x1x64xf32> to vector<1x64xf32>
    %cst_111 = arith.constant dense<0.000000e+00> : vector<64xf32>
    %259 = vector.multi_reduction <add>, %254, %cst_111 [1] : vector<64x64xf32> to vector<64xf32>
    %260 = vector.shape_cast %259 : vector<64xf32> to vector<64x1xf32>
    %cst_112 = arith.constant 6.400000e+01 : f32
    %261 = vector.broadcast %cst_112 : f32 to vector<64x1xf32>
    %262 = arith.divf %260, %261 : vector<64x1xf32>
    %263 = vector.broadcast %262 : vector<64x1xf32> to vector<64x64xf32>
    %264 = arith.subf %254, %263 : vector<64x64xf32>
    %265 = arith.mulf %264, %264 : vector<64x64xf32>
    %cst_113 = arith.constant dense<0.000000e+00> : vector<64xf32>
    %266 = vector.multi_reduction <add>, %265, %cst_113 [1] : vector<64x64xf32> to vector<64xf32>
    %267 = vector.shape_cast %266 : vector<64xf32> to vector<64x1xf32>
    %cst_114 = arith.constant 6.400000e+01 : f32
    %268 = vector.broadcast %cst_114 : f32 to vector<64x1xf32>
    %269 = arith.divf %267, %268 : vector<64x1xf32>
    %cst_115 = arith.constant 9.99999997E-7 : f32
    %270 = vector.broadcast %cst_115 : f32 to vector<64x1xf32>
    %271 = arith.addf %269, %270 : vector<64x1xf32>
    %272 = math.rsqrt %271 : vector<64x1xf32>
    %273 = vector.broadcast %272 : vector<64x1xf32> to vector<64x64xf32>
    %274 = arith.mulf %264, %273 : vector<64x64xf32>
    %275 = vector.broadcast %256 : vector<1x64xf32> to vector<64x64xf32>
    %276 = arith.mulf %274, %275 : vector<64x64xf32>
    %277 = vector.broadcast %258 : vector<1x64xf32> to vector<64x64xf32>
    %278 = arith.addf %276, %277 : vector<64x64xf32>
    %c1_116 = arith.constant 1 : index
    %c0_117 = arith.constant 0 : index
    %c0_118 = arith.constant 0 : index
    %279 = vector.load %arg6[%c1_116, %c0_117, %c0_118] : memref<2x64x192xbf16, #tpu.memory_space<vmem>>, vector<1x64x192xbf16>
    %280 = vector.shape_cast %279 : vector<1x64x192xbf16> to vector<64x192xbf16>
    %281 = arith.truncf %278 : vector<64x64xf32> to vector<64x64xbf16>
    %cst_119 = arith.constant dense<0.000000e+00> : vector<64x192xf32>
    %282 = tpu.matmul %281, %280, %cst_119 {dimension_numbers = #tpu.dot_dimension_numbers<[1], [0], [0], [1], [0, 0, 1, 1], [], []>} : vector<64x64xbf16>, vector<64x192xbf16>, vector<64x192xf32> -> vector<64x192xf32>
    %c1_120 = arith.constant 1 : index
    %c0_121 = arith.constant 0 : index
    %c0_122 = arith.constant 0 : index
    %283 = vector.load %arg7[%c1_120, %c0_121, %c0_122] : memref<2x1x192xf32, #tpu.memory_space<vmem>>, vector<1x1x192xf32>
    %284 = vector.shape_cast %283 : vector<1x1x192xf32> to vector<1x192xf32>
    %285 = vector.broadcast %284 : vector<1x192xf32> to vector<64x192xf32>
    %286 = arith.addf %282, %285 : vector<64x192xf32>
    %287 = vector.extract_strided_slice %286 {offsets = [0, 0], sizes = [32, 192], strides = [1, 1]} : vector<64x192xf32> to vector<32x192xf32>
    %288 = vector.extract_strided_slice %287 {offsets = [0, 0], sizes = [32, 16], strides = [1, 1]} : vector<32x192xf32> to vector<32x16xf32>
    %289 = vector.extract_strided_slice %287 {offsets = [0, 64], sizes = [32, 16], strides = [1, 1]} : vector<32x192xf32> to vector<32x16xf32>
    %290 = vector.extract_strided_slice %287 {offsets = [0, 128], sizes = [32, 16], strides = [1, 1]} : vector<32x192xf32> to vector<32x16xf32>
    %291 = arith.truncf %288 : vector<32x16xf32> to vector<32x16xbf16>
    %292 = arith.truncf %289 : vector<32x16xf32> to vector<32x16xbf16>
    "tpu.trace_start"() <{level = 10 : i32, message = "nd,md->nm"}> : () -> ()
    %cst_123 = arith.constant dense<0.000000e+00> : vector<32x32xf32>
    %293 = tpu.matmul %291, %292, %cst_123 {dimension_numbers = #tpu.dot_dimension_numbers<[1], [1], [0], [0], [0, 0, 1, 0], [], []>} : vector<32x16xbf16>, vector<32x16xbf16>, vector<32x32xf32> -> vector<32x32xf32>
    "tpu.trace_stop"() : () -> ()
    %cst_124 = arith.constant dense<0xFF800000> : vector<32xf32>
    %294 = vector.multi_reduction <maximumf>, %293, %cst_124 [1] : vector<32x32xf32> to vector<32xf32>
    %295 = vector.shape_cast %294 : vector<32xf32> to vector<32x1xf32>
    %296 = vector.broadcast %295 : vector<32x1xf32> to vector<32x32xf32>
    %297 = arith.subf %293, %296 : vector<32x32xf32>
    %298 = math.exp %297 : vector<32x32xf32>
    %cst_125 = arith.constant dense<0.000000e+00> : vector<32xf32>
    %299 = vector.multi_reduction <add>, %298, %cst_125 [1] : vector<32x32xf32> to vector<32xf32>
    %300 = vector.shape_cast %299 : vector<32xf32> to vector<32x1xf32>
    %301 = vector.broadcast %300 : vector<32x1xf32> to vector<32x32xf32>
    %302 = arith.divf %298, %301 : vector<32x32xf32>
    %303 = arith.truncf %302 : vector<32x32xf32> to vector<32x32xbf16>
    %304 = arith.truncf %290 : vector<32x16xf32> to vector<32x16xbf16>
    %cst_126 = arith.constant dense<0.000000e+00> : vector<32x16xf32>
    %305 = tpu.matmul %303, %304, %cst_126 {dimension_numbers = #tpu.dot_dimension_numbers<[1], [0], [0], [1], [0, 0, 1, 1], [], []>} : vector<32x32xbf16>, vector<32x16xbf16>, vector<32x16xf32> -> vector<32x16xf32>
    %c0_127 = arith.constant 0 : index
    %c0_128 = arith.constant 0 : index
    %306 = vector.load %arg22[%c0_127, %c0_128] : memref<64x64xf32, #tpu.memory_space<vmem>>, vector<32x16xf32>
    tpu.vector_store %arg22[%c0_127, %c0_128], %305 {strides = array<i32>} : memref<64x64xf32, #tpu.memory_space<vmem>>, vector<32x16xf32>,
    %307 = vector.extract_strided_slice %287 {offsets = [0, 16], sizes = [32, 16], strides = [1, 1]} : vector<32x192xf32> to vector<32x16xf32>
    %308 = vector.extract_strided_slice %287 {offsets = [0, 80], sizes = [32, 16], strides = [1, 1]} : vector<32x192xf32> to vector<32x16xf32>
    %309 = vector.extract_strided_slice %287 {offsets = [0, 144], sizes = [32, 16], strides = [1, 1]} : vector<32x192xf32> to vector<32x16xf32>
    %310 = arith.truncf %307 : vector<32x16xf32> to vector<32x16xbf16>
    %311 = arith.truncf %308 : vector<32x16xf32> to vector<32x16xbf16>
    "tpu.trace_start"() <{level = 10 : i32, message = "nd,md->nm"}> : () -> ()
    %cst_129 = arith.constant dense<0.000000e+00> : vector<32x32xf32>
    %312 = tpu.matmul %310, %311, %cst_129 {dimension_numbers = #tpu.dot_dimension_numbers<[1], [1], [0], [0], [0, 0, 1, 0], [], []>} : vector<32x16xbf16>, vector<32x16xbf16>, vector<32x32xf32> -> vector<32x32xf32>
    "tpu.trace_stop"() : () -> ()
    %cst_130 = arith.constant dense<0xFF800000> : vector<32xf32>
    %313 = vector.multi_reduction <maximumf>, %312, %cst_130 [1] : vector<32x32xf32> to vector<32xf32>
    %314 = vector.shape_cast %313 : vector<32xf32> to vector<32x1xf32>
    %315 = vector.broadcast %314 : vector<32x1xf32> to vector<32x32xf32>
    %316 = arith.subf %312, %315 : vector<32x32xf32>
    %317 = math.exp %316 : vector<32x32xf32>
    %cst_131 = arith.constant dense<0.000000e+00> : vector<32xf32>
    %318 = vector.multi_reduction <add>, %317, %cst_131 [1] : vector<32x32xf32> to vector<32xf32>
    %319 = vector.shape_cast %318 : vector<32xf32> to vector<32x1xf32>
    %320 = vector.broadcast %319 : vector<32x1xf32> to vector<32x32xf32>
    %321 = arith.divf %317, %320 : vector<32x32xf32>
    %322 = arith.truncf %321 : vector<32x32xf32> to vector<32x32xbf16>
    %323 = arith.truncf %309 : vector<32x16xf32> to vector<32x16xbf16>
    %cst_132 = arith.constant dense<0.000000e+00> : vector<32x16xf32>
    %324 = tpu.matmul %322, %323, %cst_132 {dimension_numbers = #tpu.dot_dimension_numbers<[1], [0], [0], [1], [0, 0, 1, 1], [], []>} : vector<32x32xbf16>, vector<32x16xbf16>, vector<32x16xf32> -> vector<32x16xf32>
    %c0_133 = arith.constant 0 : index
    %c16_134 = arith.constant 16 : index
    %325 = vector.load %arg22[%c0_133, %c16_134] : memref<64x64xf32, #tpu.memory_space<vmem>>, vector<32x16xf32>
    tpu.vector_store %arg22[%c0_133, %c16_134], %324 {strides = array<i32>} : memref<64x64xf32, #tpu.memory_space<vmem>>, vector<32x16xf32>,
    %326 = vector.extract_strided_slice %287 {offsets = [0, 32], sizes = [32, 16], strides = [1, 1]} : vector<32x192xf32> to vector<32x16xf32>
    %327 = vector.extract_strided_slice %287 {offsets = [0, 96], sizes = [32, 16], strides = [1, 1]} : vector<32x192xf32> to vector<32x16xf32>
    %328 = vector.extract_strided_slice %287 {offsets = [0, 160], sizes = [32, 16], strides = [1, 1]} : vector<32x192xf32> to vector<32x16xf32>
    %329 = arith.truncf %326 : vector<32x16xf32> to vector<32x16xbf16>
    %330 = arith.truncf %327 : vector<32x16xf32> to vector<32x16xbf16>
    "tpu.trace_start"() <{level = 10 : i32, message = "nd,md->nm"}> : () -> ()
    %cst_135 = arith.constant dense<0.000000e+00> : vector<32x32xf32>
    %331 = tpu.matmul %329, %330, %cst_135 {dimension_numbers = #tpu.dot_dimension_numbers<[1], [1], [0], [0], [0, 0, 1, 0], [], []>} : vector<32x16xbf16>, vector<32x16xbf16>, vector<32x32xf32> -> vector<32x32xf32>
    "tpu.trace_stop"() : () -> ()
    %cst_136 = arith.constant dense<0xFF800000> : vector<32xf32>
    %332 = vector.multi_reduction <maximumf>, %331, %cst_136 [1] : vector<32x32xf32> to vector<32xf32>
    %333 = vector.shape_cast %332 : vector<32xf32> to vector<32x1xf32>
    %334 = vector.broadcast %333 : vector<32x1xf32> to vector<32x32xf32>
    %335 = arith.subf %331, %334 : vector<32x32xf32>
    %336 = math.exp %335 : vector<32x32xf32>
    %cst_137 = arith.constant dense<0.000000e+00> : vector<32xf32>
    %337 = vector.multi_reduction <add>, %336, %cst_137 [1] : vector<32x32xf32> to vector<32xf32>
    %338 = vector.shape_cast %337 : vector<32xf32> to vector<32x1xf32>
    %339 = vector.broadcast %338 : vector<32x1xf32> to vector<32x32xf32>
    %340 = arith.divf %336, %339 : vector<32x32xf32>
    %341 = arith.truncf %340 : vector<32x32xf32> to vector<32x32xbf16>
    %342 = arith.truncf %328 : vector<32x16xf32> to vector<32x16xbf16>
    %cst_138 = arith.constant dense<0.000000e+00> : vector<32x16xf32>
    %343 = tpu.matmul %341, %342, %cst_138 {dimension_numbers = #tpu.dot_dimension_numbers<[1], [0], [0], [1], [0, 0, 1, 1], [], []>} : vector<32x32xbf16>, vector<32x16xbf16>, vector<32x16xf32> -> vector<32x16xf32>
    %c0_139 = arith.constant 0 : index
    %c32_140 = arith.constant 32 : index
    %344 = vector.load %arg22[%c0_139, %c32_140] : memref<64x64xf32, #tpu.memory_space<vmem>>, vector<32x16xf32>
    tpu.vector_store %arg22[%c0_139, %c32_140], %343 {strides = array<i32>} : memref<64x64xf32, #tpu.memory_space<vmem>>, vector<32x16xf32>,
    %345 = vector.extract_strided_slice %287 {offsets = [0, 48], sizes = [32, 16], strides = [1, 1]} : vector<32x192xf32> to vector<32x16xf32>
    %346 = vector.extract_strided_slice %287 {offsets = [0, 112], sizes = [32, 16], strides = [1, 1]} : vector<32x192xf32> to vector<32x16xf32>
    %347 = vector.extract_strided_slice %287 {offsets = [0, 176], sizes = [32, 16], strides = [1, 1]} : vector<32x192xf32> to vector<32x16xf32>
    %348 = arith.truncf %345 : vector<32x16xf32> to vector<32x16xbf16>
    %349 = arith.truncf %346 : vector<32x16xf32> to vector<32x16xbf16>
    "tpu.trace_start"() <{level = 10 : i32, message = "nd,md->nm"}> : () -> ()
    %cst_141 = arith.constant dense<0.000000e+00> : vector<32x32xf32>
    %350 = tpu.matmul %348, %349, %cst_141 {dimension_numbers = #tpu.dot_dimension_numbers<[1], [1], [0], [0], [0, 0, 1, 0], [], []>} : vector<32x16xbf16>, vector<32x16xbf16>, vector<32x32xf32> -> vector<32x32xf32>
    "tpu.trace_stop"() : () -> ()
    %cst_142 = arith.constant dense<0xFF800000> : vector<32xf32>
    %351 = vector.multi_reduction <maximumf>, %350, %cst_142 [1] : vector<32x32xf32> to vector<32xf32>
    %352 = vector.shape_cast %351 : vector<32xf32> to vector<32x1xf32>
    %353 = vector.broadcast %352 : vector<32x1xf32> to vector<32x32xf32>
    %354 = arith.subf %350, %353 : vector<32x32xf32>
    %355 = math.exp %354 : vector<32x32xf32>
    %cst_143 = arith.constant dense<0.000000e+00> : vector<32xf32>
    %356 = vector.multi_reduction <add>, %355, %cst_143 [1] : vector<32x32xf32> to vector<32xf32>
    %357 = vector.shape_cast %356 : vector<32xf32> to vector<32x1xf32>
    %358 = vector.broadcast %357 : vector<32x1xf32> to vector<32x32xf32>
    %359 = arith.divf %355, %358 : vector<32x32xf32>
    %360 = arith.truncf %359 : vector<32x32xf32> to vector<32x32xbf16>
    %361 = arith.truncf %347 : vector<32x16xf32> to vector<32x16xbf16>
    %cst_144 = arith.constant dense<0.000000e+00> : vector<32x16xf32>
    %362 = tpu.matmul %360, %361, %cst_144 {dimension_numbers = #tpu.dot_dimension_numbers<[1], [0], [0], [1], [0, 0, 1, 1], [], []>} : vector<32x32xbf16>, vector<32x16xbf16>, vector<32x16xf32> -> vector<32x16xf32>
    %c0_145 = arith.constant 0 : index
    %c48_146 = arith.constant 48 : index
    %363 = vector.load %arg22[%c0_145, %c48_146] : memref<64x64xf32, #tpu.memory_space<vmem>>, vector<32x16xf32>
    tpu.vector_store %arg22[%c0_145, %c48_146], %362 {strides = array<i32>} : memref<64x64xf32, #tpu.memory_space<vmem>>, vector<32x16xf32>,
    %364 = vector.extract_strided_slice %286 {offsets = [32, 0], sizes = [32, 192], strides = [1, 1]} : vector<64x192xf32> to vector<32x192xf32>
    %365 = vector.extract_strided_slice %364 {offsets = [0, 0], sizes = [32, 16], strides = [1, 1]} : vector<32x192xf32> to vector<32x16xf32>
    %366 = vector.extract_strided_slice %364 {offsets = [0, 64], sizes = [32, 16], strides = [1, 1]} : vector<32x192xf32> to vector<32x16xf32>
    %367 = vector.extract_strided_slice %364 {offsets = [0, 128], sizes = [32, 16], strides = [1, 1]} : vector<32x192xf32> to vector<32x16xf32>
    %368 = arith.truncf %365 : vector<32x16xf32> to vector<32x16xbf16>
    %369 = arith.truncf %366 : vector<32x16xf32> to vector<32x16xbf16>
    "tpu.trace_start"() <{level = 10 : i32, message = "nd,md->nm"}> : () -> ()
    %cst_147 = arith.constant dense<0.000000e+00> : vector<32x32xf32>
    %370 = tpu.matmul %368, %369, %cst_147 {dimension_numbers = #tpu.dot_dimension_numbers<[1], [1], [0], [0], [0, 0, 1, 0], [], []>} : vector<32x16xbf16>, vector<32x16xbf16>, vector<32x32xf32> -> vector<32x32xf32>
    "tpu.trace_stop"() : () -> ()
    %cst_148 = arith.constant dense<0xFF800000> : vector<32xf32>
    %371 = vector.multi_reduction <maximumf>, %370, %cst_148 [1] : vector<32x32xf32> to vector<32xf32>
    %372 = vector.shape_cast %371 : vector<32xf32> to vector<32x1xf32>
    %373 = vector.broadcast %372 : vector<32x1xf32> to vector<32x32xf32>
    %374 = arith.subf %370, %373 : vector<32x32xf32>
    %375 = math.exp %374 : vector<32x32xf32>
    %cst_149 = arith.constant dense<0.000000e+00> : vector<32xf32>
    %376 = vector.multi_reduction <add>, %375, %cst_149 [1] : vector<32x32xf32> to vector<32xf32>
    %377 = vector.shape_cast %376 : vector<32xf32> to vector<32x1xf32>
    %378 = vector.broadcast %377 : vector<32x1xf32> to vector<32x32xf32>
    %379 = arith.divf %375, %378 : vector<32x32xf32>
    %380 = arith.truncf %379 : vector<32x32xf32> to vector<32x32xbf16>
    %381 = arith.truncf %367 : vector<32x16xf32> to vector<32x16xbf16>
    %cst_150 = arith.constant dense<0.000000e+00> : vector<32x16xf32>
    %382 = tpu.matmul %380, %381, %cst_150 {dimension_numbers = #tpu.dot_dimension_numbers<[1], [0], [0], [1], [0, 0, 1, 1], [], []>} : vector<32x32xbf16>, vector<32x16xbf16>, vector<32x16xf32> -> vector<32x16xf32>
    %c32_151 = arith.constant 32 : index
    %c0_152 = arith.constant 0 : index
    %383 = vector.load %arg22[%c32_151, %c0_152] : memref<64x64xf32, #tpu.memory_space<vmem>>, vector<32x16xf32>
    tpu.vector_store %arg22[%c32_151, %c0_152], %382 {strides = array<i32>} : memref<64x64xf32, #tpu.memory_space<vmem>>, vector<32x16xf32>,
    %384 = vector.extract_strided_slice %364 {offsets = [0, 16], sizes = [32, 16], strides = [1, 1]} : vector<32x192xf32> to vector<32x16xf32>
    %385 = vector.extract_strided_slice %364 {offsets = [0, 80], sizes = [32, 16], strides = [1, 1]} : vector<32x192xf32> to vector<32x16xf32>
    %386 = vector.extract_strided_slice %364 {offsets = [0, 144], sizes = [32, 16], strides = [1, 1]} : vector<32x192xf32> to vector<32x16xf32>
    %387 = arith.truncf %384 : vector<32x16xf32> to vector<32x16xbf16>
    %388 = arith.truncf %385 : vector<32x16xf32> to vector<32x16xbf16>
    "tpu.trace_start"() <{level = 10 : i32, message = "nd,md->nm"}> : () -> ()
    %cst_153 = arith.constant dense<0.000000e+00> : vector<32x32xf32>
    %389 = tpu.matmul %387, %388, %cst_153 {dimension_numbers = #tpu.dot_dimension_numbers<[1], [1], [0], [0], [0, 0, 1, 0], [], []>} : vector<32x16xbf16>, vector<32x16xbf16>, vector<32x32xf32> -> vector<32x32xf32>
    "tpu.trace_stop"() : () -> ()
    %cst_154 = arith.constant dense<0xFF800000> : vector<32xf32>
    %390 = vector.multi_reduction <maximumf>, %389, %cst_154 [1] : vector<32x32xf32> to vector<32xf32>
    %391 = vector.shape_cast %390 : vector<32xf32> to vector<32x1xf32>
    %392 = vector.broadcast %391 : vector<32x1xf32> to vector<32x32xf32>
    %393 = arith.subf %389, %392 : vector<32x32xf32>
    %394 = math.exp %393 : vector<32x32xf32>
    %cst_155 = arith.constant dense<0.000000e+00> : vector<32xf32>
    %395 = vector.multi_reduction <add>, %394, %cst_155 [1] : vector<32x32xf32> to vector<32xf32>
    %396 = vector.shape_cast %395 : vector<32xf32> to vector<32x1xf32>
    %397 = vector.broadcast %396 : vector<32x1xf32> to vector<32x32xf32>
    %398 = arith.divf %394, %397 : vector<32x32xf32>
    %399 = arith.truncf %398 : vector<32x32xf32> to vector<32x32xbf16>
    %400 = arith.truncf %386 : vector<32x16xf32> to vector<32x16xbf16>
    %cst_156 = arith.constant dense<0.000000e+00> : vector<32x16xf32>
    %401 = tpu.matmul %399, %400, %cst_156 {dimension_numbers = #tpu.dot_dimension_numbers<[1], [0], [0], [1], [0, 0, 1, 1], [], []>} : vector<32x32xbf16>, vector<32x16xbf16>, vector<32x16xf32> -> vector<32x16xf32>
    %c32_157 = arith.constant 32 : index
    %c16_158 = arith.constant 16 : index
    %402 = vector.load %arg22[%c32_157, %c16_158] : memref<64x64xf32, #tpu.memory_space<vmem>>, vector<32x16xf32>
    tpu.vector_store %arg22[%c32_157, %c16_158], %401 {strides = array<i32>} : memref<64x64xf32, #tpu.memory_space<vmem>>, vector<32x16xf32>,
    %403 = vector.extract_strided_slice %364 {offsets = [0, 32], sizes = [32, 16], strides = [1, 1]} : vector<32x192xf32> to vector<32x16xf32>
    %404 = vector.extract_strided_slice %364 {offsets = [0, 96], sizes = [32, 16], strides = [1, 1]} : vector<32x192xf32> to vector<32x16xf32>
    %405 = vector.extract_strided_slice %364 {offsets = [0, 160], sizes = [32, 16], strides = [1, 1]} : vector<32x192xf32> to vector<32x16xf32>
    %406 = arith.truncf %403 : vector<32x16xf32> to vector<32x16xbf16>
    %407 = arith.truncf %404 : vector<32x16xf32> to vector<32x16xbf16>
    "tpu.trace_start"() <{level = 10 : i32, message = "nd,md->nm"}> : () -> ()
    %cst_159 = arith.constant dense<0.000000e+00> : vector<32x32xf32>
    %408 = tpu.matmul %406, %407, %cst_159 {dimension_numbers = #tpu.dot_dimension_numbers<[1], [1], [0], [0], [0, 0, 1, 0], [], []>} : vector<32x16xbf16>, vector<32x16xbf16>, vector<32x32xf32> -> vector<32x32xf32>
    "tpu.trace_stop"() : () -> ()
    %cst_160 = arith.constant dense<0xFF800000> : vector<32xf32>
    %409 = vector.multi_reduction <maximumf>, %408, %cst_160 [1] : vector<32x32xf32> to vector<32xf32>
    %410 = vector.shape_cast %409 : vector<32xf32> to vector<32x1xf32>
    %411 = vector.broadcast %410 : vector<32x1xf32> to vector<32x32xf32>
    %412 = arith.subf %408, %411 : vector<32x32xf32>
    %413 = math.exp %412 : vector<32x32xf32>
    %cst_161 = arith.constant dense<0.000000e+00> : vector<32xf32>
    %414 = vector.multi_reduction <add>, %413, %cst_161 [1] : vector<32x32xf32> to vector<32xf32>
    %415 = vector.shape_cast %414 : vector<32xf32> to vector<32x1xf32>
    %416 = vector.broadcast %415 : vector<32x1xf32> to vector<32x32xf32>
    %417 = arith.divf %413, %416 : vector<32x32xf32>
    %418 = arith.truncf %417 : vector<32x32xf32> to vector<32x32xbf16>
    %419 = arith.truncf %405 : vector<32x16xf32> to vector<32x16xbf16>
    %cst_162 = arith.constant dense<0.000000e+00> : vector<32x16xf32>
    %420 = tpu.matmul %418, %419, %cst_162 {dimension_numbers = #tpu.dot_dimension_numbers<[1], [0], [0], [1], [0, 0, 1, 1], [], []>} : vector<32x32xbf16>, vector<32x16xbf16>, vector<32x16xf32> -> vector<32x16xf32>
    %c32_163 = arith.constant 32 : index
    %c32_164 = arith.constant 32 : index
    %421 = vector.load %arg22[%c32_163, %c32_164] : memref<64x64xf32, #tpu.memory_space<vmem>>, vector<32x16xf32>
    tpu.vector_store %arg22[%c32_163, %c32_164], %420 {strides = array<i32>} : memref<64x64xf32, #tpu.memory_space<vmem>>, vector<32x16xf32>,
    %422 = vector.extract_strided_slice %364 {offsets = [0, 48], sizes = [32, 16], strides = [1, 1]} : vector<32x192xf32> to vector<32x16xf32>
    %423 = vector.extract_strided_slice %364 {offsets = [0, 112], sizes = [32, 16], strides = [1, 1]} : vector<32x192xf32> to vector<32x16xf32>
    %424 = vector.extract_strided_slice %364 {offsets = [0, 176], sizes = [32, 16], strides = [1, 1]} : vector<32x192xf32> to vector<32x16xf32>
    %425 = arith.truncf %422 : vector<32x16xf32> to vector<32x16xbf16>
    %426 = arith.truncf %423 : vector<32x16xf32> to vector<32x16xbf16>
    "tpu.trace_start"() <{level = 10 : i32, message = "nd,md->nm"}> : () -> ()
    %cst_165 = arith.constant dense<0.000000e+00> : vector<32x32xf32>
    %427 = tpu.matmul %425, %426, %cst_165 {dimension_numbers = #tpu.dot_dimension_numbers<[1], [1], [0], [0], [0, 0, 1, 0], [], []>} : vector<32x16xbf16>, vector<32x16xbf16>, vector<32x32xf32> -> vector<32x32xf32>
    "tpu.trace_stop"() : () -> ()
    %cst_166 = arith.constant dense<0xFF800000> : vector<32xf32>
    %428 = vector.multi_reduction <maximumf>, %427, %cst_166 [1] : vector<32x32xf32> to vector<32xf32>
    %429 = vector.shape_cast %428 : vector<32xf32> to vector<32x1xf32>
    %430 = vector.broadcast %429 : vector<32x1xf32> to vector<32x32xf32>
    %431 = arith.subf %427, %430 : vector<32x32xf32>
    %432 = math.exp %431 : vector<32x32xf32>
    %cst_167 = arith.constant dense<0.000000e+00> : vector<32xf32>
    %433 = vector.multi_reduction <add>, %432, %cst_167 [1] : vector<32x32xf32> to vector<32xf32>
    %434 = vector.shape_cast %433 : vector<32xf32> to vector<32x1xf32>
    %435 = vector.broadcast %434 : vector<32x1xf32> to vector<32x32xf32>
    %436 = arith.divf %432, %435 : vector<32x32xf32>
    %437 = arith.truncf %436 : vector<32x32xf32> to vector<32x32xbf16>
    %438 = arith.truncf %424 : vector<32x16xf32> to vector<32x16xbf16>
    %cst_168 = arith.constant dense<0.000000e+00> : vector<32x16xf32>
    %439 = tpu.matmul %437, %438, %cst_168 {dimension_numbers = #tpu.dot_dimension_numbers<[1], [0], [0], [1], [0, 0, 1, 1], [], []>} : vector<32x32xbf16>, vector<32x16xbf16>, vector<32x16xf32> -> vector<32x16xf32>
    %c32_169 = arith.constant 32 : index
    %c48_170 = arith.constant 48 : index
    %440 = vector.load %arg22[%c32_169, %c48_170] : memref<64x64xf32, #tpu.memory_space<vmem>>, vector<32x16xf32>
    tpu.vector_store %arg22[%c32_169, %c48_170], %439 {strides = array<i32>} : memref<64x64xf32, #tpu.memory_space<vmem>>, vector<32x16xf32>,
    %c0_171 = arith.constant 0 : index
    %c0_172 = arith.constant 0 : index
    %441 = vector.load %arg22[%c0_171, %c0_172] : memref<64x64xf32, #tpu.memory_space<vmem>>, vector<64x64xf32>
    %c1_173 = arith.constant 1 : index
    %c0_174 = arith.constant 0 : index
    %c0_175 = arith.constant 0 : index
    %442 = vector.load %arg8[%c1_173, %c0_174, %c0_175] : memref<2x64x64xbf16, #tpu.memory_space<vmem>>, vector<1x64x64xbf16>
    %443 = vector.shape_cast %442 : vector<1x64x64xbf16> to vector<64x64xbf16>
    %444 = arith.truncf %441 : vector<64x64xf32> to vector<64x64xbf16>
    %cst_176 = arith.constant dense<0.000000e+00> : vector<64x64xf32>
    %445 = tpu.matmul %444, %443, %cst_176 {dimension_numbers = #tpu.dot_dimension_numbers<[1], [0], [0], [1], [0, 0, 1, 1], [], []>} : vector<64x64xbf16>, vector<64x64xbf16>, vector<64x64xf32> -> vector<64x64xf32>
    %446 = arith.addf %254, %445 : vector<64x64xf32>
    %c1_177 = arith.constant 1 : index
    %c0_178 = arith.constant 0 : index
    %c0_179 = arith.constant 0 : index
    %447 = vector.load %arg9[%c1_177, %c0_178, %c0_179] : memref<2x1x64xf32, #tpu.memory_space<vmem>>, vector<1x1x64xf32>
    %448 = vector.shape_cast %447 : vector<1x1x64xf32> to vector<1x64xf32>
    %449 = vector.broadcast %448 : vector<1x64xf32> to vector<64x64xf32>
    %450 = arith.addf %446, %449 : vector<64x64xf32>
    %c1_180 = arith.constant 1 : index
    %c0_181 = arith.constant 0 : index
    %c0_182 = arith.constant 0 : index
    %451 = vector.load %arg10[%c1_180, %c0_181, %c0_182] : memref<2x1x64xf32, #tpu.memory_space<vmem>>, vector<1x1x64xf32>
    %452 = vector.shape_cast %451 : vector<1x1x64xf32> to vector<1x64xf32>
    %c1_183 = arith.constant 1 : index
    %c0_184 = arith.constant 0 : index
    %c0_185 = arith.constant 0 : index
    %453 = vector.load %arg11[%c1_183, %c0_184, %c0_185] : memref<2x1x64xf32, #tpu.memory_space<vmem>>, vector<1x1x64xf32>
    %454 = vector.shape_cast %453 : vector<1x1x64xf32> to vector<1x64xf32>
    %cst_186 = arith.constant dense<0.000000e+00> : vector<64xf32>
    %455 = vector.multi_reduction <add>, %450, %cst_186 [1] : vector<64x64xf32> to vector<64xf32>
    %456 = vector.shape_cast %455 : vector<64xf32> to vector<64x1xf32>
    %cst_187 = arith.constant 6.400000e+01 : f32
    %457 = vector.broadcast %cst_187 : f32 to vector<64x1xf32>
    %458 = arith.divf %456, %457 : vector<64x1xf32>
    %459 = vector.broadcast %458 : vector<64x1xf32> to vector<64x64xf32>
    %460 = arith.subf %450, %459 : vector<64x64xf32>
    %461 = arith.mulf %460, %460 : vector<64x64xf32>
    %cst_188 = arith.constant dense<0.000000e+00> : vector<64xf32>
    %462 = vector.multi_reduction <add>, %461, %cst_188 [1] : vector<64x64xf32> to vector<64xf32>
    %463 = vector.shape_cast %462 : vector<64xf32> to vector<64x1xf32>
    %cst_189 = arith.constant 6.400000e+01 : f32
    %464 = vector.broadcast %cst_189 : f32 to vector<64x1xf32>
    %465 = arith.divf %463, %464 : vector<64x1xf32>
    %cst_190 = arith.constant 9.99999997E-7 : f32
    %466 = vector.broadcast %cst_190 : f32 to vector<64x1xf32>
    %467 = arith.addf %465, %466 : vector<64x1xf32>
    %468 = math.rsqrt %467 : vector<64x1xf32>
    %469 = vector.broadcast %468 : vector<64x1xf32> to vector<64x64xf32>
    %470 = arith.mulf %460, %469 : vector<64x64xf32>
    %471 = vector.broadcast %452 : vector<1x64xf32> to vector<64x64xf32>
    %472 = arith.mulf %470, %471 : vector<64x64xf32>
    %473 = vector.broadcast %454 : vector<1x64xf32> to vector<64x64xf32>
    %474 = arith.addf %472, %473 : vector<64x64xf32>
    %c1_191 = arith.constant 1 : index
    %c0_192 = arith.constant 0 : index
    %c0_193 = arith.constant 0 : index
    %475 = vector.load %arg12[%c1_191, %c0_192, %c0_193] : memref<2x64x256xbf16, #tpu.memory_space<vmem>>, vector<1x64x256xbf16>
    %476 = vector.shape_cast %475 : vector<1x64x256xbf16> to vector<64x256xbf16>
    %477 = arith.truncf %474 : vector<64x64xf32> to vector<64x64xbf16>
    %cst_194 = arith.constant dense<0.000000e+00> : vector<64x256xf32>
    %478 = tpu.matmul %477, %476, %cst_194 {dimension_numbers = #tpu.dot_dimension_numbers<[1], [0], [0], [1], [0, 0, 1, 1], [], []>} : vector<64x64xbf16>, vector<64x256xbf16>, vector<64x256xf32> -> vector<64x256xf32>
    %c1_195 = arith.constant 1 : index
    %c0_196 = arith.constant 0 : index
    %c0_197 = arith.constant 0 : index
    %479 = vector.load %arg13[%c1_195, %c0_196, %c0_197] : memref<2x1x256xf32, #tpu.memory_space<vmem>>, vector<1x1x256xf32>
    %480 = vector.shape_cast %479 : vector<1x1x256xf32> to vector<1x256xf32>
    %481 = vector.broadcast %480 : vector<1x256xf32> to vector<64x256xf32>
    %482 = arith.addf %478, %481 : vector<64x256xf32>
    %cst_198 = arith.constant 5.000000e-01 : f32
    %483 = vector.broadcast %cst_198 : f32 to vector<64x256xf32>
    %484 = arith.mulf %483, %482 : vector<64x256xf32>
    %cst_199 = arith.constant 4.471500e-02 : f32
    %485 = vector.broadcast %cst_199 : f32 to vector<64x256xf32>
    %486 = arith.mulf %485, %482 : vector<64x256xf32>
    %487 = arith.mulf %486, %482 : vector<64x256xf32>
    %488 = arith.mulf %487, %482 : vector<64x256xf32>
    %489 = arith.addf %482, %488 : vector<64x256xf32>
    %cst_200 = arith.constant 0.797884583 : f32
    %490 = vector.broadcast %cst_200 : f32 to vector<64x256xf32>
    %491 = arith.mulf %490, %489 : vector<64x256xf32>
    %492 = math.tanh %491 : vector<64x256xf32>
    %cst_201 = arith.constant 1.000000e+00 : f32
    %493 = vector.broadcast %cst_201 : f32 to vector<64x256xf32>
    %494 = arith.addf %493, %492 : vector<64x256xf32>
    %495 = arith.mulf %484, %494 : vector<64x256xf32>
    %c1_202 = arith.constant 1 : index
    %c0_203 = arith.constant 0 : index
    %c0_204 = arith.constant 0 : index
    %496 = vector.load %arg14[%c1_202, %c0_203, %c0_204] : memref<2x256x64xbf16, #tpu.memory_space<vmem>>, vector<1x256x64xbf16>
    %497 = vector.shape_cast %496 : vector<1x256x64xbf16> to vector<256x64xbf16>
    %498 = arith.truncf %495 : vector<64x256xf32> to vector<64x256xbf16>
    %cst_205 = arith.constant dense<0.000000e+00> : vector<64x64xf32>
    %499 = tpu.matmul %498, %497, %cst_205 {dimension_numbers = #tpu.dot_dimension_numbers<[1], [0], [0], [1], [0, 0, 1, 1], [], []>} : vector<64x256xbf16>, vector<256x64xbf16>, vector<64x64xf32> -> vector<64x64xf32>
    %500 = arith.addf %450, %499 : vector<64x64xf32>
    %c1_206 = arith.constant 1 : index
    %c0_207 = arith.constant 0 : index
    %c0_208 = arith.constant 0 : index
    %501 = vector.load %arg15[%c1_206, %c0_207, %c0_208] : memref<2x1x64xf32, #tpu.memory_space<vmem>>, vector<1x1x64xf32>
    %502 = vector.shape_cast %501 : vector<1x1x64xf32> to vector<1x64xf32>
    %503 = vector.broadcast %502 : vector<1x64xf32> to vector<64x64xf32>
    %504 = arith.addf %500, %503 : vector<64x64xf32>
    %c0_209 = arith.constant 0 : index
    %c0_210 = arith.constant 0 : index
    %505 = vector.load %arg16[%c0_209, %c0_210] : memref<2x64xf32, #tpu.memory_space<vmem>>, vector<2x64xf32>
    %cst_211 = arith.constant dense<0.000000e+00> : vector<2x64xf32>
    %506 = tpu.matmul %505, %504, %cst_211 {dimension_numbers = #tpu.dot_dimension_numbers<[1], [0], [0], [1], [0, 0, 1, 1], [], []>} : vector<2x64xf32>, vector<64x64xf32>, vector<2x64xf32> -> vector<2x64xf32>
    %c0_212 = arith.constant 0 : index
    %c0_213 = arith.constant 0 : index
    %507 = vector.load %arg17[%c0_212, %c0_213] : memref<1x64xf32, #tpu.memory_space<vmem>>, vector<1x64xf32>
    %c0_214 = arith.constant 0 : index
    %c0_215 = arith.constant 0 : index
    %508 = vector.load %arg18[%c0_214, %c0_215] : memref<1x64xf32, #tpu.memory_space<vmem>>, vector<1x64xf32>
    %cst_216 = arith.constant dense<0.000000e+00> : vector<2xf32>
    %509 = vector.multi_reduction <add>, %506, %cst_216 [1] : vector<2x64xf32> to vector<2xf32>
    %510 = vector.shape_cast %509 : vector<2xf32> to vector<2x1xf32>
    %cst_217 = arith.constant 6.400000e+01 : f32
    %511 = vector.broadcast %cst_217 : f32 to vector<2x1xf32>
    %512 = arith.divf %510, %511 : vector<2x1xf32>
    %513 = vector.broadcast %512 : vector<2x1xf32> to vector<2x64xf32>
    %514 = arith.subf %506, %513 : vector<2x64xf32>
    %515 = arith.mulf %514, %514 : vector<2x64xf32>
    %cst_218 = arith.constant dense<0.000000e+00> : vector<2xf32>
    %516 = vector.multi_reduction <add>, %515, %cst_218 [1] : vector<2x64xf32> to vector<2xf32>
    %517 = vector.shape_cast %516 : vector<2xf32> to vector<2x1xf32>
    %cst_219 = arith.constant 6.400000e+01 : f32
    %518 = vector.broadcast %cst_219 : f32 to vector<2x1xf32>
    %519 = arith.divf %517, %518 : vector<2x1xf32>
    %cst_220 = arith.constant 9.99999997E-7 : f32
    %520 = vector.broadcast %cst_220 : f32 to vector<2x1xf32>
    %521 = arith.addf %519, %520 : vector<2x1xf32>
    %522 = math.rsqrt %521 : vector<2x1xf32>
    %523 = vector.broadcast %522 : vector<2x1xf32> to vector<2x64xf32>
    %524 = arith.mulf %514, %523 : vector<2x64xf32>
    %525 = vector.broadcast %507 : vector<1x64xf32> to vector<2x64xf32>
    %526 = arith.mulf %524, %525 : vector<2x64xf32>
    %527 = vector.broadcast %508 : vector<1x64xf32> to vector<2x64xf32>
    %528 = arith.addf %526, %527 : vector<2x64xf32>
    %c0_221 = arith.constant 0 : index
    %c0_222 = arith.constant 0 : index
    %529 = vector.load %arg19[%c0_221, %c0_222] : memref<64x128xf32, #tpu.memory_space<vmem>>, vector<64x128xf32>
    %cst_223 = arith.constant dense<0.000000e+00> : vector<2x128xf32>
    %530 = tpu.matmul %528, %529, %cst_223 {dimension_numbers = #tpu.dot_dimension_numbers<[1], [0], [0], [1], [0, 0, 1, 1], [], []>} : vector<2x64xf32>, vector<64x128xf32>, vector<2x128xf32> -> vector<2x128xf32>
    %c0_224 = arith.constant 0 : index
    %c0_225 = arith.constant 0 : index
    %531 = vector.load %arg20[%c0_224, %c0_225] : memref<1x128xf32, #tpu.memory_space<vmem>>, vector<1x128xf32>
    %532 = vector.broadcast %531 : vector<1x128xf32> to vector<2x128xf32>
    %533 = arith.addf %530, %532 : vector<2x128xf32>
    %c0_226 = arith.constant 0 : index
    %c0_227 = arith.constant 0 : index
    %c0_228 = arith.constant 0 : index
    %534 = vector.load %arg21[%c0_226, %c0_227, %c0_228] : memref<1x2x128xf32, #tpu.memory_space<vmem>>, vector<1x2x128xf32>
    %535 = vector.shape_cast %534 : vector<1x2x128xf32> to vector<2x128xf32>
    %536 = vector.shape_cast %533 : vector<2x128xf32> to vector<1x2x128xf32>
    tpu.vector_store %arg21[%c0_226, %c0_227, %c0_228], %536 {strides = array<i32>} : memref<1x2x128xf32, #tpu.memory_space<vmem>>, vector<1x2x128xf32>,
    return
  }
  func.func @transform_0(%arg0: i32) -> (i32, i32) {
    %c0_i32 = arith.constant 0 : i32
    %c0_i32_0 = arith.constant 0 : i32
    return %arg0, %c0_i32 : i32, i32
  }
  func.func @transform_1(%arg0: i32) -> (i32, i32) {
    %c0_i32 = arith.constant 0 : i32
    %c0_i32_0 = arith.constant 0 : i32
    %c0_i32_1 = arith.constant 0 : i32
    return %c0_i32, %c0_i32_0 : i32, i32
  }
  func.func @transform_2(%arg0: i32) -> (i32, i32) {
    %c0_i32 = arith.constant 0 : i32
    %c0_i32_0 = arith.constant 0 : i32
    %c0_i32_1 = arith.constant 0 : i32
    return %c0_i32, %c0_i32_0 : i32, i32
  }
  func.func @transform_3(%arg0: i32) -> (i32, i32, i32) {
    %c0_i32 = arith.constant 0 : i32
    %c0_i32_0 = arith.constant 0 : i32
    %c0_i32_1 = arith.constant 0 : i32
    %c0_i32_2 = arith.constant 0 : i32
    return %c0_i32, %c0_i32_0, %c0_i32_1 : i32, i32, i32
  }
  func.func @transform_4(%arg0: i32) -> (i32, i32, i32) {
    %c0_i32 = arith.constant 0 : i32
    %c0_i32_0 = arith.constant 0 : i32
    %c0_i32_1 = arith.constant 0 : i32
    %c0_i32_2 = arith.constant 0 : i32
    return %c0_i32, %c0_i32_0, %c0_i32_1 : i32, i32, i32
  }
  func.func @transform_5(%arg0: i32) -> (i32, i32, i32) {
    %c0_i32 = arith.constant 0 : i32
    %c0_i32_0 = arith.constant 0 : i32
    %c0_i32_1 = arith.constant 0 : i32
    %c0_i32_2 = arith.constant 0 : i32
    return %c0_i32, %c0_i32_0, %c0_i32_1 : i32, i32, i32
  }
  func.func @transform_6(%arg0: i32) -> (i32, i32, i32) {
    %c0_i32 = arith.constant 0 : i32
    %c0_i32_0 = arith.constant 0 : i32
    %c0_i32_1 = arith.constant 0 : i32
    %c0_i32_2 = arith.constant 0 : i32
    return %c0_i32, %c0_i32_0, %c0_i32_1 : i32, i32, i32
  }
  func.func @transform_7(%arg0: i32) -> (i32, i32, i32) {
    %c0_i32 = arith.constant 0 : i32
    %c0_i32_0 = arith.constant 0 : i32
    %c0_i32_1 = arith.constant 0 : i32
    %c0_i32_2 = arith.constant 0 : i32
    return %c0_i32, %c0_i32_0, %c0_i32_1 : i32, i32, i32
  }
  func.func @transform_8(%arg0: i32) -> (i32, i32, i32) {
    %c0_i32 = arith.constant 0 : i32
    %c0_i32_0 = arith.constant 0 : i32
    %c0_i32_1 = arith.constant 0 : i32
    %c0_i32_2 = arith.constant 0 : i32
    return %c0_i32, %c0_i32_0, %c0_i32_1 : i32, i32, i32
  }
  func.func @transform_9(%arg0: i32) -> (i32, i32, i32) {
    %c0_i32 = arith.constant 0 : i32
    %c0_i32_0 = arith.constant 0 : i32
    %c0_i32_1 = arith.constant 0 : i32
    %c0_i32_2 = arith.constant 0 : i32
    return %c0_i32, %c0_i32_0, %c0_i32_1 : i32, i32, i32
  }
  func.func @transform_10(%arg0: i32) -> (i32, i32, i32) {
    %c0_i32 = arith.constant 0 : i32
    %c0_i32_0 = arith.constant 0 : i32
    %c0_i32_1 = arith.constant 0 : i32
    %c0_i32_2 = arith.constant 0 : i32
    return %c0_i32, %c0_i32_0, %c0_i32_1 : i32, i32, i32
  }
  func.func @transform_11(%arg0: i32) -> (i32, i32, i32) {
    %c0_i32 = arith.constant 0 : i32
    %c0_i32_0 = arith.constant 0 : i32
    %c0_i32_1 = arith.constant 0 : i32
    %c0_i32_2 = arith.constant 0 : i32
    return %c0_i32, %c0_i32_0, %c0_i32_1 : i32, i32, i32
  }
  func.func @transform_12(%arg0: i32) -> (i32, i32, i32) {
    %c0_i32 = arith.constant 0 : i32
    %c0_i32_0 = arith.constant 0 : i32
    %c0_i32_1 = arith.constant 0 : i32
    %c0_i32_2 = arith.constant 0 : i32
    return %c0_i32, %c0_i32_0, %c0_i32_1 : i32, i32, i32
  }
  func.func @transform_13(%arg0: i32) -> (i32, i32, i32) {
    %c0_i32 = arith.constant 0 : i32
    %c0_i32_0 = arith.constant 0 : i32
    %c0_i32_1 = arith.constant 0 : i32
    %c0_i32_2 = arith.constant 0 : i32
    return %c0_i32, %c0_i32_0, %c0_i32_1 : i32, i32, i32
  }
  func.func @transform_14(%arg0: i32) -> (i32, i32, i32) {
    %c0_i32 = arith.constant 0 : i32
    %c0_i32_0 = arith.constant 0 : i32
    %c0_i32_1 = arith.constant 0 : i32
    %c0_i32_2 = arith.constant 0 : i32
    return %c0_i32, %c0_i32_0, %c0_i32_1 : i32, i32, i32
  }
  func.func @transform_15(%arg0: i32) -> (i32, i32) {
    %c0_i32 = arith.constant 0 : i32
    %c0_i32_0 = arith.constant 0 : i32
    %c0_i32_1 = arith.constant 0 : i32
    return %c0_i32, %c0_i32_0 : i32, i32
  }
  func.func @transform_16(%arg0: i32) -> (i32, i32) {
    %c0_i32 = arith.constant 0 : i32
    %c0_i32_0 = arith.constant 0 : i32
    %c0_i32_1 = arith.constant 0 : i32
    return %c0_i32, %c0_i32_0 : i32, i32
  }
  func.func @transform_17(%arg0: i32) -> (i32, i32) {
    %c0_i32 = arith.constant 0 : i32
    %c0_i32_0 = arith.constant 0 : i32
    %c0_i32_1 = arith.constant 0 : i32
    return %c0_i32, %c0_i32_0 : i32, i32
  }
  func.func @transform_18(%arg0: i32) -> (i32, i32) {
    %c0_i32 = arith.constant 0 : i32
    %c0_i32_0 = arith.constant 0 : i32
    %c0_i32_1 = arith.constant 0 : i32
    return %c0_i32, %c0_i32_0 : i32, i32
  }
  func.func @transform_19(%arg0: i32) -> (i32, i32) {
    %c0_i32 = arith.constant 0 : i32
    %c0_i32_0 = arith.constant 0 : i32
    %c0_i32_1 = arith.constant 0 : i32
    return %c0_i32, %c0_i32_0 : i32, i32
  }
  func.func @transform_20(%arg0: i32) -> (i32, i32, i32) {
    %c0_i32 = arith.constant 0 : i32
    %c0_i32_0 = arith.constant 0 : i32
    %c0_i32_1 = arith.constant 0 : i32
    return %arg0, %c0_i32, %c0_i32_0 : i32, i32, i32
  }
}

</mosaic_0001>

<bundles_post_ra>
// kernel: _lambda_.1
= control target key start
LH: loop header
LB: loop body
LE: loop exit
PB: predicated region body
PF: predicated region fallthrough
CT: control target
= control target key end

     0   :  { %s11358_s0 = inlined_call_operand.vmem [shape: bf16[64,1536], index: 0, kind: input, shape index: {}]   ;;  %s11359_s1 = inlined_call_operand.vmem [shape: f32[64,64], index: 1, kind: input, shape index: {}]   ;;  %s11360_s2 = inlined_call_operand.vmem [shape: bf16[1536,64], index: 2, kind: input, shape index: {}]   ;;  %s11361_s3 = inlined_call_operand.vmem [shape: f32[2,1,64], index: 3, kind: input, shape index: {}]   ;;  %s11362_s4 = inlined_call_operand.vmem [shape: f32[2,1,64], index: 4, kind: input, shape index: {}]   ;;  %s11363_s5 = inlined_call_operand.vmem [shape: bf16[2,64,192], index: 5, kind: input, shape index: {}]   ;;  %s11364_s6 = inlined_call_operand.vmem [shape: f32[2,1,192], index: 6, kind: input, shape index: {}]   ;;  %s11365_s7 = inlined_call_operand.vmem [shape: bf16[2,64,64], index: 7, kind: input, shape index: {}]   ;;  %s11366_s8 = inlined_call_operand.vmem [shape: f32[2,1,64], index: 8, kind: input, shape index: {}]   ;;  %s11367_s9 = inlined_call_operand.vmem [shape: f32[2,1,64], index: 9, kind: input, shape index: {}]   ;;  %s11368_s10 = inlined_call_operand.vmem [shape: f32[2,1,64], index: 10, kind: input, shape index: {}]   ;;  %s11369_s11 = inlined_call_operand.vmem [shape: bf16[2,64,256], index: 11, kind: input, shape index: {}]   ;;  %s11370_s12 = inlined_call_operand.vmem [shape: f32[2,1,256], index: 12, kind: input, shape index: {}]   ;;  %s11371_s13 = inlined_call_operand.vmem [shape: bf16[2,256,64], index: 13, kind: input, shape index: {}]   ;;  %s11372_s14 = inlined_call_operand.vmem [shape: f32[2,1,64], index: 14, kind: input, shape index: {}]   ;;  %s11373_s15 = inlined_call_operand.vmem [shape: f32[2,64], index: 15, kind: input, shape index: {}]   ;;  %s11374_s16 = inlined_call_operand.vmem [shape: f32[1,64], index: 16, kind: input, shape index: {}]   ;;  %s11375_s17 = inlined_call_operand.vmem [shape: f32[1,64], index: 17, kind: input, shape index: {}]   ;;  %s11376_s18 = inlined_call_operand.vmem [shape: f32[64,128], index: 18, kind: input, shape index: {}]   ;;  %s11377_s19 = inlined_call_operand.vmem [shape: f32[1,128], index: 19, kind: input, shape index: {}]   ;;  %s11378_s20 = inlined_call_operand.hbm [shape: f32[1,2,128], index: 20, kind: output, shape index: {}]  }
   0x1   :  { %11392 = sst [smem:[#allocation6_spill]] %s11358_s0 }
   0x2   :  { %11393 = sst [smem:[#allocation7_spill]] %s11359_s1 }
   0x3   :  { %11394 = sst [smem:[#allocation8_spill]] %s11360_s2 }
   0x4   :  { %11395 = sst [smem:[#allocation9_spill]] %s11361_s3 }
   0x5   :  { %11396 = sst [smem:[#allocation10_spill]] %s11362_s4 }
   0x6   :  { %s11397_s23 = sld [smem:[#allocation8_spill]]  ;;  %s11398_s29 = sld [smem:[#allocation6_spill]] }
   0xc   :  { %v8228_v0 = vld [vmem:[%s11397_s23 + $0x40] sm:$0xff]   ;;  %v8232_v4 = vld [vmem:[%s11397_s23 + $0x48] sm:$0xff]   ;;  %v8236_v8 = vld [vmem:[%s11397_s23 + $0x50] sm:$0xff]  }
   0xd   :  { %v8229_v1 = vld [vmem:[%s11397_s23 + $0xc0] sm:$0xff]   ;;  %7352 = vmatprep.subr.bf16.mxu0 %v8228_v0  ;;  %v8233_v5 = vld [vmem:[%s11397_s23 + $0xc8] sm:$0xff]   ;;  %v8237_v9 = vld [vmem:[%s11397_s23 + $0xd0] sm:$0xff]  }
   0xe   :  { %v8230_v2 = vld [vmem:[%s11397_s23] sm:$0xff]   ;;  %7392 = vmatprep.subr.bf16.mxu1 %v8229_v1  ;;  %v8234_v6 = vld [vmem:[%s11397_s23 + $0x8] sm:$0xff]   ;;  %v8238_v10 = vld [vmem:[%s11397_s23 + $0x10] sm:$0xff]  }
   0xf   :  { %v8231_v3 = vld [vmem:[%s11397_s23 + $0x80] sm:$0xff]   ;;  %7353 = vmatpush3.bf16.msra.mxu0 %v8230_v2  ;;  %v8235_v7 = vld [vmem:[%s11397_s23 + $0x88] sm:$0xff]   ;;  %v8239_v11 = vld [vmem:[%s11397_s23 + $0x90] sm:$0xff]  }
  0x10   :  { %7393 = vmatpush3.bf16.msra.mxu1 %v8231_v3  ;;  %7354 = vmatprep.subr.bf16.mxu0 %v8232_v4  ;;  %v8240_v12 = vld [vmem:[%s11397_s23 + $0x58] sm:$0xff]   ;;  %v8244_v16 = vld [vmem:[%s11397_s23 + $0x60] sm:$0xff]   ;;  %v8248_v20 = vld [vmem:[%s11397_s23 + $0x68] sm:$0xff]  }
  0x11   :  { %7394 = vmatprep.subr.bf16.mxu1 %v8233_v5  ;;  %v8241_v13 = vld [vmem:[%s11397_s23 + $0xd8] sm:$0xff]   ;;  %v8245_v17 = vld [vmem:[%s11397_s23 + $0xe0] sm:$0xff]   ;;  %v8249_v21 = vld [vmem:[%s11397_s23 + $0xe8] sm:$0xff]  }
  0x12   :  { %v8242_v14 = vld [vmem:[%s11397_s23 + $0x18] sm:$0xff]   ;;  %v8246_v18 = vld [vmem:[%s11397_s23 + $0x20] sm:$0xff]   ;;  %v8250_v22 = vld [vmem:[%s11397_s23 + $0x28] sm:$0xff]  }
  0x13   :  { %7355 = vmatpush3.bf16.msra.mxu0 %v8234_v6  ;;  %v8243_v15 = vld [vmem:[%s11397_s23 + $0x98] sm:$0xff]   ;;  %v8247_v19 = vld [vmem:[%s11397_s23 + $0xa0] sm:$0xff]   ;;  %v8251_v23 = vld [vmem:[%s11397_s23 + $0xa8] sm:$0xff]  }
  0x14   :  { %7395 = vmatpush3.bf16.msra.mxu1 %v8235_v7  ;;  %7356 = vmatprep.subr.bf16.mxu0 %v8236_v8  ;;  %v8252_v24 = vld [vmem:[%s11397_s23 + $0x70] sm:$0xff]   ;;  %v8256_v28 = vld [vmem:[%s11397_s23 + $0x78] sm:$0xff]   ;;  %v8266_v36 = vld [vmem:[%s11397_s23 + $0x140] sm:$0xff]  }
  0x15   :  { %7396 = vmatprep.subr.bf16.mxu1 %v8237_v9  ;;  %v8253_v25 = vld [vmem:[%s11397_s23 + $0xf0] sm:$0xff]   ;;  %v8257_v29 = vld [vmem:[%s11397_s23 + $0xf8] sm:$0xff]   ;;  %v8267_v37 = vld [vmem:[%s11397_s23 + $0x1c0] sm:$0xff]  }
  0x16   :  { %v8254_v26 = vld [vmem:[%s11397_s23 + $0x30] sm:$0xff]   ;;  %v8258_v30 = vld [vmem:[%s11397_s23 + $0x38] sm:$0xff]   ;;  %v8268_v38 = vld [vmem:[%s11397_s23 + $0x100] sm:$0xff]  }
  0x17   :  { %7357 = vmatpush3.bf16.msra.mxu0 %v8238_v10  ;;  %v8255_v27 = vld [vmem:[%s11397_s23 + $0xb0] sm:$0xff]   ;;  %v8259_v31 = vld [vmem:[%s11397_s23 + $0xb8] sm:$0xff]   ;;  %v8269_v39 = vld [vmem:[%s11397_s23 + $0x180] sm:$0xff]  }
  0x18   :  { %7397 = vmatpush3.bf16.msra.mxu1 %v8239_v11  ;;  %7358 = vmatprep.subr.bf16.mxu0 %v8240_v12  ;;  %v8260_v32 = vld [vmem:[%s11398_s29] ss:$48 sps:$4 sm:$0xff]   ;;  %v8262_v33 = vld [vmem:[%s11398_s29 + $0x4] ss:$48 sps:$4 sm:$0xff]   ;;  %v8263_v34 = vld [vmem:[%s11398_s29 + $0x8] ss:$48 sps:$4 sm:$0xff]  }
  0x19   :  { %7398 = vmatprep.subr.bf16.mxu1 %v8241_v13  ;;  %v8265_v35 = vld [vmem:[%s11398_s29 + $0xc] ss:$48 sps:$4 sm:$0xff]   ;;  %1163 = vmatprep.mubr.bf16.mxu0 %v8262_v33  ;;  %v8274_v44 = vld [vmem:[%s11398_s29 + $0x64] ss:$48 sps:$4 sm:$0xff]   ;;  %v8278_v46 = vld [vmem:[%s11398_s29 + $0x60] ss:$48 sps:$4 sm:$0xff]  }
  0x1a   :  { %1228 = vmatprep.mubr.bf16.mxu1 %v8265_v35  ;;  %v8270_v40 = vld [vmem:[%s11397_s23 + $0x148] sm:$0xff]   ;;  %v8280_v48 = vld [vmem:[%s11397_s23 + $0x150] sm:$0xff]   ;;  %v8284_v52 = vld [vmem:[%s11397_s23 + $0x158] sm:$0xff]  }
  0x1b   :  { %7359 = vmatpush3.bf16.msra.mxu0 %v8242_v14  ;;  %v8271_v41 = vld [vmem:[%s11397_s23 + $0x1c8] sm:$0xff]   ;;  %v8281_v49 = vld [vmem:[%s11397_s23 + $0x1d0] sm:$0xff]   ;;  %v8285_v53 = vld [vmem:[%s11397_s23 + $0x1d8] sm:$0xff]  }
  0x1c   :  { %7399 = vmatpush3.bf16.msra.mxu1 %v8243_v15  ;;  %7360 = vmatprep.subr.bf16.mxu0 %v8244_v16  ;;  %v8272_v42 = vld [vmem:[%s11397_s23 + $0x108] sm:$0xff]   ;;  %v8282_v50 = vld [vmem:[%s11397_s23 + $0x110] sm:$0xff]   ;;  %v8286_v54 = vld [vmem:[%s11397_s23 + $0x118] sm:$0xff]  }
  0x1d   :  { %7400 = vmatprep.subr.bf16.mxu1 %v8245_v17  ;;  %v8273_v43 = vld [vmem:[%s11397_s23 + $0x188] sm:$0xff]   ;;  %v8283_v51 = vld [vmem:[%s11397_s23 + $0x190] sm:$0xff]   ;;  %v8287_v55 = vld [vmem:[%s11397_s23 + $0x198] sm:$0xff]  }
  0x1e   :  { %v8276_v45 = vld [vmem:[%s11398_s29 + $0x6c] ss:$48 sps:$4 sm:$0xff]   ;;  %v8279_v47 = vld [vmem:[%s11398_s29 + $0x68] ss:$48 sps:$4 sm:$0xff]   ;;  %v8288_v56 = vld [vmem:[%s11398_s29 + $0xc4] ss:$48 sps:$4 sm:$0xff]  }
  0x1f   :  { %7361 = vmatpush3.bf16.msra.mxu0 %v8246_v18  ;;  %v8290_v57 = vld [vmem:[%s11398_s29 + $0xcc] ss:$48 sps:$4 sm:$0xff]   ;;  %v8292_v58 = vld [vmem:[%s11398_s29 + $0xc0] ss:$48 sps:$4 sm:$0xff]   ;;  %v8293_v59 = vld [vmem:[%s11398_s29 + $0xc8] ss:$48 sps:$4 sm:$0xff]  }
  0x20   :  { %7401 = vmatpush3.bf16.msra.mxu1 %v8247_v19  ;;  %7362 = vmatprep.subr.bf16.mxu0 %v8248_v20  ;;  %v8294_v60 = vld [vmem:[%s11397_s23 + $0x160] sm:$0xff]   ;;  %v8298_v0 = vld [vmem:[%s11397_s23 + $0x168] sm:$0xff]   ;;  %v8308_v8 = vld [vmem:[%s11397_s23 + $0x170] sm:$0xff]  }
  0x21   :  { %7402 = vmatprep.subr.bf16.mxu1 %v8249_v21  ;;  %v8295_v61 = vld [vmem:[%s11397_s23 + $0x1e0] sm:$0xff]   ;;  %v8299_v1 = vld [vmem:[%s11397_s23 + $0x1e8] sm:$0xff]   ;;  %v8309_v9 = vld [vmem:[%s11397_s23 + $0x1f0] sm:$0xff]  }
  0x22   :  { %v8296_v62 = vld [vmem:[%s11397_s23 + $0x120] sm:$0xff]   ;;  %v8300_v2 = vld [vmem:[%s11397_s23 + $0x128] sm:$0xff]   ;;  %v8310_v10 = vld [vmem:[%s11397_s23 + $0x130] sm:$0xff]  }
  0x23   :  { %7363 = vmatpush3.bf16.msra.mxu0 %v8250_v22  ;;  %v8297_v63 = vld [vmem:[%s11397_s23 + $0x1a0] sm:$0xff]   ;;  %v8301_v3 = vld [vmem:[%s11397_s23 + $0x1a8] sm:$0xff]   ;;  %v8311_v11 = vld [vmem:[%s11397_s23 + $0x1b0] sm:$0xff]  }
  0x24   :  { %7403 = vmatpush3.bf16.msra.mxu1 %v8251_v23  ;;  %7364 = vmatprep.subr.bf16.mxu0 %v8252_v24  ;;  %v8302_v4 = vld [vmem:[%s11398_s29 + $0x124] ss:$48 sps:$4 sm:$0xff]   ;;  %v8304_v5 = vld [vmem:[%s11398_s29 + $0x12c] ss:$48 sps:$4 sm:$0xff]   ;;  %v8306_v6 = vld [vmem:[%s11398_s29 + $0x120] ss:$48 sps:$4 sm:$0xff]  }
  0x25   :  { %7404 = vmatprep.subr.bf16.mxu1 %v8253_v25  ;;  %v8307_v7 = vld [vmem:[%s11398_s29 + $0x128] ss:$48 sps:$4 sm:$0xff]   ;;  %v8316_v16 = vld [vmem:[%s11398_s29 + $0x10] ss:$48 sps:$4 sm:$0xff]   ;;  %v8318_v17 = vld [vmem:[%s11398_s29 + $0x14] ss:$48 sps:$4 sm:$0xff]  }
  0x26   :  { %v8312_v12 = vld [vmem:[%s11397_s23 + $0x178] sm:$0xff]   ;;  %v8322_v20 = vld [vmem:[%s11397_s23 + $0x240] sm:$0xff]   ;;  %v8326_v24 = vld [vmem:[%s11397_s23 + $0x248] sm:$0xff]  }
  0x27   :  { %7365 = vmatpush3.bf16.msra.mxu0 %v8254_v26  ;;  %v8313_v13 = vld [vmem:[%s11397_s23 + $0x1f8] sm:$0xff]   ;;  %v8323_v21 = vld [vmem:[%s11397_s23 + $0x2c0] sm:$0xff]   ;;  %v8327_v25 = vld [vmem:[%s11397_s23 + $0x2c8] sm:$0xff]  }
  0x28   :  { %7405 = vmatpush3.bf16.msra.mxu1 %v8255_v27  ;;  %7366 = vmatprep.subr.bf16.mxu0 %v8256_v28  ;;  %v8314_v14 = vld [vmem:[%s11397_s23 + $0x138] sm:$0xff]   ;;  %v8324_v22 = vld [vmem:[%s11397_s23 + $0x200] sm:$0xff]   ;;  %v8328_v26 = vld [vmem:[%s11397_s23 + $0x208] sm:$0xff]  }
  0x29   :  { %7406 = vmatprep.subr.bf16.mxu1 %v8257_v29  ;;  %v8315_v15 = vld [vmem:[%s11397_s23 + $0x1b8] sm:$0xff]   ;;  %v8325_v23 = vld [vmem:[%s11397_s23 + $0x280] sm:$0xff]   ;;  %v8329_v27 = vld [vmem:[%s11397_s23 + $0x288] sm:$0xff]  }
  0x2a   :  { %v8319_v18 = vld [vmem:[%s11398_s29 + $0x18] ss:$48 sps:$4 sm:$0xff]   ;;  %v8321_v19 = vld [vmem:[%s11398_s29 + $0x1c] ss:$48 sps:$4 sm:$0xff]   ;;  %v8330_v28 = vld [vmem:[%s11398_s29 + $0x74] ss:$48 sps:$4 sm:$0xff]  }
  0x2b   :  { %7367 = vmatpush3.bf16.msra.mxu0 %v8258_v30  ;;  %v8332_v29 = vld [vmem:[%s11398_s29 + $0x7c] ss:$48 sps:$4 sm:$0xff]   ;;  %v8334_v30 = vld [vmem:[%s11398_s29 + $0x70] ss:$48 sps:$4 sm:$0xff]  }
  0x2c   :  { %7407 = vmatpush3.bf16.msra.mxu1 %v8259_v31  ;;  %7432 = vmatprep.subr.bf16.mxu0 %v8266_v36  ;;  %v8335_v31 = vld [vmem:[%s11398_s29 + $0x78] ss:$48 sps:$4 sm:$0xff]   ;;  %v8337_v33 = vld [vmem:[%s11397_s23 + $0x2d0] sm:$0xff]  }
  0x2d   :  { %7472 = vmatprep.subr.bf16.mxu1 %v8267_v37  ;;  %v8339_v35 = vld [vmem:[%s11397_s23 + $0x290] sm:$0xff]   ;;  %v8340_v36 = vld [vmem:[%s11397_s23 + $0x258] sm:$0xff]  }
  0x2e   :  { %1164 = vmatmul.mubr.bf16.vlgmr.msra.gmra.mrb[0].mxu0 %v8260_v32  ;;  %v8336_v32 = vld [vmem:[%s11397_s23 + $0x250] sm:$0xff]   ;;  %v8341_v37 = vld [vmem:[%s11397_s23 + $0x2d8] sm:$0xff]  }
  0x2f   :  { %1229 = vmatmul.mubr.bf16.vlgmr.msra.gmra.mrb[0].mxu1 %v8263_v34  ;;  %7433 = vmatpush3.bf16.msra.mxu0 %v8268_v38  ;;  %v8338_v34 = vld [vmem:[%s11397_s23 + $0x210] sm:$0xff]   ;;  %v8342_v38 = vld [vmem:[%s11397_s23 + $0x218] sm:$0xff]  }
  0x30   :  { %7473 = vmatpush3.bf16.msra.mxu1 %v8269_v39  ;;  %7434 = vmatprep.subr.bf16.mxu0 %v8270_v40  ;;  %v8343_v39 = vld [vmem:[%s11397_s23 + $0x298] sm:$0xff]   ;;  %v8344_v40 = vld [vmem:[%s11398_s29 + $0xd4] ss:$48 sps:$4 sm:$0xff]  }
  0x31   :  { %7474 = vmatprep.subr.bf16.mxu1 %v8271_v41  ;;  %1171 = vmatprep.mubr.bf16.mxu0 %v8274_v44  ;;  %v8346_v41 = vld [vmem:[%s11398_s29 + $0xdc] ss:$48 sps:$4 sm:$0xff]   ;;  %v8350_v44 = vld [vmem:[%s11397_s23 + $0x260] sm:$0xff]  }
  0x32   :  { %1236 = vmatprep.mubr.bf16.mxu1 %v8276_v45  ;;  %v8351_v45 = vld [vmem:[%s11397_s23 + $0x2e0] sm:$0xff]  }
  0x33   :  { %7435 = vmatpush3.bf16.msra.mxu0 %v8272_v42  ;;  %v8348_v42 = vld [vmem:[%s11398_s29 + $0xd0] ss:$48 sps:$4 sm:$0xff]  }
  0x34   :  { %7475 = vmatpush3.bf16.msra.mxu1 %v8273_v43  ;;  %7436 = vmatprep.subr.bf16.mxu0 %v8280_v48  ;;  %v8349_v43 = vld [vmem:[%s11398_s29 + $0xd8] ss:$48 sps:$4 sm:$0xff]  }
  0x35   :  { %7476 = vmatprep.subr.bf16.mxu1 %v8281_v49  ;;  %v8354_v48 = vld [vmem:[%s11397_s23 + $0x268] sm:$0xff]  }
  0x36   :  { %1172 = vmatmul.mubr.bf16.gmra.mrb[4].mxu0 %v8278_v46  ;;  %v8352_v46 = vld [vmem:[%s11397_s23 + $0x220] sm:$0xff]   ;;  %v8355_v49 = vld [vmem:[%s11397_s23 + $0x2e8] sm:$0xff]  }
  0x37   :  { %1237 = vmatmul.mubr.bf16.gmra.mrb[4].mxu1 %v8279_v47  ;;  %7437 = vmatpush3.bf16.msra.mxu0 %v8282_v50  ;;  %v8353_v47 = vld [vmem:[%s11397_s23 + $0x2a0] sm:$0xff]   ;;  %v8356_v50 = vld [vmem:[%s11397_s23 + $0x228] sm:$0xff]  }
  0x38   :  { %7477 = vmatpush3.bf16.msra.mxu1 %v8283_v51  ;;  %7438 = vmatprep.subr.bf16.mxu0 %v8284_v52  ;;  %v8357_v51 = vld [vmem:[%s11397_s23 + $0x2a8] sm:$0xff]   ;;  %v8358_v52 = vld [vmem:[%s11398_s29 + $0x134] ss:$48 sps:$4 sm:$0xff]  }
  0x39   :  { %7478 = vmatprep.subr.bf16.mxu1 %v8285_v53  ;;  %1179 = vmatprep.mubr.bf16.mxu0 %v8288_v56  ;;  %v8360_v53 = vld [vmem:[%s11398_s29 + $0x13c] ss:$48 sps:$4 sm:$0xff]   ;;  %v8364_v56 = vld [vmem:[%s11397_s23 + $0x270] sm:$0xff]  }
  0x3a   :  { %1244 = vmatprep.mubr.bf16.mxu1 %v8290_v57  ;;  %v8365_v57 = vld [vmem:[%s11397_s23 + $0x2f0] sm:$0xff]  }
  0x3b   :  { %7439 = vmatpush3.bf16.msra.mxu0 %v8286_v54  ;;  %v8362_v54 = vld [vmem:[%s11398_s29 + $0x130] ss:$48 sps:$4 sm:$0xff]  }
  0x3c   :  { %7479 = vmatpush3.bf16.msra.mxu1 %v8287_v55  ;;  %7440 = vmatprep.subr.bf16.mxu0 %v8294_v60  ;;  %v8363_v55 = vld [vmem:[%s11398_s29 + $0x138] ss:$48 sps:$4 sm:$0xff]  }
  0x3d   :  { %7480 = vmatprep.subr.bf16.mxu1 %v8295_v61  ;;  %v8368_v60 = vld [vmem:[%s11397_s23 + $0x278] sm:$0xff]  }
  0x3e   :  { %1180 = vmatmul.mubr.bf16.gmra.mrb[8].mxu0 %v8292_v58  ;;  %v8366_v58 = vld [vmem:[%s11397_s23 + $0x230] sm:$0xff]   ;;  %v8369_v61 = vld [vmem:[%s11397_s23 + $0x2f8] sm:$0xff]  }
  0x3f   :  { %1245 = vmatmul.mubr.bf16.gmra.mrb[8].mxu1 %v8293_v59  ;;  %7441 = vmatpush3.bf16.msra.mxu0 %v8296_v62  ;;  %v8367_v59 = vld [vmem:[%s11397_s23 + $0x2b0] sm:$0xff]   ;;  %v8370_v62 = vld [vmem:[%s11397_s23 + $0x238] sm:$0xff]  }
  0x40   :  { %7481 = vmatpush3.bf16.msra.mxu1 %v8297_v63  ;;  %7442 = vmatprep.subr.bf16.mxu0 %v8298_v0  ;;  %v8371_v63 = vld [vmem:[%s11397_s23 + $0x2b8] sm:$0xff]   ;;  %v8372_v0 = vld [vmem:[%s11398_s29 + $0x20] ss:$48 sps:$4 sm:$0xff]  }
  0x41   :  { %7482 = vmatprep.subr.bf16.mxu1 %v8299_v1  ;;  %1187 = vmatprep.mubr.bf16.mxu0 %v8302_v4  ;;  %v8374_v1 = vld [vmem:[%s11398_s29 + $0x24] ss:$48 sps:$4 sm:$0xff]  }
  0x42   :  { %1252 = vmatprep.mubr.bf16.mxu1 %v8304_v5  ;;  %v8378_v4 = vld [vmem:[%s11398_s29 + $0x84] ss:$48 sps:$4 sm:$0xff]   ;;  %v8380_v5 = vld [vmem:[%s11398_s29 + $0x8c] ss:$48 sps:$4 sm:$0xff]  }
  0x43   :  { %7443 = vmatpush3.bf16.msra.mxu0 %v8300_v2  ;;  %v8375_v2 = vld [vmem:[%s11398_s29 + $0x28] ss:$48 sps:$4 sm:$0xff]  }
  0x44   :  { %7483 = vmatpush3.bf16.msra.mxu1 %v8301_v3  ;;  %7444 = vmatprep.subr.bf16.mxu0 %v8308_v8  ;;  %v8377_v3 = vld [vmem:[%s11398_s29 + $0x2c] ss:$48 sps:$4 sm:$0xff]   ;;  %v8384_v8 = vld [vmem:[%s11398_s29 + $0xe4] ss:$48 sps:$4 sm:$0xff]  }
  0x45   :  { %7484 = vmatprep.subr.bf16.mxu1 %v8309_v9  ;;  %v8387_v9 = vld [vmem:[%s11398_s29 + $0xec] ss:$48 sps:$4 sm:$0xff]  }
  0x46   :  { %1188 = vmatmul.mubr.bf16.gmra.mrb[12].mxu0 %v8306_v6  ;;  %v8382_v6 = vld [vmem:[%s11398_s29 + $0x80] ss:$48 sps:$4 sm:$0xff]  }
  0x47   :  { %1253 = vmatmul.mubr.bf16.gmra.mrb[12].mxu1 %v8307_v7  ;;  %7445 = vmatpush3.bf16.msra.mxu0 %v8310_v10  ;;  %v8383_v7 = vld [vmem:[%s11398_s29 + $0x88] ss:$48 sps:$4 sm:$0xff]   ;;  %v8386_v10 = vld [vmem:[%s11398_s29 + $0xe0] ss:$48 sps:$4 sm:$0xff]  }
  0x48   :  { %7485 = vmatpush3.bf16.msra.mxu1 %v8311_v11  ;;  %7446 = vmatprep.subr.bf16.mxu0 %v8312_v12  ;;  %v8389_v11 = vld [vmem:[%s11398_s29 + $0xe8] ss:$48 sps:$4 sm:$0xff]   ;;  %v8390_v12 = vld [vmem:[%s11398_s29 + $0x144] ss:$48 sps:$4 sm:$0xff]  }
  0x49   :  { %7486 = vmatprep.subr.bf16.mxu1 %v8313_v13  ;;  %1293 = vmatprep.mubr.bf16.mxu0 %v8318_v17  ;;  %v8393_v13 = vld [vmem:[%s11398_s29 + $0x14c] ss:$48 sps:$4 sm:$0xff]  }
  0x4a   :  { %1358 = vmatprep.mubr.bf16.mxu1 %v8321_v19 }
  0x4b   :  { %7447 = vmatpush3.bf16.msra.mxu0 %v8314_v14  ;;  %v8392_v14 = vld [vmem:[%s11398_s29 + $0x140] ss:$48 sps:$4 sm:$0xff]  }
  0x4c   :  { %7487 = vmatpush3.bf16.msra.mxu1 %v8315_v15  ;;  %7512 = vmatprep.subr.bf16.mxu0 %v8322_v20  ;;  %v8395_v15 = vld [vmem:[%s11398_s29 + $0x148] ss:$48 sps:$4 sm:$0xff]  }
  0x4d   :  { %7552 = vmatprep.subr.bf16.mxu1 %v8323_v21 }
  0x4e   :  { %1294 = vmatmul.mubr.bf16.vlgmr.msra.gmra.mrb[16].mxu0 %v8316_v16 }
  0x4f   :  { %1359 = vmatmul.mubr.bf16.vlgmr.msra.gmra.mrb[16].mxu1 %v8319_v18  ;;  %7513 = vmatpush3.bf16.msra.mxu0 %v8324_v22 }
  0x50   :  { %7553 = vmatpush3.bf16.msra.mxu1 %v8325_v23  ;;  %7514 = vmatprep.subr.bf16.mxu0 %v8326_v24 }
  0x51   :  { %7554 = vmatprep.subr.bf16.mxu1 %v8327_v25  ;;  %1301 = vmatprep.mubr.bf16.mxu0 %v8330_v28 }
  0x52   :  { %1366 = vmatprep.mubr.bf16.mxu1 %v8332_v29 }
  0x53   :  { %7515 = vmatpush3.bf16.msra.mxu0 %v8328_v26 }
  0x54   :  { %7555 = vmatpush3.bf16.msra.mxu1 %v8329_v27  ;;  %7516 = vmatprep.subr.bf16.mxu0 %v8336_v32 }
  0x55   :  { %7556 = vmatprep.subr.bf16.mxu1 %v8337_v33 }
  0x56   :  { %1302 = vmatmul.mubr.bf16.gmra.mrb[20].mxu0 %v8334_v30 }
  0x57   :  { %1367 = vmatmul.mubr.bf16.gmra.mrb[20].mxu1 %v8335_v31  ;;  %7517 = vmatpush3.bf16.msra.mxu0 %v8338_v34 }
  0x58   :  { %7557 = vmatpush3.bf16.msra.mxu1 %v8339_v35  ;;  %7518 = vmatprep.subr.bf16.mxu0 %v8340_v36 }
  0x59   :  { %7558 = vmatprep.subr.bf16.mxu1 %v8341_v37  ;;  %1309 = vmatprep.mubr.bf16.mxu0 %v8344_v40 }
  0x5a   :  { %1374 = vmatprep.mubr.bf16.mxu1 %v8346_v41 }
  0x5b   :  { %7519 = vmatpush3.bf16.msra.mxu0 %v8342_v38 }
  0x5c   :  { %7559 = vmatpush3.bf16.msra.mxu1 %v8343_v39  ;;  %7520 = vmatprep.subr.bf16.mxu0 %v8350_v44 }
  0x5d   :  { %7560 = vmatprep.subr.bf16.mxu1 %v8351_v45 }
  0x5e   :  { %1310 = vmatmul.mubr.bf16.gmra.mrb[24].mxu0 %v8348_v42 }
  0x5f   :  { %1375 = vmatmul.mubr.bf16.gmra.mrb[24].mxu1 %v8349_v43  ;;  %7521 = vmatpush3.bf16.msra.mxu0 %v8352_v46 }
  0x60   :  { %7561 = vmatpush3.bf16.msra.mxu1 %v8353_v47  ;;  %7522 = vmatprep.subr.bf16.mxu0 %v8354_v48 }
  0x61   :  { %7562 = vmatprep.subr.bf16.mxu1 %v8355_v49  ;;  %1317 = vmatprep.mubr.bf16.mxu0 %v8358_v52 }
  0x62   :  { %1382 = vmatprep.mubr.bf16.mxu1 %v8360_v53 }
  0x63   :  { %7523 = vmatpush3.bf16.msra.mxu0 %v8356_v50 }
  0x64   :  { %7563 = vmatpush3.bf16.msra.mxu1 %v8357_v51  ;;  %7524 = vmatprep.subr.bf16.mxu0 %v8364_v56 }
  0x65   :  { %7564 = vmatprep.subr.bf16.mxu1 %v8365_v57 }
  0x66   :  { %1318 = vmatmul.mubr.bf16.gmra.mrb[28].mxu0 %v8362_v54 }
  0x67   :  { %1383 = vmatmul.mubr.bf16.gmra.mrb[28].mxu1 %v8363_v55  ;;  %7525 = vmatpush3.bf16.msra.mxu0 %v8366_v58 }
  0x68   :  { %7565 = vmatpush3.bf16.msra.mxu1 %v8367_v59  ;;  %7526 = vmatprep.subr.bf16.mxu0 %v8368_v60 }
  0x69   :  { %7566 = vmatprep.subr.bf16.mxu1 %v8369_v61  ;;  %1423 = vmatprep.mubr.bf16.mxu0 %v8374_v1 }
  0x6a   :  { %1488 = vmatprep.mubr.bf16.mxu1 %v8377_v3 }
  0x6b   :  { %7527 = vmatpush3.bf16.msra.mxu0 %v8370_v62 }
  0x6c   :  { %7567 = vmatpush3.bf16.msra.mxu1 %v8371_v63 }
  0x6e   :  { %1424 = vmatmul.mubr.bf16.vlgmr.msra.gmra.mrb[32].mxu0 %v8372_v0 }
  0x6f   :  { %1489 = vmatmul.mubr.bf16.vlgmr.msra.gmra.mrb[32].mxu1 %v8375_v2  ;;  %1431 = vmatprep.mubr.bf16.mxu0 %v8378_v4 }
  0x70   :  { %1496 = vmatprep.mubr.bf16.mxu1 %v8380_v5 }
  0x76   :  { %1432 = vmatmul.mubr.bf16.gmra.mrb[36].mxu0 %v8382_v6 }
  0x77   :  { %1497 = vmatmul.mubr.bf16.gmra.mrb[36].mxu1 %v8383_v7  ;;  %1439 = vmatprep.mubr.bf16.mxu0 %v8384_v8 }
  0x78   :  { %1504 = vmatprep.mubr.bf16.mxu1 %v8387_v9 }
  0x7e   :  { %1440 = vmatmul.mubr.bf16.gmra.mrb[40].mxu0 %v8386_v10 }
  0x7f   :  { %1505 = vmatmul.mubr.bf16.gmra.mrb[40].mxu1 %v8389_v11  ;;  %1447 = vmatprep.mubr.bf16.mxu0 %v8390_v12 }
  0x80   :  { %1512 = vmatprep.mubr.bf16.mxu1 %v8393_v13 }
  0x86   :  { %1448 = vmatmul.mubr.bf16.gmra.mrb[44].mxu0 %v8392_v14 }
  0x87   :  { %1513 = vmatmul.mubr.bf16.gmra.mrb[44].mxu1 %v8395_v15 }
  0x88   :  { %25 = vsyncpa [#allocation4], 0  ;;  %s11399_s0 = sld [smem:[#allocation7_spill]]  ;;  %vm1523_vm0 = vcmask 523264   ;;  %s11400_s29 = sld [smem:[#allocation9_spill]]  ;;  %vm1814_vm1 = vcmask 130048  }
  0x89   :  { %s11401_s24 = sld [smem:[#allocation10_spill]]  ;;  %s8895_s3 = smov 64   ;;  %vm1876_vm2 = vcmask 261120   ;;  %vm2178_vm3 = vcmask 261248   ;;  %vm2375_vm4 = vcmask 392448   ;;  %vm2572_vm5 = vcmask 523648  }
  0x8a   :  { %s8896_s26 = smov 48   ;;  %s8897_s27 = smov 112   ;;  %vm8903_vm6 = vmmov 0   ;;  %vm6836_vm7 = vcmask 517120  }
  0x8b   :  { %s11390_s28 = smov 32   ;;  %s11386_s4 = smov 96  }
  0x8c   :  { %s11388_s30 = smov 16   ;;  %s11403_s25 = smov 32  }
  0x8d   :  { %s11404_s21 = smov 16   ;;  %s11405_s23 = smov 80  }
  0x8e   :  { %v307_v18 = vld [vmem:[%s11399_s0] sm:$0xff]  ;;  %v308_v25 = vld [vmem:[%s11399_s0 + $0x8] sm:$0xff]  ;;  %v309_v36 = vld [vmem:[%s11399_s0 + $0x10] sm:$0xff] }
  0x8f   :  { %v310_v43 = vld [vmem:[%s11399_s0 + $0x18] sm:$0xff]  ;;  %v311_v54 = vld [vmem:[%s11399_s0 + $0x20] sm:$0xff]  ;;  %v312_v61 = vld [vmem:[%s11399_s0 + $0x28] sm:$0xff] }
  0x90   :  { %v313_v8 = vld [vmem:[%s11399_s0 + $0x30] sm:$0xff]  ;;  %v314_v15 = vld [vmem:[%s11399_s0 + $0x38] sm:$0xff]  ;;  %s11384_s0 = smov 80  }
 0x101   :  { %v7368_v16 = vpop.f32.mrb[0].mxu0 }
 0x102   :  { %v7408_v17 = vpop.f32.mrb[0].mxu1  ;;  %v7369_v19 = vpop.f32.mrb[1].mxu0 }
 0x103   :  { %v7370_v20 = vadd.f32 %v7369_v19, %v7368_v16  ;;  %v7409_v21 = vpop.f32.mrb[1].mxu1  ;;  %v7371_v22 = vpop.f32.mrb[2].mxu0 }
 0x104   :  { %v7410_v23 = vadd.f32 %v7409_v21, %v7408_v17  ;;  %v7411_v24 = vpop.f32.mrb[2].mxu1  ;;  %v7372_v26 = vpop.f32.mrb[3].mxu0 }
 0x105   :  { %v1166_v27 = vadd.f32 %v7370_v20, %v307_v18  ;;  %v7373_v28 = vadd.f32 %v7372_v26, %v7371_v22  ;;  %v7412_v29 = vpop.f32.mrb[3].mxu1 }
 0x106   :  { %v7413_v30 = vadd.f32 %v7412_v29, %v7411_v24 }
 0x107   :  { %v9449_v31 = vadd.f32 %v7410_v23, %v1166_v27  ;;  %v1169_v32 = vadd.f32 %v7373_v28, %v308_v25 }
 0x109   :  { %v9451_v33 = vadd.f32 %v7413_v30, %v1169_v32  ;;  %v7374_v34 = vpop.f32.mrb[4].mxu0 }
 0x10a   :  { %v7414_v35 = vpop.f32.mrb[4].mxu1  ;;  %v7375_v37 = vpop.f32.mrb[5].mxu0 }
 0x10b   :  { %v7376_v38 = vadd.f32 %v7375_v37, %v7374_v34  ;;  %v7415_v39 = vpop.f32.mrb[5].mxu1  ;;  %v7377_v40 = vpop.f32.mrb[6].mxu0 }
 0x10c   :  { %v7416_v41 = vadd.f32 %v7415_v39, %v7414_v35  ;;  %v7417_v42 = vpop.f32.mrb[6].mxu1  ;;  %v7378_v44 = vpop.f32.mrb[7].mxu0 }
 0x10d   :  { %v1174_v45 = vadd.f32 %v7376_v38, %v309_v36  ;;  %v7379_v46 = vadd.f32 %v7378_v44, %v7377_v40  ;;  %v7418_v47 = vpop.f32.mrb[7].mxu1 }
 0x10e   :  { %v7419_v48 = vadd.f32 %v7418_v47, %v7417_v42 }
 0x10f   :  { %v9459_v49 = vadd.f32 %v7416_v41, %v1174_v45  ;;  %v1177_v50 = vadd.f32 %v7379_v46, %v310_v43 }
 0x111   :  { %v9461_v51 = vadd.f32 %v7419_v48, %v1177_v50  ;;  %v7380_v52 = vpop.f32.mrb[8].mxu0 }
 0x112   :  { %v7420_v53 = vpop.f32.mrb[8].mxu1  ;;  %v7381_v55 = vpop.f32.mrb[9].mxu0 }
 0x113   :  { %v7382_v56 = vadd.f32 %v7381_v55, %v7380_v52  ;;  %v7421_v57 = vpop.f32.mrb[9].mxu1  ;;  %v7383_v58 = vpop.f32.mrb[10].mxu0 }
 0x114   :  { %v7422_v59 = vadd.f32 %v7421_v57, %v7420_v53  ;;  %v7423_v60 = vpop.f32.mrb[10].mxu1  ;;  %v7384_v62 = vpop.f32.mrb[11].mxu0 }
 0x115   :  { %v1182_v63 = vadd.f32 %v7382_v56, %v311_v54  ;;  %v7385_v0 = vadd.f32 %v7384_v62, %v7383_v58  ;;  %v7424_v1 = vpop.f32.mrb[11].mxu1 }
 0x116   :  { %v7425_v2 = vadd.f32 %v7424_v1, %v7423_v60 }
 0x117   :  { %v9469_v3 = vadd.f32 %v7422_v59, %v1182_v63  ;;  %v1185_v4 = vadd.f32 %v7385_v0, %v312_v61 }
 0x119   :  { %v9471_v5 = vadd.f32 %v7425_v2, %v1185_v4  ;;  %v7386_v6 = vpop.f32.mrb[12].mxu0 }
 0x11a   :  { %v7426_v7 = vpop.f32.mrb[12].mxu1  ;;  %v7387_v9 = vpop.f32.mrb[13].mxu0 }
 0x11b   :  { %v7427_v10 = vpop.f32.mrb[13].mxu1  ;;  %v7388_v11 = vadd.f32 %v7387_v9, %v7386_v6  ;;  %v7389_v13 = vpop.f32.mrb[14].mxu0 }
 0x11c   :  { %v7428_v12 = vadd.f32 %v7427_v10, %v7426_v7  ;;  %v7429_v14 = vpop.f32.mrb[14].mxu1  ;;  %v7390_v16 = vpop.f32.mrb[15].mxu0 }
 0x11d   :  { %v7430_v17 = vpop.f32.mrb[15].mxu1  ;;  %v1190_v18 = vadd.f32 %v7388_v11, %v313_v8  ;;  %v7391_v19 = vadd.f32 %v7390_v16, %v7389_v13 }
 0x11e   :  { %v7431_v20 = vadd.f32 %v7430_v17, %v7429_v14 }
 0x11f   :  { %v1255_v21 = vadd.f32 %v7428_v12, %v1190_v18  ;;  %v1193_v22 = vadd.f32 %v7391_v19, %v314_v15 }
 0x121   :  { %v9479_v23 = vadd.f32 %v7431_v20, %v1193_v22  ;;  %v7448_v24 = vpop.f32.mrb[16].mxu0 }
 0x122   :  { %v7449_v25 = vpop.f32.mrb[17].mxu0  ;;  %v7488_v26 = vpop.f32.mrb[16].mxu1 }
 0x123   :  { %v7450_v27 = vadd.f32 %v7449_v25, %v7448_v24  ;;  %v7451_v28 = vpop.f32.mrb[18].mxu0  ;;  %v7489_v29 = vpop.f32.mrb[17].mxu1 }
 0x124   :  { %v7452_v30 = vpop.f32.mrb[19].mxu0  ;;  %v7490_v34 = vadd.f32 %v7489_v29, %v7488_v26  ;;  %v7491_v35 = vpop.f32.mrb[18].mxu1 }
 0x125   :  { %v1296_v32 = vadd.f32 %v7450_v27, %v9449_v31  ;;  %v7453_v36 = vadd.f32 %v7452_v30, %v7451_v28  ;;  %v7492_v37 = vpop.f32.mrb[19].mxu1 }
 0x126   :  { %v7493_v40 = vadd.f32 %v7492_v37, %v7491_v35 }
 0x127   :  { %v1361_v38 = vadd.f32 %v7490_v34, %v1296_v32  ;;  %v1299_v39 = vadd.f32 %v7453_v36, %v9451_v33 }
 0x129   :  { %v9483_v41 = vadd.f32 %v7493_v40, %v1299_v39  ;;  %v7454_v42 = vpop.f32.mrb[20].mxu0 }
 0x12a   :  { %v7494_v43 = vpop.f32.mrb[20].mxu1  ;;  %v7455_v44 = vpop.f32.mrb[21].mxu0 }
 0x12b   :  { %v7456_v45 = vadd.f32 %v7455_v44, %v7454_v42  ;;  %v7495_v46 = vpop.f32.mrb[21].mxu1  ;;  %v7457_v47 = vpop.f32.mrb[22].mxu0 }
 0x12c   :  { %v7496_v48 = vadd.f32 %v7495_v46, %v7494_v43  ;;  %v7497_v50 = vpop.f32.mrb[22].mxu1  ;;  %v7458_v52 = vpop.f32.mrb[23].mxu0 }
 0x12d   :  { %v1304_v31 = vadd.f32 %v7456_v45, %v9459_v49  ;;  %v7459_v53 = vadd.f32 %v7458_v52, %v7457_v47  ;;  %v7498_v54 = vpop.f32.mrb[23].mxu1 }
 0x12e   :  { %v7499_v55 = vadd.f32 %v7498_v54, %v7497_v50 }
 0x12f   :  { %v9486_v56 = vadd.f32 %v7496_v48, %v1304_v31  ;;  %v1307_v33 = vadd.f32 %v7459_v53, %v9461_v51 }
 0x131   :  { %v9489_v57 = vadd.f32 %v7499_v55, %v1307_v33  ;;  %v7460_v58 = vpop.f32.mrb[24].mxu0 }
 0x132   :  { %v7500_v59 = vpop.f32.mrb[24].mxu1  ;;  %v7461_v60 = vpop.f32.mrb[25].mxu0 }
 0x133   :  { %v7501_v61 = vpop.f32.mrb[25].mxu1  ;;  %v7462_v62 = vadd.f32 %v7461_v60, %v7460_v58  ;;  %v7463_v0 = vpop.f32.mrb[26].mxu0 }
 0x134   :  { %v7502_v63 = vadd.f32 %v7501_v61, %v7500_v59  ;;  %v7503_v1 = vpop.f32.mrb[26].mxu1  ;;  %v7464_v2 = vpop.f32.mrb[27].mxu0 }
 0x135   :  { %v7504_v4 = vpop.f32.mrb[27].mxu1  ;;  %v1312_v49 = vadd.f32 %v7462_v62, %v9469_v3  ;;  %v7465_v6 = vadd.f32 %v7464_v2, %v7463_v0 }
 0x136   :  { %v7505_v7 = vadd.f32 %v7504_v4, %v7503_v1 }
 0x137   :  { %v9492_v8 = vadd.f32 %v7502_v63, %v1312_v49  ;;  %v1315_v51 = vadd.f32 %v7465_v6, %v9471_v5 }
 0x139   :  { %v9495_v9 = vadd.f32 %v7505_v7, %v1315_v51  ;;  %v7466_v10 = vpop.f32.mrb[28].mxu0 }
 0x13a   :  { %v7506_v11 = vpop.f32.mrb[28].mxu1  ;;  %v7467_v12 = vpop.f32.mrb[29].mxu0 }
 0x13b   :  { %v7468_v13 = vadd.f32 %v7467_v12, %v7466_v10  ;;  %v7507_v14 = vpop.f32.mrb[29].mxu1  ;;  %v7469_v15 = vpop.f32.mrb[30].mxu0 }
 0x13c   :  { %v7508_v16 = vadd.f32 %v7507_v14, %v7506_v11  ;;  %v7509_v17 = vpop.f32.mrb[30].mxu1  ;;  %v7470_v18 = vpop.f32.mrb[31].mxu0 }
 0x13d   :  { %v1320_v19 = vadd.f32 %v7468_v13, %v1255_v21  ;;  %v7471_v20 = vadd.f32 %v7470_v18, %v7469_v15  ;;  %v7510_v3 = vpop.f32.mrb[31].mxu1 }
 0x13e   :  { %v7511_v22 = vadd.f32 %v7510_v3, %v7509_v17 }
 0x13f   :  { %v9497_v24 = vadd.f32 %v7508_v16, %v1320_v19  ;;  %v1323_v25 = vadd.f32 %v7471_v20, %v9479_v23 }
 0x141   :  { %v9500_v5 = vadd.f32 %v7511_v22, %v1323_v25  ;;  %v7528_v26 = vpop.f32.mrb[32].mxu0 }
 0x142   :  { %v7568_v27 = vpop.f32.mrb[32].mxu1  ;;  %v7529_v28 = vpop.f32.mrb[33].mxu0 }
 0x143   :  { %v7530_v29 = vadd.f32 %v7529_v28, %v7528_v26  ;;  %v7569_v30 = vpop.f32.mrb[33].mxu1  ;;  %v7531_v32 = vpop.f32.mrb[34].mxu0 }
 0x144   :  { %v7570_v34 = vadd.f32 %v7569_v30, %v7568_v27  ;;  %v7571_v35 = vpop.f32.mrb[34].mxu1  ;;  %v7532_v36 = vpop.f32.mrb[35].mxu0 }
 0x145   :  { %v1426_v37 = vadd.f32 %v7530_v29, %v1361_v38  ;;  %v7533_v21 = vadd.f32 %v7532_v36, %v7531_v32  ;;  %v7572_v39 = vpop.f32.mrb[35].mxu1 }
 0x146   :  { %v7573_v40 = vadd.f32 %v7572_v39, %v7571_v35 }
 0x147   :  { %v9502_v42 = vadd.f32 %v7570_v34, %v1426_v37  ;;  %v1429_v23 = vadd.f32 %v7533_v21, %v9483_v41 }
 0x149   :  { %v9505_v43 = vadd.f32 %v7573_v40, %v1429_v23  ;;  %v7534_v44 = vpop.f32.mrb[36].mxu0  ;;  %v1524_v45 = vsel %vm1523_vm0, %v9502_v42, 0.0 }
 0x14a   :  { %v7574_v46 = vpop.f32.mrb[36].mxu1  ;;  %v7535_v47 = vpop.f32.mrb[37].mxu0  ;;  %1525 = vadd.xlane.f32.xlu0 %v1524_v45 }
 0x14b   :  { %v7536_v48 = vadd.f32 %v7535_v47, %v7534_v44  ;;  %v7575_v50 = vpop.f32.mrb[37].mxu1  ;;  %v7537_v38 = vpop.f32.mrb[38].mxu0  ;;  %v1527_v41 = vsel %vm1523_vm0, %v9505_v43, 0.0 }
 0x14c   :  { %v7576_v52 = vadd.f32 %v7575_v50, %v7574_v46  ;;  %v7577_v31 = vpop.f32.mrb[38].mxu1  ;;  %v7538_v53 = vpop.f32.mrb[39].mxu0 }
 0x14d   :  { %v1434_v54 = vadd.f32 %v7536_v48, %v9486_v56  ;;  %v7539_v55 = vadd.f32 %v7538_v53, %v7537_v38  ;;  %v7578_v33 = vpop.f32.mrb[39].mxu1 }
 0x14e   :  { %v7579_v58 = vadd.f32 %v7578_v33, %v7577_v31  ;;  %1528 = vadd.xlane.f32.xlu0 %v1527_v41  ;;  %v8401_v33 = vld [vmem:[%s11363_s5 + $0x14] ss:$8 sps:$4 sm:$0xff]   ;;  %v8399_v41 = vld [vmem:[%s11363_s5 + $0x10] ss:$8 sps:$4 sm:$0xff]  }
 0x14f   :  { %v9512_v59 = vadd.f32 %v7576_v52, %v1434_v54  ;;  %v1437_v60 = vadd.f32 %v7539_v55, %v9489_v57  ;;  %v8398_v54 = vld [vmem:[%s11363_s5 + $0x4] ss:$8 sps:$4 sm:$0xff]   ;;  %v8396_v55 = vld [vmem:[%s11363_s5] ss:$8 sps:$4 sm:$0xff]  }
 0x150   :  { %1733 = vmatprep.subr.bf16.mxu0 %v8398_v54 }
 0x151   :  { %v9515_v61 = vadd.f32 %v7579_v58, %v1437_v60  ;;  %v7540_v62 = vpop.f32.mrb[40].mxu0  ;;  %v1530_v63 = vsel %vm1523_vm0, %v9512_v59, 0.0  ;;  %1734 = vmatpush1.bf16.msra.mxu0 %v8396_v55  ;;  %v8404_v58 = vld [vmem:[%s11363_s5 + $0x24] ss:$8 sps:$4 sm:$0xff]   ;;  %v8402_v60 = vld [vmem:[%s11363_s5 + $0x20] ss:$8 sps:$4 sm:$0xff]  }
 0x152   :  { %v7541_v0 = vpop.f32.mrb[41].mxu0  ;;  %1531 = vadd.xlane.f32.xlu1 %v1530_v63  ;;  %v7580_v56 = vpop.f32.mrb[40].mxu1  ;;  %1735 = vmatprep.subr.bf16.mxu0 %v8401_v33  ;;  %v8405_v63 = vld [vmem:[%s11363_s5 + $0x30] ss:$8 sps:$4 sm:$0xff]  }
 0x153   :  { %v7542_v1 = vadd.f32 %v7541_v0, %v7540_v62  ;;  %v7543_v2 = vpop.f32.mrb[42].mxu0  ;;  %v7581_v4 = vpop.f32.mrb[41].mxu1  ;;  %v1533_v57 = vsel %vm1523_vm0, %v9515_v61, 0.0  ;;  %v8407_v62 = vld [vmem:[%s11363_s5 + $0x34] ss:$8 sps:$4 sm:$0xff]   ;;  %v8894_v0 = vmov 0  }
 0x154   :  { %v7544_v49 = vpop.f32.mrb[43].mxu0  ;;  %v7582_v6 = vadd.f32 %v7581_v4, %v7580_v56  ;;  %v7583_v7 = vpop.f32.mrb[42].mxu1  ;;  %1765 = vmatprep.mubr.bf16.mxu0 %v8894_v0 }
 0x155   :  { %v1442_v51 = vadd.f32 %v7542_v1, %v9492_v8  ;;  %v7545_v10 = vadd.f32 %v7544_v49, %v7543_v2  ;;  %v7584_v11 = vpop.f32.mrb[43].mxu1  ;;  %1736 = vmatpush1.bf16.msra.mxu0 %v8399_v41 }
 0x156   :  { %v7585_v12 = vadd.f32 %v7584_v11, %v7583_v7  ;;  %1534 = vadd.xlane.f32.xlu1 %v1533_v57  ;;  %1737 = vmatprep.subr.bf16.mxu0 %v8404_v58 }
 0x157   :  { %v1445_v13 = vadd.f32 %v7545_v10, %v9495_v9  ;;  %v9523_v14 = vadd.f32 %v7582_v6, %v1442_v51 }
 0x159   :  { %v9525_v15 = vadd.f32 %v7585_v12, %v1445_v13  ;;  %v7546_v16 = vpop.f32.mrb[44].mxu0  ;;  %1738 = vmatpush1.bf16.msra.mxu0 %v8402_v60 }
 0x15a   :  { %v7547_v17 = vpop.f32.mrb[45].mxu0  ;;  %v7586_v18 = vpop.f32.mrb[44].mxu1  ;;  %1739 = vmatprep.subr.bf16.mxu0 %v8407_v62 }
 0x15b   :  { %v7548_v19 = vadd.f32 %v7547_v17, %v7546_v16  ;;  %v7549_v20 = vpop.f32.mrb[46].mxu0  ;;  %v7587_v3 = vpop.f32.mrb[45].mxu1  ;;  %v9569_v17 = vld [vmem:[%s11400_s29] ss:$0 sm:$0xff] }
 0x15c   :  { %v7550_v8 = vpop.f32.mrb[47].mxu0  ;;  %v7588_v22 = vadd.f32 %v7587_v3, %v7586_v18  ;;  %v7589_v25 = vpop.f32.mrb[46].mxu1  ;;  %v9575_v3 = vld [vmem:[%s11401_s24] ss:$0 sm:$0xff] }
 0x15d   :  { %v1450_v26 = vadd.f32 %v7548_v19, %v9497_v24  ;;  %v7551_v27 = vadd.f32 %v7550_v8, %v7549_v20  ;;  %v7590_v28 = vpop.f32.mrb[47].mxu1  ;;  %1740 = vmatpush1.bf16.msra.mxu0 %v8405_v63 }
 0x15e   :  { %v7591_v29 = vadd.f32 %v7590_v28, %v7589_v25 }
 0x15f   :  { %v1453_v9 = vadd.f32 %v7551_v27, %v9500_v5  ;;  %v9529_v30 = vadd.f32 %v7588_v22, %v1450_v26 }
 0x161   :  { %v9531_v32 = vadd.f32 %v7591_v29, %v1453_v9 }
 0x1d7   :  { %v1526_v34 = vpop.xlane.xlu0 %1525 }
 0x1d8   :  { %v1549_v35 = vmul.f32 0.015625, %v1526_v34 }
 0x1da   :  { %v1557_v36 = vsub.f32 %v9502_v42, %v1549_v35 }
 0x1db   :  { %v1529_v37 = vpop.xlane.xlu0 %1528 }
 0x1dc   :  { %v1550_v21 = vmul.f32 0.015625, %v1529_v37  ;;  %v1565_v39 = vmul.f32 %v1557_v36, %v1557_v36 }
 0x1de   :  { %v1558_v40 = vsub.f32 %v9505_v43, %v1550_v21  ;;  %v1573_v24 = vsel %vm1523_vm0, %v1565_v39, 0.0  ;;  %v1671_v39 = vlaneseq }
 0x1df   :  { %v1532_v23 = vpop.xlane.xlu1 %1531  ;;  %1574 = vadd.xlane.f32.xlu0 %v1573_v24 }
 0x1e0   :  { %v1551_v44 = vmul.f32 0.015625, %v1532_v23  ;;  %v1566_v45 = vmul.f32 %v1558_v40, %v1558_v40  ;;  %v1669_v23 = vld [vmem:[%s11364_s6] sm:$0x3] }
 0x1e2   :  { %v1559_v5 = vsub.f32 %v9512_v59, %v1551_v44  ;;  %v1576_v46 = vsel %vm1523_vm0, %v1566_v45, 0.0 }
 0x1e3   :  { %v1535_v47 = vpop.xlane.xlu1 %1534  ;;  %1577 = vadd.xlane.f32.xlu1 %v1576_v46 }
 0x1e4   :  { %v1552_v48 = vmul.f32 0.015625, %v1535_v47  ;;  %v1567_v50 = vmul.f32 %v1559_v5, %v1559_v5 }
 0x1e6   :  { %v1560_v38 = vsub.f32 %v9515_v61, %v1552_v48  ;;  %v1579_v52 = vsel %vm1523_vm0, %v1567_v50, 0.0 }
 0x1e7   :  { %1580 = vadd.xlane.f32.xlu0 %v1579_v52 }
 0x1e8   :  { %v1568_v31 = vmul.f32 %v1560_v38, %v1560_v38 }
 0x1ea   :  { %v1582_v53 = vsel %vm1523_vm0, %v1568_v31, 0.0 }
 0x1eb   :  { %1583 = vadd.xlane.f32.xlu1 %v1582_v53 }
 0x26c   :  { %v1575_v56 = vpop.xlane.xlu0 %1574 }
 0x26d   :  { %v1597_v1 = vmul.f32 0.015625, %v1575_v56 }
 0x26f   :  { %v1605_v2 = vadd.f32 1e-06, %v1597_v1 }
 0x270   :  { %v1578_v4 = vpop.xlane.xlu1 %1577 }
 0x271   :  { %8484 = vrsqrt.f32 %v1605_v2  ;;  %v1598_v49 = vmul.f32 0.015625, %v1578_v4 }
 0x273   :  { %v1606_v6 = vadd.f32 1e-06, %v1598_v49 }
 0x274   :  { %v1581_v7 = vpop.xlane.xlu0 %1580 }
 0x275   :  { %8486 = vrsqrt.f32 %v1606_v6  ;;  %v1599_v51 = vmul.f32 0.015625, %v1581_v7 }
 0x277   :  { %v1607_v10 = vadd.f32 1e-06, %v1599_v51 }
 0x278   :  { %v1584_v11 = vpop.xlane.xlu1 %1583 }
 0x279   :  { %8488 = vrsqrt.f32 %v1607_v10  ;;  %v1600_v57 = vmul.f32 0.015625, %v1584_v11 }
 0x27b   :  { %v8485_v12 = vpop.eup %8484  ;;  %v1608_v13 = vadd.f32 1e-06, %v1600_v57 }
 0x27c   :  { %v1621_v16 = vmul.f32 %v8485_v12, %v1557_v36 }
 0x27d   :  { %8490 = vrsqrt.f32 %v1608_v13 }
 0x27e   :  { %v1635_v19 = vmul.f32 %v9569_v17, %v1621_v16 }
 0x27f   :  { %v8487_v18 = vpop.eup %8486 }
 0x280   :  { %v1622_v20 = vmul.f32 %v8487_v18, %v1558_v40  ;;  %v1649_v25 = vadd.f32 %v9575_v3, %v1635_v19  ;;  %v1672_v40 = vshrl.u32 %v1671_v39, 7 }
 0x282   :  { %v1636_v8 = vmul.f32 %v9569_v17, %v1622_v20  ;;  %v9588_v24 = vsub.s32 0, %v1672_v40  ;;  %v9593_v44 = vsub.s32 1, %v1672_v40 }
 0x283   :  { %v8489_v22 = vpop.eup %8488 }
 0x284   :  { %v1650_v26 = vadd.f32 %v9575_v3, %v1636_v8  ;;  %v1623_v27 = vmul.f32 %v8489_v22, %v1559_v5  ;;  %v9596_v45 = vrot.slane %v1669_v23, %v9588_v24  ;;  %v9599_v46 = vrot.slane %v1669_v23, %v9593_v44 }
 0x286   :  { %v1665_v28 = vpack.c.bf16 %v1650_v26, %v1649_v25  ;;  %v1637_v34 = vmul.f32 %v9569_v17, %v1623_v27 }
 0x287   :  { %v8491_v29 = vpop.eup %8490 }
 0x288   :  { %7121 = vmatmul.mubr.msk.bf16.vlgmr.msra.gmra.mrb[48].mxu0 %vm1523_vm0, %v1665_v28  ;;  %v1624_v9 = vmul.f32 %v8491_v29, %v1560_v38  ;;  %v1651_v36 = vadd.f32 %v9575_v3, %v1637_v34 }
 0x289   :  { %1775 = vmatprep.mubr.bf16.mxu0 %v8894_v0 }
 0x28a   :  { %v1638_v35 = vmul.f32 %v9569_v17, %v1624_v9 }
 0x28c   :  { %v1652_v37 = vadd.f32 %v9575_v3, %v1638_v35 }
 0x28e   :  { %v1666_v21 = vpack.c.bf16 %v1652_v37, %v1651_v36 }
 0x290   :  { %7122 = vmatmul.mubr.msk.bf16.gmra.mrb[52].mxu0 %vm1523_vm0, %v1666_v21 }
 0x291   :  { %1785 = vmatprep.mubr.bf16.mxu0 %v8894_v0 }
 0x35b   :  { %v1767_v5 = vpop.f32.mrb[48].mxu0 }
 0x35c   :  { %v1769_v47 = vpop.f32.mrb[49].mxu0  ;;  %v1768_v50 = vadd.f32 %v1767_v5, %v9596_v45 }
 0x35d   :  { %v1771_v48 = vpop.f32.mrb[50].mxu0  ;;  %v1770_v31 = vadd.f32 %v1769_v47, %v9599_v46 }
 0x35e   :  { %v1772_v38 = vadd.f32 %v1771_v48, %v9596_v45  ;;  %v1773_v52 = vpop.f32.mrb[51].mxu0 }
 0x35f   :  { %v1774_v53 = vadd.f32 %v1773_v52, %v9599_v46 }
 0x360   :  { %v9605_v54 = vpack.c.bf16 %v1772_v38, %v1768_v50 }
 0x361   :  { %v9607_v55 = vpack.c.bf16 %v1774_v53, %v1770_v31 }
 0x362   :  { %1810 = vrot.lane.b32.xlu0 %v9605_v54, %s8895_s3  ;;  %7838 = vmatprep.mubr.msk.bf16.mxu1 %vm1814_vm1, %v9605_v54 }
 0x363   :  { %v1777_v33 = vpop.f32.mrb[52].mxu0 }
 0x364   :  { %v1779_v41 = vpop.f32.mrb[53].mxu0  ;;  %v1778_v60 = vadd.f32 %v1777_v33, %v9596_v45 }
 0x365   :  { %v1781_v58 = vpop.f32.mrb[54].mxu0  ;;  %v1780_v56 = vadd.f32 %v1779_v41, %v9599_v46 }
 0x366   :  { %v1782_v62 = vadd.f32 %v1781_v58, %v9596_v45  ;;  %v1783_v63 = vpop.f32.mrb[55].mxu0 }
 0x367   :  { %v1784_v1 = vadd.f32 %v1783_v63, %v9599_v46 }
 0x368   :  { %v9617_v2 = vpack.c.bf16 %v1782_v62, %v1778_v60 }
 0x369   :  { %v9619_v4 = vpack.c.bf16 %v1784_v1, %v1780_v56 }
 0x36a   :  { %1812 = vrot.lane.b32.xlu1 %v9617_v2, %s8895_s3 }
 0x3d4   :  { %v1811_v49 = vpop.permute.xlu0 %1810 }
 0x3d5   :  { %8184 = vmatprep.subr.msk.bf16.mxu1 %vm1814_vm1, %v1811_v49  ;;  %v1822_v6 = vsel %vm1814_vm1, %v1811_v49, 0 }
 0x3d6   :  { %7835 = vmatpush3.bf16.xpose.msra.mxu1 %v1822_v6 }
 0x3dc   :  { %v1813_v7 = vpop.permute.xlu1 %1812 }
 0x3dd   :  { %8185 = vmatprep.subr.msk.bf16.mxu1 %vm1814_vm1, %v1813_v7  ;;  %v1825_v51 = vsel %vm1814_vm1, %v1813_v7, 0 }
 0x3de   :  { %7837 = vmatpush3.bf16.xpose.msra.mxu1 %v1825_v51 }
 0x3df   :  { %7842 = vmatprep.subr.bf16.mxu1 %v9607_v55 }
 0x3e5   :  { %7839 = vmatmul.mubr.msk.bf16.vlgmr.msra.gmra.mrb[48].mxu1 %vm1814_vm1, %v9617_v2 }
 0x3e6   :  { %7843 = vmatpush3.bf16.msra.mxu1 %v9607_v55 }
 0x3e7   :  { %7844 = vmatprep.subr.bf16.mxu1 %v9619_v4 }
 0x3ea   :  { %7845 = vmatpush3.bf16.msra.mxu1 %v9619_v4 }
 0x4b8   :  { %v7840_v10 = vpop.f32.mrb[48].mxu1 }
 0x4b9   :  { %v1861_v11 = vpop.f32.mrb[49].mxu1  ;;  %v1883_v19 = vsel %vm1876_vm2, %v7840_v10, -inf }
 0x4ba   :  { %v7841_v57 = vpop.f32.mrb[50].mxu1  ;;  %v1877_v12 = vsel %vm1876_vm2, %v1861_v11, -inf }
 0x4bb   :  { %1878 = vmax.xlane.f32.xlu1 %v1877_v12  ;;  %v1864_v13 = vpop.f32.mrb[51].mxu1  ;;  %v1886_v18 = vsel %vm1876_vm2, %v7841_v57, -inf }
 0x4bc   :  { %v1880_v16 = vsel %vm1876_vm2, %v1864_v13, -inf }
 0x4bd   :  { %1881 = vmax.xlane.f32.xlu0 %v1880_v16 }
 0x4bf   :  { %1887 = vmax.xlane.f32.xlu1 %v1886_v18 }
 0x4c1   :  { %1884 = vmax.xlane.f32.xlu0 %v1883_v19 }
 0x548   :  { %v1879_v20 = vpop.xlane.xlu1 %1878 }
 0x549   :  { %v1889_v26 = vsub.f32 %v1861_v11, %v1879_v20 }
 0x54a   :  { %v1882_v8 = vpop.xlane.xlu0 %1881 }
 0x54b   :  { %v1890_v22 = vsub.f32 %v1864_v13, %v1882_v8  ;;  %v1893_v35 = vmul.f32 1.442695, %v1889_v26 }
 0x54c   :  { %v1888_v25 = vpop.xlane.xlu1 %1887 }
 0x54d   :  { %v1895_v27 = vmul.f32 1.442695, %v1890_v22  ;;  %v1892_v28 = vsub.f32 %v7841_v57, %v1888_v25 }
 0x54e   :  { %v1885_v29 = vpop.xlane.xlu0 %1884 }
 0x54f   :  { %8492 = vpow2.f32 %v1895_v27  ;;  %v1899_v9 = vmul.f32 1.442695, %v1892_v28  ;;  %v1891_v34 = vsub.f32 %v7840_v10, %v1885_v29 }
 0x551   :  { %8494 = vpow2.f32 %v1899_v9  ;;  %v1897_v36 = vmul.f32 1.442695, %v1891_v34 }
 0x553   :  { %8496 = vpow2.f32 %v1897_v36 }
 0x554   :  { %8498 = vpow2.f32 %v1893_v35 }
 0x559   :  { %v8493_v37 = vpop.eup %8492 }
 0x55a   :  { %v1904_v21 = vsel %vm1876_vm2, %v8493_v37, 0.0 }
 0x55b   :  { %v8495_v39 = vpop.eup %8494  ;;  %1905 = vadd.xlane.f32.xlu1 %v1904_v21 }
 0x55c   :  { %v1910_v23 = vsel %vm1876_vm2, %v8495_v39, 0.0 }
 0x55d   :  { %v8497_v40 = vpop.eup %8496 }
 0x55e   :  { %v1907_v5 = vsel %vm1876_vm2, %v8497_v40, 0.0  ;;  %v8499_v47 = vpop.eup %8498 }
 0x55f   :  { %1911 = vadd.xlane.f32.xlu1 %v1910_v23  ;;  %1908 = vadd.xlane.f32.xlu0 %v1907_v5  ;;  %v1901_v48 = vsel %vm1876_vm2, %v8499_v47, 0.0 }
 0x563   :  { %1902 = vadd.xlane.f32.xlu0 %v1901_v48 }
 0x570   :  { %1990 = vrot.lane.b32.xlu1 %v9617_v2, %s8896_s26 }
 0x574   :  { %1984 = vrot.lane.b32.xlu1 %v9605_v54, %s8897_s27 }
 0x578   :  { %1986 = vrot.lane.b32.xlu1 %v9617_v2, %s8897_s27 }
 0x579   :  { %1988 = vrot.lane.b32.xlu0 %v9605_v54, %s8896_s26 }
 0x5e8   :  { %v1906_v50 = vpop.xlane.xlu1 %1905 }
 0x5ec   :  { %v1912_v38 = vpop.xlane.xlu1 %1911  ;;  %v1909_v52 = vpop.xlane.xlu0 %1908 }
 0x5ed   :  { %8500 = vrcp.f32 %v1912_v38 }
 0x5ee   :  { %8502 = vrcp.f32 %v1909_v52 }
 0x5ef   :  { %8504 = vrcp.f32 %v1906_v50 }
 0x5f0   :  { %v1903_v31 = vpop.xlane.xlu0 %1902  ;;  %v1991_v56 = vpop.permute.xlu1 %1990 }
 0x5f1   :  { %8506 = vrcp.f32 %v1903_v31  ;;  %v2002_v11 = vsel %vm1814_vm1, %v1991_v56, 0 }
 0x5f4   :  { %v1989_v53 = vpop.permute.xlu0 %1988  ;;  %v1985_v51 = vpop.permute.xlu1 %1984 }
 0x5f5   :  { %8186 = vmatprep.subr.msk.bf16.mxu1 %vm1814_vm1, %v1989_v53  ;;  %v1999_v10 = vsel %vm1814_vm1, %v1989_v53, 0 }
 0x5f7   :  { %v8501_v33 = vpop.eup %8500 }
 0x5f8   :  { %v8503_v41 = vpop.eup %8502  ;;  %v1920_v62 = vmul.f32 %v8501_v33, %v8495_v39  ;;  %v1987_v57 = vpop.permute.xlu1 %1986 }
 0x5f9   :  { %v8505_v58 = vpop.eup %8504  ;;  %v1918_v63 = vmul.f32 %v8503_v41, %v8497_v40 }
 0x5fa   :  { %v1916_v49 = vmul.f32 %v8505_v58, %v8493_v37  ;;  %v1536_v58 = vsel %vm1523_vm0, %v9523_v14, 0.0 }
 0x5fb   :  { %v8507_v60 = vpop.eup %8506  ;;  %v1922_v7 = vpack.c.bf16 %v1920_v62, %v1918_v63  ;;  %v1545_v62 = vsel %vm1523_vm0, %v9531_v32, 0.0  ;;  %v1539_v63 = vsel %vm1523_vm0, %v9525_v15, 0.0 }
 0x5fc   :  { %v1914_v1 = vmul.f32 %v8507_v60, %v8499_v47  ;;  %v1542_v60 = vsel %vm1523_vm0, %v9529_v30, 0.0 }
 0x5fe   :  { %v1921_v6 = vpack.c.bf16 %v1916_v49, %v1914_v1 }
 0x600   :  { %7846 = vmatprep.mubr.msk.bf16.mxu1 %vm1876_vm2, %v1921_v6 }
 0x601   :  { %7847 = vmatmul.mubr.msk.bf16.vlgmr.msra.gmra.mrb[52].mxu1 %vm1876_vm2, %v1922_v7 }
 0x602   :  { %7851 = vmatpush3.bf16.xpose.msra.mxu1 %v1999_v10  ;;  %7854 = vmatprep.mubr.msk.bf16.mxu1 %vm1814_vm1, %v1985_v51 }
 0x603   :  { %8187 = vmatprep.subr.msk.bf16.mxu1 %vm1814_vm1, %v1991_v56 }
 0x60a   :  { %7853 = vmatpush3.bf16.xpose.msra.mxu1 %v2002_v11 }
 0x611   :  { %7855 = vmatmul.mubr.msk.bf16.vlgmr.msra.gmra.mrb[56].mxu1 %vm1814_vm1, %v1987_v57 }
 0x6d4   :  { %v7848_v12 = vpop.f32.mrb[52].mxu1 }
 0x6d5   :  { %1982 = vst.msk [vmem:[#allocation2 + $0x10] sm:$0xff] %vm1814_vm1, %v7848_v12  ;;  %v1965_v13 = vpop.f32.mrb[53].mxu1 }
 0x6d6   :  { %1980 = vst.msk [vmem:[#allocation2] sm:$0xff] %vm1814_vm1, %v1965_v13  ;;  %v7849_v16 = vpop.f32.mrb[54].mxu1 }
 0x6d7   :  { %1983 = vst.msk [vmem:[#allocation2 + $0x18] sm:$0xff] %vm1814_vm1, %v7849_v16  ;;  %v1968_v18 = vpop.f32.mrb[55].mxu1 }
 0x6d8   :  { %1981 = vst.msk [vmem:[#allocation2 + $0x8] sm:$0xff] %vm1814_vm1, %v1968_v18 }
 0x6e4   :  { %v7856_v19 = vpop.f32.mrb[56].mxu1 }
 0x6e5   :  { %v2038_v20 = vpop.f32.mrb[57].mxu1  ;;  %v2059_v27 = vsel %vm1876_vm2, %v7856_v19, -inf }
 0x6e6   :  { %v7857_v8 = vpop.f32.mrb[58].mxu1  ;;  %v2053_v22 = vsel %vm1876_vm2, %v2038_v20, -inf }
 0x6e7   :  { %2054 = vmax.xlane.f32.xlu0 %v2053_v22  ;;  %v2041_v25 = vpop.f32.mrb[59].mxu1  ;;  %v2062_v28 = vsel %vm1876_vm2, %v7857_v8, -inf }
 0x6e8   :  { %v2056_v26 = vsel %vm1876_vm2, %v2041_v25, -inf }
 0x6e9   :  { %2057 = vmax.xlane.f32.xlu1 %v2056_v26 }
 0x6eb   :  { %2060 = vmax.xlane.f32.xlu0 %v2059_v27 }
 0x6ef   :  { %2063 = vmax.xlane.f32.xlu0 %v2062_v28 }
 0x6fa   :  { %2103 = vrot.lane.b32.xlu1 %v9619_v4, %s8897_s27 }
 0x774   :  { %v2055_v29 = vpop.xlane.xlu0 %2054 }
 0x775   :  { %v2065_v9 = vsub.f32 %v2038_v20, %v2055_v29 }
 0x776   :  { %v2058_v34 = vpop.xlane.xlu1 %2057 }
 0x777   :  { %v2069_v37 = vmul.f32 1.442695, %v2065_v9  ;;  %v2066_v21 = vsub.f32 %v2041_v25, %v2058_v34 }
 0x778   :  { %v2061_v35 = vpop.xlane.xlu0 %2060 }
 0x779   :  { %v2067_v36 = vsub.f32 %v7856_v19, %v2061_v35  ;;  %v2071_v5 = vmul.f32 1.442695, %v2066_v21 }
 0x77a   :  { %v2104_v56 = vpop.permute.xlu1 %2103 }
 0x77b   :  { %v2073_v39 = vmul.f32 1.442695, %v2067_v36 }
 0x77c   :  { %v2064_v40 = vpop.xlane.xlu0 %2063 }
 0x77d   :  { %8508 = vpow2.f32 %v2073_v39  ;;  %v2068_v23 = vsub.f32 %v7857_v8, %v2064_v40 }
 0x77e   :  { %8510 = vpow2.f32 %v2069_v37 }
 0x77f   :  { %v2075_v47 = vmul.f32 1.442695, %v2068_v23 }
 0x781   :  { %8512 = vpow2.f32 %v2075_v47 }
 0x782   :  { %8514 = vpow2.f32 %v2071_v5 }
 0x787   :  { %v8509_v48 = vpop.eup %8508 }
 0x788   :  { %v2083_v50 = vsel %vm1876_vm2, %v8509_v48, 0.0  ;;  %v8511_v38 = vpop.eup %8510 }
 0x789   :  { %2084 = vadd.xlane.f32.xlu0 %v2083_v50  ;;  %v2077_v31 = vsel %vm1876_vm2, %v8511_v38, 0.0 }
 0x78b   :  { %v8513_v52 = vpop.eup %8512 }
 0x78c   :  { %v2086_v53 = vsel %vm1876_vm2, %v8513_v52, 0.0  ;;  %v8515_v33 = vpop.eup %8514 }
 0x78d   :  { %2078 = vadd.xlane.f32.xlu0 %v2077_v31  ;;  %2087 = vadd.xlane.f32.xlu1 %v2086_v53  ;;  %v2080_v41 = vsel %vm1876_vm2, %v8515_v33, 0.0 }
 0x791   :  { %2081 = vadd.xlane.f32.xlu1 %v2080_v41 }
 0x7a2   :  { %2187 = vrot.lane.b32.xlu1 %v9605_v54, %s11390_s28 }
 0x7a3   :  { %2101 = vrot.lane.b32.xlu0 %v9607_v55, %s8897_s27 }
 0x7a6   :  { %2189 = vrot.lane.b32.xlu1 %v9617_v2, %s11390_s28 }
 0x7a7   :  { %2183 = vrot.lane.b32.xlu0 %v9605_v54, %s11386_s4 }
 0x7aa   :  { %2185 = vrot.lane.b32.xlu1 %v9617_v2, %s11386_s4 }
 0x7c6   :  { %1537 = vadd.xlane.f32.xlu0 %v1536_v58 }
 0x7ca   :  { %1543 = vadd.xlane.f32.xlu0 %v1542_v60 }
 0x7ce   :  { %1546 = vadd.xlane.f32.xlu0 %v1545_v62  ;;  %1540 = vadd.xlane.f32.xlu1 %v1539_v63 }
 0x816   :  { %v2085_v1 = vpop.xlane.xlu0 %2084 }
 0x81a   :  { %v2079_v49 = vpop.xlane.xlu0 %2078  ;;  %v2088_v6 = vpop.xlane.xlu1 %2087 }
 0x81b   :  { %8516 = vrcp.f32 %v2088_v6 }
 0x81c   :  { %8518 = vrcp.f32 %v2079_v49 }
 0x81d   :  { %8520 = vrcp.f32 %v2085_v1 }
 0x81e   :  { %v2102_v7 = vpop.permute.xlu0 %2101  ;;  %v2082_v51 = vpop.xlane.xlu1 %2081 }
 0x81f   :  { %8522 = vrcp.f32 %v2082_v51  ;;  %7858 = vmatprep.subr.bf16.mxu1 %v2102_v7 }
 0x820   :  { %7859 = vmatpush3.bf16.msra.mxu1 %v2102_v7 }
 0x821   :  { %7860 = vmatprep.subr.bf16.mxu1 %v2104_v56 }
 0x822   :  { %v2188_v10 = vpop.permute.xlu1 %2187  ;;  %v2184_v25 = vpop.permute.xlu0 %2183 }
 0x823   :  { %v2198_v26 = vsel %vm1814_vm1, %v2188_v10, 0 }
 0x824   :  { %7861 = vmatpush3.bf16.msra.mxu1 %v2104_v56 }
 0x825   :  { %8188 = vmatprep.subr.msk.bf16.mxu1 %vm1814_vm1, %v2188_v10  ;;  %v8517_v11 = vpop.eup %8516 }
 0x826   :  { %v8519_v57 = vpop.eup %8518  ;;  %v2096_v16 = vmul.f32 %v8517_v11, %v8513_v52  ;;  %v2190_v27 = vpop.permute.xlu1 %2189 }
 0x827   :  { %v8521_v12 = vpop.eup %8520  ;;  %v2090_v18 = vmul.f32 %v8519_v57, %v8511_v38  ;;  %v2201_v28 = vsel %vm1814_vm1, %v2190_v27, 0 }
 0x828   :  { %v2094_v20 = vmul.f32 %v8521_v12, %v8509_v48 }
 0x829   :  { %v8523_v13 = vpop.eup %8522 }
 0x82a   :  { %v2092_v19 = vmul.f32 %v8523_v13, %v8515_v33  ;;  %v2098_v22 = vpack.c.bf16 %v2096_v16, %v2094_v20  ;;  %v2186_v29 = vpop.permute.xlu1 %2185 }
 0x82c   :  { %v2097_v8 = vpack.c.bf16 %v2092_v19, %v2090_v18 }
 0x82e   :  { %7862 = vmatprep.mubr.msk.bf16.mxu1 %vm1876_vm2, %v2097_v8 }
 0x82f   :  { %7863 = vmatmul.mubr.msk.bf16.vlgmr.msra.gmra.mrb[60].mxu1 %vm1876_vm2, %v2098_v22 }
 0x830   :  { %7867 = vmatpush3.bf16.xpose.msra.mxu1 %v2198_v26  ;;  %7870 = vmatprep.mubr.msk.bf16.mxu1 %vm1814_vm1, %v2184_v25 }
 0x831   :  { %8189 = vmatprep.subr.msk.bf16.mxu1 %vm1814_vm1, %v2190_v27 }
 0x838   :  { %7869 = vmatpush3.bf16.xpose.msra.mxu1 %v2201_v28 }
 0x83f   :  { %7871 = vmatmul.mubr.msk.bf16.vlgmr.msra.gmra.mrb[64].mxu1 %vm1814_vm1, %v2186_v29 }
 0x853   :  { %v1538_v37 = vpop.xlane.xlu0 %1537 }
 0x854   :  { %v1553_v40 = vmul.f32 0.015625, %v1538_v37 }
 0x856   :  { %v9706_v50 = vsub.f32 %v9523_v14, %v1553_v40 }
 0x857   :  { %v1544_v21 = vpop.xlane.xlu0 %1543 }
 0x858   :  { %v1555_v38 = vmul.f32 0.015625, %v1544_v21  ;;  %v1569_v63 = vmul.f32 %v9706_v50, %v9706_v50 }
 0x85a   :  { %v9714_v60 = vsub.f32 %v9529_v30, %v1555_v38  ;;  %v1585_v6 = vsel %vm1523_vm0, %v1569_v63, 0.0 }
 0x85b   :  { %v1541_v39 = vpop.xlane.xlu1 %1540  ;;  %v1547_v47 = vpop.xlane.xlu0 %1546 }
 0x85c   :  { %v1554_v23 = vmul.f32 0.015625, %v1541_v39  ;;  %v1556_v33 = vmul.f32 0.015625, %v1547_v47  ;;  %v1571_v7 = vmul.f32 %v9714_v60, %v9714_v60 }
 0x85e   :  { %v9710_v41 = vsub.f32 %v9525_v15, %v1554_v23  ;;  %v9720_v56 = vsub.f32 %v9531_v32, %v1556_v33  ;;  %v1591_v11 = vsel %vm1523_vm0, %v1571_v7, 0.0 }
 0x860   :  { %v1570_v49 = vmul.f32 %v9710_v41, %v9710_v41  ;;  %v1572_v10 = vmul.f32 %v9720_v56, %v9720_v56 }
 0x862   :  { %v1588_v51 = vsel %vm1523_vm0, %v1570_v49, 0.0  ;;  %v1594_v57 = vsel %vm1523_vm0, %v1572_v10, 0.0 }
 0x902   :  { %v9697_v9 = vpop.f32.mrb[60].mxu1 }
 0x903   :  { %v9699_v34 = vpop.f32.mrb[61].mxu1 }
 0x904   :  { %v9701_v35 = vpop.f32.mrb[62].mxu1 }
 0x905   :  { %v9703_v36 = vpop.f32.mrb[63].mxu1 }
 0x912   :  { %v7872_v5 = vpop.f32.mrb[64].mxu1 }
 0x913   :  { %v2237_v48 = vpop.f32.mrb[65].mxu1  ;;  %v2258_v62 = vsel %vm1876_vm2, %v7872_v5, -inf }
 0x914   :  { %v7873_v52 = vpop.f32.mrb[66].mxu1  ;;  %v2252_v31 = vsel %vm1876_vm2, %v2237_v48, -inf }
 0x915   :  { %2253 = vmax.xlane.f32.xlu0 %v2252_v31  ;;  %v2240_v53 = vpop.f32.mrb[67].mxu1  ;;  %v2261_v1 = vsel %vm1876_vm2, %v7873_v52, -inf }
 0x916   :  { %v2255_v58 = vsel %vm1876_vm2, %v2240_v53, -inf }
 0x917   :  { %2256 = vmax.xlane.f32.xlu1 %v2255_v58 }
 0x919   :  { %2259 = vmax.xlane.f32.xlu0 %v2258_v62 }
 0x91b   :  { %2262 = vmax.xlane.f32.xlu1 %v2261_v1 }
 0x91d   :  { %1586 = vadd.xlane.f32.xlu0 %v1585_v6 }
 0x91f   :  { %1589 = vadd.xlane.f32.xlu1 %v1588_v51 }
 0x921   :  { %1592 = vadd.xlane.f32.xlu0 %v1591_v11 }
 0x923   :  { %1595 = vadd.xlane.f32.xlu1 %v1594_v57 }
 0x934   :  { %2300 = vrot.lane.b32.xlu1 %v9619_v4, %s11386_s4 }
 0x9a2   :  { %v2254_v12 = vpop.xlane.xlu0 %2253 }
 0x9a3   :  { %v2264_v13 = vsub.f32 %v2237_v48, %v2254_v12 }
 0x9a4   :  { %v2257_v16 = vpop.xlane.xlu1 %2256 }
 0x9a5   :  { %v2265_v18 = vsub.f32 %v2240_v53, %v2257_v16  ;;  %v2268_v8 = vmul.f32 1.442695, %v2264_v13 }
 0x9a6   :  { %v2260_v19 = vpop.xlane.xlu0 %2259 }
 0x9a7   :  { %v2266_v20 = vsub.f32 %v7872_v5, %v2260_v19  ;;  %v2270_v27 = vmul.f32 1.442695, %v2265_v18 }
 0x9a8   :  { %v2263_v22 = vpop.xlane.xlu1 %2262 }
 0x9a9   :  { %v2272_v25 = vmul.f32 1.442695, %v2266_v20  ;;  %v2267_v26 = vsub.f32 %v7873_v52, %v2263_v22 }
 0x9aa   :  { %v1587_v28 = vpop.xlane.xlu0 %1586 }
 0x9ab   :  { %8524 = vpow2.f32 %v2272_v25  ;;  %v2274_v29 = vmul.f32 1.442695, %v2267_v26  ;;  %v1601_v37 = vmul.f32 0.015625, %v1587_v28 }
 0x9ac   :  { %8526 = vpow2.f32 %v2268_v8  ;;  %v1590_v21 = vpop.xlane.xlu1 %1589 }
 0x9ad   :  { %8528 = vpow2.f32 %v2274_v29  ;;  %v1609_v39 = vadd.f32 1e-06, %v1601_v37  ;;  %v1602_v40 = vmul.f32 0.015625, %v1590_v21 }
 0x9ae   :  { %8530 = vpow2.f32 %v2270_v27  ;;  %v1593_v23 = vpop.xlane.xlu0 %1592 }
 0x9af   :  { %8532 = vrsqrt.f32 %v1609_v39  ;;  %v1610_v47 = vadd.f32 1e-06, %v1602_v40  ;;  %v1603_v48 = vmul.f32 0.015625, %v1593_v23 }
 0x9b0   :  { %v1596_v5 = vpop.xlane.xlu1 %1595 }
 0x9b1   :  { %8534 = vrsqrt.f32 %v1610_v47  ;;  %v1611_v38 = vadd.f32 1e-06, %v1603_v48  ;;  %v1604_v31 = vmul.f32 0.015625, %v1596_v5 }
 0x9b3   :  { %8536 = vrsqrt.f32 %v1611_v38  ;;  %v1612_v52 = vadd.f32 1e-06, %v1604_v31 }
 0x9b5   :  { %v9735_v53 = vpop.eup %8524  ;;  %8538 = vrsqrt.f32 %v1612_v52 }
 0x9b6   :  { %v8527_v33 = vpop.eup %8526  ;;  %v2282_v58 = vsel %vm1876_vm2, %v9735_v53, 0.0 }
 0x9b7   :  { %v8529_v62 = vpop.eup %8528  ;;  %2283 = vadd.xlane.f32.xlu0 %v2282_v58  ;;  %v2276_v6 = vsel %vm1876_vm2, %v8527_v33, 0.0 }
 0x9b8   :  { %v8531_v63 = vpop.eup %8530  ;;  %v2285_v1 = vsel %vm1876_vm2, %v8529_v62, 0.0 }
 0x9b9   :  { %v8533_v49 = vpop.eup %8532  ;;  %2286 = vadd.xlane.f32.xlu1 %v2285_v1  ;;  %v2279_v10 = vsel %vm1876_vm2, %v8531_v63, 0.0 }
 0x9ba   :  { %v1625_v7 = vmul.f32 %v8533_v49, %v9706_v50 }
 0x9bb   :  { %v8535_v51 = vpop.eup %8534  ;;  %2277 = vadd.xlane.f32.xlu0 %v2276_v6 }
 0x9bc   :  { %v1626_v11 = vmul.f32 %v8535_v51, %v9710_v41  ;;  %v1639_v57 = vmul.f32 %v9569_v17, %v1625_v7 }
 0x9bd   :  { %v8537_v12 = vpop.eup %8536  ;;  %2280 = vadd.xlane.f32.xlu1 %v2279_v10 }
 0x9be   :  { %v1640_v13 = vmul.f32 %v9569_v17, %v1626_v11  ;;  %v1653_v18 = vadd.f32 %v9575_v3, %v1639_v57  ;;  %v1627_v20 = vmul.f32 %v8537_v12, %v9714_v60 }
 0x9bf   :  { %v8539_v16 = vpop.eup %8538 }
 0x9c0   :  { %v1654_v19 = vadd.f32 %v9575_v3, %v1640_v13  ;;  %v1628_v50 = vmul.f32 %v8539_v16, %v9720_v56  ;;  %v1641_v41 = vmul.f32 %v9569_v17, %v1627_v20 }
 0x9c2   :  { %v1667_v8 = vpack.c.bf16 %v1654_v19, %v1653_v18  ;;  %v1642_v22 = vmul.f32 %v9569_v17, %v1628_v50  ;;  %v1655_v26 = vadd.f32 %v9575_v3, %v1641_v41  ;;  %v2301_v17 = vpop.permute.xlu1 %2300 }
 0x9c4   :  { %7123 = vmatmul.mubr.msk.bf16.gmra.mrb[56].mxu0 %vm1523_vm0, %v1667_v8  ;;  %v1656_v25 = vadd.f32 %v9575_v3, %v1642_v22 }
 0x9c5   :  { %1795 = vmatprep.mubr.bf16.mxu0 %v8894_v0 }
 0x9c6   :  { %v1668_v27 = vpack.c.bf16 %v1656_v25, %v1655_v26 }
 0x9cc   :  { %7124 = vmatmul.mubr.msk.bf16.gmra.mrb[60].mxu0 %vm1523_vm0, %v1668_v27 }
 0x9ce   :  { %2384 = vrot.lane.b32.xlu1 %v9605_v54, %s11388_s30 }
 0x9d1   :  { %2298 = vrot.lane.b32.xlu0 %v9607_v55, %s11386_s4 }
 0x9d2   :  { %2386 = vrot.lane.b32.xlu1 %v9617_v2, %s11388_s30 }
 0x9d5   :  { %2380 = vrot.lane.b32.xlu0 %v9605_v54, %s11384_s0 }
 0x9d6   :  { %2382 = vrot.lane.b32.xlu1 %v9617_v2, %s11384_s0 }
 0xa44   :  { %v2284_v3 = vpop.xlane.xlu0 %2283 }
 0xa46   :  { %v2287_v60 = vpop.xlane.xlu1 %2286 }
 0xa47   :  { %8540 = vrcp.f32 %v2287_v60 }
 0xa48   :  { %v2278_v56 = vpop.xlane.xlu0 %2277 }
 0xa49   :  { %8542 = vrcp.f32 %v2278_v56 }
 0xa4a   :  { %8544 = vrcp.f32 %v2284_v3  ;;  %v2281_v28 = vpop.xlane.xlu1 %2280 }
 0xa4b   :  { %8546 = vrcp.f32 %v2281_v28 }
 0xa4c   :  { %v2299_v29 = vpop.permute.xlu0 %2298 }
 0xa4d   :  { %7874 = vmatprep.subr.bf16.mxu0 %v2299_v29 }
 0xa4e   :  { %7875 = vmatpush3.bf16.msra.mxu0 %v2299_v29  ;;  %v2385_v21 = vpop.permute.xlu1 %2384 }
 0xa4f   :  { %7876 = vmatprep.subr.bf16.mxu0 %v2301_v17  ;;  %v2395_v52 = vsel %vm1814_vm1, %v2385_v21, 0 }
 0xa50   :  { %v2381_v31 = vpop.permute.xlu0 %2380 }
 0xa51   :  { %v8541_v37 = vpop.eup %8540 }
 0xa52   :  { %7877 = vmatpush3.bf16.msra.mxu0 %v2301_v17  ;;  %v2295_v40 = vmul.f32 %v8541_v37, %v8529_v62  ;;  %v2387_v58 = vpop.permute.xlu1 %2386 }
 0xa53   :  { %v8543_v54 = vpop.eup %8542  ;;  %8190 = vmatprep.subr.msk.bf16.mxu0 %vm1814_vm1, %v2385_v21 }
 0xa54   :  { %v8545_v2 = vpop.eup %8544  ;;  %v2289_v23 = vmul.f32 %v8543_v54, %v8527_v33  ;;  %v2398_v33 = vsel %vm1814_vm1, %v2387_v58, 0 }
 0xa55   :  { %v8547_v39 = vpop.eup %8546  ;;  %v2293_v48 = vmul.f32 %v8545_v2, %v9735_v53 }
 0xa56   :  { %v2291_v47 = vmul.f32 %v8547_v39, %v8531_v63  ;;  %v2383_v62 = vpop.permute.xlu1 %2382 }
 0xa57   :  { %v2297_v38 = vpack.c.bf16 %v2295_v40, %v2293_v48 }
 0xa58   :  { %v2296_v5 = vpack.c.bf16 %v2291_v47, %v2289_v23 }
 0xa5a   :  { %7878 = vmatprep.mubr.msk.bf16.mxu0 %vm1876_vm2, %v2296_v5 }
 0xa5b   :  { %7879 = vmatmul.mubr.msk.bf16.vlgmr.msra.gmra.mrb[64].mxu0 %vm1876_vm2, %v2297_v38 }
 0xa5c   :  { %7883 = vmatpush3.bf16.xpose.msra.mxu0 %v2395_v52  ;;  %7886 = vmatprep.mubr.msk.bf16.mxu0 %vm1814_vm1, %v2381_v31 }
 0xa5d   :  { %8191 = vmatprep.subr.msk.bf16.mxu0 %vm1814_vm1, %v2387_v58 }
 0xa64   :  { %7885 = vmatpush3.bf16.xpose.msra.mxu0 %v2398_v33 }
 0xa6b   :  { %7887 = vmatmul.mubr.msk.bf16.vlgmr.msra.gmra.mrb[68].mxu0 %vm1814_vm1, %v2383_v62 }
 0xa97   :  { %v1787_v53 = vpop.f32.mrb[56].mxu0 }
 0xa98   :  { %v1789_v63 = vpop.f32.mrb[57].mxu0  ;;  %v1788_v49 = vadd.f32 %v1787_v53, %v9596_v45 }
 0xa99   :  { %v1791_v1 = vpop.f32.mrb[58].mxu0  ;;  %v1790_v51 = vadd.f32 %v1789_v63, %v9599_v46 }
 0xa9a   :  { %v1792_v6 = vadd.f32 %v1791_v1, %v9596_v45  ;;  %v1793_v7 = vpop.f32.mrb[59].mxu0 }
 0xa9b   :  { %v1794_v10 = vadd.f32 %v1793_v7, %v9599_v46 }
 0xa9c   :  { %v9780_v11 = vpack.c.bf16 %v1792_v6, %v1788_v49 }
 0xa9d   :  { %v9782_v57 = vpack.c.bf16 %v1794_v10, %v1790_v51 }
 0xa9f   :  { %v1797_v12 = vpop.f32.mrb[60].mxu0  ;;  %7906 = vmatprep.subr.bf16.mxu0 %v9782_v57 }
 0xaa0   :  { %v1799_v13 = vpop.f32.mrb[61].mxu0  ;;  %7907 = vmatpush3.bf16.msra.mxu0 %v9782_v57  ;;  %v1798_v18 = vadd.f32 %v1797_v12, %v9596_v45 }
 0xaa1   :  { %v1801_v16 = vpop.f32.mrb[62].mxu0  ;;  %v1800_v50 = vadd.f32 %v1799_v13, %v9599_v46 }
 0xaa2   :  { %v1802_v19 = vadd.f32 %v1801_v16, %v9596_v45  ;;  %v1803_v20 = vpop.f32.mrb[63].mxu0 }
 0xaa3   :  { %v1804_v8 = vadd.f32 %v1803_v20, %v9599_v46 }
 0xaa4   :  { %v9790_v22 = vpack.c.bf16 %v1802_v19, %v1798_v18 }
 0xaa5   :  { %v9792_v41 = vpack.c.bf16 %v1804_v8, %v1800_v50 }
 0xaa7   :  { %7908 = vmatprep.subr.bf16.mxu0 %v9792_v41 }
 0xaa8   :  { %7909 = vmatpush3.bf16.msra.mxu0 %v9792_v41 }
 0xb2e   :  { %v9796_v25 = vpop.f32.mrb[64].mxu0 }
 0xb2f   :  { %v9798_v26 = vpop.f32.mrb[65].mxu0 }
 0xb30   :  { %v9800_v27 = vpop.f32.mrb[66].mxu0 }
 0xb31   :  { %v9802_v45 = vpop.f32.mrb[67].mxu0 }
 0xb3e   :  { %v7888_v17 = vpop.f32.mrb[68].mxu0 }
 0xb3f   :  { %v2434_v3 = vpop.f32.mrb[69].mxu0  ;;  %v2455_v29 = vsel %vm1876_vm2, %v7888_v17, -inf }
 0xb40   :  { %v7889_v60 = vpop.f32.mrb[70].mxu0  ;;  %v2449_v46 = vsel %vm1876_vm2, %v2434_v3, -inf }
 0xb41   :  { %2450 = vmax.xlane.f32.xlu0 %v2449_v46  ;;  %v2437_v56 = vpop.f32.mrb[71].mxu0  ;;  %v2458_v37 = vsel %vm1876_vm2, %v7889_v60, -inf }
 0xb42   :  { %v2452_v28 = vsel %vm1876_vm2, %v2437_v56, -inf }
 0xb43   :  { %2453 = vmax.xlane.f32.xlu1 %v2452_v28 }
 0xb45   :  { %2456 = vmax.xlane.f32.xlu0 %v2455_v29 }
 0xb49   :  { %2459 = vmax.xlane.f32.xlu0 %v2458_v37 }
 0xb54   :  { %2497 = vrot.lane.b32.xlu1 %v9619_v4, %s11384_s0 }
 0xbce   :  { %v2451_v21 = vpop.xlane.xlu0 %2450 }
 0xbcf   :  { %v2461_v54 = vsub.f32 %v2434_v3, %v2451_v21 }
 0xbd0   :  { %v2454_v2 = vpop.xlane.xlu1 %2453 }
 0xbd1   :  { %v2465_v23 = vmul.f32 1.442695, %v2461_v54  ;;  %v2462_v47 = vsub.f32 %v2437_v56, %v2454_v2 }
 0xbd2   :  { %v2457_v39 = vpop.xlane.xlu0 %2456 }
 0xbd3   :  { %v2463_v40 = vsub.f32 %v7888_v17, %v2457_v39  ;;  %v2467_v31 = vmul.f32 1.442695, %v2462_v47 }
 0xbd4   :  { %v2498_v6 = vpop.permute.xlu1 %2497 }
 0xbd5   :  { %v2469_v48 = vmul.f32 1.442695, %v2463_v40 }
 0xbd6   :  { %v2460_v5 = vpop.xlane.xlu0 %2459 }
 0xbd7   :  { %8548 = vpow2.f32 %v2469_v48  ;;  %v2464_v38 = vsub.f32 %v7889_v60, %v2460_v5 }
 0xbd8   :  { %8550 = vpow2.f32 %v2465_v23 }
 0xbd9   :  { %v2471_v52 = vmul.f32 1.442695, %v2464_v38 }
 0xbdb   :  { %8552 = vpow2.f32 %v2471_v52 }
 0xbdc   :  { %8554 = vpow2.f32 %v2467_v31 }
 0xbe1   :  { %v8549_v58 = vpop.eup %8548 }
 0xbe2   :  { %v2479_v33 = vsel %vm1876_vm2, %v8549_v58, 0.0  ;;  %v8551_v4 = vpop.eup %8550 }
 0xbe3   :  { %2480 = vadd.xlane.f32.xlu0 %v2479_v33  ;;  %v2473_v53 = vsel %vm1876_vm2, %v8551_v4, 0.0 }
 0xbe5   :  { %v8553_v62 = vpop.eup %8552 }
 0xbe6   :  { %v2482_v63 = vsel %vm1876_vm2, %v8553_v62, 0.0  ;;  %v8555_v1 = vpop.eup %8554 }
 0xbe7   :  { %2474 = vadd.xlane.f32.xlu0 %v2473_v53  ;;  %2483 = vadd.xlane.f32.xlu1 %v2482_v63  ;;  %v2476_v49 = vsel %vm1876_vm2, %v8555_v1, 0.0 }
 0xbeb   :  { %2477 = vadd.xlane.f32.xlu1 %v2476_v49 }
 0xbfc   :  { %2581 = vrot.lane.b32.xlu1 %v9780_v11, %s8895_s3 }
 0xbfd   :  { %2495 = vrot.lane.b32.xlu0 %v9607_v55, %s11384_s0 }
 0xc00   :  { %2583 = vrot.lane.b32.xlu1 %v9790_v22, %s8895_s3 }
 0xc70   :  { %v2481_v7 = vpop.xlane.xlu0 %2480 }
 0xc74   :  { %v2475_v51 = vpop.xlane.xlu0 %2474  ;;  %v2484_v10 = vpop.xlane.xlu1 %2483 }
 0xc75   :  { %8556 = vrcp.f32 %v2484_v10 }
 0xc76   :  { %8558 = vrcp.f32 %v2475_v51 }
 0xc77   :  { %8560 = vrcp.f32 %v2481_v7 }
 0xc78   :  { %v2496_v12 = vpop.permute.xlu0 %2495  ;;  %v2478_v13 = vpop.xlane.xlu1 %2477 }
 0xc79   :  { %8562 = vrcp.f32 %v2478_v13  ;;  %7890 = vmatprep.subr.bf16.mxu1 %v2496_v12 }
 0xc7a   :  { %7891 = vmatpush3.bf16.msra.mxu1 %v2496_v12 }
 0xc7b   :  { %7892 = vmatprep.subr.bf16.mxu1 %v2498_v6 }
 0xc7c   :  { %v2582_v16 = vpop.permute.xlu1 %2581 }
 0xc7d   :  { %v2592_v56 = vsel %vm1814_vm1, %v2582_v16, 0 }
 0xc7e   :  { %7893 = vmatpush3.bf16.msra.mxu1 %v2498_v6 }
 0xc7f   :  { %8192 = vmatprep.subr.msk.bf16.mxu1 %vm1814_vm1, %v2582_v16  ;;  %v8557_v55 = vpop.eup %8556 }
 0xc80   :  { %v8559_v18 = vpop.eup %8558  ;;  %v2492_v50 = vmul.f32 %v8557_v55, %v8553_v62  ;;  %v2584_v28 = vpop.permute.xlu1 %2583 }
 0xc81   :  { %v8561_v19 = vpop.eup %8560  ;;  %v2486_v8 = vmul.f32 %v8559_v18, %v8551_v4  ;;  %v2595_v29 = vsel %vm1814_vm1, %v2584_v28, 0 }
 0xc82   :  { %v2490_v3 = vmul.f32 %v8561_v19, %v8549_v58 }
 0xc83   :  { %v8563_v20 = vpop.eup %8562 }
 0xc84   :  { %v2488_v17 = vmul.f32 %v8563_v20, %v8555_v1  ;;  %v2494_v46 = vpack.c.bf16 %v2492_v50, %v2490_v3 }
 0xc86   :  { %v2493_v60 = vpack.c.bf16 %v2488_v17, %v2486_v8 }
 0xc88   :  { %7894 = vmatprep.mubr.msk.bf16.mxu1 %vm1876_vm2, %v2493_v60 }
 0xc89   :  { %7895 = vmatmul.mubr.msk.bf16.vlgmr.msra.gmra.mrb[68].mxu1 %vm1876_vm2, %v2494_v46 }
 0xc8a   :  { %7899 = vmatpush3.bf16.xpose.msra.mxu1 %v2592_v56  ;;  %7902 = vmatprep.mubr.msk.bf16.mxu1 %vm1814_vm1, %v9780_v11 }
 0xc8b   :  { %8193 = vmatprep.subr.msk.bf16.mxu1 %vm1814_vm1, %v2584_v28 }
 0xc92   :  { %7901 = vmatpush3.bf16.xpose.msra.mxu1 %v2595_v29 }
 0xc99   :  { %7903 = vmatmul.mubr.msk.bf16.vlgmr.msra.gmra.mrb[72].mxu1 %vm1814_vm1, %v9790_v22 }
 0xd5c   :  { %v9830_v37 = vpop.f32.mrb[68].mxu1 }
 0xd5d   :  { %v9832_v21 = vpop.f32.mrb[69].mxu1 }
 0xd5e   :  { %v9834_v54 = vpop.f32.mrb[70].mxu1 }
 0xd5f   :  { %v9836_v2 = vpop.f32.mrb[71].mxu1 }
 0xd6c   :  { %v7904_v39 = vpop.f32.mrb[72].mxu1 }
 0xd6d   :  { %v2631_v40 = vpop.f32.mrb[73].mxu1  ;;  %v2652_v38 = vsel %vm1876_vm2, %v7904_v39, -inf }
 0xd6e   :  { %v7905_v23 = vpop.f32.mrb[74].mxu1  ;;  %v2646_v47 = vsel %vm1876_vm2, %v2631_v40, -inf }
 0xd6f   :  { %2647 = vmax.xlane.f32.xlu0 %v2646_v47  ;;  %v2634_v48 = vpop.f32.mrb[75].mxu1  ;;  %v2655_v31 = vsel %vm1876_vm2, %v7905_v23, -inf }
 0xd70   :  { %v2649_v5 = vsel %vm1876_vm2, %v2634_v48, -inf }
 0xd71   :  { %2650 = vmax.xlane.f32.xlu1 %v2649_v5 }
 0xd73   :  { %2653 = vmax.xlane.f32.xlu0 %v2652_v38 }
 0xd77   :  { %2656 = vmax.xlane.f32.xlu0 %v2655_v31 }
 0xdfc   :  { %v2648_v52 = vpop.xlane.xlu0 %2647 }
 0xdfd   :  { %v2658_v33 = vsub.f32 %v2631_v40, %v2648_v52 }
 0xdfe   :  { %v2651_v58 = vpop.xlane.xlu1 %2650 }
 0xdff   :  { %v2659_v4 = vsub.f32 %v2634_v48, %v2651_v58  ;;  %v2662_v1 = vmul.f32 1.442695, %v2658_v33 }
 0xe00   :  { %v2654_v62 = vpop.xlane.xlu0 %2653 }
 0xe01   :  { %v2664_v53 = vmul.f32 1.442695, %v2659_v4  ;;  %v2660_v63 = vsub.f32 %v7904_v39, %v2654_v62 }
 0xe03   :  { %8564 = vpow2.f32 %v2664_v53  ;;  %v2666_v49 = vmul.f32 1.442695, %v2660_v63 }
 0xe04   :  { %v2657_v6 = vpop.xlane.xlu0 %2656 }
 0xe05   :  { %8566 = vpow2.f32 %v2666_v49  ;;  %v2661_v7 = vsub.f32 %v7905_v23, %v2657_v6 }
 0xe06   :  { %8568 = vpow2.f32 %v2662_v1 }
 0xe07   :  { %v2668_v51 = vmul.f32 1.442695, %v2661_v7 }
 0xe09   :  { %8570 = vpow2.f32 %v2668_v51 }
 0xe0d   :  { %v8565_v10 = vpop.eup %8564 }
 0xe0e   :  { %v2673_v12 = vsel %vm1876_vm2, %v8565_v10, 0.0 }
 0xe0f   :  { %v8567_v13 = vpop.eup %8566  ;;  %2674 = vadd.xlane.f32.xlu1 %v2673_v12 }
 0xe10   :  { %v2676_v16 = vsel %vm1876_vm2, %v8567_v13, 0.0  ;;  %v8569_v55 = vpop.eup %8568 }
 0xe11   :  { %2677 = vadd.xlane.f32.xlu0 %v2676_v16  ;;  %v2670_v19 = vsel %vm1876_vm2, %v8569_v55, 0.0 }
 0xe13   :  { %v8571_v18 = vpop.eup %8570 }
 0xe14   :  { %v2679_v20 = vsel %vm1876_vm2, %v8571_v18, 0.0 }
 0xe15   :  { %2671 = vadd.xlane.f32.xlu0 %v2670_v19  ;;  %2680 = vadd.xlane.f32.xlu1 %v2679_v20 }
 0xe26   :  { %2759 = vrot.lane.b32.xlu1 %v9790_v22, %s8896_s26 }
 0xe2a   :  { %2753 = vrot.lane.b32.xlu1 %v9780_v11, %s8897_s27 }
 0xe2b   :  { %2757 = vrot.lane.b32.xlu0 %v9780_v11, %s8896_s26 }
 0xe2e   :  { %2755 = vrot.lane.b32.xlu1 %v9790_v22, %s8897_s27 }
 0xe9c   :  { %v2675_v50 = vpop.xlane.xlu1 %2674 }
 0xe9d   :  { %8572 = vrcp.f32 %v2675_v50 }
 0xe9e   :  { %v2678_v8 = vpop.xlane.xlu0 %2677 }
 0xe9f   :  { %8574 = vrcp.f32 %v2678_v8 }
 0xea2   :  { %v2672_v17 = vpop.xlane.xlu0 %2671  ;;  %v2681_v3 = vpop.xlane.xlu1 %2680 }
 0xea3   :  { %8576 = vrcp.f32 %v2672_v17 }
 0xea4   :  { %8578 = vrcp.f32 %v2681_v3 }
 0xea6   :  { %v2758_v60 = vpop.permute.xlu0 %2757  ;;  %v2760_v29 = vpop.permute.xlu1 %2759 }
 0xea7   :  { %8194 = vmatprep.subr.msk.bf16.mxu0 %vm1814_vm1, %v2758_v60  ;;  %v8573_v46 = vpop.eup %8572  ;;  %v2768_v52 = vsel %vm1814_vm1, %v2758_v60, 0  ;;  %v2771_v58 = vsel %vm1814_vm1, %v2760_v29, 0 }
 0xea8   :  { %v2685_v23 = vmul.f32 %v8573_v46, %v8565_v10 }
 0xea9   :  { %v8575_v56 = vpop.eup %8574 }
 0xeaa   :  { %v2687_v47 = vmul.f32 %v8575_v56, %v8567_v13  ;;  %v2754_v31 = vpop.permute.xlu1 %2753 }
 0xead   :  { %v8577_v28 = vpop.eup %8576 }
 0xeae   :  { %v8579_v39 = vpop.eup %8578  ;;  %v2683_v40 = vmul.f32 %v8577_v28, %v8569_v55  ;;  %v2756_v33 = vpop.permute.xlu1 %2755 }
 0xeaf   :  { %v2689_v48 = vmul.f32 %v8579_v39, %v8571_v18 }
 0xeb0   :  { %v2690_v5 = vpack.c.bf16 %v2685_v23, %v2683_v40 }
 0xeb1   :  { %v2691_v38 = vpack.c.bf16 %v2689_v48, %v2687_v47 }
 0xeb2   :  { %7910 = vmatprep.mubr.msk.bf16.mxu0 %vm1876_vm2, %v2690_v5 }
 0xeb3   :  { %7911 = vmatmul.mubr.msk.bf16.vlgmr.msra.gmra.mrb[72].mxu0 %vm1876_vm2, %v2691_v38 }
 0xeb4   :  { %7915 = vmatpush3.bf16.xpose.msra.mxu0 %v2768_v52  ;;  %7918 = vmatprep.mubr.msk.bf16.mxu0 %vm1814_vm1, %v2754_v31 }
 0xeb5   :  { %8195 = vmatprep.subr.msk.bf16.mxu0 %vm1814_vm1, %v2760_v29 }
 0xebc   :  { %7917 = vmatpush3.bf16.xpose.msra.mxu0 %v2771_v58 }
 0xec3   :  { %7919 = vmatmul.mubr.msk.bf16.vlgmr.msra.gmra.mrb[76].mxu0 %vm1814_vm1, %v2756_v33 }
 0xf86   :  { %v7912_v4 = vpop.f32.mrb[72].mxu0 }
 0xf87   :  { %2751 = vst.msk [vmem:[#allocation2 + $0x30] sm:$0xff] %vm1814_vm1, %v7912_v4  ;;  %v2734_v62 = vpop.f32.mrb[73].mxu0 }
 0xf88   :  { %2749 = vst.msk [vmem:[#allocation2 + $0x20] sm:$0xff] %vm1814_vm1, %v2734_v62  ;;  %v7913_v53 = vpop.f32.mrb[74].mxu0 }
 0xf89   :  { %2752 = vst.msk [vmem:[#allocation2 + $0x38] sm:$0xff] %vm1814_vm1, %v7913_v53  ;;  %v2737_v63 = vpop.f32.mrb[75].mxu0 }
 0xf8a   :  { %2750 = vst.msk [vmem:[#allocation2 + $0x28] sm:$0xff] %vm1814_vm1, %v2737_v63 }
 0xf96   :  { %v7920_v1 = vpop.f32.mrb[76].mxu0 }
 0xf97   :  { %v2807_v49 = vpop.f32.mrb[77].mxu0  ;;  %v2828_v12 = vsel %vm1876_vm2, %v7920_v1, -inf }
 0xf98   :  { %v7921_v6 = vpop.f32.mrb[78].mxu0  ;;  %v2822_v7 = vsel %vm1876_vm2, %v2807_v49, -inf }
 0xf99   :  { %2823 = vmax.xlane.f32.xlu0 %v2822_v7  ;;  %v2810_v51 = vpop.f32.mrb[79].mxu0  ;;  %v2831_v13 = vsel %vm1876_vm2, %v7921_v6, -inf }
 0xf9a   :  { %v2825_v10 = vsel %vm1876_vm2, %v2810_v51, -inf }
 0xf9b   :  { %2826 = vmax.xlane.f32.xlu1 %v2825_v10 }
 0xf9d   :  { %2829 = vmax.xlane.f32.xlu0 %v2828_v12 }
 0xfa1   :  { %2832 = vmax.xlane.f32.xlu0 %v2831_v13 }
 0xfac   :  { %2872 = vrot.lane.b32.xlu1 %v9792_v41, %s8897_s27 }
0x1026   :  { %v2824_v16 = vpop.xlane.xlu0 %2823 }
0x1027   :  { %v2834_v55 = vsub.f32 %v2807_v49, %v2824_v16 }
0x1028   :  { %v2827_v18 = vpop.xlane.xlu1 %2826 }
0x1029   :  { %v2838_v50 = vmul.f32 1.442695, %v2834_v55  ;;  %v2835_v8 = vsub.f32 %v2810_v51, %v2827_v18 }
0x102a   :  { %v2830_v19 = vpop.xlane.xlu0 %2829 }
0x102b   :  { %v2836_v20 = vsub.f32 %v7920_v1, %v2830_v19  ;;  %v2840_v46 = vmul.f32 1.442695, %v2835_v8 }
0x102c   :  { %v2873_v38 = vpop.permute.xlu1 %2872 }
0x102d   :  { %v2842_v17 = vmul.f32 1.442695, %v2836_v20 }
0x102e   :  { %v2833_v3 = vpop.xlane.xlu0 %2832 }
0x102f   :  { %8580 = vpow2.f32 %v2842_v17  ;;  %v2837_v60 = vsub.f32 %v7921_v6, %v2833_v3 }
0x1030   :  { %8582 = vpow2.f32 %v2838_v50 }
0x1031   :  { %v2844_v56 = vmul.f32 1.442695, %v2837_v60 }
0x1033   :  { %8584 = vpow2.f32 %v2844_v56 }
0x1034   :  { %8586 = vpow2.f32 %v2840_v46 }
0x1039   :  { %v8581_v28 = vpop.eup %8580 }
0x103a   :  { %v2852_v29 = vsel %vm1876_vm2, %v8581_v28, 0.0  ;;  %v8583_v39 = vpop.eup %8582 }
0x103b   :  { %2853 = vadd.xlane.f32.xlu0 %v2852_v29  ;;  %v2846_v23 = vsel %vm1876_vm2, %v8583_v39, 0.0 }
0x103d   :  { %v8585_v40 = vpop.eup %8584 }
0x103e   :  { %v2855_v47 = vsel %vm1876_vm2, %v8585_v40, 0.0  ;;  %v8587_v48 = vpop.eup %8586 }
0x103f   :  { %2847 = vadd.xlane.f32.xlu0 %v2846_v23  ;;  %2856 = vadd.xlane.f32.xlu1 %v2855_v47  ;;  %v2849_v5 = vsel %vm1876_vm2, %v8587_v48, 0.0 }
0x1043   :  { %2850 = vadd.xlane.f32.xlu1 %v2849_v5 }
0x1054   :  { %2955 = vrot.lane.b32.xlu1 %v9780_v11, %s11390_s28 }
0x1055   :  { %2870 = vrot.lane.b32.xlu0 %v9782_v57, %s8897_s27 }
0x1058   :  { %2957 = vrot.lane.b32.xlu1 %v9790_v22, %s11390_s28 }
0x1059   :  { %2951 = vrot.lane.b32.xlu0 %v9780_v11, %s11386_s4 }
0x105c   :  { %2953 = vrot.lane.b32.xlu1 %v9790_v22, %s11386_s4 }
0x10c8   :  { %v2854_v31 = vpop.xlane.xlu0 %2853 }
0x10cc   :  { %v2848_v52 = vpop.xlane.xlu0 %2847  ;;  %v2857_v58 = vpop.xlane.xlu1 %2856 }
0x10cd   :  { %8588 = vrcp.f32 %v2857_v58 }
0x10ce   :  { %8590 = vrcp.f32 %v2848_v52 }
0x10cf   :  { %8592 = vrcp.f32 %v2854_v31 }
0x10d0   :  { %v2871_v33 = vpop.permute.xlu0 %2870  ;;  %v2851_v4 = vpop.xlane.xlu1 %2850 }
0x10d1   :  { %8594 = vrcp.f32 %v2851_v4  ;;  %7922 = vmatprep.subr.bf16.mxu1 %v2871_v33 }
0x10d2   :  { %7923 = vmatpush3.bf16.msra.mxu1 %v2871_v33 }
0x10d3   :  { %7924 = vmatprep.subr.bf16.mxu1 %v2873_v38 }
0x10d4   :  { %v2956_v62 = vpop.permute.xlu1 %2955  ;;  %v2952_v16 = vpop.permute.xlu0 %2951 }
0x10d5   :  { %v2966_v55 = vsel %vm1814_vm1, %v2956_v62, 0 }
0x10d6   :  { %7925 = vmatpush3.bf16.msra.mxu1 %v2873_v38 }
0x10d7   :  { %8196 = vmatprep.subr.msk.bf16.mxu1 %vm1814_vm1, %v2956_v62  ;;  %v8589_v53 = vpop.eup %8588 }
0x10d8   :  { %v8591_v63 = vpop.eup %8590  ;;  %v2865_v6 = vmul.f32 %v8589_v53, %v8585_v40  ;;  %v2958_v18 = vpop.permute.xlu1 %2957 }
0x10d9   :  { %v8593_v1 = vpop.eup %8592  ;;  %v2859_v7 = vmul.f32 %v8591_v63, %v8583_v39  ;;  %v2969_v19 = vsel %vm1814_vm1, %v2958_v18, 0 }
0x10da   :  { %v2863_v10 = vmul.f32 %v8593_v1, %v8581_v28 }
0x10db   :  { %v8595_v49 = vpop.eup %8594 }
0x10dc   :  { %v2861_v51 = vmul.f32 %v8595_v49, %v8587_v48  ;;  %v2867_v13 = vpack.c.bf16 %v2865_v6, %v2863_v10  ;;  %v2954_v20 = vpop.permute.xlu1 %2953 }
0x10de   :  { %v2866_v12 = vpack.c.bf16 %v2861_v51, %v2859_v7 }
0x10e0   :  { %7926 = vmatprep.mubr.msk.bf16.mxu1 %vm1876_vm2, %v2866_v12 }
0x10e1   :  { %7927 = vmatmul.mubr.msk.bf16.vlgmr.msra.gmra.mrb[76].mxu1 %vm1876_vm2, %v2867_v13 }
0x10e2   :  { %7931 = vmatpush3.bf16.xpose.msra.mxu1 %v2966_v55  ;;  %7934 = vmatprep.mubr.msk.bf16.mxu1 %vm1814_vm1, %v2952_v16 }
0x10e3   :  { %8197 = vmatprep.subr.msk.bf16.mxu1 %vm1814_vm1, %v2958_v18 }
0x10ea   :  { %7933 = vmatpush3.bf16.xpose.msra.mxu1 %v2969_v19 }
0x10f1   :  { %7935 = vmatmul.mubr.msk.bf16.vlgmr.msra.gmra.mrb[80].mxu1 %vm1814_vm1, %v2954_v20 }
0x11b4   :  { %v9894_v50 = vpop.f32.mrb[76].mxu1 }
0x11b5   :  { %v9896_v8 = vpop.f32.mrb[77].mxu1 }
0x11b6   :  { %v9898_v17 = vpop.f32.mrb[78].mxu1 }
0x11b7   :  { %v9900_v3 = vpop.f32.mrb[79].mxu1 }
0x11c4   :  { %v7936_v60 = vpop.f32.mrb[80].mxu1 }
0x11c5   :  { %v3005_v46 = vpop.f32.mrb[81].mxu1  ;;  %v3026_v40 = vsel %vm1876_vm2, %v7936_v60, -inf }
0x11c6   :  { %v7937_v56 = vpop.f32.mrb[82].mxu1  ;;  %v3020_v28 = vsel %vm1876_vm2, %v3005_v46, -inf }
0x11c7   :  { %3021 = vmax.xlane.f32.xlu0 %v3020_v28  ;;  %v3008_v29 = vpop.f32.mrb[83].mxu1  ;;  %v3029_v23 = vsel %vm1876_vm2, %v7937_v56, -inf }
0x11c8   :  { %v3023_v39 = vsel %vm1876_vm2, %v3008_v29, -inf }
0x11c9   :  { %3024 = vmax.xlane.f32.xlu1 %v3023_v39 }
0x11cb   :  { %3027 = vmax.xlane.f32.xlu0 %v3026_v40 }
0x11cf   :  { %3030 = vmax.xlane.f32.xlu0 %v3029_v23 }
0x11da   :  { %3068 = vrot.lane.b32.xlu1 %v9792_v41, %s11386_s4 }
0x1254   :  { %v3022_v47 = vpop.xlane.xlu0 %3021 }
0x1255   :  { %v3032_v48 = vsub.f32 %v3005_v46, %v3022_v47 }
0x1256   :  { %v3025_v5 = vpop.xlane.xlu1 %3024 }
0x1257   :  { %v3036_v52 = vmul.f32 1.442695, %v3032_v48  ;;  %v3033_v58 = vsub.f32 %v3008_v29, %v3025_v5 }
0x1258   :  { %v3028_v38 = vpop.xlane.xlu0 %3027 }
0x1259   :  { %v3034_v31 = vsub.f32 %v7936_v60, %v3028_v38  ;;  %v3038_v53 = vmul.f32 1.442695, %v3033_v58 }
0x125a   :  { %v3069_v16 = vpop.permute.xlu1 %3068 }
0x125b   :  { %v3040_v33 = vmul.f32 1.442695, %v3034_v31 }
0x125c   :  { %v3031_v4 = vpop.xlane.xlu0 %3030 }
0x125d   :  { %8596 = vpow2.f32 %v3040_v33  ;;  %v3035_v62 = vsub.f32 %v7937_v56, %v3031_v4 }
0x125e   :  { %8598 = vpow2.f32 %v3036_v52 }
0x125f   :  { %v3042_v63 = vmul.f32 1.442695, %v3035_v62 }
0x1261   :  { %8600 = vpow2.f32 %v3042_v63 }
0x1262   :  { %8602 = vpow2.f32 %v3038_v53 }
0x1267   :  { %v8597_v1 = vpop.eup %8596 }
0x1268   :  { %v3050_v49 = vsel %vm1876_vm2, %v8597_v1, 0.0  ;;  %v8599_v6 = vpop.eup %8598 }
0x1269   :  { %3051 = vadd.xlane.f32.xlu0 %v3050_v49  ;;  %v3044_v51 = vsel %vm1876_vm2, %v8599_v6, 0.0 }
0x126b   :  { %v8601_v7 = vpop.eup %8600 }
0x126c   :  { %v3053_v10 = vsel %vm1876_vm2, %v8601_v7, 0.0  ;;  %v8603_v12 = vpop.eup %8602 }
0x126d   :  { %3045 = vadd.xlane.f32.xlu0 %v3044_v51  ;;  %3054 = vadd.xlane.f32.xlu1 %v3053_v10  ;;  %v3047_v13 = vsel %vm1876_vm2, %v8603_v12, 0.0 }
0x1271   :  { %3048 = vadd.xlane.f32.xlu1 %v3047_v13 }
0x1282   :  { %3151 = vrot.lane.b32.xlu1 %v9780_v11, %s11388_s30 }
0x1283   :  { %3066 = vrot.lane.b32.xlu0 %v9782_v57, %s11386_s4 }
0x1286   :  { %3153 = vrot.lane.b32.xlu1 %v9790_v22, %s11388_s30 }
0x1287   :  { %3147 = vrot.lane.b32.xlu0 %v9780_v11, %s11384_s0 }
0x128a   :  { %3149 = vrot.lane.b32.xlu1 %v9790_v22, %s11384_s0 }
0x12f6   :  { %v3052_v55 = vpop.xlane.xlu0 %3051 }
0x12fa   :  { %v3046_v18 = vpop.xlane.xlu0 %3045  ;;  %v3055_v19 = vpop.xlane.xlu1 %3054 }
0x12fb   :  { %8604 = vrcp.f32 %v3055_v19 }
0x12fc   :  { %8606 = vrcp.f32 %v3046_v18 }
0x12fd   :  { %8608 = vrcp.f32 %v3052_v55 }
0x12fe   :  { %v3067_v20 = vpop.permute.xlu0 %3066  ;;  %v3049_v60 = vpop.xlane.xlu1 %3048 }
0x12ff   :  { %8610 = vrcp.f32 %v3049_v60  ;;  %7938 = vmatprep.subr.bf16.mxu0 %v3067_v20 }
0x1300   :  { %7939 = vmatpush3.bf16.msra.mxu0 %v3067_v20 }
0x1301   :  { %7940 = vmatprep.subr.bf16.mxu0 %v3069_v16 }
0x1302   :  { %v3152_v46 = vpop.permute.xlu1 %3151  ;;  %v3148_v5 = vpop.permute.xlu0 %3147 }
0x1303   :  { %v3162_v38 = vsel %vm1814_vm1, %v3152_v46, 0 }
0x1304   :  { %7941 = vmatpush3.bf16.msra.mxu0 %v3069_v16 }
0x1305   :  { %8198 = vmatprep.subr.msk.bf16.mxu0 %vm1814_vm1, %v3152_v46  ;;  %v8605_v11 = vpop.eup %8604 }
0x1306   :  { %v8607_v56 = vpop.eup %8606  ;;  %v3063_v29 = vmul.f32 %v8605_v11, %v8601_v7  ;;  %v3154_v31 = vpop.permute.xlu1 %3153 }
0x1307   :  { %v8609_v22 = vpop.eup %8608  ;;  %v3057_v39 = vmul.f32 %v8607_v56, %v8599_v6  ;;  %v3165_v52 = vsel %vm1814_vm1, %v3154_v31, 0 }
0x1308   :  { %v3061_v23 = vmul.f32 %v8609_v22, %v8597_v1 }
0x1309   :  { %v8611_v28 = vpop.eup %8610 }
0x130a   :  { %v3059_v40 = vmul.f32 %v8611_v28, %v8603_v12  ;;  %v3065_v48 = vpack.c.bf16 %v3063_v29, %v3061_v23  ;;  %v3150_v58 = vpop.permute.xlu1 %3149 }
0x130c   :  { %v3064_v47 = vpack.c.bf16 %v3059_v40, %v3057_v39 }
0x130e   :  { %7942 = vmatprep.mubr.msk.bf16.mxu0 %vm1876_vm2, %v3064_v47 }
0x130f   :  { %7943 = vmatmul.mubr.msk.bf16.vlgmr.msra.gmra.mrb[80].mxu0 %vm1876_vm2, %v3065_v48 }
0x1310   :  { %7947 = vmatpush3.bf16.xpose.msra.mxu0 %v3162_v38  ;;  %7950 = vmatprep.mubr.msk.bf16.mxu0 %vm1814_vm1, %v3148_v5 }
0x1311   :  { %8199 = vmatprep.subr.msk.bf16.mxu0 %vm1814_vm1, %v3154_v31  ;;  %v8408_v31 = vld [vmem:[%s11365_s7] sm:$0xff]  }
0x1318   :  { %7949 = vmatpush3.bf16.xpose.msra.mxu0 %v3165_v52 }
0x131f   :  { %7951 = vmatmul.mubr.msk.bf16.vlgmr.msra.gmra.mrb[84].mxu0 %vm1814_vm1, %v3150_v58 }
0x1320   :  { %3729 = vmatprep.mubr.bf16.mxu0 %v8894_v0 }
0x13e2   :  { %v9931_v33 = vpop.f32.mrb[80].mxu0 }
0x13e3   :  { %v9933_v4 = vpop.f32.mrb[81].mxu0 }
0x13e4   :  { %v9935_v62 = vpop.f32.mrb[82].mxu0 }
0x13e5   :  { %v9937_v53 = vpop.f32.mrb[83].mxu0 }
0x13f2   :  { %v7952_v63 = vpop.f32.mrb[84].mxu0 }
0x13f3   :  { %v3201_v1 = vpop.f32.mrb[85].mxu0  ;;  %v3222_v10 = vsel %vm1876_vm2, %v7952_v63, -inf }
0x13f4   :  { %v7953_v49 = vpop.f32.mrb[86].mxu0  ;;  %v3216_v6 = vsel %vm1876_vm2, %v3201_v1, -inf }
0x13f5   :  { %3217 = vmax.xlane.f32.xlu0 %v3216_v6  ;;  %v3204_v7 = vpop.f32.mrb[87].mxu0  ;;  %v3225_v12 = vsel %vm1876_vm2, %v7953_v49, -inf }
0x13f6   :  { %v3219_v51 = vsel %vm1876_vm2, %v3204_v7, -inf }
0x13f7   :  { %3220 = vmax.xlane.f32.xlu1 %v3219_v51 }
0x13f9   :  { %3223 = vmax.xlane.f32.xlu0 %v3222_v10 }
0x13fd   :  { %3226 = vmax.xlane.f32.xlu0 %v3225_v12 }
0x1408   :  { %3264 = vrot.lane.b32.xlu1 %v9792_v41, %s11384_s0 }
0x140c   :  { %2166 = vrot.lane.b32.xlu1 %v9699_v34, %s11388_s30 }
0x1410   :  { %2168 = vrot.lane.b32.xlu1 %v9703_v36, %s11388_s30 }
0x1413   :  { %3262 = vrot.lane.b32.xlu0 %v9782_v57, %s11384_s0 }
0x1414   :  { %2172 = vrot.lane.b32.xlu1 %v9701_v35, %s11388_s30 }
0x1417   :  { %2170 = vrot.lane.b32.xlu0 %v9697_v9, %s11388_s30 }
0x1418   :  { %2365 = vrot.lane.b32.xlu1 %v9802_v45, %s11390_s28 }
0x141b   :  { %2363 = vrot.lane.b32.xlu0 %v9798_v26, %s11390_s28 }
0x141c   :  { %2369 = vrot.lane.b32.xlu1 %v9800_v27, %s11390_s28 }
0x141f   :  { %2367 = vrot.lane.b32.xlu0 %v9796_v25, %s11390_s28 }
0x1420   :  { %2562 = vrot.lane.b32.xlu1 %v9836_v2, %s8896_s26 }
0x1482   :  { %v3218_v34 = vpop.xlane.xlu0 %3217 }
0x1483   :  { %v3228_v36 = vsub.f32 %v3201_v1, %v3218_v34 }
0x1484   :  { %v3221_v35 = vpop.xlane.xlu1 %3220 }
0x1485   :  { %v3232_v13 = vmul.f32 1.442695, %v3228_v36  ;;  %v3229_v45 = vsub.f32 %v3204_v7, %v3221_v35 }
0x1486   :  { %v3224_v57 = vpop.xlane.xlu0 %3223 }
0x1487   :  { %v3230_v9 = vsub.f32 %v7952_v63, %v3224_v57  ;;  %v3234_v18 = vmul.f32 1.442695, %v3229_v45 }
0x1488   :  { %v3265_v41 = vpop.permute.xlu1 %3264 }
0x1489   :  { %v3236_v16 = vmul.f32 1.442695, %v3230_v9 }
0x148a   :  { %v3227_v55 = vpop.xlane.xlu0 %3226 }
0x148b   :  { %8612 = vpow2.f32 %v3236_v16  ;;  %v3231_v26 = vsub.f32 %v7953_v49, %v3227_v55  ;;  %v8410_v16 = vld [vmem:[%s11365_s7 + $0x10] sm:$0xff]   ;;  %v8411_v55 = vld [vmem:[%s11365_s7 + $0x18] sm:$0xff]  }
0x148c   :  { %v2167_v27 = vpop.permute.xlu1 %2166  ;;  %8614 = vpow2.f32 %v3232_v13  ;;  %v8409_v13 = vld [vmem:[%s11365_s7 + $0x8] sm:$0xff]  }
0x148d   :  { %v3238_v25 = vmul.f32 1.442695, %v3231_v26  ;;  %2179 = vst.msk [vmem:[#allocation2] sm:$0xff] %vm2178_vm3, %v2167_v27 }
0x148e   :  { %v3263_v2 = vpop.permute.xlu0 %3262 }
0x148f   :  { %8616 = vpow2.f32 %v3238_v25  ;;  %7954 = vmatprep.subr.bf16.mxu1 %v3263_v2 }
0x1490   :  { %7955 = vmatpush3.bf16.msra.mxu1 %v3263_v2  ;;  %v2169_v19 = vpop.permute.xlu1 %2168  ;;  %8618 = vpow2.f32 %v3234_v18 }
0x1491   :  { %2180 = vst.msk [vmem:[#allocation2 + $0x8] sm:$0xff] %vm2178_vm3, %v2169_v19  ;;  %7956 = vmatprep.subr.bf16.mxu1 %v3265_v41 }
0x1492   :  { %v2171_v20 = vpop.permute.xlu0 %2170 }
0x1493   :  { %2181 = vst.msk [vmem:[#allocation2 + $0x10] sm:$0xff] %vm2178_vm3, %v2171_v20 }
0x1494   :  { %7957 = vmatpush3.bf16.msra.mxu1 %v3265_v41  ;;  %v2173_v60 = vpop.permute.xlu1 %2172 }
0x1495   :  { %v8613_v46 = vpop.eup %8612  ;;  %2182 = vst.msk [vmem:[#allocation2 + $0x18] sm:$0xff] %vm2178_vm3, %v2173_v60  ;;  %7962 = vmatprep.subr.bf16.mxu1 %v8408_v31 }
0x1496   :  { %v2364_v11 = vpop.permute.xlu0 %2363  ;;  %v3246_v56 = vsel %vm1876_vm2, %v8613_v46, 0.0  ;;  %v8615_v22 = vpop.eup %8614 }
0x1497   :  { %2376 = vst.msk [vmem:[#allocation2] sm:$0xff] %vm2375_vm4, %v2364_v11  ;;  %3247 = vadd.xlane.f32.xlu0 %v3246_v56  ;;  %v3240_v40 = vsel %vm1876_vm2, %v8615_v22, 0.0 }
0x1498   :  { %v2366_v28 = vpop.permute.xlu1 %2365 }
0x1499   :  { %v8617_v29 = vpop.eup %8616  ;;  %2377 = vst.msk [vmem:[#allocation2 + $0x8] sm:$0xff] %vm2375_vm4, %v2366_v28 }
0x149a   :  { %v2368_v39 = vpop.permute.xlu0 %2367  ;;  %v3249_v23 = vsel %vm1876_vm2, %v8617_v29, 0.0  ;;  %v8619_v47 = vpop.eup %8618 }
0x149b   :  { %2378 = vst.msk [vmem:[#allocation2 + $0x10] sm:$0xff] %vm2375_vm4, %v2368_v39  ;;  %3241 = vadd.xlane.f32.xlu0 %v3240_v40  ;;  %3250 = vadd.xlane.f32.xlu1 %v3249_v23  ;;  %v3243_v5 = vsel %vm1876_vm2, %v8619_v47, 0.0 }
0x149c   :  { %v2370_v48 = vpop.permute.xlu1 %2369 }
0x149d   :  { %2379 = vst.msk [vmem:[#allocation2 + $0x18] sm:$0xff] %vm2375_vm4, %v2370_v48 }
0x149f   :  { %3244 = vadd.xlane.f32.xlu1 %v3243_v5 }
0x14a0   :  { %v2563_v38 = vpop.permute.xlu1 %2562 }
0x14a1   :  { %2574 = vst.msk [vmem:[#allocation2 + $0x8] sm:$0xff] %vm2572_vm5, %v2563_v38 }
0x14a8   :  { %v3344_v41 = vld [vmem:[#allocation2 + $0x8] sm:$0xff] }
0x14b0   :  { %2566 = vrot.lane.b32.xlu1 %v9834_v54, %s8896_s26 }
0x14b1   :  { %2560 = vrot.lane.b32.xlu0 %v9832_v21, %s8896_s26 }
0x14b5   :  { %2564 = vrot.lane.b32.xlu0 %v9830_v37, %s8896_s26 }
0x1524   :  { %v3248_v52 = vpop.xlane.xlu0 %3247 }
0x1528   :  { %v3242_v58 = vpop.xlane.xlu0 %3241  ;;  %v3251_v63 = vpop.xlane.xlu1 %3250 }
0x1529   :  { %8620 = vrcp.f32 %v3251_v63 }
0x152a   :  { %8622 = vrcp.f32 %v3242_v58 }
0x152b   :  { %8624 = vrcp.f32 %v3248_v52 }
0x152c   :  { %v2561_v1 = vpop.permute.xlu0 %2560  ;;  %v3245_v49 = vpop.xlane.xlu1 %3244 }
0x152d   :  { %2573 = vst.msk [vmem:[#allocation2] sm:$0xff] %vm2572_vm5, %v2561_v1  ;;  %8626 = vrcp.f32 %v3245_v49 }
0x1530   :  { %v2565_v21 = vpop.permute.xlu0 %2564  ;;  %v2567_v54 = vpop.permute.xlu1 %2566 }
0x1531   :  { %2575 = vst.msk [vmem:[#allocation2 + $0x10] sm:$0xff] %vm2572_vm5, %v2565_v21  ;;  %2576 = vst.msk [vmem:[#allocation2 + $0x18] sm:$0xff] %vm2572_vm5, %v2567_v54 }
0x1533   :  { %v8621_v37 = vpop.eup %8620 }
0x1534   :  { %v8623_v6 = vpop.eup %8622  ;;  %v3259_v10 = vmul.f32 %v8621_v37, %v8617_v29  ;;  %v3343_v36 = vld [vmem:[#allocation2] sm:$0xff] }
0x1535   :  { %v8625_v7 = vpop.eup %8624  ;;  %v3253_v12 = vmul.f32 %v8623_v6, %v8615_v22  ;;  %v3359_v45 = vpack.c.bf16 %v3344_v41, %v3343_v36  ;;  %v8414_v41 = vld [vmem:[%s11369_s11 + $0x4] ss:$8 sps:$4 sm:$0xff]  }
0x1536   :  { %v3257_v35 = vmul.f32 %v8625_v7, %v8613_v46  ;;  %v10014_v46 = vld [vmem:[%s11366_s8] ss:$0 sm:$0xff]  ;;  %3697 = vmatprep.subr.bf16.mxu0 %v8414_v41 }
0x1537   :  { %v8627_v51 = vpop.eup %8626 }
0x1538   :  { %v3255_v34 = vmul.f32 %v8627_v51, %v8619_v47  ;;  %v3261_v9 = vpack.c.bf16 %v3259_v10, %v3257_v35  ;;  %v3345_v26 = vld [vmem:[#allocation2 + $0x10] sm:$0xff]  ;;  %v3346_v27 = vld [vmem:[#allocation2 + $0x18] sm:$0xff] }
0x1539   :  { %v3360_v18 = vpack.c.bf16 %v3346_v27, %v3345_v26 }
0x153a   :  { %v3260_v57 = vpack.c.bf16 %v3255_v34, %v3253_v12 }
0x153c   :  { %7958 = vmatprep.mubr.msk.bf16.mxu1 %vm1876_vm2, %v3260_v57 }
0x153d   :  { %7959 = vmatmul.mubr.msk.bf16.vlgmr.msra.gmra.mrb[84].mxu1 %vm1876_vm2, %v3261_v9 }
0x153e   :  { %7963 = vmatpush3.bf16.msra.mxu1 %v8408_v31  ;;  %7970 = vmatprep.mubr.msk.bf16.mxu1 %vm1523_vm0, %v3359_v45  ;;  %v8417_v45 = vld [vmem:[%s11369_s11 + $0x14] ss:$8 sps:$4 sm:$0xff]  }
0x153f   :  { %7964 = vmatprep.subr.bf16.mxu1 %v8409_v13 }
0x1542   :  { %7965 = vmatpush3.bf16.msra.mxu1 %v8409_v13  ;;  %v8412_v13 = vld [vmem:[%s11369_s11] ss:$8 sps:$4 sm:$0xff]  }
0x1543   :  { %7966 = vmatprep.subr.bf16.mxu1 %v8410_v16  ;;  %3698 = vmatpush1.bf16.msra.mxu0 %v8412_v13 }
0x1544   :  { %3699 = vmatprep.subr.bf16.mxu0 %v8417_v45 }
0x1546   :  { %7967 = vmatpush3.bf16.msra.mxu1 %v8410_v16  ;;  %v8415_v16 = vld [vmem:[%s11369_s11 + $0x10] ss:$8 sps:$4 sm:$0xff]  }
0x1547   :  { %7968 = vmatprep.subr.bf16.mxu1 %v8411_v55  ;;  %3700 = vmatpush1.bf16.msra.mxu0 %v8415_v16 }
0x154a   :  { %7969 = vmatpush3.bf16.msra.mxu1 %v8411_v55 }
0x154d   :  { %7971 = vmatmul.mubr.msk.bf16.vlgmr.msra.gmra.mrb[88].mxu1 %vm1523_vm0, %v3360_v18 }
0x1610   :  { %v10003_v25 = vpop.f32.mrb[84].mxu1 }
0x1611   :  { %v10005_v2 = vpop.f32.mrb[85].mxu1 }
0x1612   :  { %v10007_v19 = vpop.f32.mrb[86].mxu1 }
0x1613   :  { %v10009_v20 = vpop.f32.mrb[87].mxu1 }
0x1620   :  { %v7972_v60 = vpop.f32.mrb[88].mxu1 }
0x1621   :  { %v3433_v11 = vpop.f32.mrb[89].mxu1  ;;  %v3466_v56 = vadd.f32 %v7972_v60, %v9512_v59 }
0x1622   :  { %v3464_v22 = vadd.f32 %v3433_v11, %v9502_v42  ;;  %v7973_v28 = vpop.f32.mrb[90].mxu1 }
0x1623   :  { %v3436_v29 = vpop.f32.mrb[91].mxu1  ;;  %v10023_v23 = vadd.f32 %v10014_v46, %v3466_v56  ;;  %v3467_v47 = vadd.f32 %v7973_v28, %v9515_v61  ;;  %v10118_v28 = vld [vmem:[%s11367_s9] ss:$0 sm:$0xff] }
0x1624   :  { %v10019_v39 = vadd.f32 %v10014_v46, %v3464_v22  ;;  %v3465_v40 = vadd.f32 %v3436_v29, %v9505_v43 }
0x1625   :  { %v10034_v5 = vadd.f32 %v10014_v46, %v3467_v47  ;;  %v3495_v43 = vsel %vm1523_vm0, %v10023_v23, 0.0 }
0x1626   :  { %v10027_v48 = vadd.f32 %v10014_v46, %v3465_v40  ;;  %v3489_v59 = vsel %vm1523_vm0, %v10019_v39, 0.0 }
0x1627   :  { %3490 = vadd.xlane.f32.xlu0 %v3489_v59  ;;  %v3498_v61 = vsel %vm1523_vm0, %v10034_v5, 0.0 }
0x1628   :  { %v3492_v42 = vsel %vm1523_vm0, %v10027_v48, 0.0 }
0x1629   :  { %3493 = vadd.xlane.f32.xlu1 %v3492_v42 }
0x162b   :  { %3496 = vadd.xlane.f32.xlu0 %v3495_v43 }
0x162f   :  { %3499 = vadd.xlane.f32.xlu0 %v3498_v61 }
0x16b4   :  { %v3491_v38 = vpop.xlane.xlu0 %3490 }
0x16b5   :  { %v3513_v31 = vmul.f32 0.015625, %v3491_v38  ;;  %v10128_v38 = vld [vmem:[%s11368_s10] ss:$0 sm:$0xff] }
0x16b6   :  { %v3494_v52 = vpop.xlane.xlu1 %3493 }
0x16b7   :  { %v10041_v58 = vsub.f32 %v10019_v39, %v3513_v31  ;;  %v3514_v63 = vmul.f32 0.015625, %v3494_v52 }
0x16b8   :  { %v3497_v1 = vpop.xlane.xlu0 %3496 }
0x16b9   :  { %v10044_v49 = vsub.f32 %v10027_v48, %v3514_v63  ;;  %v3515_v21 = vmul.f32 0.015625, %v3497_v1  ;;  %v3529_v54 = vmul.f32 %v10041_v58, %v10041_v58 }
0x16bb   :  { %v10049_v37 = vsub.f32 %v10023_v23, %v3515_v21  ;;  %v3537_v6 = vsel %vm1523_vm0, %v3529_v54, 0.0  ;;  %v3530_v7 = vmul.f32 %v10044_v49, %v10044_v49 }
0x16bc   :  { %3538 = vadd.xlane.f32.xlu0 %v3537_v6  ;;  %v3500_v51 = vpop.xlane.xlu0 %3499 }
0x16bd   :  { %v3516_v10 = vmul.f32 0.015625, %v3500_v51  ;;  %v3540_v12 = vsel %vm1523_vm0, %v3530_v7, 0.0  ;;  %v3531_v34 = vmul.f32 %v10049_v37, %v10049_v37 }
0x16be   :  { %3541 = vadd.xlane.f32.xlu1 %v3540_v12 }
0x16bf   :  { %v10058_v35 = vsub.f32 %v10034_v5, %v3516_v10  ;;  %v3543_v36 = vsel %vm1523_vm0, %v3531_v34, 0.0 }
0x16c0   :  { %3544 = vadd.xlane.f32.xlu0 %v3543_v36 }
0x16c1   :  { %v3532_v57 = vmul.f32 %v10058_v35, %v10058_v35 }
0x16c3   :  { %v3546_v9 = vsel %vm1523_vm0, %v3532_v57, 0.0 }
0x16c4   :  { %3547 = vadd.xlane.f32.xlu1 %v3546_v9 }
0x16d5   :  { %2937 = vrot.lane.b32.xlu1 %v9900_v3, %s11388_s30  ;;  %v8420_v3 = vld [vmem:[%s11369_s11 + $0x24] ss:$8 sps:$4 sm:$0xff]  }
0x16d6   :  { %2935 = vrot.lane.b32.xlu0 %v9896_v8, %s11388_s30  ;;  %v8418_v8 = vld [vmem:[%s11369_s11 + $0x20] ss:$8 sps:$4 sm:$0xff]   ;;  %3701 = vmatprep.subr.bf16.mxu0 %v8420_v3 }
0x16d7   :  { %3702 = vmatpush1.bf16.msra.mxu0 %v8418_v8 }
0x16d9   :  { %2939 = vrot.lane.b32.xlu1 %v9894_v50, %s11388_s30  ;;  %v8423_v50 = vld [vmem:[%s11369_s11 + $0x34] ss:$8 sps:$4 sm:$0xff]  }
0x16da   :  { %3131 = vrot.lane.b32.xlu0 %v9933_v4, %s11390_s28  ;;  %v8421_v4 = vld [vmem:[%s11369_s11 + $0x30] ss:$8 sps:$4 sm:$0xff]   ;;  %3703 = vmatprep.subr.bf16.mxu0 %v8423_v50  ;;  %v8424_v50 = vld [vmem:[%s11371_s13 + $0x40] sm:$0xff]  }
0x16db   :  { %3704 = vmatpush1.bf16.msra.mxu0 %v8421_v4  ;;  %v8425_v4 = vld [vmem:[%s11371_s13] sm:$0xff]   ;;  %7664 = vmatprep.subr.bf16.mxu1 %v8424_v50 }
0x16dc   :  { %7665 = vmatpush3.bf16.msra.mxu1 %v8425_v4 }
0x16dd   :  { %2941 = vrot.lane.b32.xlu1 %v9898_v17, %s11388_s30 }
0x16de   :  { %3135 = vrot.lane.b32.xlu0 %v9931_v33, %s11390_s28 }
0x16e1   :  { %3133 = vrot.lane.b32.xlu1 %v9937_v53, %s11390_s28 }
0x16e2   :  { %3327 = vrot.lane.b32.xlu0 %v10005_v2, %s8896_s26 }
0x16e5   :  { %3137 = vrot.lane.b32.xlu1 %v9935_v62, %s11390_s28 }
0x16e6   :  { %3331 = vrot.lane.b32.xlu0 %v10003_v25, %s8896_s26 }
0x16e9   :  { %3329 = vrot.lane.b32.xlu1 %v10009_v20, %s8896_s26 }
0x16ed   :  { %3333 = vrot.lane.b32.xlu1 %v10007_v19, %s8896_s26 }
0x1749   :  { %v3539_v17 = vpop.xlane.xlu0 %3538 }
0x174a   :  { %v3561_v33 = vmul.f32 0.015625, %v3539_v17  ;;  %v8426_v17 = vld [vmem:[%s11371_s13 + $0x48] sm:$0xff]  }
0x174b   :  { %v3542_v55 = vpop.xlane.xlu1 %3541  ;;  %7666 = vmatprep.subr.bf16.mxu1 %v8426_v17 }
0x174c   :  { %v3569_v26 = vadd.f32 1e-06, %v3561_v33  ;;  %v3562_v53 = vmul.f32 0.015625, %v3542_v55  ;;  %v8427_v33 = vld [vmem:[%s11371_s13 + $0x8] sm:$0xff]   ;;  %v8428_v55 = vld [vmem:[%s11371_s13 + $0x50] sm:$0xff]  }
0x174d   :  { %v3545_v27 = vpop.xlane.xlu0 %3544  ;;  %7667 = vmatpush3.bf16.msra.mxu1 %v8427_v33 }
0x174e   :  { %8628 = vrsqrt.f32 %v3569_v26  ;;  %v3570_v18 = vadd.f32 1e-06, %v3562_v53  ;;  %v3563_v2 = vmul.f32 0.015625, %v3545_v27  ;;  %v8429_v26 = vld [vmem:[%s11371_s13 + $0x10] sm:$0xff]   ;;  %7668 = vmatprep.subr.bf16.mxu1 %v8428_v55  ;;  %v8430_v53 = vld [vmem:[%s11371_s13 + $0x58] sm:$0xff]  }
0x174f   :  { %v8431_v27 = vld [vmem:[%s11371_s13 + $0x18] sm:$0xff]  }
0x1750   :  { %8630 = vrsqrt.f32 %v3570_v18  ;;  %v3571_v62 = vadd.f32 1e-06, %v3563_v2  ;;  %v8432_v18 = vld [vmem:[%s11371_s13 + $0x60] sm:$0xff]  }
0x1751   :  { %v2936_v60 = vpop.permute.xlu0 %2935  ;;  %v3548_v11 = vpop.xlane.xlu1 %3547  ;;  %7669 = vmatpush3.bf16.msra.mxu1 %v8429_v26  ;;  %v8433_v2 = vld [vmem:[%s11371_s13 + $0x20] sm:$0xff]  }
0x1752   :  { %8632 = vrsqrt.f32 %v3571_v62  ;;  %2947 = vst.msk [vmem:[#allocation2 + $0x20] sm:$0xff] %vm2178_vm3, %v2936_v60  ;;  %v3564_v25 = vmul.f32 0.015625, %v3548_v11  ;;  %7670 = vmatprep.subr.bf16.mxu1 %v8430_v53  ;;  %v8434_v62 = vld [vmem:[%s11371_s13 + $0x68] sm:$0xff]   ;;  %v8436_v11 = vld [vmem:[%s11371_s13 + $0x70] sm:$0xff]  }
0x1753   :  { %v8435_v60 = vld [vmem:[%s11371_s13 + $0x28] sm:$0xff]  }
0x1754   :  { %v3572_v20 = vadd.f32 1e-06, %v3564_v25  ;;  %v8437_v25 = vld [vmem:[%s11371_s13 + $0x30] sm:$0xff]  }
0x1755   :  { %v3132_v56 = vpop.permute.xlu0 %3131  ;;  %v2938_v19 = vpop.permute.xlu1 %2937  ;;  %7671 = vmatpush3.bf16.msra.mxu1 %v8431_v27 }
0x1756   :  { %8634 = vrsqrt.f32 %v3572_v20  ;;  %3143 = vst.msk [vmem:[#allocation2 + $0x20] sm:$0xff] %vm2375_vm4, %v3132_v56  ;;  %7672 = vmatprep.subr.bf16.mxu1 %v8432_v18  ;;  %v8438_v20 = vld [vmem:[%s11371_s13 + $0x78] sm:$0xff]  }
0x1757   :  { %2948 = vst.msk [vmem:[#allocation2 + $0x28] sm:$0xff] %vm2178_vm3, %v2938_v19  ;;  %v8439_v56 = vld [vmem:[%s11371_s13 + $0x38] sm:$0xff]   ;;  %v3633_v19 = vld [vmem:[%s11370_s12] sm:$0x3] }
0x1758   :  { %v8629_v22 = vpop.eup %8628 }
0x1759   :  { %v3585_v29 = vmul.f32 %v8629_v22, %v10041_v58  ;;  %v3136_v40 = vpop.permute.xlu0 %3135  ;;  %v2940_v47 = vpop.permute.xlu1 %2939  ;;  %7673 = vmatpush3.bf16.msra.mxu1 %v8433_v2  ;;  %v10204_v22 = vrot.slane %v3633_v19, %v9588_v24 }
0x175a   :  { %v8631_v59 = vpop.eup %8630  ;;  %2949 = vst.msk [vmem:[#allocation2 + $0x30] sm:$0xff] %vm2178_vm3, %v2940_v47  ;;  %7674 = vmatprep.subr.bf16.mxu1 %v8434_v62 }
0x175b   :  { %v3599_v42 = vmul.f32 %v10118_v28, %v3585_v29  ;;  %v3586_v43 = vmul.f32 %v8631_v59, %v10044_v49  ;;  %3145 = vst.msk [vmem:[#allocation2 + $0x30] sm:$0xff] %vm2375_vm4, %v3136_v40  ;;  %v10207_v29 = vrot.slane %v3633_v19, %v9593_v44 }
0x175c   :  { %v8633_v61 = vpop.eup %8632 }
0x175d   :  { %v3600_v31 = vmul.f32 %v10118_v28, %v3586_v43  ;;  %v3328_v52 = vpop.permute.xlu0 %3327  ;;  %v2942_v58 = vpop.permute.xlu1 %2941  ;;  %v3613_v63 = vadd.f32 %v10128_v38, %v3599_v42  ;;  %v3587_v49 = vmul.f32 %v8633_v61, %v10049_v37  ;;  %7675 = vmatpush3.bf16.msra.mxu1 %v8435_v60 }
0x175e   :  { %3339 = vst.msk [vmem:[#allocation2 + $0x20] sm:$0xff] %vm2572_vm5, %v3328_v52  ;;  %7676 = vmatprep.subr.bf16.mxu1 %v8436_v11 }
0x175f   :  { %2950 = vst.msk [vmem:[#allocation2 + $0x38] sm:$0xff] %vm2178_vm3, %v2942_v58  ;;  %v3614_v1 = vadd.f32 %v10128_v38, %v3600_v31  ;;  %v3601_v10 = vmul.f32 %v10118_v28, %v3587_v49 }
0x1760   :  { %v8635_v21 = vpop.eup %8634 }
0x1761   :  { %v3332_v54 = vpop.permute.xlu0 %3331  ;;  %v3134_v6 = vpop.permute.xlu1 %3133  ;;  %v3629_v7 = vpack.c.bf16 %v3614_v1, %v3613_v63  ;;  %v3588_v51 = vmul.f32 %v8635_v21, %v10058_v35  ;;  %v3615_v36 = vadd.f32 %v10128_v38, %v3601_v10  ;;  %7677 = vmatpush3.bf16.msra.mxu1 %v8437_v25 }
0x1762   :  { %3341 = vst.msk [vmem:[#allocation2 + $0x30] sm:$0xff] %vm2572_vm5, %v3332_v54  ;;  %7678 = vmatprep.subr.bf16.mxu1 %v8438_v20 }
0x1763   :  { %3144 = vst.msk [vmem:[#allocation2 + $0x28] sm:$0xff] %vm2375_vm4, %v3134_v6  ;;  %7176 = vmatmul.mubr.msk.bf16.vlgmr.msra.gmra.mrb[88].mxu0 %vm1523_vm0, %v3629_v7  ;;  %v3602_v12 = vmul.f32 %v10118_v28, %v3588_v51 }
0x1764   :  { %3739 = vmatprep.mubr.bf16.mxu0 %v8894_v0 }
0x1765   :  { %v3138_v34 = vpop.permute.xlu1 %3137  ;;  %v3616_v37 = vadd.f32 %v10128_v38, %v3602_v12  ;;  %v3347_v41 = vld [vmem:[#allocation2 + $0x20] sm:$0xff]  ;;  %7679 = vmatpush3.bf16.msra.mxu1 %v8439_v56 }
0x1766   :  { %3146 = vst.msk [vmem:[#allocation2 + $0x38] sm:$0xff] %vm2375_vm4, %v3138_v34 }
0x1767   :  { %v3630_v57 = vpack.c.bf16 %v3616_v37, %v3615_v36 }
0x1769   :  { %v3330_v35 = vpop.permute.xlu1 %3329  ;;  %v3349_v16 = vld [vmem:[#allocation2 + $0x30] sm:$0xff] }
0x176a   :  { %3340 = vst.msk [vmem:[#allocation2 + $0x28] sm:$0xff] %vm2572_vm5, %v3330_v35 }
0x176b   :  { %7177 = vmatmul.mubr.msk.bf16.gmra.mrb[92].mxu0 %vm1523_vm0, %v3630_v57 }
0x176c   :  { %3749 = vmatprep.mubr.bf16.mxu0 %v8894_v0 }
0x176d   :  { %v3334_v9 = vpop.permute.xlu1 %3333 }
0x176e   :  { %3342 = vst.msk [vmem:[#allocation2 + $0x38] sm:$0xff] %vm2572_vm5, %v3334_v9 }
0x1771   :  { %v3348_v13 = vld [vmem:[#allocation2 + $0x28] sm:$0xff] }
0x1772   :  { %v3361_v45 = vpack.c.bf16 %v3348_v13, %v3347_v41 }
0x1774   :  { %7974 = vmatprep.mubr.msk.bf16.mxu1 %vm1523_vm0, %v3361_v45 }
0x1775   :  { %v3350_v3 = vld [vmem:[#allocation2 + $0x38] sm:$0xff] }
0x1776   :  { %v3362_v8 = vpack.c.bf16 %v3350_v3, %v3349_v16 }
0x1778   :  { %7975 = vmatmul.mubr.msk.bf16.gmra.mrb[92].mxu1 %vm1523_vm0, %v3362_v8 }
0x1836   :  { %v3731_v40 = vpop.f32.mrb[88].mxu0 }
0x1837   :  { %v10210_v47 = vadd.f32 %v3731_v40, %v10204_v22  ;;  %v3733_v59 = vpop.f32.mrb[89].mxu0 }
0x1838   :  { %v10213_v42 = vadd.f32 %v3733_v59, %v10207_v29  ;;  %v3735_v43 = vpop.f32.mrb[90].mxu0 }
0x1839   :  { %v3786_v61 = vmul.f32 0.044715, %v10210_v47  ;;  %v10217_v31 = vadd.f32 %v3735_v43, %v10204_v22  ;;  %v3737_v52 = vpop.f32.mrb[91].mxu0 }
0x183a   :  { %v3787_v58 = vmul.f32 0.044715, %v10213_v42  ;;  %v10221_v63 = vadd.f32 %v3737_v52, %v10207_v29 }
0x183b   :  { %v3802_v1 = vmul.f32 %v3786_v61, %v10210_v47  ;;  %v3788_v49 = vmul.f32 0.044715, %v10217_v31 }
0x183c   :  { %v3803_v21 = vmul.f32 %v3787_v58, %v10213_v42  ;;  %v3789_v54 = vmul.f32 0.044715, %v10221_v63 }
0x183d   :  { %v3818_v6 = vmul.f32 %v3802_v1, %v10210_v47  ;;  %v3804_v7 = vmul.f32 %v3788_v49, %v10217_v31 }
0x183e   :  { %v3819_v51 = vmul.f32 %v3803_v21, %v10213_v42  ;;  %v3805_v10 = vmul.f32 %v3789_v54, %v10221_v63  ;;  %v3741_v12 = vpop.f32.mrb[92].mxu0 }
0x183f   :  { %v3834_v34 = vadd.f32 %v3818_v6, %v10210_v47  ;;  %v3820_v37 = vmul.f32 %v3804_v7, %v10217_v31  ;;  %v10234_v36 = vadd.f32 %v3741_v12, %v10204_v22  ;;  %v3743_v35 = vpop.f32.mrb[93].mxu0 }
0x1840   :  { %v3821_v57 = vmul.f32 %v3805_v10, %v10221_v63  ;;  %v10238_v9 = vadd.f32 %v3743_v35, %v10207_v29  ;;  %v3745_v41 = vpop.f32.mrb[94].mxu0  ;;  %v3835_v13 = vadd.f32 %v3819_v51, %v10213_v42 }
0x1841   :  { %v3850_v45 = vmul.f32 0.7978846, %v3834_v34  ;;  %v3836_v16 = vadd.f32 %v3820_v37, %v10217_v31  ;;  %v3790_v3 = vmul.f32 0.044715, %v10234_v36  ;;  %v10244_v8 = vadd.f32 %v3745_v41, %v10204_v22  ;;  %v3747_v50 = vpop.f32.mrb[95].mxu0 }
0x1842   :  { %v3791_v4 = vmul.f32 0.044715, %v10238_v9  ;;  %v10248_v17 = vadd.f32 %v3747_v50, %v10207_v29  ;;  %v3837_v33 = vadd.f32 %v3821_v57, %v10221_v63  ;;  %v3851_v55 = vmul.f32 0.7978846, %v3835_v13 }
0x1843   :  { %8636 = vtanh.f32 %v3850_v45  ;;  %v3852_v26 = vmul.f32 0.7978846, %v3836_v16  ;;  %v3806_v53 = vmul.f32 %v3790_v3, %v10234_v36  ;;  %v3792_v27 = vmul.f32 0.044715, %v10244_v8 }
0x1844   :  { %v3807_v18 = vmul.f32 %v3791_v4, %v10238_v9  ;;  %v3793_v2 = vmul.f32 0.044715, %v10248_v17  ;;  %v3853_v62 = vmul.f32 0.7978846, %v3837_v33  ;;  %8638 = vtanh.f32 %v3851_v55 }
0x1845   :  { %8640 = vtanh.f32 %v3852_v26  ;;  %v3822_v60 = vmul.f32 %v3806_v53, %v10234_v36  ;;  %v3808_v11 = vmul.f32 %v3792_v27, %v10244_v8  ;;  %v3770_v34 = vmul.f32 0.5, %v10210_v47 }
0x1846   :  { %v3823_v25 = vmul.f32 %v3807_v18, %v10238_v9  ;;  %v3809_v20 = vmul.f32 %v3793_v2, %v10248_v17  ;;  %8642 = vtanh.f32 %v3853_v62  ;;  %v3771_v13 = vmul.f32 0.5, %v10213_v42 }
0x1847   :  { %v3824_v56 = vmul.f32 %v3808_v11, %v10244_v8  ;;  %v3838_v19 = vadd.f32 %v3822_v60, %v10234_v36  ;;  %v3773_v47 = vmul.f32 0.5, %v10221_v63 }
0x1848   :  { %v3825_v40 = vmul.f32 %v3809_v20, %v10248_v17  ;;  %v3839_v59 = vadd.f32 %v3823_v25, %v10238_v9 }
0x1849   :  { %v3840_v43 = vadd.f32 %v3824_v56, %v10244_v8  ;;  %v3854_v61 = vmul.f32 0.7978846, %v3838_v19  ;;  %v3774_v19 = vmul.f32 0.5, %v10234_v36 }
0x184a   :  { %v3841_v52 = vadd.f32 %v3825_v40, %v10248_v17  ;;  %v3855_v58 = vmul.f32 0.7978846, %v3839_v59  ;;  %v3776_v40 = vmul.f32 0.5, %v10244_v8 }
0x184b   :  { %v7976_v1 = vpop.f32.mrb[92].mxu1  ;;  %v3856_v49 = vmul.f32 0.7978846, %v3840_v43  ;;  %8644 = vtanh.f32 %v3854_v61  ;;  %v3775_v43 = vmul.f32 0.5, %v10238_v9  ;;  %v3777_v61 = vmul.f32 0.5, %v10248_v17 }
0x184c   :  { %v3470_v21 = vadd.f32 %v7976_v1, %v9529_v30  ;;  %v3449_v54 = vpop.f32.mrb[93].mxu1  ;;  %v3857_v6 = vmul.f32 0.7978846, %v3841_v52  ;;  %8646 = vtanh.f32 %v3855_v58  ;;  %v10300_v9 = vld [vmem:[%s11372_s14] ss:$0 sm:$0xff] }
0x184d   :  { %v8637_v7 = vpop.eup %8636  ;;  %v3468_v51 = vadd.f32 %v3449_v54, %v9523_v14  ;;  %v7977_v10 = vpop.f32.mrb[94].mxu1  ;;  %8648 = vtanh.f32 %v3856_v49  ;;  %v3772_v14 = vmul.f32 0.5, %v10217_v31 }
0x184e   :  { %v8639_v12 = vpop.eup %8638  ;;  %v3452_v37 = vpop.f32.mrb[95].mxu1  ;;  %v3882_v35 = vadd.f32 1.0, %v8637_v7  ;;  %8650 = vtanh.f32 %v3857_v6  ;;  %v10275_v3 = vadd.f32 %v10014_v46, %v3470_v21  ;;  %v3471_v4 = vadd.f32 %v7977_v10, %v9531_v32 }
0x184f   :  { %v8641_v57 = vpop.eup %8640  ;;  %v10269_v41 = vadd.f32 %v10014_v46, %v3468_v51  ;;  %v3469_v30 = vadd.f32 %v3452_v37, %v9525_v15  ;;  %v3883_v45 = vadd.f32 1.0, %v8639_v12 }
0x1850   :  { %v8643_v16 = vpop.eup %8642  ;;  %v3884_v50 = vadd.f32 1.0, %v8641_v57  ;;  %v3898_v42 = vmul.f32 %v3882_v35, %v3770_v34  ;;  %v10287_v32 = vadd.f32 %v10014_v46, %v3471_v4  ;;  %v3507_v2 = vsel %vm1523_vm0, %v10275_v3, 0.0 }
0x1851   :  { %v10280_v33 = vadd.f32 %v10014_v46, %v3469_v30  ;;  %v3501_v15 = vsel %vm1523_vm0, %v10269_v41, 0.0  ;;  %v3885_v55 = vadd.f32 1.0, %v8643_v16  ;;  %v3899_v53 = vmul.f32 %v3883_v45, %v3771_v13 }
0x1852   :  { %3502 = vadd.xlane.f32.xlu0 %v3501_v15  ;;  %v3900_v26 = vmul.f32 %v3884_v50, %v3772_v14  ;;  %v3510_v46 = vsel %vm1523_vm0, %v10287_v32, 0.0 }
0x1853   :  { %v3504_v31 = vsel %vm1523_vm0, %v10280_v33, 0.0  ;;  %v3901_v27 = vmul.f32 %v3885_v55, %v3773_v47 }
0x1854   :  { %3505 = vadd.xlane.f32.xlu1 %v3504_v31  ;;  %v3946_v63 = vpack.c.bf16 %v3900_v26, %v3898_v42 }
0x1855   :  { %v8645_v18 = vpop.eup %8644  ;;  %v3947_v62 = vpack.c.bf16 %v3901_v27, %v3899_v53 }
0x1856   :  { %v8647_v60 = vpop.eup %8646  ;;  %3508 = vadd.xlane.f32.xlu0 %v3507_v2  ;;  %v3886_v11 = vadd.f32 1.0, %v8645_v18 }
0x1857   :  { %v8649_v25 = vpop.eup %8648  ;;  %4082 = vmatprep.mubr.bf16.mxu1 %v3947_v62  ;;  %v3887_v20 = vadd.f32 1.0, %v8647_v60 }
0x1858   :  { %v8651_v56 = vpop.eup %8650  ;;  %4083 = vmatmul.mubr.bf16.vlgmr.msra.gmra.mrb[96].mxu1 %v3946_v63  ;;  %v3888_v59 = vadd.f32 1.0, %v8649_v25  ;;  %v3902_v58 = vmul.f32 %v3886_v11, %v3774_v19 }
0x1859   :  { %v3889_v52 = vadd.f32 1.0, %v8651_v56  ;;  %v3903_v49 = vmul.f32 %v3887_v20, %v3775_v43 }
0x185a   :  { %3511 = vadd.xlane.f32.xlu0 %v3510_v46  ;;  %v3904_v1 = vmul.f32 %v3888_v59, %v3776_v40 }
0x185b   :  { %v3905_v21 = vmul.f32 %v3889_v52, %v3777_v61 }
0x185c   :  { %v3948_v54 = vpack.c.bf16 %v3904_v1, %v3902_v58 }
0x185d   :  { %v3949_v6 = vpack.c.bf16 %v3905_v21, %v3903_v49 }
0x185f   :  { %4090 = vmatprep.mubr.bf16.mxu1 %v3949_v6 }
0x1860   :  { %4091 = vmatmul.mubr.bf16.gmra.mrb[100].mxu1 %v3948_v54 }
0x18df   :  { %v3503_v36 = vpop.xlane.xlu0 %3502 }
0x18e0   :  { %v3517_v13 = vmul.f32 0.015625, %v3503_v36 }
0x18e1   :  { %v3506_v30 = vpop.xlane.xlu1 %3505 }
0x18e2   :  { %v3518_v50 = vmul.f32 0.015625, %v3506_v30 }
0x18e3   :  { %v3509_v37 = vpop.xlane.xlu0 %3508 }
0x18e4   :  { %v3519_v26 = vmul.f32 0.015625, %v3509_v37  ;;  %v10319_v27 = vsub.f32 %v10280_v33, %v3518_v50 }
0x18e6   :  { %v10326_v62 = vsub.f32 %v10275_v3, %v3519_v26 }
0x18e7   :  { %v3512_v55 = vpop.xlane.xlu0 %3511 }
0x18e8   :  { %v3520_v63 = vmul.f32 0.015625, %v3512_v55  ;;  %v3535_v19 = vmul.f32 %v10326_v62, %v10326_v62 }
0x18ea   :  { %v10336_v25 = vsub.f32 %v10287_v32, %v3520_v63  ;;  %v3555_v46 = vsel %vm1523_vm0, %v3535_v19, 0.0 }
0x18ec   :  { %v3536_v59 = vmul.f32 %v10336_v25, %v10336_v25 }
0x18ee   :  { %v3558_v43 = vsel %vm1523_vm0, %v3536_v59, 0.0 }
0x192b   :  { %v7680_v8 = vpop.f32.mrb[96].mxu1 }
0x192c   :  { %v7681_v7 = vpop.f32.mrb[97].mxu1 }
0x192d   :  { %v7682_v51 = vadd.f32 %v7681_v7, %v7680_v8  ;;  %v7683_v10 = vpop.f32.mrb[98].mxu1 }
0x192e   :  { %v7684_v17 = vpop.f32.mrb[99].mxu1 }
0x192f   :  { %v4115_v12 = vadd.f32 %v7682_v51, %v10019_v39  ;;  %v7685_v34 = vadd.f32 %v7684_v17, %v7683_v10 }
0x1931   :  { %v10304_v35 = vadd.f32 %v10300_v9, %v4115_v12  ;;  %v4116_v57 = vadd.f32 %v7685_v34, %v10027_v48  ;;  %v10315_v48 = vsub.f32 %v10269_v41, %v3517_v13 }
0x1933   :  { %v10308_v45 = vadd.f32 %v10300_v9, %v4116_v57  ;;  %v7686_v16 = vpop.f32.mrb[100].mxu1  ;;  %v4142_v14 = vsel %vm1523_vm0, %v10304_v35, 0.0 }
0x1934   :  { %v7687_v47 = vpop.f32.mrb[101].mxu1  ;;  %4143 = vadd.xlane.f32.xlu0 %v4142_v14 }
0x1935   :  { %v7688_v39 = vadd.f32 %v7687_v47, %v7686_v16  ;;  %v7689_v4 = vpop.f32.mrb[102].mxu1  ;;  %v4145_v15 = vsel %vm1523_vm0, %v10308_v45, 0.0 }
0x1936   :  { %v7690_v42 = vpop.f32.mrb[103].mxu1  ;;  %4146 = vadd.xlane.f32.xlu1 %v4145_v15 }
0x1937   :  { %v4117_v31 = vadd.f32 %v7688_v39, %v10023_v23  ;;  %v7691_v53 = vadd.f32 %v7690_v42, %v7689_v4  ;;  %v3533_v23 = vmul.f32 %v10315_v48, %v10315_v48 }
0x1939   :  { %v10322_v18 = vadd.f32 %v10300_v9, %v4117_v31  ;;  %v4118_v2 = vadd.f32 %v7691_v53, %v10034_v5  ;;  %v3534_v5 = vmul.f32 %v10319_v27, %v10319_v27  ;;  %v3549_v56 = vsel %vm1523_vm0, %v3533_v23, 0.0 }
0x193b   :  { %v10329_v60 = vadd.f32 %v10300_v9, %v4118_v2  ;;  %v4148_v11 = vsel %vm1523_vm0, %v10322_v18, 0.0  ;;  %v3552_v40 = vsel %vm1523_vm0, %v3534_v5, 0.0 }
0x193c   :  { %4149 = vadd.xlane.f32.xlu0 %v4148_v11 }
0x193d   :  { %v4151_v20 = vsel %vm1523_vm0, %v10329_v60, 0.0 }
0x193e   :  { %4152 = vadd.xlane.f32.xlu1 %v4151_v20 }
0x1940   :  { %3550 = vadd.xlane.f32.xlu0 %v3549_v56 }
0x1942   :  { %3553 = vadd.xlane.f32.xlu1 %v3552_v40 }
0x1944   :  { %3556 = vadd.xlane.f32.xlu0 %v3555_v46 }
0x1946   :  { %3559 = vadd.xlane.f32.xlu1 %v3558_v43 }
0x19c1   :  { %v4144_v61 = vpop.xlane.xlu0 %4143 }
0x19c2   :  { %v4166_v52 = vmul.f32 0.015625, %v4144_v61 }
0x19c3   :  { %v4147_v58 = vpop.xlane.xlu1 %4146 }
0x19c4   :  { %v10351_v1 = vsub.f32 %v10304_v35, %v4166_v52  ;;  %v4167_v49 = vmul.f32 0.015625, %v4147_v58  ;;  %v8440_v52 = vld [vmem:[%s11363_s5 + $0x40] ss:$8 sps:$4 sm:$0xff]  }
0x19c6   :  { %v10354_v21 = vsub.f32 %v10308_v45, %v4167_v49  ;;  %v4182_v54 = vmul.f32 %v10351_v1, %v10351_v1  ;;  %v8443_v49 = vld [vmem:[%s11363_s5 + $0x50] ss:$8 sps:$4 sm:$0xff]  }
0x19c8   :  { %v4190_v6 = vsel %vm1523_vm0, %v4182_v54, 0.0  ;;  %v4183_v36 = vmul.f32 %v10354_v21, %v10354_v21 }
0x19c9   :  { %4191 = vadd.xlane.f32.xlu0 %v4190_v6  ;;  %v4150_v8 = vpop.xlane.xlu0 %4149  ;;  %v8448_v6 = vld [vmem:[%s11363_s5 + $0x64] ss:$8 sps:$4 sm:$0xff]  }
0x19ca   :  { %v4168_v7 = vmul.f32 0.015625, %v4150_v8  ;;  %v4193_v51 = vsel %vm1523_vm0, %v4183_v36, 0.0  ;;  %v8451_v8 = vld [vmem:[%s11363_s5 + $0x74] ss:$8 sps:$4 sm:$0xff]  }
0x19cb   :  { %4194 = vadd.xlane.f32.xlu1 %v4193_v51  ;;  %v4153_v10 = vpop.xlane.xlu1 %4152 }
0x19cc   :  { %v10363_v17 = vsub.f32 %v10322_v18, %v4168_v7  ;;  %v4169_v12 = vmul.f32 0.015625, %v4153_v10 }
0x19cd   :  { %v3551_v34 = vpop.xlane.xlu0 %3550 }
0x19ce   :  { %v10366_v37 = vsub.f32 %v10329_v60, %v4169_v12  ;;  %v3565_v57 = vmul.f32 0.015625, %v3551_v34  ;;  %v4184_v30 = vmul.f32 %v10363_v17, %v10363_v17 }
0x19cf   :  { %v3554_v13 = vpop.xlane.xlu1 %3553 }
0x19d0   :  { %v3573_v16 = vadd.f32 1e-06, %v3565_v57  ;;  %v3566_v14 = vmul.f32 0.015625, %v3554_v13  ;;  %v4196_v47 = vsel %vm1523_vm0, %v4184_v30, 0.0  ;;  %v4185_v50 = vmul.f32 %v10366_v37, %v10366_v37 }
0x19d1   :  { %4197 = vadd.xlane.f32.xlu0 %v4196_v47  ;;  %v3557_v39 = vpop.xlane.xlu0 %3556 }
0x19d2   :  { %8652 = vrsqrt.f32 %v3573_v16  ;;  %v3574_v4 = vadd.f32 1e-06, %v3566_v14  ;;  %v3567_v15 = vmul.f32 0.015625, %v3557_v39  ;;  %v4199_v55 = vsel %vm1523_vm0, %v4185_v50, 0.0 }
0x19d3   :  { %4200 = vadd.xlane.f32.xlu1 %v4199_v55  ;;  %v3560_v42 = vpop.xlane.xlu1 %3559 }
0x19d4   :  { %8654 = vrsqrt.f32 %v3574_v4  ;;  %v3575_v26 = vadd.f32 1e-06, %v3567_v15  ;;  %v3568_v31 = vmul.f32 0.015625, %v3560_v42  ;;  %v10417_v4 = vld [vmem:[%s11400_s29 + $0x1] ss:$0 sm:$0xff] }
0x19d6   :  { %8656 = vrsqrt.f32 %v3575_v26  ;;  %v3576_v53 = vadd.f32 1e-06, %v3568_v31  ;;  %v10425_v31 = vld [vmem:[%s11401_s24 + $0x1] ss:$0 sm:$0xff] }
0x19d8   :  { %8658 = vrsqrt.f32 %v3576_v53 }
0x19dc   :  { %v8653_v63 = vpop.eup %8652 }
0x19dd   :  { %v3589_v2 = vmul.f32 %v8653_v63, %v10315_v48  ;;  %v8442_v48 = vld [vmem:[%s11363_s5 + $0x44] ss:$8 sps:$4 sm:$0xff]  }
0x19de   :  { %v8655_v11 = vpop.eup %8654  ;;  %4352 = vmatprep.subr.bf16.mxu0 %v8442_v48 }
0x19df   :  { %v3590_v23 = vmul.f32 %v8655_v11, %v10319_v27  ;;  %v3603_v20 = vmul.f32 %v10118_v28, %v3589_v2  ;;  %4353 = vmatpush1.bf16.msra.mxu0 %v8440_v52 }
0x19e0   :  { %v8657_v5 = vpop.eup %8656 }
0x19e1   :  { %v3604_v56 = vmul.f32 %v10118_v28, %v3590_v23  ;;  %v3617_v40 = vadd.f32 %v10128_v38, %v3603_v20  ;;  %v3591_v46 = vmul.f32 %v8657_v5, %v10326_v62  ;;  %v8445_v62 = vld [vmem:[%s11363_s5 + $0x54] ss:$8 sps:$4 sm:$0xff]  }
0x19e2   :  { %v8659_v19 = vpop.eup %8658  ;;  %4354 = vmatprep.subr.bf16.mxu0 %v8445_v62 }
0x19e3   :  { %v3618_v59 = vadd.f32 %v10128_v38, %v3604_v56  ;;  %v3592_v43 = vmul.f32 %v8659_v19, %v10336_v25  ;;  %v3605_v58 = vmul.f32 %v10118_v28, %v3591_v46  ;;  %4355 = vmatpush1.bf16.msra.mxu0 %v8443_v49 }
0x19e4   :  { %4356 = vmatprep.subr.bf16.mxu0 %v8448_v6 }
0x19e5   :  { %v3631_v61 = vpack.c.bf16 %v3618_v59, %v3617_v40  ;;  %v3606_v27 = vmul.f32 %v10118_v28, %v3592_v43  ;;  %v3619_v54 = vadd.f32 %v10128_v38, %v3605_v58  ;;  %v8446_v28 = vld [vmem:[%s11363_s5 + $0x60] ss:$8 sps:$4 sm:$0xff]  }
0x19e7   :  { %7178 = vmatmul.mubr.msk.bf16.gmra.mrb[96].mxu0 %vm1523_vm0, %v3631_v61  ;;  %v3620_v25 = vadd.f32 %v10128_v38, %v3606_v27  ;;  %v8449_v38 = vld [vmem:[%s11363_s5 + $0x70] ss:$8 sps:$4 sm:$0xff]  }
0x19e8   :  { %3759 = vmatprep.mubr.bf16.mxu0 %v8894_v0  ;;  %4357 = vmatpush1.bf16.msra.mxu0 %v8446_v28 }
0x19e9   :  { %v3632_v36 = vpack.c.bf16 %v3620_v25, %v3619_v54  ;;  %4358 = vmatprep.subr.bf16.mxu0 %v8451_v8 }
0x19ec   :  { %4359 = vmatpush1.bf16.msra.mxu0 %v8449_v38 }
0x19ef   :  { %7179 = vmatmul.mubr.msk.bf16.gmra.mrb[100].mxu0 %vm1523_vm0, %v3632_v36 }
0x19f0   :  { %4384 = vmatprep.mubr.bf16.mxu0 %v8894_v0 }
0x1a56   :  { %v4192_v7 = vpop.xlane.xlu0 %4191 }
0x1a57   :  { %v4214_v51 = vmul.f32 0.015625, %v4192_v7 }
0x1a58   :  { %v4195_v10 = vpop.xlane.xlu1 %4194 }
0x1a59   :  { %v4222_v12 = vadd.f32 1e-06, %v4214_v51  ;;  %v4215_v34 = vmul.f32 0.015625, %v4195_v10 }
0x1a5b   :  { %8660 = vrsqrt.f32 %v4222_v12  ;;  %v4223_v57 = vadd.f32 1e-06, %v4215_v34 }
0x1a5d   :  { %8662 = vrsqrt.f32 %v4223_v57 }
0x1a5e   :  { %v4198_v30 = vpop.xlane.xlu0 %4197 }
0x1a5f   :  { %v4216_v13 = vmul.f32 0.015625, %v4198_v30 }
0x1a60   :  { %v4201_v16 = vpop.xlane.xlu1 %4200 }
0x1a61   :  { %v4224_v14 = vadd.f32 1e-06, %v4216_v13  ;;  %v4217_v47 = vmul.f32 0.015625, %v4201_v16 }
0x1a63   :  { %8664 = vrsqrt.f32 %v4224_v14  ;;  %v4225_v50 = vadd.f32 1e-06, %v4217_v47 }
0x1a65   :  { %v8661_v39 = vpop.eup %8660  ;;  %8666 = vrsqrt.f32 %v4225_v50 }
0x1a66   :  { %v4238_v15 = vmul.f32 %v8661_v39, %v10351_v1 }
0x1a67   :  { %v8663_v55 = vpop.eup %8662 }
0x1a68   :  { %v4252_v42 = vmul.f32 %v10417_v4, %v4238_v15  ;;  %v4239_v26 = vmul.f32 %v8663_v55, %v10354_v21 }
0x1a6a   :  { %v4253_v53 = vmul.f32 %v10417_v4, %v4239_v26  ;;  %v4266_v63 = vadd.f32 %v10425_v31, %v4252_v42 }
0x1a6c   :  { %v4267_v2 = vadd.f32 %v10425_v31, %v4253_v53 }
0x1a6d   :  { %v8665_v11 = vpop.eup %8664 }
0x1a6e   :  { %v4283_v23 = vpack.c.bf16 %v4267_v2, %v4266_v63  ;;  %v4240_v1 = vmul.f32 %v8665_v11, %v10363_v17 }
0x1a6f   :  { %v8667_v20 = vpop.eup %8666 }
0x1a70   :  { %7218 = vmatmul.mubr.msk.bf16.vlgmr.msra.gmra.mrb[104].mxu0 %vm1523_vm0, %v4283_v23  ;;  %v4241_v21 = vmul.f32 %v8667_v20, %v10366_v37  ;;  %v4254_v5 = vmul.f32 %v10417_v4, %v4240_v1 }
0x1a71   :  { %4394 = vmatprep.mubr.bf16.mxu0 %v8894_v0 }
0x1a72   :  { %v4255_v56 = vmul.f32 %v10417_v4, %v4241_v21  ;;  %v4268_v19 = vadd.f32 %v10425_v31, %v4254_v5 }
0x1a74   :  { %v4269_v40 = vadd.f32 %v10425_v31, %v4255_v56 }
0x1a76   :  { %v4284_v59 = vpack.c.bf16 %v4269_v40, %v4268_v19 }
0x1a78   :  { %7219 = vmatmul.mubr.msk.bf16.gmra.mrb[108].mxu0 %vm1523_vm0, %v4284_v59 }
0x1a79   :  { %4404 = vmatprep.mubr.bf16.mxu0 %v8894_v0 }
0x1aba   :  { %v3751_v17 = vpop.f32.mrb[96].mxu0 }
0x1abb   :  { %v10441_v46 = vadd.f32 %v3751_v17, %v10204_v22  ;;  %v3753_v37 = vpop.f32.mrb[97].mxu0 }
0x1abc   :  { %v10444_v43 = vadd.f32 %v3753_v37, %v10207_v29  ;;  %v3755_v48 = vpop.f32.mrb[98].mxu0 }
0x1abd   :  { %v3794_v61 = vmul.f32 0.044715, %v10441_v46  ;;  %v10448_v27 = vadd.f32 %v3755_v48, %v10204_v22  ;;  %v3757_v52 = vpop.f32.mrb[99].mxu0 }
0x1abe   :  { %v3795_v58 = vmul.f32 0.044715, %v10444_v43  ;;  %v10452_v62 = vadd.f32 %v3757_v52, %v10207_v29 }
0x1abf   :  { %v3810_v25 = vmul.f32 %v3794_v61, %v10441_v46  ;;  %v3796_v49 = vmul.f32 0.044715, %v10448_v27 }
0x1ac0   :  { %v3811_v54 = vmul.f32 %v3795_v58, %v10444_v43  ;;  %v3797_v28 = vmul.f32 0.044715, %v10452_v62 }
0x1ac1   :  { %v3826_v6 = vmul.f32 %v3810_v25, %v10441_v46  ;;  %v3812_v36 = vmul.f32 %v3796_v49, %v10448_v27 }
0x1ac2   :  { %v3827_v8 = vmul.f32 %v3811_v54, %v10444_v43  ;;  %v3813_v38 = vmul.f32 %v3797_v28, %v10452_v62  ;;  %v3761_v7 = vpop.f32.mrb[100].mxu0 }
0x1ac3   :  { %v3828_v51 = vmul.f32 %v3812_v36, %v10448_v27  ;;  %v10464_v10 = vadd.f32 %v3761_v7, %v10204_v22  ;;  %v3763_v12 = vpop.f32.mrb[101].mxu0  ;;  %v3842_v34 = vadd.f32 %v3826_v6, %v10441_v46 }
0x1ac4   :  { %v3829_v57 = vmul.f32 %v3813_v38, %v10452_v62  ;;  %v10469_v30 = vadd.f32 %v3763_v12, %v10207_v29  ;;  %v3765_v13 = vpop.f32.mrb[102].mxu0  ;;  %v3843_v16 = vadd.f32 %v3827_v8, %v10444_v43  ;;  %v3778_v8 = vmul.f32 0.5, %v10441_v46 }
0x1ac5   :  { %v3798_v14 = vmul.f32 0.044715, %v10464_v10  ;;  %v3766_v47 = vadd.f32 %v3765_v13, %v10204_v22  ;;  %v3767_v50 = vpop.f32.mrb[103].mxu0  ;;  %v3844_v39 = vadd.f32 %v3828_v51, %v10448_v27  ;;  %v3858_v15 = vmul.f32 0.7978846, %v3842_v34 }
0x1ac6   :  { %v3799_v55 = vmul.f32 0.044715, %v10469_v30  ;;  %v3768_v42 = vadd.f32 %v3767_v50, %v10207_v29  ;;  %v3845_v26 = vadd.f32 %v3829_v57, %v10452_v62  ;;  %v3859_v53 = vmul.f32 0.7978846, %v3843_v16 }
0x1ac7   :  { %v3814_v63 = vmul.f32 %v3798_v14, %v10464_v10  ;;  %v3800_v2 = vmul.f32 0.044715, %v3766_v47  ;;  %v3860_v11 = vmul.f32 0.7978846, %v3844_v39  ;;  %8668 = vtanh.f32 %v3858_v15 }
0x1ac8   :  { %v3815_v23 = vmul.f32 %v3799_v55, %v10469_v30  ;;  %v3801_v1 = vmul.f32 0.044715, %v3768_v42  ;;  %v3861_v22 = vmul.f32 0.7978846, %v3845_v26  ;;  %8670 = vtanh.f32 %v3859_v53 }
0x1ac9   :  { %v3830_v20 = vmul.f32 %v3814_v63, %v10464_v10  ;;  %v3816_v21 = vmul.f32 %v3800_v2, %v3766_v47  ;;  %8672 = vtanh.f32 %v3860_v11  ;;  %v3780_v38 = vmul.f32 0.5, %v10448_v27 }
0x1aca   :  { %v3831_v5 = vmul.f32 %v3815_v23, %v10469_v30  ;;  %v3817_v29 = vmul.f32 %v3801_v1, %v3768_v42  ;;  %8674 = vtanh.f32 %v3861_v22  ;;  %v3779_v51 = vmul.f32 0.5, %v10444_v43 }
0x1acb   :  { %v3832_v56 = vmul.f32 %v3816_v21, %v3766_v47  ;;  %v3846_v19 = vadd.f32 %v3830_v20, %v10464_v10  ;;  %v3781_v12 = vmul.f32 0.5, %v10452_v62  ;;  %v3782_v27 = vmul.f32 0.5, %v10464_v10 }
0x1acc   :  { %v3833_v40 = vmul.f32 %v3817_v29, %v3768_v42  ;;  %v3847_v59 = vadd.f32 %v3831_v5, %v10469_v30  ;;  %v3784_v43 = vmul.f32 0.5, %v3766_v47  ;;  %v3783_v62 = vmul.f32 0.5, %v10469_v30 }
0x1acd   :  { %v3848_v17 = vadd.f32 %v3832_v56, %v3766_v47  ;;  %v3862_v37 = vmul.f32 0.7978846, %v3846_v19  ;;  %v3785_v11 = vmul.f32 0.5, %v3768_v42  ;;  %v7209_v56 = vld [vmem:[%s11364_s6 + $0x2] sm:$0x3]  ;;  %s11402_s6 = smov 96  }
0x1ace   :  { %v3849_v48 = vadd.f32 %v3833_v40, %v3768_v42  ;;  %v3863_v61 = vmul.f32 0.7978846, %v3847_v59  ;;  %v10494_v10 = vrot.slane %v7209_v56, %v9588_v24  ;;  %v10497_v30 = vrot.slane %v7209_v56, %v9593_v44 }
0x1acf   :  { %v3864_v52 = vmul.f32 0.7978846, %v3848_v17  ;;  %8676 = vtanh.f32 %v3862_v37 }
0x1ad0   :  { %v3865_v58 = vmul.f32 0.7978846, %v3849_v48  ;;  %8678 = vtanh.f32 %v3863_v61 }
0x1ad1   :  { %v8669_v25 = vpop.eup %8668  ;;  %8680 = vtanh.f32 %v3864_v52 }
0x1ad2   :  { %v8671_v49 = vpop.eup %8670  ;;  %v3890_v54 = vadd.f32 1.0, %v8669_v25  ;;  %8682 = vtanh.f32 %v3865_v58 }
0x1ad3   :  { %v8673_v28 = vpop.eup %8672  ;;  %v3891_v6 = vadd.f32 1.0, %v8671_v49 }
0x1ad4   :  { %v8675_v36 = vpop.eup %8674  ;;  %v3892_v7 = vadd.f32 1.0, %v8673_v28  ;;  %v3906_v57 = vmul.f32 %v3890_v54, %v3778_v8 }
0x1ad5   :  { %v3893_v34 = vadd.f32 1.0, %v8675_v36  ;;  %v3907_v16 = vmul.f32 %v3891_v6, %v3779_v51 }
0x1ad6   :  { %v3908_v13 = vmul.f32 %v3892_v7, %v3780_v38 }
0x1ad7   :  { %v3909_v14 = vmul.f32 %v3893_v34, %v3781_v12 }
0x1ad8   :  { %v3950_v50 = vpack.c.bf16 %v3908_v13, %v3906_v57 }
0x1ad9   :  { %v8677_v39 = vpop.eup %8676  ;;  %v3951_v15 = vpack.c.bf16 %v3909_v14, %v3907_v16 }
0x1ada   :  { %v8679_v55 = vpop.eup %8678  ;;  %v3894_v26 = vadd.f32 1.0, %v8677_v39 }
0x1adb   :  { %v8681_v53 = vpop.eup %8680  ;;  %4098 = vmatprep.mubr.bf16.mxu1 %v3951_v15  ;;  %v3895_v46 = vadd.f32 1.0, %v8679_v55 }
0x1adc   :  { %v8683_v63 = vpop.eup %8682  ;;  %4099 = vmatmul.mubr.bf16.gmra.mrb[104].mxu1 %v3950_v50  ;;  %v3896_v2 = vadd.f32 1.0, %v8681_v53  ;;  %v3910_v1 = vmul.f32 %v3894_v26, %v3782_v27 }
0x1add   :  { %v3897_v23 = vadd.f32 1.0, %v8683_v63  ;;  %v3911_v20 = vmul.f32 %v3895_v46, %v3783_v62 }
0x1ade   :  { %v3912_v22 = vmul.f32 %v3896_v2, %v3784_v43 }
0x1adf   :  { %v3913_v21 = vmul.f32 %v3897_v23, %v3785_v11 }
0x1ae0   :  { %v3952_v5 = vpack.c.bf16 %v3912_v22, %v3910_v1 }
0x1ae1   :  { %v3953_v29 = vpack.c.bf16 %v3913_v21, %v3911_v20 }
0x1ae3   :  { %4106 = vmatprep.mubr.bf16.mxu1 %v3953_v29 }
0x1ae4   :  { %4107 = vmatmul.mubr.bf16.gmra.mrb[108].mxu1 %v3952_v5 }
0x1b43   :  { %v4386_v47 = vpop.f32.mrb[104].mxu0 }
0x1b44   :  { %v4388_v42 = vpop.f32.mrb[105].mxu0  ;;  %v4387_v40 = vadd.f32 %v4386_v47, %v10494_v10 }
0x1b45   :  { %v4390_v19 = vpop.f32.mrb[106].mxu0  ;;  %v4389_v37 = vadd.f32 %v4388_v42, %v10497_v30 }
0x1b46   :  { %v4391_v59 = vadd.f32 %v4390_v19, %v10494_v10  ;;  %v4392_v17 = vpop.f32.mrb[107].mxu0 }
0x1b47   :  { %v4393_v48 = vadd.f32 %v4392_v17, %v10497_v30 }
0x1b48   :  { %v10503_v61 = vpack.c.bf16 %v4391_v59, %v4387_v40 }
0x1b49   :  { %v10505_v52 = vpack.c.bf16 %v4393_v48, %v4389_v37 }
0x1b4a   :  { %4429 = vrot.lane.b32.xlu0 %v10503_v61, %s8895_s3  ;;  %7982 = vmatprep.mubr.msk.bf16.mxu1 %vm1814_vm1, %v10503_v61 }
0x1b4b   :  { %v4396_v58 = vpop.f32.mrb[108].mxu0  ;;  %7986 = vmatprep.subr.bf16.mxu0 %v10505_v52 }
0x1b4c   :  { %v4398_v25 = vpop.f32.mrb[109].mxu0  ;;  %7987 = vmatpush3.bf16.msra.mxu0 %v10505_v52  ;;  %v4397_v54 = vadd.f32 %v4396_v58, %v10494_v10 }
0x1b4d   :  { %v4400_v49 = vpop.f32.mrb[110].mxu0  ;;  %v4399_v36 = vadd.f32 %v4398_v25, %v10497_v30 }
0x1b4e   :  { %v4401_v28 = vadd.f32 %v4400_v49, %v10494_v10  ;;  %4601 = vrot.lane.b32.xlu0 %v10503_v61, %s8897_s27  ;;  %v4402_v6 = vpop.f32.mrb[111].mxu0 }
0x1b4f   :  { %v4403_v8 = vadd.f32 %v4402_v6, %v10497_v30 }
0x1b50   :  { %v10519_v38 = vpack.c.bf16 %v4401_v28, %v4397_v54 }
0x1b51   :  { %v10521_v7 = vpack.c.bf16 %v4403_v8, %v4399_v36 }
0x1b52   :  { %4431 = vrot.lane.b32.xlu1 %v10519_v38, %s8895_s3 }
0x1b53   :  { %7988 = vmatprep.subr.bf16.mxu0 %v10521_v7 }
0x1b54   :  { %7989 = vmatpush3.bf16.msra.mxu0 %v10521_v7 }
0x1b56   :  { %4605 = vrot.lane.b32.xlu1 %v10503_v61, %s8896_s26 }
0x1b5a   :  { %4607 = vrot.lane.b32.xlu1 %v10519_v38, %s8896_s26 }
0x1b5e   :  { %4603 = vrot.lane.b32.xlu1 %v10519_v38, %s8897_s27 }
0x1baf   :  { %v7692_v51 = vpop.f32.mrb[104].mxu1 }
0x1bb0   :  { %v7693_v12 = vpop.f32.mrb[105].mxu1 }
0x1bb1   :  { %v7694_v34 = vadd.f32 %v7693_v12, %v7692_v51  ;;  %v7695_v57 = vpop.f32.mrb[106].mxu1 }
0x1bb2   :  { %v7696_v13 = vpop.f32.mrb[107].mxu1 }
0x1bb3   :  { %v4119_v16 = vadd.f32 %v7694_v34, %v10269_v41  ;;  %v7697_v14 = vadd.f32 %v7696_v13, %v7695_v57 }
0x1bb5   :  { %v10535_v50 = vadd.f32 %v10300_v9, %v4119_v16  ;;  %v4120_v39 = vadd.f32 %v7697_v14, %v10280_v33 }
0x1bb7   :  { %v10539_v15 = vadd.f32 %v10300_v9, %v4120_v39  ;;  %v7698_v55 = vpop.f32.mrb[108].mxu1  ;;  %v4154_v26 = vsel %vm1523_vm0, %v10535_v50, 0.0 }
0x1bb8   :  { %v7699_v53 = vpop.f32.mrb[109].mxu1  ;;  %4155 = vadd.xlane.f32.xlu0 %v4154_v26 }
0x1bb9   :  { %v7700_v46 = vadd.f32 %v7699_v53, %v7698_v55  ;;  %v7701_v63 = vpop.f32.mrb[110].mxu1  ;;  %v4157_v41 = vsel %vm1523_vm0, %v10539_v15, 0.0 }
0x1bba   :  { %v7702_v27 = vpop.f32.mrb[111].mxu1  ;;  %4158 = vadd.xlane.f32.xlu1 %v4157_v41 }
0x1bbb   :  { %v4121_v43 = vadd.f32 %v7700_v46, %v10275_v3  ;;  %v7703_v2 = vadd.f32 %v7702_v27, %v7701_v63 }
0x1bbc   :  { %v4430_v33 = vpop.permute.xlu0 %4429 }
0x1bbd   :  { %v10547_v62 = vadd.f32 %v10300_v9, %v4121_v43  ;;  %v4122_v11 = vadd.f32 %v7703_v2, %v10287_v32  ;;  %8200 = vmatprep.subr.msk.bf16.mxu1 %vm1814_vm1, %v4430_v33  ;;  %v4440_v23 = vsel %vm1814_vm1, %v4430_v33, 0 }
0x1bbe   :  { %7979 = vmatpush3.bf16.xpose.msra.mxu1 %v4440_v23 }
0x1bbf   :  { %v10553_v1 = vadd.f32 %v10300_v9, %v4122_v11  ;;  %v4160_v22 = vsel %vm1523_vm0, %v10547_v62, 0.0 }
0x1bc0   :  { %4161 = vadd.xlane.f32.xlu0 %v4160_v22  ;;  %v4602_v5 = vpop.permute.xlu0 %4601 }
0x1bc1   :  { %v4163_v3 = vsel %vm1523_vm0, %v10553_v1, 0.0 }
0x1bc4   :  { %4164 = vadd.xlane.f32.xlu0 %v4163_v3  ;;  %v4432_v20 = vpop.permute.xlu1 %4431 }
0x1bc5   :  { %8201 = vmatprep.subr.msk.bf16.mxu1 %vm1814_vm1, %v4432_v20  ;;  %v4443_v32 = vsel %vm1814_vm1, %v4432_v20, 0 }
0x1bc6   :  { %7981 = vmatpush3.bf16.xpose.msra.mxu1 %v4443_v32 }
0x1bc8   :  { %v4606_v21 = vpop.permute.xlu1 %4605 }
0x1bc9   :  { %8202 = vmatprep.subr.msk.bf16.mxu1 %vm1814_vm1, %v4606_v21  ;;  %v4616_v9 = vsel %vm1814_vm1, %v4606_v21, 0 }
0x1bcc   :  { %v4608_v29 = vpop.permute.xlu1 %4607 }
0x1bcd   :  { %7983 = vmatmul.mubr.msk.bf16.vlgmr.msra.gmra.mrb[112].mxu1 %vm1814_vm1, %v10519_v38  ;;  %v4619_v56 = vsel %vm1814_vm1, %v4608_v29, 0 }
0x1bce   :  { %7995 = vmatpush3.bf16.xpose.msra.mxu1 %v4616_v9  ;;  %7998 = vmatprep.mubr.msk.bf16.mxu1 %vm1814_vm1, %v4602_v5 }
0x1bcf   :  { %8203 = vmatprep.subr.msk.bf16.mxu1 %vm1814_vm1, %v4608_v29 }
0x1bd0   :  { %v4604_v47 = vpop.permute.xlu1 %4603 }
0x1bd6   :  { %7997 = vmatpush3.bf16.xpose.msra.mxu1 %v4619_v56 }
0x1bdd   :  { %7999 = vmatmul.mubr.msk.bf16.vlgmr.msra.gmra.mrb[116].mxu1 %vm1814_vm1, %v4604_v47 }
0x1c45   :  { %v4156_v58 = vpop.xlane.xlu0 %4155 }
0x1c46   :  { %v4170_v28 = vmul.f32 0.015625, %v4156_v58 }
0x1c47   :  { %v4159_v54 = vpop.xlane.xlu1 %4158 }
0x1c48   :  { %v4171_v6 = vmul.f32 0.015625, %v4159_v54  ;;  %v10574_v12 = vsub.f32 %v10535_v50, %v4170_v28 }
0x1c4a   :  { %v10582_v14 = vsub.f32 %v10539_v15, %v4171_v6  ;;  %v4186_v46 = vmul.f32 %v10574_v12, %v10574_v12 }
0x1c4c   :  { %v4187_v27 = vmul.f32 %v10582_v14, %v10582_v14  ;;  %v4202_v43 = vsel %vm1523_vm0, %v4186_v46, 0.0 }
0x1c4d   :  { %v4162_v49 = vpop.xlane.xlu0 %4161 }
0x1c4e   :  { %v4172_v34 = vmul.f32 0.015625, %v4162_v49  ;;  %v4205_v33 = vsel %vm1523_vm0, %v4187_v27, 0.0 }
0x1c50   :  { %v10587_v26 = vsub.f32 %v10547_v62, %v4172_v34 }
0x1c51   :  { %v4165_v8 = vpop.xlane.xlu0 %4164 }
0x1c52   :  { %v4173_v39 = vmul.f32 0.015625, %v4165_v8  ;;  %v4188_v2 = vmul.f32 %v10587_v26, %v10587_v26 }
0x1c54   :  { %v10593_v63 = vsub.f32 %v10553_v1, %v4173_v39  ;;  %v4208_v23 = vsel %vm1523_vm0, %v4188_v2, 0.0 }
0x1c56   :  { %v4189_v11 = vmul.f32 %v10593_v63, %v10593_v63 }
0x1c58   :  { %v4211_v22 = vsel %vm1523_vm0, %v4189_v11, 0.0 }
0x1ca0   :  { %v7984_v42 = vpop.f32.mrb[112].mxu1 }
0x1ca1   :  { %v4479_v19 = vpop.f32.mrb[113].mxu1  ;;  %v4500_v48 = vsel %vm1876_vm2, %v7984_v42, -inf }
0x1ca2   :  { %v7985_v40 = vpop.f32.mrb[114].mxu1  ;;  %v4494_v59 = vsel %vm1876_vm2, %v4479_v19, -inf }
0x1ca3   :  { %4495 = vmax.xlane.f32.xlu0 %v4494_v59  ;;  %v4482_v17 = vpop.f32.mrb[115].mxu1  ;;  %v4503_v25 = vsel %vm1876_vm2, %v7985_v40, -inf }
0x1ca4   :  { %v4497_v37 = vsel %vm1876_vm2, %v4482_v17, -inf }
0x1ca5   :  { %4498 = vmax.xlane.f32.xlu1 %v4497_v37 }
0x1ca7   :  { %4501 = vmax.xlane.f32.xlu0 %v4500_v48 }
0x1ca9   :  { %4504 = vmax.xlane.f32.xlu1 %v4503_v25 }
0x1cb0   :  { %v8000_v36 = vpop.f32.mrb[116].mxu1 }
0x1cb1   :  { %v4655_v51 = vpop.f32.mrb[117].mxu1  ;;  %v4676_v53 = vsel %vm1876_vm2, %v8000_v36, -inf }
0x1cb2   :  { %v10576_v57 = vpop.f32.mrb[118].mxu1  ;;  %v4670_v13 = vsel %vm1876_vm2, %v4655_v51, -inf }
0x1cb3   :  { %4671 = vmax.xlane.f32.xlu0 %v4670_v13  ;;  %v10579_v16 = vpop.f32.mrb[119].mxu1  ;;  %v4679_v41 = vsel %vm1876_vm2, %v10576_v57, -inf }
0x1cb4   :  { %v4673_v55 = vsel %vm1876_vm2, %v10579_v16, -inf }
0x1cb5   :  { %4674 = vmax.xlane.f32.xlu1 %v4673_v55 }
0x1cb7   :  { %4677 = vmax.xlane.f32.xlu0 %v4676_v53 }
0x1cb9   :  { %4680 = vmax.xlane.f32.xlu1 %v4679_v41 }
0x1cbb   :  { %4203 = vadd.xlane.f32.xlu0 %v4202_v43 }
0x1cbd   :  { %4206 = vadd.xlane.f32.xlu1 %v4205_v33 }
0x1cbf   :  { %4209 = vadd.xlane.f32.xlu0 %v4208_v23 }
0x1cc1   :  { %4212 = vadd.xlane.f32.xlu1 %v4211_v22 }
0x1d30   :  { %v4496_v3 = vpop.xlane.xlu0 %4495 }
0x1d31   :  { %v4506_v20 = vsub.f32 %v4479_v19, %v4496_v3 }
0x1d32   :  { %v4499_v32 = vpop.xlane.xlu1 %4498 }
0x1d33   :  { %v4507_v5 = vsub.f32 %v4482_v17, %v4499_v32  ;;  %v4510_v29 = vmul.f32 1.442695, %v4506_v20 }
0x1d34   :  { %v4502_v21 = vpop.xlane.xlu0 %4501 }
0x1d35   :  { %v4508_v9 = vsub.f32 %v7984_v42, %v4502_v21  ;;  %v4512_v37 = vmul.f32 1.442695, %v4507_v5 }
0x1d36   :  { %v4505_v56 = vpop.xlane.xlu1 %4504 }
0x1d37   :  { %v4514_v47 = vmul.f32 1.442695, %v4508_v9  ;;  %v4509_v59 = vsub.f32 %v7985_v40, %v4505_v56 }
0x1d39   :  { %8684 = vpow2.f32 %v4514_v47  ;;  %v4516_v48 = vmul.f32 1.442695, %v4509_v59 }
0x1d3a   :  { %8686 = vpow2.f32 %v4510_v29 }
0x1d3b   :  { %8688 = vpow2.f32 %v4516_v48 }
0x1d3c   :  { %8690 = vpow2.f32 %v4512_v37 }
0x1d40   :  { %v4672_v58 = vpop.xlane.xlu0 %4671 }
0x1d41   :  { %v4682_v19 = vsub.f32 %v4655_v51, %v4672_v58 }
0x1d42   :  { %v10607_v25 = vpop.xlane.xlu1 %4674 }
0x1d43   :  { %v10609_v49 = vpop.eup %8684  ;;  %v4686_v13 = vmul.f32 1.442695, %v4682_v19 }
0x1d44   :  { %v10611_v54 = vpop.eup %8686  ;;  %v4678_v17 = vpop.xlane.xlu0 %4677  ;;  %v4524_v42 = vsel %vm1876_vm2, %v10609_v49, 0.0 }
0x1d45   :  { %v10615_v28 = vpop.eup %8688  ;;  %v4684_v40 = vsub.f32 %v8000_v36, %v4678_v17  ;;  %4525 = vadd.xlane.f32.xlu0 %v4524_v42  ;;  %v4518_v55 = vsel %vm1876_vm2, %v10611_v54, 0.0 }
0x1d46   :  { %v4681_v6 = vpop.xlane.xlu1 %4680  ;;  %v4527_v8 = vsel %vm1876_vm2, %v10615_v28, 0.0  ;;  %v10619_v34 = vpop.eup %8690 }
0x1d47   :  { %v4690_v39 = vmul.f32 1.442695, %v4684_v40  ;;  %4528 = vadd.xlane.f32.xlu1 %v4527_v8  ;;  %v4521_v36 = vsel %vm1876_vm2, %v10619_v34, 0.0 }
0x1d48   :  { %v4204_v51 = vpop.xlane.xlu0 %4203 }
0x1d49   :  { %8692 = vpow2.f32 %v4690_v39  ;;  %v4218_v53 = vmul.f32 0.015625, %v4204_v51  ;;  %4519 = vadd.xlane.f32.xlu0 %v4518_v55  ;;  %v4685_v55 = vsub.f32 %v10576_v57, %v4681_v6 }
0x1d4a   :  { %v4207_v46 = vpop.xlane.xlu1 %4206  ;;  %8694 = vpow2.f32 %v4686_v13 }
0x1d4b   :  { %v4226_v41 = vadd.f32 1e-06, %v4218_v53  ;;  %v4219_v27 = vmul.f32 0.015625, %v4207_v46  ;;  %4522 = vadd.xlane.f32.xlu1 %v4521_v36 }
0x1d4c   :  { %v4210_v43 = vpop.xlane.xlu0 %4209 }
0x1d4d   :  { %8696 = vrsqrt.f32 %v4226_v41  ;;  %v4227_v2 = vadd.f32 1e-06, %v4219_v27  ;;  %v4220_v33 = vmul.f32 0.015625, %v4210_v43 }
0x1d4e   :  { %v4213_v11 = vpop.xlane.xlu1 %4212 }
0x1d4f   :  { %8698 = vrsqrt.f32 %v4227_v2  ;;  %v4228_v23 = vadd.f32 1e-06, %v4220_v33  ;;  %v4221_v22 = vmul.f32 0.015625, %v4213_v11 }
0x1d51   :  { %8700 = vrsqrt.f32 %v4228_v23  ;;  %v4229_v3 = vadd.f32 1e-06, %v4221_v22 }
0x1d53   :  { %v10625_v20 = vpop.eup %8692  ;;  %8702 = vrsqrt.f32 %v4229_v3 }
0x1d54   :  { %v4700_v32 = vsel %vm1876_vm2, %v10625_v20, 0.0  ;;  %v10629_v21 = vpop.eup %8694 }
0x1d55   :  { %4701 = vadd.xlane.f32.xlu0 %v4700_v32  ;;  %v4694_v9 = vsel %vm1876_vm2, %v10629_v21, 0.0 }
0x1d57   :  { %v8697_v5 = vpop.eup %8696 }
0x1d58   :  { %v4242_v29 = vmul.f32 %v8697_v5, %v10574_v12 }
0x1d59   :  { %v8699_v56 = vpop.eup %8698  ;;  %4695 = vadd.xlane.f32.xlu0 %v4694_v9 }
0x1d5a   :  { %v4243_v47 = vmul.f32 %v8699_v56, %v10582_v14  ;;  %v4256_v59 = vmul.f32 %v10417_v4, %v4242_v29 }
0x1d5b   :  { %v8701_v37 = vpop.eup %8700 }
0x1d5c   :  { %4720 = vrot.lane.b32.xlu1 %v10521_v7, %s8897_s27  ;;  %v4257_v48 = vmul.f32 %v10417_v4, %v4243_v47  ;;  %v4270_v19 = vadd.f32 %v10425_v31, %v4256_v59  ;;  %v4244_v42 = vmul.f32 %v8701_v37, %v10587_v26  ;;  %v4683_v26 = vsub.f32 %v10579_v16, %v10607_v25 }
0x1d5d   :  { %v8703_v58 = vpop.eup %8702 }
0x1d5e   :  { %v4271_v17 = vadd.f32 %v10425_v31, %v4257_v48  ;;  %v4245_v12 = vmul.f32 %v8703_v58, %v10593_v63  ;;  %v4258_v8 = vmul.f32 %v10417_v4, %v4244_v42  ;;  %v4692_v63 = vmul.f32 1.442695, %v4685_v55 }
0x1d5f   :  { %v4688_v53 = vmul.f32 1.442695, %v4683_v26 }
0x1d60   :  { %v4285_v40 = vpack.c.bf16 %v4271_v17, %v4270_v19  ;;  %v4259_v14 = vmul.f32 %v10417_v4, %v4245_v12  ;;  %v4272_v39 = vadd.f32 %v10425_v31, %v4258_v8  ;;  %8704 = vpow2.f32 %v4692_v63 }
0x1d61   :  { %8706 = vpow2.f32 %v4688_v53 }
0x1d62   :  { %7220 = vmatmul.mubr.msk.bf16.gmra.mrb[112].mxu0 %vm1523_vm0, %v4285_v40  ;;  %v4273_v13 = vadd.f32 %v10425_v31, %v4259_v14 }
0x1d63   :  { %4414 = vmatprep.mubr.bf16.mxu0 %v8894_v0 }
0x1d64   :  { %v4286_v51 = vpack.c.bf16 %v4273_v13, %v4272_v39 }
0x1d6a   :  { %7221 = vmatmul.mubr.msk.bf16.gmra.mrb[116].mxu0 %vm1523_vm0, %v4286_v51  ;;  %v8705_v4 = vpop.eup %8704 }
0x1d6b   :  { %v4703_v31 = vsel %vm1876_vm2, %v8705_v4, 0.0  ;;  %v8707_v46 = vpop.eup %8706 }
0x1d6c   :  { %v4697_v57 = vsel %vm1876_vm2, %v8707_v46, 0.0 }
0x1d6f   :  { %4718 = vrot.lane.b32.xlu0 %v10505_v52, %s8897_s27 }
0x1d73   :  { %4799 = vrot.lane.b32.xlu0 %v10503_v61, %s11402_s6 }
0x1d80   :  { %4704 = vadd.xlane.f32.xlu1 %v4703_v31 }
0x1d84   :  { %4698 = vadd.xlane.f32.xlu1 %v4697_v57 }
0x1d95   :  { %4803 = vrot.lane.b32.xlu1 %v10503_v61, %s11403_s25 }
0x1d99   :  { %4805 = vrot.lane.b32.xlu1 %v10519_v38, %s11403_s25 }
0x1d9d   :  { %4801 = vrot.lane.b32.xlu1 %v10519_v38, %s11402_s6 }
0x1dd2   :  { %v4526_v16 = vpop.xlane.xlu0 %4525 }
0x1dd4   :  { %v4529_v25 = vpop.xlane.xlu1 %4528 }
0x1dd5   :  { %8708 = vrcp.f32 %v4529_v25 }
0x1dd6   :  { %v4520_v6 = vpop.xlane.xlu0 %4519 }
0x1dd7   :  { %8710 = vrcp.f32 %v4520_v6 }
0x1dd8   :  { %8712 = vrcp.f32 %v4526_v16  ;;  %v4523_v36 = vpop.xlane.xlu1 %4522 }
0x1dd9   :  { %8714 = vrcp.f32 %v4523_v36 }
0x1ddc   :  { %v4721_v56 = vpop.permute.xlu1 %4720 }
0x1ddf   :  { %v8709_v41 = vpop.eup %8708 }
0x1de0   :  { %v4537_v11 = vmul.f32 %v8709_v41, %v10615_v28 }
0x1de1   :  { %v8711_v27 = vpop.eup %8710 }
0x1de2   :  { %v8713_v43 = vpop.eup %8712  ;;  %v4702_v2 = vpop.xlane.xlu0 %4701  ;;  %v4531_v23 = vmul.f32 %v8711_v27, %v10611_v54 }
0x1de3   :  { %v8715_v33 = vpop.eup %8714  ;;  %v4535_v3 = vmul.f32 %v8713_v43, %v10609_v49 }
0x1de4   :  { %v4533_v22 = vmul.f32 %v8715_v33, %v10619_v34 }
0x1de5   :  { %v4539_v9 = vpack.c.bf16 %v4537_v11, %v4535_v3 }
0x1de6   :  { %v4696_v32 = vpop.xlane.xlu0 %4695  ;;  %v4538_v5 = vpack.c.bf16 %v4533_v22, %v4531_v23 }
0x1de8   :  { %7990 = vmatprep.mubr.msk.bf16.mxu0 %vm1876_vm2, %v4538_v5 }
0x1de9   :  { %7991 = vmatmul.mubr.msk.bf16.vlgmr.msra.gmra.mrb[120].mxu0 %vm1876_vm2, %v4539_v9 }
0x1dea   :  { %v4719_v29 = vpop.permute.xlu0 %4718 }
0x1deb   :  { %8002 = vmatprep.subr.bf16.mxu0 %v4719_v29 }
0x1dec   :  { %8003 = vmatpush3.bf16.msra.mxu0 %v4719_v29 }
0x1ded   :  { %8004 = vmatprep.subr.bf16.mxu0 %v4721_v56 }
0x1dee   :  { %v4800_v40 = vpop.permute.xlu0 %4799 }
0x1df0   :  { %8005 = vmatpush3.bf16.msra.mxu0 %v4721_v56 }
0x1e0d   :  { %v4705_v28 = vpop.xlane.xlu1 %4704 }
0x1e0e   :  { %8716 = vrcp.f32 %v4705_v28 }
0x1e0f   :  { %8718 = vrcp.f32 %v4696_v32 }
0x1e10   :  { %8720 = vrcp.f32 %v4702_v2 }
0x1e11   :  { %v4699_v54 = vpop.xlane.xlu1 %4698 }
0x1e12   :  { %8722 = vrcp.f32 %v4699_v54 }
0x1e15   :  { %v4804_v49 = vpop.permute.xlu1 %4803 }
0x1e16   :  { %8204 = vmatprep.subr.msk.bf16.mxu0 %vm1814_vm1, %v4804_v49  ;;  %v4814_v14 = vsel %vm1814_vm1, %v4804_v49, 0 }
0x1e18   :  { %v8717_v34 = vpop.eup %8716 }
0x1e19   :  { %v8719_v47 = vpop.eup %8718  ;;  %v4713_v48 = vmul.f32 %v8717_v34, %v8705_v4  ;;  %v4806_v8 = vpop.permute.xlu1 %4805 }
0x1e1a   :  { %v8721_v59 = vpop.eup %8720  ;;  %v4707_v58 = vmul.f32 %v8719_v47, %v10629_v21  ;;  %v4817_v21 = vsel %vm1814_vm1, %v4806_v8, 0 }
0x1e1b   :  { %v4711_v17 = vmul.f32 %v8721_v59, %v10625_v20 }
0x1e1c   :  { %v8723_v37 = vpop.eup %8722 }
0x1e1d   :  { %v4709_v19 = vmul.f32 %v8723_v37, %v8707_v46  ;;  %v4715_v12 = vpack.c.bf16 %v4713_v48, %v4711_v17  ;;  %v4802_v13 = vpop.permute.xlu1 %4801 }
0x1e1f   :  { %v4714_v42 = vpack.c.bf16 %v4709_v19, %v4707_v58 }
0x1e21   :  { %8006 = vmatprep.mubr.msk.bf16.mxu0 %vm1876_vm2, %v4714_v42 }
0x1e22   :  { %8007 = vmatmul.mubr.msk.bf16.vlgmr.msra.gmra.mrb[124].mxu0 %vm1876_vm2, %v4715_v12 }
0x1e23   :  { %8011 = vmatpush3.bf16.xpose.msra.mxu0 %v4814_v14  ;;  %8014 = vmatprep.mubr.msk.bf16.mxu0 %vm1814_vm1, %v4800_v40 }
0x1e24   :  { %8205 = vmatprep.subr.msk.bf16.mxu0 %vm1814_vm1, %v4806_v8 }
0x1e2b   :  { %8013 = vmatpush3.bf16.xpose.msra.mxu0 %v4817_v21 }
0x1e32   :  { %8015 = vmatmul.mubr.msk.bf16.vlgmr.msra.gmra.mrb[128].mxu0 %vm1814_vm1, %v4802_v13 }
0x1e35   :  { %v4406_v20 = vpop.f32.mrb[112].mxu0 }
0x1e36   :  { %v4408_v39 = vpop.f32.mrb[113].mxu0  ;;  %v4407_v55 = vadd.f32 %v4406_v20, %v10494_v10 }
0x1e37   :  { %v4410_v51 = vpop.f32.mrb[114].mxu0  ;;  %v4409_v53 = vadd.f32 %v4408_v39, %v10497_v30 }
0x1e38   :  { %v4411_v26 = vadd.f32 %v4410_v51, %v10494_v10  ;;  %v4412_v63 = vpop.f32.mrb[115].mxu0 }
0x1e39   :  { %v4413_v4 = vadd.f32 %v4412_v63, %v10497_v30 }
0x1e3a   :  { %v10685_v31 = vpack.c.bf16 %v4411_v26, %v4407_v55 }
0x1e3b   :  { %v10687_v46 = vpack.c.bf16 %v4413_v4, %v4409_v53 }
0x1e3d   :  { %v4416_v57 = vpop.f32.mrb[116].mxu0 }
0x1e3e   :  { %v4418_v16 = vpop.f32.mrb[117].mxu0  ;;  %v4417_v6 = vadd.f32 %v4416_v57, %v10494_v10 }
0x1e3f   :  { %v4420_v25 = vpop.f32.mrb[118].mxu0  ;;  %v4419_v27 = vadd.f32 %v4418_v16, %v10497_v30 }
0x1e40   :  { %v4421_v36 = vadd.f32 %v4420_v25, %v10494_v10  ;;  %v4422_v41 = vpop.f32.mrb[119].mxu0 }
0x1e41   :  { %v4423_v43 = vadd.f32 %v4422_v41, %v10497_v30 }
0x1e42   :  { %v10693_v2 = vpack.c.bf16 %v4421_v36, %v4417_v6 }
0x1e43   :  { %v10695_v33 = vpack.c.bf16 %v4423_v43, %v4419_v27 }
0x1ebc   :  { %v7992_v11 = vpop.f32.mrb[120].mxu0 }
0x1ebd   :  { %4599 = vst.msk [vmem:[#allocation2 + $0x10] sm:$0xff] %vm1814_vm1, %v7992_v11  ;;  %v4582_v23 = vpop.f32.mrb[121].mxu0 }
0x1ebe   :  { %4597 = vst.msk [vmem:[#allocation2] sm:$0xff] %vm1814_vm1, %v4582_v23  ;;  %v7993_v22 = vpop.f32.mrb[122].mxu0 }
0x1ebf   :  { %4600 = vst.msk [vmem:[#allocation2 + $0x18] sm:$0xff] %vm1814_vm1, %v7993_v22  ;;  %v4585_v3 = vpop.f32.mrb[123].mxu0 }
0x1ec0   :  { %4598 = vst.msk [vmem:[#allocation2 + $0x8] sm:$0xff] %vm1814_vm1, %v4585_v3 }
0x1ef5   :  { %v10701_v10 = vpop.f32.mrb[124].mxu0 }
0x1ef6   :  { %v10703_v32 = vpop.f32.mrb[125].mxu0 }
0x1ef7   :  { %v10705_v30 = vpop.f32.mrb[126].mxu0 }
0x1ef8   :  { %v10707_v5 = vpop.f32.mrb[127].mxu0 }
0x1f05   :  { %v8016_v9 = vpop.f32.mrb[128].mxu0 }
0x1f06   :  { %v4853_v29 = vpop.f32.mrb[129].mxu0  ;;  %v4874_v34 = vsel %vm1876_vm2, %v8016_v9, -inf }
0x1f07   :  { %v8017_v56 = vpop.f32.mrb[130].mxu0  ;;  %v4868_v28 = vsel %vm1876_vm2, %v4853_v29, -inf }
0x1f08   :  { %4869 = vmax.xlane.f32.xlu0 %v4868_v28  ;;  %v4856_v54 = vpop.f32.mrb[131].mxu0  ;;  %v4877_v47 = vsel %vm1876_vm2, %v8017_v56, -inf }
0x1f09   :  { %v4871_v49 = vsel %vm1876_vm2, %v4856_v54, -inf }
0x1f0a   :  { %4872 = vmax.xlane.f32.xlu1 %v4871_v49 }
0x1f0c   :  { %4875 = vmax.xlane.f32.xlu0 %v4874_v34 }
0x1f10   :  { %4878 = vmax.xlane.f32.xlu0 %v4877_v47 }
0x1f1b   :  { %4916 = vrot.lane.b32.xlu1 %v10521_v7, %s11402_s6 }
0x1f95   :  { %v4870_v59 = vpop.xlane.xlu0 %4869 }
0x1f96   :  { %v4880_v37 = vsub.f32 %v4853_v29, %v4870_v59 }
0x1f97   :  { %v4873_v48 = vpop.xlane.xlu1 %4872 }
0x1f98   :  { %v4884_v17 = vmul.f32 1.442695, %v4880_v37  ;;  %v4881_v42 = vsub.f32 %v4856_v54, %v4873_v48 }
0x1f99   :  { %v4876_v58 = vpop.xlane.xlu0 %4875 }
0x1f9a   :  { %v4882_v19 = vsub.f32 %v8016_v9, %v4876_v58  ;;  %v4886_v8 = vmul.f32 1.442695, %v4881_v42 }
0x1f9b   :  { %v4917_v4 = vpop.permute.xlu1 %4916 }
0x1f9c   :  { %v4888_v12 = vmul.f32 1.442695, %v4882_v19 }
0x1f9d   :  { %v4879_v40 = vpop.xlane.xlu0 %4878 }
0x1f9e   :  { %8724 = vpow2.f32 %v4888_v12  ;;  %v4883_v14 = vsub.f32 %v8017_v56, %v4879_v40 }
0x1f9f   :  { %8726 = vpow2.f32 %v4884_v17 }
0x1fa0   :  { %v4890_v21 = vmul.f32 1.442695, %v4883_v14 }
0x1fa2   :  { %8728 = vpow2.f32 %v4890_v21 }
0x1fa3   :  { %8730 = vpow2.f32 %v4886_v8 }
0x1fa8   :  { %v8725_v13 = vpop.eup %8724 }
0x1fa9   :  { %v4898_v20 = vsel %vm1876_vm2, %v8725_v13, 0.0  ;;  %v8727_v39 = vpop.eup %8726 }
0x1faa   :  { %4899 = vadd.xlane.f32.xlu0 %v4898_v20  ;;  %v4892_v55 = vsel %vm1876_vm2, %v8727_v39, 0.0 }
0x1fac   :  { %v8729_v51 = vpop.eup %8728 }
0x1fad   :  { %v4901_v26 = vsel %vm1876_vm2, %v8729_v51, 0.0  ;;  %v8731_v63 = vpop.eup %8730 }
0x1fae   :  { %4893 = vadd.xlane.f32.xlu0 %v4892_v55  ;;  %4902 = vadd.xlane.f32.xlu1 %v4901_v26  ;;  %v4895_v53 = vsel %vm1876_vm2, %v8731_v63, 0.0 }
0x1fb2   :  { %4896 = vadd.xlane.f32.xlu1 %v4895_v53 }
0x1fc3   :  { %4999 = vrot.lane.b32.xlu1 %v10503_v61, %s11404_s21 }
0x1fc4   :  { %4914 = vrot.lane.b32.xlu0 %v10505_v52, %s11402_s6 }
0x1fc7   :  { %5001 = vrot.lane.b32.xlu1 %v10519_v38, %s11404_s21 }
0x1fc8   :  { %4995 = vrot.lane.b32.xlu0 %v10503_v61, %s11405_s23 }
0x1fcb   :  { %4997 = vrot.lane.b32.xlu1 %v10519_v38, %s11405_s23 }
0x2037   :  { %v4900_v57 = vpop.xlane.xlu0 %4899 }
0x203b   :  { %v4894_v16 = vpop.xlane.xlu0 %4893  ;;  %v4903_v25 = vpop.xlane.xlu1 %4902 }
0x203c   :  { %8732 = vrcp.f32 %v4903_v25 }
0x203d   :  { %8734 = vrcp.f32 %v4894_v16 }
0x203e   :  { %8736 = vrcp.f32 %v4900_v57 }
0x203f   :  { %v4915_v6 = vpop.permute.xlu0 %4914  ;;  %v4897_v36 = vpop.xlane.xlu1 %4896 }
0x2040   :  { %8738 = vrcp.f32 %v4897_v36  ;;  %8018 = vmatprep.subr.bf16.mxu1 %v4915_v6 }
0x2041   :  { %8019 = vmatpush3.bf16.msra.mxu1 %v4915_v6 }
0x2042   :  { %8020 = vmatprep.subr.bf16.mxu1 %v4917_v4 }
0x2043   :  { %v5000_v41 = vpop.permute.xlu1 %4999  ;;  %v4996_v56 = vpop.permute.xlu0 %4995 }
0x2044   :  { %v5010_v28 = vsel %vm1814_vm1, %v5000_v41, 0 }
0x2045   :  { %8021 = vmatpush3.bf16.msra.mxu1 %v4917_v4 }
0x2046   :  { %8206 = vmatprep.subr.msk.bf16.mxu1 %vm1814_vm1, %v5000_v41  ;;  %v8733_v61 = vpop.eup %8732 }
0x2047   :  { %v8735_v27 = vpop.eup %8734  ;;  %v4911_v11 = vmul.f32 %v8733_v61, %v8729_v51  ;;  %v5002_v54 = vpop.permute.xlu1 %5001 }
0x2048   :  { %v8737_v38 = vpop.eup %8736  ;;  %v4905_v23 = vmul.f32 %v8735_v27, %v8727_v39  ;;  %v5013_v49 = vsel %vm1814_vm1, %v5002_v54, 0 }
0x2049   :  { %v4909_v3 = vmul.f32 %v8737_v38, %v8725_v13 }
0x204a   :  { %v8739_v43 = vpop.eup %8738 }
0x204b   :  { %v4907_v22 = vmul.f32 %v8739_v43, %v8731_v63  ;;  %v4913_v29 = vpack.c.bf16 %v4911_v11, %v4909_v3  ;;  %v4998_v34 = vpop.permute.xlu1 %4997 }
0x204d   :  { %v4912_v9 = vpack.c.bf16 %v4907_v22, %v4905_v23 }
0x204f   :  { %8022 = vmatprep.mubr.msk.bf16.mxu1 %vm1876_vm2, %v4912_v9 }
0x2050   :  { %8023 = vmatmul.mubr.msk.bf16.vlgmr.msra.gmra.mrb[120].mxu1 %vm1876_vm2, %v4913_v29 }
0x2051   :  { %8027 = vmatpush3.bf16.xpose.msra.mxu1 %v5010_v28  ;;  %8030 = vmatprep.mubr.msk.bf16.mxu1 %vm1814_vm1, %v4996_v56 }
0x2052   :  { %8207 = vmatprep.subr.msk.bf16.mxu1 %vm1814_vm1, %v5002_v54 }
0x2059   :  { %8029 = vmatpush3.bf16.xpose.msra.mxu1 %v5013_v49 }
0x205a   :  { %8050 = vmatprep.subr.bf16.mxu1 %v10687_v46 }
0x2060   :  { %8031 = vmatmul.mubr.msk.bf16.vlgmr.msra.gmra.mrb[124].mxu1 %vm1814_vm1, %v4998_v34 }
0x2061   :  { %8051 = vmatpush3.bf16.msra.mxu1 %v10687_v46 }
0x2062   :  { %8052 = vmatprep.subr.bf16.mxu1 %v10695_v33 }
0x2065   :  { %8053 = vmatpush3.bf16.msra.mxu1 %v10695_v33 }
0x2123   :  { %v10741_v47 = vpop.f32.mrb[120].mxu1 }
0x2124   :  { %v10743_v59 = vpop.f32.mrb[121].mxu1 }
0x2125   :  { %v10745_v37 = vpop.f32.mrb[122].mxu1 }
0x2126   :  { %v10747_v48 = vpop.f32.mrb[123].mxu1 }
0x2133   :  { %v8032_v58 = vpop.f32.mrb[124].mxu1 }
0x2134   :  { %v5049_v19 = vpop.f32.mrb[125].mxu1  ;;  %v5070_v14 = vsel %vm1876_vm2, %v8032_v58, -inf }
0x2135   :  { %v8033_v17 = vpop.f32.mrb[126].mxu1  ;;  %v5064_v42 = vsel %vm1876_vm2, %v5049_v19, -inf }
0x2136   :  { %5065 = vmax.xlane.f32.xlu0 %v5064_v42  ;;  %v5052_v12 = vpop.f32.mrb[127].mxu1  ;;  %v5073_v8 = vsel %vm1876_vm2, %v8033_v17, -inf }
0x2137   :  { %v5067_v40 = vsel %vm1876_vm2, %v5052_v12, -inf }
0x2138   :  { %5068 = vmax.xlane.f32.xlu1 %v5067_v40 }
0x213a   :  { %5071 = vmax.xlane.f32.xlu0 %v5070_v14 }
0x213e   :  { %5074 = vmax.xlane.f32.xlu0 %v5073_v8 }
0x2149   :  { %5112 = vrot.lane.b32.xlu1 %v10521_v7, %s11405_s23 }
0x21c3   :  { %v5066_v21 = vpop.xlane.xlu0 %5065 }
0x21c4   :  { %v5076_v13 = vsub.f32 %v5049_v19, %v5066_v21 }
0x21c5   :  { %v5069_v20 = vpop.xlane.xlu1 %5068 }
0x21c6   :  { %v5080_v55 = vmul.f32 1.442695, %v5076_v13  ;;  %v5077_v26 = vsub.f32 %v5052_v12, %v5069_v20 }
0x21c7   :  { %v5072_v39 = vpop.xlane.xlu0 %5071 }
0x21c8   :  { %v5078_v51 = vsub.f32 %v8032_v58, %v5072_v39  ;;  %v5082_v57 = vmul.f32 1.442695, %v5077_v26 }
0x21c9   :  { %v5113_v43 = vpop.permute.xlu1 %5112 }
0x21ca   :  { %v5084_v63 = vmul.f32 1.442695, %v5078_v51 }
0x21cb   :  { %v5075_v53 = vpop.xlane.xlu0 %5074 }
0x21cc   :  { %8740 = vpow2.f32 %v5084_v63  ;;  %v5079_v4 = vsub.f32 %v8033_v17, %v5075_v53 }
0x21cd   :  { %8742 = vpow2.f32 %v5080_v55 }
0x21ce   :  { %v5086_v16 = vmul.f32 1.442695, %v5079_v4 }
0x21d0   :  { %8744 = vpow2.f32 %v5086_v16 }
0x21d1   :  { %8746 = vpow2.f32 %v5082_v57 }
0x21d6   :  { %v8741_v25 = vpop.eup %8740 }
0x21d7   :  { %v5094_v6 = vsel %vm1876_vm2, %v8741_v25, 0.0  ;;  %v8743_v7 = vpop.eup %8742 }
0x21d8   :  { %5095 = vadd.xlane.f32.xlu0 %v5094_v6  ;;  %v5088_v41 = vsel %vm1876_vm2, %v8743_v7, 0.0 }
0x21da   :  { %v8745_v36 = vpop.eup %8744 }
0x21db   :  { %v5097_v61 = vsel %vm1876_vm2, %v8745_v36, 0.0  ;;  %v8747_v27 = vpop.eup %8746 }
0x21dc   :  { %5089 = vadd.xlane.f32.xlu0 %v5088_v41  ;;  %5098 = vadd.xlane.f32.xlu1 %v5097_v61  ;;  %v5091_v38 = vsel %vm1876_vm2, %v8747_v27, 0.0 }
0x21e0   :  { %5092 = vadd.xlane.f32.xlu1 %v5091_v38 }
0x21f1   :  { %5195 = vrot.lane.b32.xlu1 %v10685_v31, %s8895_s3 }
0x21f2   :  { %5110 = vrot.lane.b32.xlu0 %v10505_v52, %s11405_s23 }
0x21f5   :  { %5197 = vrot.lane.b32.xlu1 %v10693_v2, %s8895_s3 }
0x2265   :  { %v5096_v11 = vpop.xlane.xlu0 %5095 }
0x2269   :  { %v5090_v23 = vpop.xlane.xlu0 %5089  ;;  %v5099_v22 = vpop.xlane.xlu1 %5098 }
0x226a   :  { %8748 = vrcp.f32 %v5099_v22 }
0x226b   :  { %8750 = vrcp.f32 %v5090_v23 }
0x226c   :  { %8752 = vrcp.f32 %v5096_v11 }
0x226d   :  { %v5111_v3 = vpop.permute.xlu0 %5110  ;;  %v5093_v9 = vpop.xlane.xlu1 %5092 }
0x226e   :  { %8754 = vrcp.f32 %v5093_v9  ;;  %8034 = vmatprep.subr.bf16.mxu0 %v5111_v3 }
0x226f   :  { %8035 = vmatpush3.bf16.msra.mxu0 %v5111_v3 }
0x2270   :  { %8036 = vmatprep.subr.bf16.mxu0 %v5113_v43 }
0x2271   :  { %v5196_v29 = vpop.permute.xlu1 %5195 }
0x2272   :  { %v5206_v12 = vsel %vm1814_vm1, %v5196_v29, 0 }
0x2273   :  { %8037 = vmatpush3.bf16.msra.mxu0 %v5113_v43 }
0x2274   :  { %8208 = vmatprep.subr.msk.bf16.mxu0 %vm1814_vm1, %v5196_v29  ;;  %v8749_v52 = vpop.eup %8748 }
0x2275   :  { %v8751_v56 = vpop.eup %8750  ;;  %v5107_v49 = vmul.f32 %v8749_v52, %v8745_v36  ;;  %v5198_v40 = vpop.permute.xlu1 %5197 }
0x2276   :  { %v8753_v28 = vpop.eup %8752  ;;  %v5101_v34 = vmul.f32 %v8751_v56, %v8743_v7  ;;  %v5209_v14 = vsel %vm1814_vm1, %v5198_v40, 0 }
0x2277   :  { %v5105_v19 = vmul.f32 %v8753_v28, %v8741_v25 }
0x2278   :  { %v8755_v54 = vpop.eup %8754 }
0x2279   :  { %v5103_v58 = vmul.f32 %v8755_v54, %v8747_v27  ;;  %v5109_v42 = vpack.c.bf16 %v5107_v49, %v5105_v19 }
0x227b   :  { %v5108_v17 = vpack.c.bf16 %v5103_v58, %v5101_v34 }
0x227d   :  { %8038 = vmatprep.mubr.msk.bf16.mxu0 %vm1876_vm2, %v5108_v17 }
0x227e   :  { %8039 = vmatmul.mubr.msk.bf16.vlgmr.msra.gmra.mrb[132].mxu0 %vm1876_vm2, %v5109_v42 }
0x227f   :  { %8043 = vmatpush3.bf16.xpose.msra.mxu0 %v5206_v12  ;;  %8046 = vmatprep.mubr.msk.bf16.mxu0 %vm1814_vm1, %v10685_v31 }
0x2280   :  { %8209 = vmatprep.subr.msk.bf16.mxu0 %vm1814_vm1, %v5198_v40 }
0x2287   :  { %8045 = vmatpush3.bf16.xpose.msra.mxu0 %v5209_v14 }
0x228e   :  { %8047 = vmatmul.mubr.msk.bf16.vlgmr.msra.gmra.mrb[136].mxu0 %vm1814_vm1, %v10693_v2 }
0x2351   :  { %v10775_v8 = vpop.f32.mrb[132].mxu0 }
0x2352   :  { %v10777_v21 = vpop.f32.mrb[133].mxu0 }
0x2353   :  { %v10779_v13 = vpop.f32.mrb[134].mxu0 }
0x2354   :  { %v10781_v20 = vpop.f32.mrb[135].mxu0 }
0x2361   :  { %v8048_v39 = vpop.f32.mrb[136].mxu0 }
0x2362   :  { %v5245_v51 = vpop.f32.mrb[137].mxu0  ;;  %v5266_v4 = vsel %vm1876_vm2, %v8048_v39, -inf }
0x2363   :  { %v8049_v55 = vpop.f32.mrb[138].mxu0  ;;  %v5260_v26 = vsel %vm1876_vm2, %v5245_v51, -inf }
0x2364   :  { %5261 = vmax.xlane.f32.xlu0 %v5260_v26  ;;  %v5248_v63 = vpop.f32.mrb[139].mxu0  ;;  %v5269_v57 = vsel %vm1876_vm2, %v8049_v55, -inf }
0x2365   :  { %v5263_v53 = vsel %vm1876_vm2, %v5248_v63, -inf }
0x2366   :  { %5264 = vmax.xlane.f32.xlu1 %v5263_v53 }
0x2368   :  { %5267 = vmax.xlane.f32.xlu0 %v5266_v4 }
0x236c   :  { %5270 = vmax.xlane.f32.xlu0 %v5269_v57 }
0x23f1   :  { %v5262_v16 = vpop.xlane.xlu0 %5261 }
0x23f2   :  { %v5272_v6 = vsub.f32 %v5245_v51, %v5262_v16 }
0x23f3   :  { %v5265_v25 = vpop.xlane.xlu1 %5264 }
0x23f4   :  { %v5273_v7 = vsub.f32 %v5248_v63, %v5265_v25  ;;  %v5276_v27 = vmul.f32 1.442695, %v5272_v6 }
0x23f5   :  { %v5268_v36 = vpop.xlane.xlu0 %5267 }
0x23f6   :  { %v5278_v41 = vmul.f32 1.442695, %v5273_v7  ;;  %v5274_v61 = vsub.f32 %v8048_v39, %v5268_v36 }
0x23f8   :  { %8756 = vpow2.f32 %v5278_v41  ;;  %v5280_v38 = vmul.f32 1.442695, %v5274_v61 }
0x23f9   :  { %v5271_v43 = vpop.xlane.xlu0 %5270 }
0x23fa   :  { %8758 = vpow2.f32 %v5280_v38  ;;  %v5275_v11 = vsub.f32 %v8049_v55, %v5271_v43 }
0x23fb   :  { %8760 = vpow2.f32 %v5276_v27 }
0x23fc   :  { %v5282_v23 = vmul.f32 1.442695, %v5275_v11 }
0x23fe   :  { %8762 = vpow2.f32 %v5282_v23 }
0x2402   :  { %v8757_v22 = vpop.eup %8756 }
0x2403   :  { %v5287_v3 = vsel %vm1876_vm2, %v8757_v22, 0.0 }
0x2404   :  { %v8759_v9 = vpop.eup %8758  ;;  %5288 = vadd.xlane.f32.xlu1 %v5287_v3 }
0x2405   :  { %v5290_v29 = vsel %vm1876_vm2, %v8759_v9, 0.0  ;;  %v8761_v52 = vpop.eup %8760 }
0x2406   :  { %5291 = vadd.xlane.f32.xlu0 %v5290_v29  ;;  %v5284_v28 = vsel %vm1876_vm2, %v8761_v52, 0.0 }
0x2408   :  { %v8763_v56 = vpop.eup %8762 }
0x2409   :  { %v5293_v54 = vsel %vm1876_vm2, %v8763_v56, 0.0 }
0x240a   :  { %5285 = vadd.xlane.f32.xlu0 %v5284_v28  ;;  %5294 = vadd.xlane.f32.xlu1 %v5293_v54 }
0x241b   :  { %5373 = vrot.lane.b32.xlu1 %v10693_v2, %s8896_s26 }
0x241f   :  { %5367 = vrot.lane.b32.xlu1 %v10685_v31, %s8897_s27 }
0x2420   :  { %5371 = vrot.lane.b32.xlu0 %v10685_v31, %s8896_s26 }
0x2423   :  { %5369 = vrot.lane.b32.xlu1 %v10693_v2, %s8897_s27 }
0x2491   :  { %v5289_v49 = vpop.xlane.xlu1 %5288 }
0x2492   :  { %8764 = vrcp.f32 %v5289_v49 }
0x2493   :  { %v5292_v34 = vpop.xlane.xlu0 %5291 }
0x2494   :  { %8766 = vrcp.f32 %v5292_v34 }
0x2497   :  { %v5286_v58 = vpop.xlane.xlu0 %5285  ;;  %v5295_v19 = vpop.xlane.xlu1 %5294 }
0x2498   :  { %8768 = vrcp.f32 %v5286_v58 }
0x2499   :  { %8770 = vrcp.f32 %v5295_v19 }
0x249b   :  { %v5372_v17 = vpop.permute.xlu0 %5371  ;;  %v5374_v14 = vpop.permute.xlu1 %5373 }
0x249c   :  { %8210 = vmatprep.subr.msk.bf16.mxu1 %vm1814_vm1, %v5372_v17  ;;  %v8765_v42 = vpop.eup %8764  ;;  %v5382_v57 = vsel %vm1814_vm1, %v5372_v17, 0  ;;  %v5385_v25 = vsel %vm1814_vm1, %v5374_v14, 0 }
0x249d   :  { %v5299_v55 = vmul.f32 %v8765_v42, %v8757_v22 }
0x249e   :  { %v8767_v12 = vpop.eup %8766 }
0x249f   :  { %v5301_v26 = vmul.f32 %v8767_v12, %v8759_v9  ;;  %v5368_v16 = vpop.permute.xlu1 %5367 }
0x24a2   :  { %v8769_v40 = vpop.eup %8768 }
0x24a3   :  { %v8771_v39 = vpop.eup %8770  ;;  %v5297_v51 = vmul.f32 %v8769_v40, %v8761_v52  ;;  %v5370_v6 = vpop.permute.xlu1 %5369 }
0x24a4   :  { %v5303_v63 = vmul.f32 %v8771_v39, %v8763_v56 }
0x24a5   :  { %v5304_v53 = vpack.c.bf16 %v5299_v55, %v5297_v51 }
0x24a6   :  { %v5305_v4 = vpack.c.bf16 %v5303_v63, %v5301_v26 }
0x24a7   :  { %8054 = vmatprep.mubr.msk.bf16.mxu1 %vm1876_vm2, %v5304_v53 }
0x24a8   :  { %8055 = vmatmul.mubr.msk.bf16.vlgmr.msra.gmra.mrb[128].mxu1 %vm1876_vm2, %v5305_v4 }
0x24a9   :  { %8059 = vmatpush3.bf16.xpose.msra.mxu1 %v5382_v57  ;;  %8062 = vmatprep.mubr.msk.bf16.mxu1 %vm1814_vm1, %v5368_v16 }
0x24aa   :  { %8211 = vmatprep.subr.msk.bf16.mxu1 %vm1814_vm1, %v5374_v14 }
0x24b1   :  { %8061 = vmatpush3.bf16.xpose.msra.mxu1 %v5385_v25 }
0x24b8   :  { %8063 = vmatmul.mubr.msk.bf16.vlgmr.msra.gmra.mrb[132].mxu1 %vm1814_vm1, %v5370_v6 }
0x257b   :  { %v8056_v7 = vpop.f32.mrb[128].mxu1 }
0x257c   :  { %5365 = vst.msk [vmem:[#allocation2 + $0x30] sm:$0xff] %vm1814_vm1, %v8056_v7  ;;  %v5348_v36 = vpop.f32.mrb[129].mxu1 }
0x257d   :  { %5363 = vst.msk [vmem:[#allocation2 + $0x20] sm:$0xff] %vm1814_vm1, %v5348_v36  ;;  %v8057_v41 = vpop.f32.mrb[130].mxu1 }
0x257e   :  { %5366 = vst.msk [vmem:[#allocation2 + $0x38] sm:$0xff] %vm1814_vm1, %v8057_v41  ;;  %v5351_v61 = vpop.f32.mrb[131].mxu1 }
0x257f   :  { %5364 = vst.msk [vmem:[#allocation2 + $0x28] sm:$0xff] %vm1814_vm1, %v5351_v61 }
0x258b   :  { %v8064_v27 = vpop.f32.mrb[132].mxu1 }
0x258c   :  { %v5421_v38 = vpop.f32.mrb[133].mxu1  ;;  %v5442_v3 = vsel %vm1876_vm2, %v8064_v27, -inf }
0x258d   :  { %v8065_v43 = vpop.f32.mrb[134].mxu1  ;;  %v5436_v11 = vsel %vm1876_vm2, %v5421_v38, -inf }
0x258e   :  { %5437 = vmax.xlane.f32.xlu0 %v5436_v11  ;;  %v5424_v23 = vpop.f32.mrb[135].mxu1  ;;  %v5445_v9 = vsel %vm1876_vm2, %v8065_v43, -inf }
0x258f   :  { %v5439_v22 = vsel %vm1876_vm2, %v5424_v23, -inf }
0x2590   :  { %5440 = vmax.xlane.f32.xlu1 %v5439_v22 }
0x2592   :  { %5443 = vmax.xlane.f32.xlu0 %v5442_v3 }
0x2596   :  { %5446 = vmax.xlane.f32.xlu0 %v5445_v9 }
0x25a1   :  { %5486 = vrot.lane.b32.xlu1 %v10695_v33, %s8897_s27 }
0x261b   :  { %v5438_v29 = vpop.xlane.xlu0 %5437 }
0x261c   :  { %v5448_v52 = vsub.f32 %v5421_v38, %v5438_v29 }
0x261d   :  { %v5441_v56 = vpop.xlane.xlu1 %5440 }
0x261e   :  { %v5452_v49 = vmul.f32 1.442695, %v5448_v52  ;;  %v5449_v34 = vsub.f32 %v5424_v23, %v5441_v56 }
0x261f   :  { %v5444_v28 = vpop.xlane.xlu0 %5443 }
0x2620   :  { %v5450_v54 = vsub.f32 %v8064_v27, %v5444_v28  ;;  %v5454_v42 = vmul.f32 1.442695, %v5449_v34 }
0x2621   :  { %v5487_v4 = vpop.permute.xlu1 %5486 }
0x2622   :  { %v5456_v58 = vmul.f32 1.442695, %v5450_v54 }
0x2623   :  { %v5447_v19 = vpop.xlane.xlu0 %5446 }
0x2624   :  { %8772 = vpow2.f32 %v5456_v58  ;;  %v5451_v17 = vsub.f32 %v8065_v43, %v5447_v19 }
0x2625   :  { %8774 = vpow2.f32 %v5452_v49 }
0x2626   :  { %v5458_v12 = vmul.f32 1.442695, %v5451_v17 }
0x2628   :  { %8776 = vpow2.f32 %v5458_v12 }
0x2629   :  { %8778 = vpow2.f32 %v5454_v42 }
0x262e   :  { %v8773_v40 = vpop.eup %8772 }
0x262f   :  { %v5466_v14 = vsel %vm1876_vm2, %v8773_v40, 0.0  ;;  %v8775_v39 = vpop.eup %8774 }
0x2630   :  { %5467 = vadd.xlane.f32.xlu0 %v5466_v14  ;;  %v5460_v55 = vsel %vm1876_vm2, %v8775_v39, 0.0 }
0x2632   :  { %v8777_v51 = vpop.eup %8776 }
0x2633   :  { %v5469_v26 = vsel %vm1876_vm2, %v8777_v51, 0.0  ;;  %v8779_v63 = vpop.eup %8778 }
0x2634   :  { %5461 = vadd.xlane.f32.xlu0 %v5460_v55  ;;  %5470 = vadd.xlane.f32.xlu1 %v5469_v26  ;;  %v5463_v53 = vsel %vm1876_vm2, %v8779_v63, 0.0 }
0x2638   :  { %5464 = vadd.xlane.f32.xlu1 %v5463_v53 }
0x2649   :  { %5569 = vrot.lane.b32.xlu1 %v10685_v31, %s11403_s25 }
0x264a   :  { %5484 = vrot.lane.b32.xlu0 %v10687_v46, %s8897_s27 }
0x264d   :  { %5571 = vrot.lane.b32.xlu1 %v10693_v2, %s11403_s25 }
0x264e   :  { %5565 = vrot.lane.b32.xlu0 %v10685_v31, %s11402_s6 }
0x2651   :  { %5567 = vrot.lane.b32.xlu1 %v10693_v2, %s11402_s6 }
0x26bd   :  { %v5468_v57 = vpop.xlane.xlu0 %5467 }
0x26c1   :  { %v5462_v16 = vpop.xlane.xlu0 %5461  ;;  %v5471_v25 = vpop.xlane.xlu1 %5470 }
0x26c2   :  { %8780 = vrcp.f32 %v5471_v25 }
0x26c3   :  { %8782 = vrcp.f32 %v5462_v16 }
0x26c4   :  { %8784 = vrcp.f32 %v5468_v57 }
0x26c5   :  { %v5485_v6 = vpop.permute.xlu0 %5484  ;;  %v5465_v7 = vpop.xlane.xlu1 %5464 }
0x26c6   :  { %8786 = vrcp.f32 %v5465_v7  ;;  %8066 = vmatprep.subr.bf16.mxu0 %v5485_v6 }
0x26c7   :  { %8067 = vmatpush3.bf16.msra.mxu0 %v5485_v6 }
0x26c8   :  { %8068 = vmatprep.subr.bf16.mxu0 %v5487_v4 }
0x26c9   :  { %v5570_v36 = vpop.permute.xlu1 %5569  ;;  %v5566_v29 = vpop.permute.xlu0 %5565 }
0x26ca   :  { %v5580_v52 = vsel %vm1814_vm1, %v5570_v36, 0 }
0x26cb   :  { %8069 = vmatpush3.bf16.msra.mxu0 %v5487_v4 }
0x26cc   :  { %8212 = vmatprep.subr.msk.bf16.mxu0 %vm1814_vm1, %v5570_v36  ;;  %v8781_v41 = vpop.eup %8780 }
0x26cd   :  { %v8783_v61 = vpop.eup %8782  ;;  %v5479_v43 = vmul.f32 %v8781_v41, %v8777_v51  ;;  %v5572_v56 = vpop.permute.xlu1 %5571 }
0x26ce   :  { %v8785_v27 = vpop.eup %8784  ;;  %v5473_v11 = vmul.f32 %v8783_v61, %v8775_v39  ;;  %v5583_v28 = vsel %vm1814_vm1, %v5572_v56, 0 }
0x26cf   :  { %v5477_v22 = vmul.f32 %v8785_v27, %v8773_v40 }
0x26d0   :  { %v8787_v38 = vpop.eup %8786 }
0x26d1   :  { %v5475_v23 = vmul.f32 %v8787_v38, %v8779_v63  ;;  %v5481_v9 = vpack.c.bf16 %v5479_v43, %v5477_v22  ;;  %v5568_v54 = vpop.permute.xlu1 %5567 }
0x26d3   :  { %v5480_v3 = vpack.c.bf16 %v5475_v23, %v5473_v11 }
0x26d5   :  { %8070 = vmatprep.mubr.msk.bf16.mxu0 %vm1876_vm2, %v5480_v3 }
0x26d6   :  { %8071 = vmatmul.mubr.msk.bf16.vlgmr.msra.gmra.mrb[140].mxu0 %vm1876_vm2, %v5481_v9 }
0x26d7   :  { %8075 = vmatpush3.bf16.xpose.msra.mxu0 %v5580_v52  ;;  %8078 = vmatprep.mubr.msk.bf16.mxu0 %vm1814_vm1, %v5566_v29 }
0x26d8   :  { %8213 = vmatprep.subr.msk.bf16.mxu0 %vm1814_vm1, %v5572_v56 }
0x26df   :  { %8077 = vmatpush3.bf16.xpose.msra.mxu0 %v5583_v28 }
0x26e6   :  { %8079 = vmatmul.mubr.msk.bf16.vlgmr.msra.gmra.mrb[144].mxu0 %vm1814_vm1, %v5568_v54 }
0x27a9   :  { %v10839_v49 = vpop.f32.mrb[140].mxu0 }
0x27aa   :  { %v10841_v34 = vpop.f32.mrb[141].mxu0 }
0x27ab   :  { %v10843_v58 = vpop.f32.mrb[142].mxu0 }
0x27ac   :  { %v10845_v19 = vpop.f32.mrb[143].mxu0 }
0x27b9   :  { %v8080_v17 = vpop.f32.mrb[144].mxu0 }
0x27ba   :  { %v5619_v42 = vpop.f32.mrb[145].mxu0  ;;  %v5640_v51 = vsel %vm1876_vm2, %v8080_v17, -inf }
0x27bb   :  { %v8081_v12 = vpop.f32.mrb[146].mxu0  ;;  %v5634_v40 = vsel %vm1876_vm2, %v5619_v42, -inf }
0x27bc   :  { %5635 = vmax.xlane.f32.xlu0 %v5634_v40  ;;  %v5622_v14 = vpop.f32.mrb[147].mxu0  ;;  %v5643_v55 = vsel %vm1876_vm2, %v8081_v12, -inf }
0x27bd   :  { %v5637_v39 = vsel %vm1876_vm2, %v5622_v14, -inf }
0x27be   :  { %5638 = vmax.xlane.f32.xlu1 %v5637_v39 }
0x27c0   :  { %5641 = vmax.xlane.f32.xlu0 %v5640_v51 }
0x27c4   :  { %5644 = vmax.xlane.f32.xlu0 %v5643_v55 }
0x27cf   :  { %5682 = vrot.lane.b32.xlu1 %v10695_v33, %s11402_s6 }
0x2849   :  { %v5636_v26 = vpop.xlane.xlu0 %5635 }
0x284a   :  { %v5646_v63 = vsub.f32 %v5619_v42, %v5636_v26 }
0x284b   :  { %v5639_v53 = vpop.xlane.xlu1 %5638 }
0x284c   :  { %v5650_v16 = vmul.f32 1.442695, %v5646_v63  ;;  %v5647_v25 = vsub.f32 %v5622_v14, %v5639_v53 }
0x284d   :  { %v5642_v4 = vpop.xlane.xlu0 %5641 }
0x284e   :  { %v5648_v57 = vsub.f32 %v8080_v17, %v5642_v4  ;;  %v5652_v41 = vmul.f32 1.442695, %v5647_v25 }
0x284f   :  { %v5683_v29 = vpop.permute.xlu1 %5682 }
0x2850   :  { %v5654_v6 = vmul.f32 1.442695, %v5648_v57 }
0x2851   :  { %v5645_v7 = vpop.xlane.xlu0 %5644 }
0x2852   :  { %8788 = vpow2.f32 %v5654_v6  ;;  %v5649_v36 = vsub.f32 %v8081_v12, %v5645_v7 }
0x2853   :  { %8790 = vpow2.f32 %v5650_v16 }
0x2854   :  { %v5656_v61 = vmul.f32 1.442695, %v5649_v36 }
0x2856   :  { %8792 = vpow2.f32 %v5656_v61 }
0x2857   :  { %8794 = vpow2.f32 %v5652_v41 }
0x285c   :  { %v8789_v27 = vpop.eup %8788 }
0x285d   :  { %v5664_v38 = vsel %vm1876_vm2, %v8789_v27, 0.0  ;;  %v8791_v43 = vpop.eup %8790 }
0x285e   :  { %5665 = vadd.xlane.f32.xlu0 %v5664_v38  ;;  %v5658_v23 = vsel %vm1876_vm2, %v8791_v43, 0.0 }
0x2860   :  { %v8793_v11 = vpop.eup %8792 }
0x2861   :  { %v5667_v22 = vsel %vm1876_vm2, %v8793_v11, 0.0  ;;  %v8795_v3 = vpop.eup %8794 }
0x2862   :  { %5659 = vadd.xlane.f32.xlu0 %v5658_v23  ;;  %5668 = vadd.xlane.f32.xlu1 %v5667_v22  ;;  %v5661_v9 = vsel %vm1876_vm2, %v8795_v3, 0.0 }
0x2866   :  { %5662 = vadd.xlane.f32.xlu1 %v5661_v9 }
0x2877   :  { %5765 = vrot.lane.b32.xlu1 %v10685_v31, %s11404_s21 }
0x2878   :  { %5680 = vrot.lane.b32.xlu0 %v10687_v46, %s11402_s6 }
0x287b   :  { %5767 = vrot.lane.b32.xlu1 %v10693_v2, %s11404_s21 }
0x287c   :  { %5761 = vrot.lane.b32.xlu0 %v10685_v31, %s11405_s23 }
0x287f   :  { %5763 = vrot.lane.b32.xlu1 %v10693_v2, %s11405_s23 }
0x28eb   :  { %v5666_v52 = vpop.xlane.xlu0 %5665 }
0x28ef   :  { %v5660_v56 = vpop.xlane.xlu0 %5659  ;;  %v5669_v28 = vpop.xlane.xlu1 %5668 }
0x28f0   :  { %8796 = vrcp.f32 %v5669_v28 }
0x28f1   :  { %8798 = vrcp.f32 %v5660_v56 }
0x28f2   :  { %8800 = vrcp.f32 %v5666_v52 }
0x28f3   :  { %v5681_v54 = vpop.permute.xlu0 %5680  ;;  %v5663_v17 = vpop.xlane.xlu1 %5662 }
0x28f4   :  { %8802 = vrcp.f32 %v5663_v17  ;;  %8082 = vmatprep.subr.bf16.mxu1 %v5681_v54 }
0x28f5   :  { %8083 = vmatpush3.bf16.msra.mxu1 %v5681_v54 }
0x28f6   :  { %8084 = vmatprep.subr.bf16.mxu1 %v5683_v29 }
0x28f7   :  { %v5766_v42 = vpop.permute.xlu1 %5765  ;;  %v5762_v53 = vpop.permute.xlu0 %5761 }
0x28f8   :  { %v5776_v4 = vsel %vm1814_vm1, %v5766_v42, 0 }
0x28f9   :  { %8085 = vmatpush3.bf16.msra.mxu1 %v5683_v29 }
0x28fa   :  { %8214 = vmatprep.subr.msk.bf16.mxu1 %vm1814_vm1, %v5766_v42  ;;  %v8797_v31 = vpop.eup %8796 }
0x28fb   :  { %v8799_v12 = vpop.eup %8798  ;;  %v5677_v14 = vmul.f32 %v8797_v31, %v8793_v11  ;;  %v5768_v57 = vpop.permute.xlu1 %5767 }
0x28fc   :  { %v8801_v2 = vpop.eup %8800  ;;  %v5671_v39 = vmul.f32 %v8799_v12, %v8791_v43  ;;  %v5779_v16 = vsel %vm1814_vm1, %v5768_v57, 0 }
0x28fd   :  { %v5675_v55 = vmul.f32 %v8801_v2, %v8789_v27 }
0x28fe   :  { %v8803_v40 = vpop.eup %8802 }
0x28ff   :  { %v5673_v51 = vmul.f32 %v8803_v40, %v8795_v3  ;;  %v5679_v63 = vpack.c.bf16 %v5677_v14, %v5675_v55  ;;  %v5764_v25 = vpop.permute.xlu1 %5763 }
0x2901   :  { %v5678_v26 = vpack.c.bf16 %v5673_v51, %v5671_v39 }
0x2903   :  { %8086 = vmatprep.mubr.msk.bf16.mxu1 %vm1876_vm2, %v5678_v26 }
0x2904   :  { %8087 = vmatmul.mubr.msk.bf16.vlgmr.msra.gmra.mrb[136].mxu1 %vm1876_vm2, %v5679_v63 }
0x2905   :  { %8091 = vmatpush3.bf16.xpose.msra.mxu1 %v5776_v4  ;;  %8094 = vmatprep.mubr.msk.bf16.mxu1 %vm1814_vm1, %v5762_v53 }
0x2906   :  { %8215 = vmatprep.subr.msk.bf16.mxu1 %vm1814_vm1, %v5768_v57 }
0x290d   :  { %8093 = vmatpush3.bf16.xpose.msra.mxu1 %v5779_v16 }
0x2914   :  { %8095 = vmatmul.mubr.msk.bf16.vlgmr.msra.gmra.mrb[140].mxu1 %vm1814_vm1, %v5764_v25 }
0x2915   :  { %6349 = vmatprep.mubr.bf16.mxu1 %v8894_v0 }
0x29d7   :  { %v8088_v6 = vpop.f32.mrb[136].mxu1 }
0x29d8   :  { %v5726_v7 = vpop.f32.mrb[137].mxu1 }
0x29d9   :  { %v8089_v36 = vpop.f32.mrb[138].mxu1 }
0x29da   :  { %v5729_v41 = vpop.f32.mrb[139].mxu1 }
0x29e7   :  { %v8096_v61 = vpop.f32.mrb[140].mxu1 }
0x29e8   :  { %v5815_v27 = vpop.f32.mrb[141].mxu1  ;;  %v5836_v22 = vsel %vm1876_vm2, %v8096_v61, -inf }
0x29e9   :  { %v8097_v38 = vpop.f32.mrb[142].mxu1  ;;  %v5830_v43 = vsel %vm1876_vm2, %v5815_v27, -inf }
0x29ea   :  { %5831 = vmax.xlane.f32.xlu0 %v5830_v43  ;;  %v5818_v11 = vpop.f32.mrb[143].mxu1  ;;  %v5839_v3 = vsel %vm1876_vm2, %v8097_v38, -inf  ;;  %v8455_v43 = vld [vmem:[%s11365_s7 + $0x38] sm:$0xff]  }
0x29eb   :  { %v5833_v23 = vsel %vm1876_vm2, %v5818_v11, -inf }
0x29ec   :  { %5834 = vmax.xlane.f32.xlu1 %v5833_v23 }
0x29ee   :  { %5837 = vmax.xlane.f32.xlu0 %v5836_v22 }
0x29f2   :  { %5840 = vmax.xlane.f32.xlu0 %v5839_v3 }
0x2a77   :  { %v5832_v9 = vpop.xlane.xlu0 %5831 }
0x2a78   :  { %v5842_v29 = vsub.f32 %v5815_v27, %v5832_v9 }
0x2a79   :  { %v5835_v52 = vpop.xlane.xlu1 %5834 }
0x2a7a   :  { %v5846_v54 = vmul.f32 1.442695, %v5842_v29  ;;  %v5843_v17 = vsub.f32 %v5818_v11, %v5835_v52 }
0x2a7b   :  { %v5838_v56 = vpop.xlane.xlu0 %5837 }
0x2a7c   :  { %v5844_v28 = vsub.f32 %v8096_v61, %v5838_v56  ;;  %v5848_v2 = vmul.f32 1.442695, %v5843_v17  ;;  %v8454_v61 = vld [vmem:[%s11365_s7 + $0x30] sm:$0xff]  }
0x2a7e   :  { %v5850_v42 = vmul.f32 1.442695, %v5844_v28 }
0x2a7f   :  { %v5841_v31 = vpop.xlane.xlu0 %5840 }
0x2a80   :  { %8804 = vpow2.f32 %v5850_v42  ;;  %v5845_v12 = vsub.f32 %v8097_v38, %v5841_v31 }
0x2a81   :  { %8806 = vpow2.f32 %v5846_v54 }
0x2a82   :  { %v5852_v40 = vmul.f32 1.442695, %v5845_v12 }
0x2a84   :  { %8808 = vpow2.f32 %v5852_v40 }
0x2a85   :  { %8810 = vpow2.f32 %v5848_v2 }
0x2a8a   :  { %v10880_v14 = vpop.eup %8804 }
0x2a8b   :  { %v5860_v39 = vsel %vm1876_vm2, %v10880_v14, 0.0  ;;  %v8807_v51 = vpop.eup %8806 }
0x2a8c   :  { %5861 = vadd.xlane.f32.xlu0 %v5860_v39  ;;  %v5854_v26 = vsel %vm1876_vm2, %v8807_v51, 0.0 }
0x2a8e   :  { %v8809_v55 = vpop.eup %8808 }
0x2a8f   :  { %v5863_v63 = vsel %vm1876_vm2, %v8809_v55, 0.0  ;;  %v8811_v53 = vpop.eup %8810 }
0x2a90   :  { %5855 = vadd.xlane.f32.xlu0 %v5854_v26  ;;  %5864 = vadd.xlane.f32.xlu1 %v5863_v63  ;;  %v5857_v4 = vsel %vm1876_vm2, %v8811_v53, 0.0 }
0x2a94   :  { %5858 = vadd.xlane.f32.xlu1 %v5857_v4 }
0x2aa5   :  { %5878 = vrot.lane.b32.xlu1 %v10695_v33, %s11405_s23 }
0x2aa6   :  { %5876 = vrot.lane.b32.xlu0 %v10687_v46, %s11405_s23  ;;  %s8905_s23 = smov [#allocation3]  }
0x2aa9   :  { %4783 = vrot.lane.b32.xlu1 %v10703_v32, %s11404_s21 }
0x2aaa   :  { %4787 = vrot.lane.b32.xlu0 %v10701_v10, %s11404_s21 }
0x2aad   :  { %4785 = vrot.lane.b32.xlu1 %v10707_v5, %s11404_s21  ;;  %v8452_v5 = vld [vmem:[%s11365_s7 + $0x20] sm:$0xff]  }
0x2aae   :  { %4979 = vrot.lane.b32.xlu0 %v10743_v59, %s11403_s25 }
0x2ab1   :  { %4789 = vrot.lane.b32.xlu1 %v10705_v30, %s11404_s21 }
0x2ab2   :  { %4983 = vrot.lane.b32.xlu0 %v10741_v47, %s11403_s25 }
0x2ab5   :  { %4981 = vrot.lane.b32.xlu1 %v10747_v48, %s11403_s25 }
0x2ab6   :  { %5175 = vrot.lane.b32.xlu0 %v10777_v21, %s8896_s26 }
0x2ab9   :  { %4985 = vrot.lane.b32.xlu1 %v10745_v37, %s11403_s25 }
0x2aba   :  { %5179 = vrot.lane.b32.xlu0 %v10775_v8, %s8896_s26 }
0x2abd   :  { %5177 = vrot.lane.b32.xlu1 %v10781_v20, %s8896_s26 }
0x2abe   :  { %5549 = vrot.lane.b32.xlu0 %v10841_v34, %s11404_s21 }
0x2ac1   :  { %5181 = vrot.lane.b32.xlu1 %v10779_v13, %s8896_s26 }
0x2ac2   :  { %5553 = vrot.lane.b32.xlu0 %v10839_v49, %s11404_s21 }
0x2ac5   :  { %5551 = vrot.lane.b32.xlu1 %v10845_v19, %s11404_s21 }
0x2ac6   :  { %5745 = vrot.lane.b32.xlu0 %v5726_v7, %s11403_s25  ;;  %v8453_v7 = vld [vmem:[%s11365_s7 + $0x28] sm:$0xff]  }
0x2ac9   :  { %5555 = vrot.lane.b32.xlu1 %v10843_v58, %s11404_s21 }
0x2aca   :  { %5749 = vrot.lane.b32.xlu0 %v8088_v6, %s11403_s25 }
0x2acd   :  { %5747 = vrot.lane.b32.xlu1 %v5729_v41, %s11403_s25 }
0x2ad1   :  { %5751 = vrot.lane.b32.xlu1 %v8089_v36, %s11403_s25 }
0x2b19   :  { %v5862_v46 = vpop.xlane.xlu0 %5861 }
0x2b1d   :  { %v5856_v33 = vpop.xlane.xlu0 %5855  ;;  %v5865_v10 = vpop.xlane.xlu1 %5864 }
0x2b1e   :  { %8812 = vrcp.f32 %v5865_v10 }
0x2b1f   :  { %8814 = vrcp.f32 %v5856_v33  ;;  %v7271_v33 = vld [vmem:[%s11366_s8 + $0x1] ss:$0 sm:$0xff] }
0x2b20   :  { %8816 = vrcp.f32 %v5862_v46 }
0x2b21   :  { %v5877_v32 = vpop.permute.xlu0 %5876  ;;  %v5859_v30 = vpop.xlane.xlu1 %5858 }
0x2b22   :  { %8818 = vrcp.f32 %v5859_v30  ;;  %8098 = vmatprep.subr.bf16.mxu0 %v5877_v32 }
0x2b23   :  { %8099 = vmatpush3.bf16.msra.mxu0 %v5877_v32 }
0x2b25   :  { %v4788_v47 = vpop.permute.xlu0 %4787  ;;  %v5879_v59 = vpop.permute.xlu1 %5878 }
0x2b26   :  { %4797 = vst.msk [vmem:[#allocation2 + $0x10] sm:$0xff] %vm2178_vm3, %v4788_v47  ;;  %8100 = vmatprep.subr.bf16.mxu0 %v5879_v59 }
0x2b27   :  { %8101 = vmatpush3.bf16.msra.mxu0 %v5879_v59 }
0x2b28   :  { %8106 = vmatprep.subr.bf16.mxu0 %v8452_v5  ;;  %v8813_v37 = vpop.eup %8812 }
0x2b29   :  { %v4980_v48 = vpop.permute.xlu0 %4979  ;;  %v4784_v8 = vpop.permute.xlu1 %4783  ;;  %v5873_v49 = vmul.f32 %v8813_v37, %v8809_v55 }
0x2b2a   :  { %v8815_v21 = vpop.eup %8814  ;;  %4795 = vst.msk [vmem:[#allocation2] sm:$0xff] %vm2178_vm3, %v4784_v8 }
0x2b2b   :  { %v8817_v13 = vpop.eup %8816  ;;  %4991 = vst.msk [vmem:[#allocation2] sm:$0xff] %vm2375_vm4, %v4980_v48  ;;  %v5867_v19 = vmul.f32 %v8815_v21, %v8807_v51 }
0x2b2c   :  { %v8819_v20 = vpop.eup %8818  ;;  %v5871_v16 = vmul.f32 %v8817_v13, %v10880_v14 }
0x2b2d   :  { %v4984_v34 = vpop.permute.xlu0 %4983  ;;  %v4786_v58 = vpop.permute.xlu1 %4785  ;;  %v5869_v57 = vmul.f32 %v8819_v20, %v8811_v53 }
0x2b2e   :  { %4993 = vst.msk [vmem:[#allocation2 + $0x10] sm:$0xff] %vm2375_vm4, %v4984_v34  ;;  %v5875_v6 = vpack.c.bf16 %v5873_v49, %v5871_v16 }
0x2b2f   :  { %4796 = vst.msk [vmem:[#allocation2 + $0x8] sm:$0xff] %vm2178_vm3, %v4786_v58  ;;  %v5874_v25 = vpack.c.bf16 %v5869_v57, %v5867_v19 }
0x2b31   :  { %v5176_v36 = vpop.permute.xlu0 %5175  ;;  %8102 = vmatprep.mubr.msk.bf16.mxu0 %vm1876_vm2, %v5874_v25  ;;  %v4790_v41 = vpop.permute.xlu1 %4789 }
0x2b32   :  { %5187 = vst.msk [vmem:[#allocation2] sm:$0xff] %vm2572_vm5, %v5176_v36  ;;  %8103 = vmatmul.mubr.msk.bf16.vlgmr.msra.gmra.mrb[148].mxu0 %vm1876_vm2, %v5875_v6 }
0x2b33   :  { %4798 = vst.msk [vmem:[#allocation2 + $0x18] sm:$0xff] %vm2178_vm3, %v4790_v41  ;;  %8107 = vmatpush3.bf16.msra.mxu0 %v8452_v5 }
0x2b34   :  { %8108 = vmatprep.subr.bf16.mxu0 %v8453_v7 }
0x2b35   :  { %v5180_v27 = vpop.permute.xlu0 %5179  ;;  %v4982_v38 = vpop.permute.xlu1 %4981 }
0x2b36   :  { %5189 = vst.msk [vmem:[#allocation2 + $0x10] sm:$0xff] %vm2572_vm5, %v5180_v27 }
0x2b37   :  { %4992 = vst.msk [vmem:[#allocation2 + $0x8] sm:$0xff] %vm2375_vm4, %v4982_v38  ;;  %8109 = vmatpush3.bf16.msra.mxu0 %v8453_v7 }
0x2b38   :  { %8110 = vmatprep.subr.bf16.mxu0 %v8454_v61 }
0x2b39   :  { %v5550_v11 = vpop.permute.xlu0 %5549  ;;  %v4986_v23 = vpop.permute.xlu1 %4985  ;;  %v5957_v28 = vld [vmem:[#allocation2] sm:$0xff] }
0x2b3a   :  { %5561 = vst.msk [vmem:[#allocation2 + $0x20] sm:$0xff] %vm2178_vm3, %v5550_v11 }
0x2b3b   :  { %4994 = vst.msk [vmem:[#allocation2 + $0x18] sm:$0xff] %vm2375_vm4, %v4986_v23  ;;  %8111 = vmatpush3.bf16.msra.mxu0 %v8454_v61 }
0x2b3c   :  { %8112 = vmatprep.subr.bf16.mxu0 %v8455_v43 }
0x2b3d   :  { %v5554_v22 = vpop.permute.xlu0 %5553  ;;  %v5178_v3 = vpop.permute.xlu1 %5177  ;;  %v5959_v31 = vld [vmem:[#allocation2 + $0x10] sm:$0xff] }
0x2b3e   :  { %5563 = vst.msk [vmem:[#allocation2 + $0x30] sm:$0xff] %vm2178_vm3, %v5554_v22 }
0x2b3f   :  { %5188 = vst.msk [vmem:[#allocation2 + $0x8] sm:$0xff] %vm2572_vm5, %v5178_v3  ;;  %8113 = vmatpush3.bf16.msra.mxu0 %v8455_v43 }
0x2b41   :  { %v5746_v9 = vpop.permute.xlu0 %5745  ;;  %v5182_v29 = vpop.permute.xlu1 %5181 }
0x2b42   :  { %5757 = vst.msk [vmem:[#allocation2 + $0x20] sm:$0xff] %vm2375_vm4, %v5746_v9 }
0x2b43   :  { %5190 = vst.msk [vmem:[#allocation2 + $0x18] sm:$0xff] %vm2572_vm5, %v5182_v29 }
0x2b45   :  { %v5750_v52 = vpop.permute.xlu0 %5749  ;;  %v5552_v56 = vpop.permute.xlu1 %5551 }
0x2b46   :  { %v5958_v54 = vld [vmem:[#allocation2 + $0x8] sm:$0xff]  ;;  %5759 = vst.msk [vmem:[#allocation2 + $0x30] sm:$0xff] %vm2375_vm4, %v5750_v52 }
0x2b47   :  { %5562 = vst.msk [vmem:[#allocation2 + $0x28] sm:$0xff] %vm2178_vm3, %v5552_v56  ;;  %v5974_v17 = vpack.c.bf16 %v5958_v54, %v5957_v28 }
0x2b49   :  { %8114 = vmatprep.mubr.msk.bf16.mxu0 %vm1523_vm0, %v5974_v17  ;;  %v5556_v42 = vpop.permute.xlu1 %5555 }
0x2b4a   :  { %v5960_v12 = vld [vmem:[#allocation2 + $0x18] sm:$0xff]  ;;  %5564 = vst.msk [vmem:[#allocation2 + $0x38] sm:$0xff] %vm2178_vm3, %v5556_v42 }
0x2b4b   :  { %v5975_v2 = vpack.c.bf16 %v5960_v12, %v5959_v31 }
0x2b4d   :  { %8115 = vmatmul.mubr.msk.bf16.vlgmr.msra.gmra.mrb[152].mxu0 %vm1523_vm0, %v5975_v2  ;;  %v5748_v40 = vpop.permute.xlu1 %5747 }
0x2b4e   :  { %5758 = vst.msk [vmem:[#allocation2 + $0x28] sm:$0xff] %vm2375_vm4, %v5748_v40 }
0x2b51   :  { %v5752_v14 = vpop.permute.xlu1 %5751 }
0x2b52   :  { %5760 = vst.msk [vmem:[#allocation2 + $0x38] sm:$0xff] %vm2375_vm4, %v5752_v14 }
0x2c05   :  { %v8104_v39 = vpop.f32.mrb[148].mxu0 }
0x2c06   :  { %v5922_v51 = vpop.f32.mrb[149].mxu0 }
0x2c07   :  { %5941 = vrot.lane.b32.xlu0 %v5922_v51, %s8896_s26  ;;  %v8105_v55 = vpop.f32.mrb[150].mxu0 }
0x2c08   :  { %v5925_v26 = vpop.f32.mrb[151].mxu0 }
0x2c09   :  { %5943 = vrot.lane.b32.xlu1 %v5925_v26, %s8896_s26 }
0x2c0b   :  { %5945 = vrot.lane.b32.xlu0 %v8104_v39, %s8896_s26 }
0x2c0d   :  { %5947 = vrot.lane.b32.xlu1 %v8105_v55, %s8896_s26 }
0x2c20   :  { %v8116_v63 = vpop.f32.mrb[152].mxu0 }
0x2c21   :  { %v6048_v53 = vpop.f32.mrb[153].mxu0  ;;  %v6081_v32 = vadd.f32 %v8116_v63, %v10322_v18 }
0x2c22   :  { %v6079_v4 = vadd.f32 %v6048_v53, %v10304_v35  ;;  %v8117_v46 = vpop.f32.mrb[154].mxu0 }
0x2c23   :  { %v6051_v10 = vpop.f32.mrb[155].mxu0  ;;  %v10976_v47 = vadd.f32 %v7271_v33, %v6081_v32  ;;  %v6082_v59 = vadd.f32 %v8117_v46, %v10329_v60  ;;  %v8456_v46 = vld [vmem:[%s11369_s11 + $0x40] ss:$8 sps:$4 sm:$0xff]   ;;  %v8464_v32 = vld [vmem:[%s11369_s11 + $0x64] ss:$8 sps:$4 sm:$0xff]  }
0x2c24   :  { %v10973_v30 = vadd.f32 %v7271_v33, %v6079_v4  ;;  %v6080_v5 = vadd.f32 %v6051_v10, %v10308_v45  ;;  %v8458_v4 = vld [vmem:[%s11369_s11 + $0x44] ss:$8 sps:$4 sm:$0xff]   ;;  %v8459_v10 = vld [vmem:[%s11369_s11 + $0x50] ss:$8 sps:$4 sm:$0xff]  }
0x2c25   :  { %v10983_v48 = vadd.f32 %v7271_v33, %v6082_v59  ;;  %v6113_v8 = vsel %vm1523_vm0, %v10976_v47, 0.0  ;;  %6317 = vmatprep.subr.bf16.mxu1 %v8458_v4  ;;  %v8467_v59 = vld [vmem:[%s11369_s11 + $0x74] ss:$8 sps:$4 sm:$0xff]  }
0x2c26   :  { %v6107_v37 = vsel %vm1523_vm0, %v10973_v30, 0.0  ;;  %v10981_v35 = vadd.f32 %v7271_v33, %v6080_v5  ;;  %6318 = vmatpush1.bf16.msra.mxu1 %v8456_v46  ;;  %v8462_v5 = vld [vmem:[%s11369_s11 + $0x60] ss:$8 sps:$4 sm:$0xff]  }
0x2c27   :  { %v6116_v45 = vsel %vm1523_vm0, %v10983_v48, 0.0 }
0x2c28   :  { %v6110_v18 = vsel %vm1523_vm0, %v10981_v35, 0.0 }
0x2c2a   :  { %6108 = vadd.xlane.f32.xlu0 %v6107_v37  ;;  %v8465_v37 = vld [vmem:[%s11369_s11 + $0x70] ss:$8 sps:$4 sm:$0xff]  }
0x2c2e   :  { %6114 = vadd.xlane.f32.xlu0 %v6113_v8 }
0x2c31   :  { %6111 = vadd.xlane.f32.xlu1 %v6110_v18 }
0x2c32   :  { %6117 = vadd.xlane.f32.xlu0 %v6116_v45 }
0x2c79   :  { %v5942_v60 = vpop.permute.xlu0 %5941 }
0x2c7a   :  { %5953 = vst.msk [vmem:[#allocation2 + $0x20] sm:$0xff] %vm2572_vm5, %v5942_v60 }
0x2c7b   :  { %v5944_v21 = vpop.permute.xlu1 %5943 }
0x2c7c   :  { %5954 = vst.msk [vmem:[#allocation2 + $0x28] sm:$0xff] %vm2572_vm5, %v5944_v21 }
0x2c7d   :  { %v5946_v13 = vpop.permute.xlu0 %5945 }
0x2c7e   :  { %5955 = vst.msk [vmem:[#allocation2 + $0x30] sm:$0xff] %vm2572_vm5, %v5946_v13 }
0x2c7f   :  { %v5948_v20 = vpop.permute.xlu1 %5947 }
0x2c80   :  { %5956 = vst.msk [vmem:[#allocation2 + $0x38] sm:$0xff] %vm2572_vm5, %v5948_v20 }
0x2c81   :  { %v5961_v49 = vld [vmem:[#allocation2 + $0x20] sm:$0xff] }
0x2c83   :  { %v5962_v34 = vld [vmem:[#allocation2 + $0x28] sm:$0xff] }
0x2c84   :  { %v5976_v58 = vpack.c.bf16 %v5962_v34, %v5961_v49 }
0x2c85   :  { %v5963_v19 = vld [vmem:[#allocation2 + $0x30] sm:$0xff] }
0x2c86   :  { %8118 = vmatprep.mubr.msk.bf16.mxu0 %vm1523_vm0, %v5976_v58 }
0x2c87   :  { %v5964_v57 = vld [vmem:[#allocation2 + $0x38] sm:$0xff] }
0x2c88   :  { %v5977_v16 = vpack.c.bf16 %v5964_v57, %v5963_v19 }
0x2c8a   :  { %8119 = vmatmul.mubr.msk.bf16.gmra.mrb[156].mxu0 %vm1523_vm0, %v5977_v16 }
0x2cb7   :  { %v6109_v25 = vpop.xlane.xlu0 %6108 }
0x2cb8   :  { %v6131_v36 = vmul.f32 0.015625, %v6109_v25 }
0x2cba   :  { %v11004_v29 = vsub.f32 %v10973_v30, %v6131_v36 }
0x2cbb   :  { %v6115_v6 = vpop.xlane.xlu0 %6114 }
0x2cbc   :  { %v6133_v56 = vmul.f32 0.015625, %v6115_v6  ;;  %v6147_v12 = vmul.f32 %v11004_v29, %v11004_v29 }
0x2cbe   :  { %v6112_v41 = vpop.xlane.xlu1 %6111  ;;  %v11020_v42 = vsub.f32 %v10976_v47, %v6133_v56  ;;  %v6155_v39 = vsel %vm1523_vm0, %v6147_v12, 0.0 }
0x2cbf   :  { %v6132_v23 = vmul.f32 0.015625, %v6112_v41  ;;  %v6118_v52 = vpop.xlane.xlu0 %6117 }
0x2cc0   :  { %v6134_v17 = vmul.f32 0.015625, %v6118_v52  ;;  %v6149_v51 = vmul.f32 %v11020_v42, %v11020_v42 }
0x2cc2   :  { %v11027_v2 = vsub.f32 %v10983_v48, %v6134_v17  ;;  %v6161_v63 = vsel %vm1523_vm0, %v6149_v51, 0.0 }
0x2cc4   :  { %v6150_v26 = vmul.f32 %v11027_v2, %v11027_v2 }
0x2cc6   :  { %v6164_v53 = vsel %vm1523_vm0, %v6150_v26, 0.0 }
0x2d5d   :  { %v8120_v7 = vpop.f32.mrb[156].mxu0 }
0x2d5e   :  { %v6064_v61 = vpop.f32.mrb[157].mxu0  ;;  %v6085_v27 = vadd.f32 %v8120_v7, %v10547_v62  ;;  %v11013_v62 = vsub.f32 %v10981_v35, %v6132_v23 }
0x2d5f   :  { %v6083_v38 = vadd.f32 %v6064_v61, %v10535_v50  ;;  %v8121_v43 = vpop.f32.mrb[158].mxu0 }
0x2d60   :  { %v6067_v11 = vpop.f32.mrb[159].mxu0  ;;  %v6086_v3 = vadd.f32 %v8121_v43, %v10553_v1  ;;  %v11006_v28 = vadd.f32 %v7271_v33, %v6085_v27  ;;  %v6148_v14 = vmul.f32 %v11013_v62, %v11013_v62 }
0x2d61   :  { %v10999_v22 = vadd.f32 %v7271_v33, %v6083_v38  ;;  %v6084_v9 = vadd.f32 %v6067_v11, %v10539_v15 }
0x2d62   :  { %v11015_v1 = vadd.f32 %v7271_v33, %v6086_v3  ;;  %v6125_v31 = vsel %vm1523_vm0, %v11006_v28, 0.0  ;;  %v6158_v55 = vsel %vm1523_vm0, %v6148_v14, 0.0 }
0x2d63   :  { %v11008_v54 = vadd.f32 %v7271_v33, %v6084_v9  ;;  %v6119_v50 = vsel %vm1523_vm0, %v10999_v22, 0.0  ;;  %v8461_v33 = vld [vmem:[%s11369_s11 + $0x54] ss:$8 sps:$4 sm:$0xff]  }
0x2d64   :  { %6120 = vadd.xlane.f32.xlu0 %v6119_v50  ;;  %v6128_v40 = vsel %vm1523_vm0, %v11015_v1, 0.0  ;;  %6319 = vmatprep.subr.bf16.mxu1 %v8461_v33 }
0x2d65   :  { %v6122_v15 = vsel %vm1523_vm0, %v11008_v54, 0.0  ;;  %6320 = vmatpush1.bf16.msra.mxu1 %v8459_v10 }
0x2d66   :  { %6123 = vadd.xlane.f32.xlu1 %v6122_v15  ;;  %6321 = vmatprep.subr.bf16.mxu1 %v8464_v32 }
0x2d68   :  { %6126 = vadd.xlane.f32.xlu0 %v6125_v31 }
0x2d69   :  { %6322 = vmatpush1.bf16.msra.mxu1 %v8462_v5 }
0x2d6a   :  { %6129 = vadd.xlane.f32.xlu1 %v6128_v40  ;;  %6323 = vmatprep.subr.bf16.mxu1 %v8467_v59  ;;  %v11092_v40 = vld [vmem:[%s11367_s9 + $0x1] ss:$0 sm:$0xff] }
0x2d6c   :  { %6156 = vadd.xlane.f32.xlu0 %v6155_v39 }
0x2d6d   :  { %6324 = vmatpush1.bf16.msra.mxu1 %v8465_v37 }
0x2d6e   :  { %6159 = vadd.xlane.f32.xlu1 %v6158_v55 }
0x2d70   :  { %6162 = vadd.xlane.f32.xlu0 %v6161_v63  ;;  %v11100_v63 = vld [vmem:[%s11368_s10 + $0x1] ss:$0 sm:$0xff] }
0x2d72   :  { %6165 = vadd.xlane.f32.xlu1 %v6164_v53 }
0x2df1   :  { %v6121_v8 = vpop.xlane.xlu0 %6120 }
0x2df2   :  { %v6135_v18 = vmul.f32 0.015625, %v6121_v8  ;;  %v8469_v8 = vld [vmem:[%s11371_s13 + $0x80] sm:$0xff]  }
0x2df3   :  { %v6124_v45 = vpop.xlane.xlu1 %6123 }
0x2df4   :  { %v11066_v60 = vsub.f32 %v10999_v22, %v6135_v18  ;;  %v6136_v21 = vmul.f32 0.015625, %v6124_v45  ;;  %v8470_v18 = vld [vmem:[%s11371_s13 + $0xc8] sm:$0xff]  }
0x2df5   :  { %v6127_v13 = vpop.xlane.xlu0 %6126  ;;  %v8471_v45 = vld [vmem:[%s11371_s13 + $0x88] sm:$0xff]  }
0x2df6   :  { %v11069_v20 = vsub.f32 %v11008_v54, %v6136_v21  ;;  %v6137_v49 = vmul.f32 0.015625, %v6127_v13  ;;  %v6151_v34 = vmul.f32 %v11066_v60, %v11066_v60  ;;  %v8472_v21 = vld [vmem:[%s11371_s13 + $0xd0] sm:$0xff]  }
0x2df7   :  { %v6130_v58 = vpop.xlane.xlu1 %6129  ;;  %v8473_v13 = vld [vmem:[%s11371_s13 + $0x90] sm:$0xff]  }
0x2df8   :  { %v11074_v19 = vsub.f32 %v11006_v28, %v6137_v49  ;;  %v6138_v57 = vmul.f32 0.015625, %v6130_v58  ;;  %v6167_v16 = vsel %vm1523_vm0, %v6151_v34, 0.0  ;;  %v6152_v25 = vmul.f32 %v11069_v20, %v11069_v20  ;;  %v8474_v49 = vld [vmem:[%s11371_s13 + $0xd8] sm:$0xff]   ;;  %v8476_v58 = vld [vmem:[%s11371_s13 + $0xe0] sm:$0xff]  }
0x2df9   :  { %6168 = vadd.xlane.f32.xlu0 %v6167_v16  ;;  %v6157_v6 = vpop.xlane.xlu0 %6156  ;;  %v8475_v34 = vld [vmem:[%s11371_s13 + $0x98] sm:$0xff]   ;;  %v8478_v16 = vld [vmem:[%s11371_s13 + $0xe8] sm:$0xff]  }
0x2dfa   :  { %v11080_v7 = vsub.f32 %v11015_v1, %v6138_v57  ;;  %v6179_v36 = vmul.f32 0.015625, %v6157_v6  ;;  %v6170_v41 = vsel %vm1523_vm0, %v6152_v25, 0.0  ;;  %v6153_v61 = vmul.f32 %v11074_v19, %v11074_v19  ;;  %v8477_v57 = vld [vmem:[%s11371_s13 + $0xa0] sm:$0xff]   ;;  %v8479_v25 = vld [vmem:[%s11371_s13 + $0xa8] sm:$0xff]   ;;  %v8480_v6 = vld [vmem:[%s11371_s13 + $0xf0] sm:$0xff]  }
0x2dfb   :  { %6171 = vadd.xlane.f32.xlu1 %v6170_v41  ;;  %v6160_v27 = vpop.xlane.xlu1 %6159  ;;  %v8482_v41 = vld [vmem:[%s11371_s13 + $0xf8] sm:$0xff]  }
0x2dfc   :  { %v6187_v38 = vadd.f32 1e-06, %v6179_v36  ;;  %v6180_v43 = vmul.f32 0.015625, %v6160_v27  ;;  %v6173_v11 = vsel %vm1523_vm0, %v6153_v61, 0.0  ;;  %v6154_v23 = vmul.f32 %v11080_v7, %v11080_v7  ;;  %v8481_v36 = vld [vmem:[%s11371_s13 + $0xb0] sm:$0xff]   ;;  %v8483_v61 = vld [vmem:[%s11371_s13 + $0xb8] sm:$0xff]  }
0x2dfd   :  { %6174 = vadd.xlane.f32.xlu0 %v6173_v11  ;;  %v6163_v3 = vpop.xlane.xlu0 %6162 }
0x2dfe   :  { %8820 = vrsqrt.f32 %v6187_v38  ;;  %v6188_v9 = vadd.f32 1e-06, %v6180_v43  ;;  %v6181_v52 = vmul.f32 0.015625, %v6163_v3  ;;  %v6176_v56 = vsel %vm1523_vm0, %v6154_v23, 0.0 }
0x2dff   :  { %6177 = vadd.xlane.f32.xlu1 %v6176_v56  ;;  %v6166_v50 = vpop.xlane.xlu1 %6165 }
0x2e00   :  { %8822 = vrsqrt.f32 %v6188_v9  ;;  %v6189_v17 = vadd.f32 1e-06, %v6181_v52  ;;  %v6182_v15 = vmul.f32 0.015625, %v6166_v50 }
0x2e02   :  { %8824 = vrsqrt.f32 %v6189_v17  ;;  %v6190_v31 = vadd.f32 1e-06, %v6182_v15 }
0x2e04   :  { %8826 = vrsqrt.f32 %v6190_v31 }
0x2e08   :  { %v8821_v12 = vpop.eup %8820 }
0x2e09   :  { %v6203_v14 = vmul.f32 %v8821_v12, %v11004_v29 }
0x2e0a   :  { %v8823_v39 = vpop.eup %8822 }
0x2e0b   :  { %v6217_v51 = vmul.f32 %v11092_v40, %v6203_v14  ;;  %v6204_v55 = vmul.f32 %v8823_v39, %v11013_v62 }
0x2e0c   :  { %v8825_v26 = vpop.eup %8824 }
0x2e0d   :  { %v6218_v53 = vmul.f32 %v11092_v40, %v6204_v55  ;;  %v6205_v46 = vmul.f32 %v8825_v26, %v11020_v42  ;;  %v6231_v29 = vadd.f32 %v11100_v63, %v6217_v51 }
0x2e0e   :  { %v8827_v4 = vpop.eup %8826 }
0x2e0f   :  { %v6206_v33 = vmul.f32 %v8827_v4, %v11027_v2  ;;  %v6232_v10 = vadd.f32 %v11100_v63, %v6218_v53  ;;  %v6219_v5 = vmul.f32 %v11092_v40, %v6205_v46  ;;  %v8468_v2 = vld [vmem:[%s11371_s13 + $0xc0] sm:$0xff]  }
0x2e10   :  { %7776 = vmatprep.subr.bf16.mxu0 %v8468_v2 }
0x2e11   :  { %v6248_v32 = vpack.c.bf16 %v6232_v10, %v6231_v29  ;;  %v6220_v62 = vmul.f32 %v11092_v40, %v6206_v33  ;;  %v6233_v37 = vadd.f32 %v11100_v63, %v6219_v5  ;;  %7777 = vmatpush3.bf16.msra.mxu0 %v8469_v8 }
0x2e12   :  { %7778 = vmatprep.subr.bf16.mxu0 %v8470_v18 }
0x2e13   :  { %7293 = vmatmul.mubr.msk.bf16.vlgmr.msra.gmra.mrb[144].mxu1 %vm1523_vm0, %v6248_v32  ;;  %v6234_v59 = vadd.f32 %v11100_v63, %v6220_v62 }
0x2e14   :  { %6359 = vmatprep.mubr.bf16.mxu1 %v8894_v0 }
0x2e15   :  { %v6249_v42 = vpack.c.bf16 %v6234_v59, %v6233_v37  ;;  %7779 = vmatpush3.bf16.msra.mxu0 %v8471_v45 }
0x2e16   :  { %7780 = vmatprep.subr.bf16.mxu0 %v8472_v21 }
0x2e19   :  { %7781 = vmatpush3.bf16.msra.mxu0 %v8473_v13 }
0x2e1a   :  { %7782 = vmatprep.subr.bf16.mxu0 %v8474_v49 }
0x2e1b   :  { %7294 = vmatmul.mubr.msk.bf16.gmra.mrb[148].mxu1 %vm1523_vm0, %v6249_v42 }
0x2e1c   :  { %6369 = vmatprep.mubr.bf16.mxu1 %v8894_v0 }
0x2e1d   :  { %7783 = vmatpush3.bf16.msra.mxu0 %v8475_v34 }
0x2e1e   :  { %7784 = vmatprep.subr.bf16.mxu0 %v8476_v58 }
0x2e21   :  { %7785 = vmatpush3.bf16.msra.mxu0 %v8477_v57 }
0x2e22   :  { %7786 = vmatprep.subr.bf16.mxu0 %v8478_v16 }
0x2e25   :  { %7787 = vmatpush3.bf16.msra.mxu0 %v8479_v25 }
0x2e26   :  { %7788 = vmatprep.subr.bf16.mxu0 %v8480_v6 }
0x2e29   :  { %7789 = vmatpush3.bf16.msra.mxu0 %v8481_v36 }
0x2e2a   :  { %7790 = vmatprep.subr.bf16.mxu0 %v8482_v41 }
0x2e2d   :  { %7791 = vmatpush3.bf16.msra.mxu0 %v8483_v61 }
0x2e86   :  { %v6169_v27 = vpop.xlane.xlu0 %6168 }
0x2e87   :  { %v6183_v38 = vmul.f32 0.015625, %v6169_v27 }
0x2e88   :  { %v6172_v43 = vpop.xlane.xlu1 %6171 }
0x2e89   :  { %v6191_v11 = vadd.f32 1e-06, %v6183_v38  ;;  %v6184_v23 = vmul.f32 0.015625, %v6172_v43 }
0x2e8a   :  { %v6175_v3 = vpop.xlane.xlu0 %6174 }
0x2e8b   :  { %8828 = vrsqrt.f32 %v6191_v11  ;;  %v6192_v9 = vadd.f32 1e-06, %v6184_v23  ;;  %v6185_v52 = vmul.f32 0.015625, %v6175_v3 }
0x2e8c   :  { %v6178_v56 = vpop.xlane.xlu1 %6177 }
0x2e8d   :  { %8830 = vrsqrt.f32 %v6192_v9  ;;  %v6193_v50 = vadd.f32 1e-06, %v6185_v52  ;;  %v6186_v17 = vmul.f32 0.015625, %v6178_v56 }
0x2e8f   :  { %8832 = vrsqrt.f32 %v6193_v50  ;;  %v6194_v15 = vadd.f32 1e-06, %v6186_v17 }
0x2e91   :  { %8834 = vrsqrt.f32 %v6194_v15 }
0x2e95   :  { %v8829_v31 = vpop.eup %8828 }
0x2e96   :  { %v6207_v12 = vmul.f32 %v8829_v31, %v11066_v60 }
0x2e97   :  { %v8831_v14 = vpop.eup %8830 }
0x2e98   :  { %v6208_v39 = vmul.f32 %v8831_v14, %v11069_v20  ;;  %v6221_v51 = vmul.f32 %v11092_v40, %v6207_v12 }
0x2e99   :  { %v8833_v55 = vpop.eup %8832 }
0x2e9a   :  { %v6222_v26 = vmul.f32 %v11092_v40, %v6208_v39  ;;  %v6209_v4 = vmul.f32 %v8833_v55, %v11074_v19  ;;  %v6235_v33 = vadd.f32 %v11100_v63, %v6221_v51 }
0x2e9b   :  { %v8835_v53 = vpop.eup %8834 }
0x2e9c   :  { %v6210_v46 = vmul.f32 %v8835_v53, %v11080_v7  ;;  %v6236_v29 = vadd.f32 %v11100_v63, %v6222_v26  ;;  %v6223_v20 = vmul.f32 %v11092_v40, %v6209_v4  ;;  %v7284_v7 = vld [vmem:[%s11370_s12 + $0x2] sm:$0x3]  ;;  %s6959_s12 = sshll.u32 %s8905_s23, 4  ;;  %s6960_s12 = int_to_ptr.vmem [resolvable:$true] %s6959_s12 }
0x2e9d   :  { %v11182_v5 = vrot.slane %v7284_v7, %v9588_v24  ;;  %v11185_v59 = vrot.slane %v7284_v7, %v9593_v44  ;;  %p8875_p1 = scmp.lt.s32.totalorder %s6960_s12, %s6960_s12 }
0x2e9e   :  { %v6250_v10 = vpack.c.bf16 %v6236_v29, %v6235_v33  ;;  %v6224_v60 = vmul.f32 %v11092_v40, %v6210_v46  ;;  %v6237_v62 = vadd.f32 %v11100_v63, %v6223_v20 }
0x2ea0   :  { %7295 = vmatmul.mubr.msk.bf16.gmra.mrb[152].mxu1 %vm1523_vm0, %v6250_v10  ;;  %v6238_v32 = vadd.f32 %v11100_v63, %v6224_v60 }
0x2ea1   :  { %6379 = vmatprep.mubr.bf16.mxu1 %v8894_v0 }
0x2ea2   :  { %v6251_v19 = vpack.c.bf16 %v6238_v32, %v6237_v62 }
0x2ea8   :  { %7296 = vmatmul.mubr.msk.bf16.gmra.mrb[156].mxu1 %vm1523_vm0, %v6251_v19 }
0x2ee6   :  { %v6351_v40 = vpop.f32.mrb[144].mxu1 }
0x2ee7   :  { %v11188_v0 = vadd.f32 %v6351_v40, %v11182_v5  ;;  %v6353_v37 = vpop.f32.mrb[145].mxu1 }
0x2ee8   :  { %v11191_v63 = vadd.f32 %v6353_v37, %v11185_v59  ;;  %v6355_v42 = vpop.f32.mrb[146].mxu1 }
0x2ee9   :  { %v6406_v2 = vmul.f32 0.044715, %v11188_v0  ;;  %v11195_v8 = vadd.f32 %v6355_v42, %v11182_v5  ;;  %v6357_v18 = vpop.f32.mrb[147].mxu1 }
0x2eea   :  { %v6407_v24 = vmul.f32 0.044715, %v11191_v63  ;;  %v11199_v44 = vadd.f32 %v6357_v18, %v11185_v59 }
0x2eeb   :  { %v6422_v45 = vmul.f32 %v6406_v2, %v11188_v0  ;;  %v6408_v21 = vmul.f32 0.044715, %v11195_v8 }
0x2eec   :  { %v6423_v13 = vmul.f32 %v6407_v24, %v11191_v63  ;;  %v6409_v49 = vmul.f32 0.044715, %v11199_v44 }
0x2eed   :  { %v6438_v34 = vmul.f32 %v6422_v45, %v11188_v0  ;;  %v6424_v58 = vmul.f32 %v6408_v21, %v11195_v8 }
0x2eee   :  { %v6439_v57 = vmul.f32 %v6423_v13, %v11191_v63  ;;  %v6425_v16 = vmul.f32 %v6409_v49, %v11199_v44  ;;  %v6361_v25 = vpop.f32.mrb[148].mxu1  ;;  %v6390_v13 = vmul.f32 0.5, %v11188_v0  ;;  %v6392_v49 = vmul.f32 0.5, %v11195_v8 }
0x2eef   :  { %v6454_v6 = vadd.f32 %v6438_v34, %v11188_v0  ;;  %v6440_v36 = vmul.f32 %v6424_v58, %v11195_v8  ;;  %v11212_v41 = vadd.f32 %v6361_v25, %v11182_v5  ;;  %v6363_v61 = vpop.f32.mrb[149].mxu1  ;;  %v6391_v58 = vmul.f32 0.5, %v11191_v63 }
0x2ef0   :  { %v6441_v27 = vmul.f32 %v6425_v16, %v11199_v44  ;;  %v11216_v38 = vadd.f32 %v6363_v61, %v11185_v59  ;;  %v6365_v43 = vpop.f32.mrb[150].mxu1  ;;  %v6455_v11 = vadd.f32 %v6439_v57, %v11191_v63  ;;  %v6393_v57 = vmul.f32 0.5, %v11199_v44 }
0x2ef1   :  { %v6470_v23 = vmul.f32 0.7978846, %v6454_v6  ;;  %v6456_v3 = vadd.f32 %v6440_v36, %v11195_v8  ;;  %v6410_v9 = vmul.f32 0.044715, %v11212_v41  ;;  %v6366_v52 = vadd.f32 %v6365_v43, %v11182_v5  ;;  %v6367_v56 = vpop.f32.mrb[151].mxu1 }
0x2ef2   :  { %v6411_v50 = vmul.f32 0.044715, %v11216_v38  ;;  %v6368_v17 = vadd.f32 %v6367_v56, %v11185_v59  ;;  %v6457_v15 = vadd.f32 %v6441_v27, %v11199_v44  ;;  %v6471_v31 = vmul.f32 0.7978846, %v6455_v11 }
0x2ef3   :  { %8836 = vtanh.f32 %v6470_v23  ;;  %v6472_v12 = vmul.f32 0.7978846, %v6456_v3  ;;  %v6426_v14 = vmul.f32 %v6410_v9, %v11212_v41  ;;  %v6412_v39 = vmul.f32 0.044715, %v6366_v52 }
0x2ef4   :  { %v6427_v51 = vmul.f32 %v6411_v50, %v11216_v38  ;;  %v6413_v55 = vmul.f32 0.044715, %v6368_v17  ;;  %v6473_v26 = vmul.f32 0.7978846, %v6457_v15  ;;  %8838 = vtanh.f32 %v6471_v31 }
0x2ef5   :  { %8840 = vtanh.f32 %v6472_v12  ;;  %v6442_v53 = vmul.f32 %v6426_v14, %v11212_v41  ;;  %v6428_v4 = vmul.f32 %v6412_v39, %v6366_v52  ;;  %v6394_v8 = vmul.f32 0.5, %v11212_v41 }
0x2ef6   :  { %v6443_v46 = vmul.f32 %v6427_v51, %v11216_v38  ;;  %v6429_v33 = vmul.f32 %v6413_v55, %v6368_v17  ;;  %8842 = vtanh.f32 %v6473_v26  ;;  %v6396_v63 = vmul.f32 0.5, %v6366_v52 }
0x2ef7   :  { %v6444_v29 = vmul.f32 %v6428_v4, %v6366_v52  ;;  %v6458_v10 = vadd.f32 %v6442_v53, %v11212_v41  ;;  %v6395_v44 = vmul.f32 0.5, %v11216_v38  ;;  %v6397_v15 = vmul.f32 0.5, %v6368_v17 }
0x2ef8   :  { %v6445_v60 = vmul.f32 %v6429_v33, %v6368_v17  ;;  %v6459_v20 = vadd.f32 %v6443_v46, %v11216_v38  ;;  %v8902_v53 = vmov 0.0|0.0  }
0x2ef9   :  { %v6460_v32 = vadd.f32 %v6444_v29, %v6366_v52  ;;  %v6474_v62 = vmul.f32 0.7978846, %v6458_v10  ;;  %8160 = vmatprep.subr.bf16.mxu1 %v8902_v53 }
0x2efa   :  { %v6461_v19 = vadd.f32 %v6445_v60, %v6368_v17  ;;  %v6475_v7 = vmul.f32 0.7978846, %v6459_v20 }
0x2efb   :  { %v6476_v40 = vmul.f32 0.7978846, %v6460_v32  ;;  %8844 = vtanh.f32 %v6474_v62 }
0x2efc   :  { %v6477_v37 = vmul.f32 0.7978846, %v6461_v19  ;;  %8846 = vtanh.f32 %v6475_v7 }
0x2efd   :  { %v8837_v42 = vpop.eup %8836  ;;  %8848 = vtanh.f32 %v6476_v40 }
0x2efe   :  { %v8839_v2 = vpop.eup %8838  ;;  %v6502_v18 = vadd.f32 1.0, %v8837_v42  ;;  %8850 = vtanh.f32 %v6477_v37 }
0x2eff   :  { %v8841_v24 = vpop.eup %8840  ;;  %v6503_v45 = vadd.f32 1.0, %v8839_v2 }
0x2f00   :  { %v8843_v21 = vpop.eup %8842  ;;  %v6504_v34 = vadd.f32 1.0, %v8841_v24  ;;  %v6518_v25 = vmul.f32 %v6502_v18, %v6390_v13 }
0x2f01   :  { %v6505_v16 = vadd.f32 1.0, %v8843_v21  ;;  %v6519_v36 = vmul.f32 %v6503_v45, %v6391_v58 }
0x2f02   :  { %v6520_v6 = vmul.f32 %v6504_v34, %v6392_v49 }
0x2f03   :  { %v6521_v61 = vmul.f32 %v6505_v16, %v6393_v57 }
0x2f04   :  { %v6567_v27 = vpack.c.bf16 %v6520_v6, %v6518_v25 }
0x2f05   :  { %v8845_v43 = vpop.eup %8844  ;;  %v6568_v11 = vpack.c.bf16 %v6521_v61, %v6519_v36 }
0x2f06   :  { %v8847_v23 = vpop.eup %8846  ;;  %v6506_v3 = vadd.f32 1.0, %v8845_v43 }
0x2f07   :  { %v8849_v9 = vpop.eup %8848  ;;  %6703 = vmatprep.mubr.bf16.mxu0 %v6568_v11  ;;  %v6507_v0 = vadd.f32 1.0, %v8847_v23 }
0x2f08   :  { %v8851_v56 = vpop.eup %8850  ;;  %6704 = vmatmul.mubr.bf16.vlgmr.msra.gmra.mrb[160].mxu0 %v6567_v27  ;;  %v6508_v50 = vadd.f32 1.0, %v8849_v9  ;;  %v6522_v12 = vmul.f32 %v6506_v3, %v6394_v8 }
0x2f09   :  { %v6509_v31 = vadd.f32 1.0, %v8851_v56  ;;  %v6523_v39 = vmul.f32 %v6507_v0, %v6395_v44 }
0x2f0a   :  { %v6524_v14 = vmul.f32 %v6508_v50, %v6396_v63 }
0x2f0b   :  { %v6525_v51 = vmul.f32 %v6509_v31, %v6397_v15 }
0x2f0c   :  { %v6569_v55 = vpack.c.bf16 %v6524_v14, %v6522_v12 }
0x2f0d   :  { %v6570_v26 = vpack.c.bf16 %v6525_v51, %v6523_v39 }
0x2f0f   :  { %6711 = vmatprep.mubr.bf16.mxu0 %v6570_v26 }
0x2f10   :  { %6712 = vmatmul.mubr.bf16.gmra.mrb[164].mxu0 %v6569_v55 }
0x2f73   :  { %v6371_v4 = vpop.f32.mrb[152].mxu1 }
0x2f74   :  { %v11239_v41 = vadd.f32 %v6371_v4, %v11182_v5  ;;  %v6373_v52 = vpop.f32.mrb[153].mxu1 }
0x2f75   :  { %v11242_v38 = vadd.f32 %v6373_v52, %v11185_v59  ;;  %v6375_v17 = vpop.f32.mrb[154].mxu1 }
0x2f76   :  { %v6414_v46 = vmul.f32 0.044715, %v11239_v41  ;;  %v11246_v33 = vadd.f32 %v6375_v17, %v11182_v5  ;;  %v6377_v29 = vpop.f32.mrb[155].mxu1 }
0x2f77   :  { %v6415_v10 = vmul.f32 0.044715, %v11242_v38  ;;  %v11250_v60 = vadd.f32 %v6377_v29, %v11185_v59 }
0x2f78   :  { %v6430_v20 = vmul.f32 %v6414_v46, %v11239_v41  ;;  %v6416_v32 = vmul.f32 0.044715, %v11246_v33 }
0x2f79   :  { %v6431_v62 = vmul.f32 %v6415_v10, %v11242_v38  ;;  %v6417_v19 = vmul.f32 0.044715, %v11250_v60 }
0x2f7a   :  { %v6446_v7 = vmul.f32 %v6430_v20, %v11239_v41  ;;  %v6432_v40 = vmul.f32 %v6416_v32, %v11246_v33  ;;  %v6398_v32 = vmul.f32 0.5, %v11239_v41 }
0x2f7b   :  { %v6447_v37 = vmul.f32 %v6431_v62, %v11242_v38  ;;  %v6433_v42 = vmul.f32 %v6417_v19, %v11250_v60  ;;  %v6381_v2 = vpop.f32.mrb[156].mxu1  ;;  %v6400_v62 = vmul.f32 0.5, %v11246_v33 }
0x2f7c   :  { %v6448_v18 = vmul.f32 %v6432_v40, %v11246_v33  ;;  %v11262_v24 = vadd.f32 %v6381_v2, %v11182_v5  ;;  %v6383_v45 = vpop.f32.mrb[157].mxu1  ;;  %v6462_v21 = vadd.f32 %v6446_v7, %v11239_v41  ;;  %v6399_v7 = vmul.f32 0.5, %v11242_v38 }
0x2f7d   :  { %v6449_v13 = vmul.f32 %v6433_v42, %v11250_v60  ;;  %v11267_v49 = vadd.f32 %v6383_v45, %v11185_v59  ;;  %v6385_v34 = vpop.f32.mrb[158].mxu1  ;;  %v6463_v58 = vadd.f32 %v6447_v37, %v11242_v38  ;;  %v6401_v40 = vmul.f32 0.5, %v11250_v60 }
0x2f7e   :  { %v6418_v57 = vmul.f32 0.044715, %v11262_v24  ;;  %v6386_v16 = vadd.f32 %v6385_v34, %v11182_v5  ;;  %v6387_v25 = vpop.f32.mrb[159].mxu1  ;;  %v6464_v6 = vadd.f32 %v6448_v18, %v11246_v33  ;;  %v6478_v36 = vmul.f32 0.7978846, %v6462_v21 }
0x2f7f   :  { %v6419_v61 = vmul.f32 0.044715, %v11267_v49  ;;  %v6388_v27 = vadd.f32 %v6387_v25, %v11185_v59  ;;  %v6465_v43 = vadd.f32 %v6449_v13, %v11250_v60  ;;  %v6479_v11 = vmul.f32 0.7978846, %v6463_v58 }
0x2f80   :  { %v6434_v23 = vmul.f32 %v6418_v57, %v11262_v24  ;;  %v6420_v3 = vmul.f32 0.044715, %v6386_v16  ;;  %v6480_v9 = vmul.f32 0.7978846, %v6464_v6  ;;  %8852 = vtanh.f32 %v6478_v36 }
0x2f81   :  { %v6435_v0 = vmul.f32 %v6419_v61, %v11267_v49  ;;  %v6421_v56 = vmul.f32 0.044715, %v6388_v27  ;;  %v6481_v5 = vmul.f32 0.7978846, %v6465_v43  ;;  %8854 = vtanh.f32 %v6479_v11 }
0x2f82   :  { %v6450_v8 = vmul.f32 %v6434_v23, %v11262_v24  ;;  %v6436_v63 = vmul.f32 %v6420_v3, %v6386_v16  ;;  %8856 = vtanh.f32 %v6480_v9  ;;  %v6402_v33 = vmul.f32 0.5, %v11262_v24 }
0x2f83   :  { %v6451_v50 = vmul.f32 %v6435_v0, %v11267_v49  ;;  %v6437_v59 = vmul.f32 %v6421_v56, %v6388_v27  ;;  %8858 = vtanh.f32 %v6481_v5  ;;  %v6404_v38 = vmul.f32 0.5, %v6386_v16 }
0x2f84   :  { %v6452_v44 = vmul.f32 %v6436_v63, %v6386_v16  ;;  %v6466_v15 = vadd.f32 %v6450_v8, %v11262_v24  ;;  %v6403_v60 = vmul.f32 0.5, %v11267_v49  ;;  %v6405_v61 = vmul.f32 0.5, %v6388_v27 }
0x2f85   :  { %v6453_v31 = vmul.f32 %v6437_v59, %v6388_v27  ;;  %v6467_v12 = vadd.f32 %v6451_v50, %v11267_v49  ;;  %v7346_v49 = vld [vmem:[%s11372_s14 + $0x1] ss:$0 sm:$0xff] }
0x2f86   :  { %v6468_v14 = vadd.f32 %v6452_v44, %v6386_v16  ;;  %v6482_v39 = vmul.f32 0.7978846, %v6466_v15 }
0x2f87   :  { %v6469_v51 = vadd.f32 %v6453_v31, %v6388_v27  ;;  %v6483_v55 = vmul.f32 0.7978846, %v6467_v12 }
0x2f88   :  { %v6484_v26 = vmul.f32 0.7978846, %v6468_v14  ;;  %8860 = vtanh.f32 %v6482_v39 }
0x2f89   :  { %v6485_v4 = vmul.f32 0.7978846, %v6469_v51  ;;  %8862 = vtanh.f32 %v6483_v55 }
0x2f8a   :  { %v8853_v52 = vpop.eup %8852  ;;  %8864 = vtanh.f32 %v6484_v26 }
0x2f8b   :  { %v8855_v17 = vpop.eup %8854  ;;  %v6510_v46 = vadd.f32 1.0, %v8853_v52  ;;  %8866 = vtanh.f32 %v6485_v4 }
0x2f8c   :  { %v8857_v29 = vpop.eup %8856  ;;  %v6511_v10 = vadd.f32 1.0, %v8855_v17 }
0x2f8d   :  { %v8859_v20 = vpop.eup %8858  ;;  %v6512_v19 = vadd.f32 1.0, %v8857_v29  ;;  %v6526_v42 = vmul.f32 %v6510_v46, %v6398_v32 }
0x2f8e   :  { %v6513_v37 = vadd.f32 1.0, %v8859_v20  ;;  %v6527_v18 = vmul.f32 %v6511_v10, %v6399_v7 }
0x2f8f   :  { %v6528_v2 = vmul.f32 %v6512_v19, %v6400_v62 }
0x2f90   :  { %v6529_v45 = vmul.f32 %v6513_v37, %v6401_v40 }
0x2f91   :  { %v6571_v21 = vpack.c.bf16 %v6528_v2, %v6526_v42 }
0x2f92   :  { %v8861_v13 = vpop.eup %8860  ;;  %v6572_v34 = vpack.c.bf16 %v6529_v45, %v6527_v18 }
0x2f93   :  { %v8863_v58 = vpop.eup %8862  ;;  %v6514_v57 = vadd.f32 1.0, %v8861_v13 }
0x2f94   :  { %v8865_v25 = vpop.eup %8864  ;;  %6719 = vmatprep.mubr.bf16.mxu0 %v6572_v34  ;;  %v6515_v41 = vadd.f32 1.0, %v8863_v58 }
0x2f95   :  { %v8867_v6 = vpop.eup %8866  ;;  %6720 = vmatmul.mubr.bf16.gmra.mrb[168].mxu0 %v6571_v21  ;;  %v6516_v36 = vadd.f32 1.0, %v8865_v25  ;;  %v6530_v11 = vmul.f32 %v6514_v57, %v6402_v33 }
0x2f96   :  { %v6517_v43 = vadd.f32 1.0, %v8867_v6  ;;  %v6531_v3 = vmul.f32 %v6515_v41, %v6403_v60 }
0x2f97   :  { %v6532_v23 = vmul.f32 %v6516_v36, %v6404_v38 }
0x2f98   :  { %v6533_v9 = vmul.f32 %v6517_v43, %v6405_v61  ;;  %v6864_v61 = vld [vmem:[%s11376_s18] sm:$0xff]  ;;  %v6865_v43 = vld [vmem:[%s11376_s18 + $0x8] sm:$0xff] }
0x2f99   :  { %v6573_v0 = vpack.c.bf16 %v6532_v23, %v6530_v11  ;;  %v8173_v11 = vpack.c.bf16 %v6865_v43, %v6864_v61  ;;  %v6866_v23 = vld [vmem:[%s11376_s18 + $0x10] sm:$0xff] }
0x2f9a   :  { %v6574_v56 = vpack.c.bf16 %v6533_v9, %v6531_v3  ;;  %v6867_v3 = vld [vmem:[%s11376_s18 + $0x18] sm:$0xff] }
0x2f9b   :  { %v8176_v9 = vpack.c.bf16 %v6867_v3, %v6866_v23 }
0x2f9c   :  { %6727 = vmatprep.mubr.bf16.mxu0 %v6574_v56  ;;  %v6869_v56 = vld [vmem:[%s11376_s18 + $0x28] sm:$0xff] }
0x2f9d   :  { %6728 = vmatmul.mubr.bf16.gmra.mrb[172].mxu0 %v6573_v0  ;;  %v6868_v0 = vld [vmem:[%s11376_s18 + $0x20] sm:$0xff] }
0x2fdb   :  { %v7792_v5 = vpop.f32.mrb[160].mxu0 }
0x2fdc   :  { %v7793_v8 = vpop.f32.mrb[161].mxu0 }
0x2fdd   :  { %v7794_v63 = vadd.f32 %v7793_v8, %v7792_v5  ;;  %v7795_v50 = vpop.f32.mrb[162].mxu0  ;;  %v6870_v5 = vld [vmem:[%s11376_s18 + $0x30] sm:$0xff]  ;;  %v8179_v8 = vpack.c.bf16 %v6869_v56, %v6868_v0 }
0x2fde   :  { %v7796_v59 = vpop.f32.mrb[163].mxu0 }
0x2fdf   :  { %v6736_v24 = vadd.f32 %v7794_v63, %v10973_v30  ;;  %v7797_v16 = vadd.f32 %v7796_v59, %v7795_v50  ;;  %v6871_v63 = vld [vmem:[%s11376_s18 + $0x38] sm:$0xff] }
0x2fe0   :  { %v8182_v50 = vpack.c.bf16 %v6871_v63, %v6870_v5 }
0x2fe1   :  { %v6737_v27 = vadd.f32 %v7797_v16, %v10981_v35  ;;  %v6752_v44 = vadd.f32 %v7346_v49, %v6736_v24  ;;  %v8904_v35 = vmov 0.0  }
0x2fe2   :  { %8138 = vmatprep.mubr.msk.f32.mxu1 %vm8903_vm6, %v8904_v35 }
0x2fe3   :  { %v6753_v15 = vadd.f32 %v7346_v49, %v6737_v27  ;;  %v7798_v31 = vpop.f32.mrb[164].mxu0  ;;  %v7348_v27 = vld [vmem:[%s11374_s16] ss:$0 sm:$0xff]  ;;  %s8870_s16 = scalar_lea.vmem %s6960_s12, 32 }
0x2fe4   :  { %v7799_v12 = vpop.f32.mrb[165].mxu0  ;;  %p8871_p0 = scmp.ne.s32.totalorder %s6960_s12, %s8870_s16  ;;  %p8876_p2 = scmp.lt.s32.totalorder %s8870_s16, %s8870_s16 }
0x2fe5   :  { %v8161_v14 = vpack.c.bf16 %v6753_v15, %v6752_v44  ;;  %v7800_v39 = vadd.f32 %v7799_v12, %v7798_v31  ;;  %v7801_v51 = vpop.f32.mrb[166].mxu0  ;;  %v7349_v15 = vld [vmem:[%s11375_s17] ss:$0 sm:$0xff] }
0x2fe6   :  { %v7802_v55 = vpop.f32.mrb[167].mxu0  ;;  %p8877_p3 = por %p8876_p2, %p8875_p1 }
0x2fe7   :  { %v6738_v26 = vadd.f32 %v7800_v39, %v10976_v47  ;;  %v7803_v4 = vadd.f32 %v7802_v55, %v7801_v51  ;;  %8162 = vmatpush3.bf16.msra.mxu1 %v8161_v14 }
0x2fe8   :  { %8163 = vmatprep.subr.bf16.mxu1 %v8902_v53  ;;  %p8878_p4 = pnand %p8877_p3, %p8871_p0 }
0x2fe9   :  { %v6739_v30 = vadd.f32 %v7803_v4, %v10983_v48  ;;  %v6754_v52 = vadd.f32 %v7346_v49, %v6738_v26 }
0x2feb   :  { %v6755_v17 = vadd.f32 %v7346_v49, %v6739_v30 }
0x2fed   :  { %v8164_v46 = vpack.c.bf16 %v6755_v17, %v6754_v52 }
0x2fef   :  { %8165 = vmatpush3.bf16.msra.mxu1 %v8164_v46 }
0x2ff0   :  { %8166 = vmatprep.subr.bf16.mxu1 %v8902_v53 }
0x3068   :  { %v7804_v29 = vpop.f32.mrb[168].mxu0 }
0x3069   :  { %v7805_v10 = vpop.f32.mrb[169].mxu0 }
0x306a   :  { %v7806_v20 = vadd.f32 %v7805_v10, %v7804_v29  ;;  %v7807_v47 = vpop.f32.mrb[170].mxu0 }
0x306b   :  { %v7808_v32 = vpop.f32.mrb[171].mxu0 }
0x306c   :  { %v6740_v62 = vadd.f32 %v7806_v20, %v10999_v22  ;;  %v7809_v19 = vadd.f32 %v7808_v32, %v7807_v47 }
0x306e   :  { %v6741_v48 = vadd.f32 %v7809_v19, %v11008_v54  ;;  %v6756_v7 = vadd.f32 %v7346_v49, %v6740_v62  ;;  %v6760_v54 = vld [vmem:[%s11373_s15] sm:$0x3] }
0x3070   :  { %v6757_v40 = vadd.f32 %v7346_v49, %v6741_v48  ;;  %v7810_v37 = vpop.f32.mrb[172].mxu0 }
0x3071   :  { %v7811_v42 = vpop.f32.mrb[173].mxu0 }
0x3072   :  { %v8167_v2 = vpack.c.bf16 %v6757_v40, %v6756_v7  ;;  %v7812_v18 = vadd.f32 %v7811_v42, %v7810_v37  ;;  %v7813_v45 = vpop.f32.mrb[174].mxu0 }
0x3073   :  { %v7814_v21 = vpop.f32.mrb[175].mxu0 }
0x3074   :  { %v6742_v13 = vadd.f32 %v7812_v18, %v11006_v28  ;;  %v7815_v34 = vadd.f32 %v7814_v21, %v7813_v45  ;;  %8168 = vmatpush3.bf16.msra.mxu1 %v8167_v2 }
0x3075   :  { %8169 = vmatprep.subr.bf16.mxu1 %v8902_v53 }
0x3076   :  { %v6743_v58 = vadd.f32 %v7815_v34, %v11015_v1  ;;  %v6758_v22 = vadd.f32 %v7346_v49, %v6742_v13 }
0x3078   :  { %v6759_v57 = vadd.f32 %v7346_v49, %v6743_v58 }
0x307a   :  { %v8170_v25 = vpack.c.bf16 %v6759_v57, %v6758_v22 }
0x307c   :  { %8171 = vmatpush3.bf16.msra.mxu1 %v8170_v25 }
0x307d   :  { %8172 = vmatprep.subr.bf16.mxu1 %v8902_v53 }
0x307f   :  { %8139 = vmatmul.mubr.msk.f32.vlgmr.msra.gmra.mrb[160].mxu1 %vm1523_vm0, %v6760_v54 }
0x3080   :  { %8157 = vmatprep.mubr.msk.f32.mxu1 %vm8903_vm6, %v8904_v35  ;;  %8174 = vmatpush3.bf16.msra.mxu1 %v8173_v11 }
0x3081   :  { %8175 = vmatprep.subr.bf16.mxu1 %v8902_v53 }
0x3084   :  { %8177 = vmatpush3.bf16.msra.mxu1 %v8176_v9 }
0x3085   :  { %8178 = vmatprep.subr.bf16.mxu1 %v8902_v53 }
0x3088   :  { %8180 = vmatpush3.bf16.msra.mxu1 %v8179_v8 }
0x3089   :  { %8181 = vmatprep.subr.bf16.mxu1 %v8902_v53  ;;  %v7350_v53 = vld [vmem:[%s11377_s19] ss:$0 sm:$0xff] }
0x308c   :  { %8183 = vmatpush3.bf16.msra.mxu1 %v8182_v50 }
0x3152   :  { %v6830_v28 = vpop.f32.mrb[160].mxu1 }
0x3153   :  { %v6837_v41 = vsel %vm6836_vm7, %v6830_v28, 0.0  ;;  %v8140_v6 = vpop.f32.mrb[161].mxu1 }
0x3154   :  { %6838 = vadd.xlane.f32.xlu0 %v6837_v41 }
0x31e1   :  { %v6839_v1 = vpop.xlane.xlu0 %6838 }
0x31e2   :  { %v6840_v33 = vmul.f32 0.015625, %v6839_v1 }
0x31e4   :  { %v6841_v38 = vsub.f32 %v6830_v28, %v6840_v33 }
0x31e6   :  { %v6842_v36 = vmul.f32 %v6841_v38, %v6841_v38 }
0x31e8   :  { %v6843_v60 = vsel %vm6836_vm7, %v6842_v36, 0.0 }
0x31e9   :  { %6844 = vadd.xlane.f32.xlu1 %v6843_v60 }
0x3276   :  { %v6845_v59 = vpop.xlane.xlu1 %6844 }
0x3277   :  { %v6846_v24 = vmul.f32 0.015625, %v6845_v59 }
0x3279   :  { %v6847_v16 = vadd.f32 1e-06, %v6846_v24 }
0x327b   :  { %8868 = vrsqrt.f32 %v6847_v16 }
0x3285   :  { %v8869_v49 = vpop.eup %8868 }
0x3286   :  { %v6849_v44 = vmul.f32 %v8869_v49, %v6841_v38 }
0x3288   :  { %v6856_v31 = vmul.f32 %v7348_v27, %v6849_v44 }
0x328a   :  { %v6863_v12 = vadd.f32 %v7349_v15, %v6856_v31 }
0x328c   :  { %8158 = vmatmul.mubr.msk.f32.vlgmr.msra.gmra.mrb[162].mxu1 %vm1523_vm0, %v6863_v12 }
0x335f   :  { %v6948_v14 = vpop.f32.mrb[162].mxu1 }
0x3360   :  { %v6949_v39 = vadd.f32 %v7350_v53, %v6948_v14  ;;  %v8159_v51 = vpop.f32.mrb[163].mxu1 }
0x3362   :  { %6952 = vst [vmem:[#allocation3] sm:$0x3] %v6949_v39 }
0x3363   :  { %8881 = shalt.err (!%p8878_p4)
}
0x3364   :  { %s8882_s14 = scalar_lea.hbm %s11378_s20, 32 }
0x3365   :  { %p8883_p5 = scmp.ne.s32.totalorder %s11378_s20, %s8882_s14  ;;  %p8886_p6 = scmp.lt.u32.totalorder %s8882_s14, %s11378_s20 }
0x3367   :  { %p8888_p7 = pnand %p8886_p6, %p8883_p5 }
0x3369   :  { %8891 = shalt.err (!%p8888_p7)
}
0x336a   :  { %6962 = dma.vmem_to_hbm [thread:$0]  %s6960_s12, 32, %s11378_s20, [#allocation4]  }
0x336b   :  { %8892 = dma.done.wait [#allocation4], 32  }
0x336c   :  { %8893 = vsyncadd [#allocation4], 4294967264 }
0x336d   :  { %6966 = vsyncpa [#allocation4], 1 }

</bundles_post_ra>
